<compile_context>
chip_gen: v6e
topology: v6e:2x2x1
jax: 0.10.0
libtpu: 0.0.40
codegen_flags: <defaults>
</compile_context>

<pallas_src>
import functools
import numpy as np
import jax
import jax.numpy as jnp
from jax import lax
from jax.experimental import pallas as pl
from jax.experimental.pallas import tpu as pltpu

K = 16                                # frnn_grid_points(K=16)
_BEST = 128                           # running best-K padded to a full lane tile
_SENTINEL = np.int32(2**31 - 1)       # strictly larger than any real combined key


def _round_up(x, m):
    return -(-x // m) * m


def _frg_kernel(r2b_ref, flag_ref, q_ref, c_ref, out_ref, ws_ref, *,
                dim, tq, tc, hi_mask, low_mask):
    """One (query-tile, candidate-tile) step of the streaming radius top-K.

    r2b_ref : SMEM (1,)        i32  bitcast(float32(cutoff**2))   (scalar prefetch)
    flag_ref: SMEM (nq*nc,)    i32  1 if this tile pair can contain an in-radius
                                    pair (bounding-box test), else 0 (prefetch)
    q_ref   : VMEM (tq, d_pad) f32  query positions (rows)
    c_ref   : VMEM (d_pad, tc) f32  candidate positions, transposed, sentinel padded
    out_ref : VMEM (K, tq)     i32  lane-dense neighbor indices (written on last tile)
    ws_ref  : VMEM (tq, tc+128) i32 workspace:
              [:, :tc]  this tile's combined keys (written once per step, read-only after)
              [:, tc:]  running best-K in lanes 0..K-1, sentinel in lanes K..127
    """
    qi = pl.program_id(0)
    ci = pl.program_id(1)
    nc = pl.num_programs(1)
    sent = jnp.int32(_SENTINEL)

    @pl.when(ci == 0)
    def _init():
        ws_ref[:, tc:] = jnp.full((tq, _BEST), sent, jnp.int32)

    # Skip everything (distances, keys, merge) when the bounding boxes of this
    # query tile and candidate tile are further apart than the cutoff.
    @pl.when(flag_ref[qi * nc + ci] > 0)
    def _work():
        # ---- pairwise squared distances, per coordinate on the VPU (lane dense) ----
        d = None
        for c in range(dim):
            qc = q_ref[:, c:c + 1]                 # (tq, 1)
            cc = c_ref[c:c + 1, :]                 # (1, tc)
            diff = qc - cc                         # (tq, tc)
            d = diff * diff if d is None else d + diff * diff

        # ---- combined (distance | index) keys --------------------------------
        # d >= 0 so its f32 bit pattern is order-preserving when read as int32.
        # Radius test uses full-precision dbits; ordering uses the quantized key.
        dbits = pltpu.bitcast(d, jnp.int32)
        col = lax.broadcasted_iota(jnp.int32, (1, tc), 1) + ci * tc   # global candidate idx
        r2b = r2b_ref[0]
        keys = jnp.where(dbits <= r2b, (dbits & jnp.int32(hi_mask)) | col, sent)
        ws_ref[:, :tc] = keys                      # the ONLY full-tile store this step

        # ---- monotone-threshold top-K scan over {tile keys} U {running best} ----
        # Keys are unique per row (low bits hold a unique *global* candidate
        # index, disjoint from the indices already stored in the best slab), so
        # a strictly increasing threshold walks the union in ascending order
        # without any per-iteration write-back.
        lane = lax.broadcasted_iota(jnp.int32, (tq, _BEST), 1)

        def body(k, carry):
            prev_m, nb = carry
            w = ws_ref[...]                                        # (tq, tc+128) read-only
            m = jnp.min(jnp.where(w > prev_m, w, sent),
                        axis=-1, keepdims=True)                    # (tq, 1)
            nb = jnp.where(lane == k, m, nb)                       # place pick k in-register
            return m, nb

        init = (jnp.full((tq, 1), -1, jnp.int32),                  # all real keys are >= 0
                jnp.full((tq, _BEST), sent, jnp.int32))
        _, new_best = lax.fori_loop(0, K, body, init, unroll=True)
        ws_ref[:, tc:] = new_best                                  # single small store

    @pl.when(ci == nc - 1)
    def _finalize():
        b = ws_ref[:, tc:tc + K]                                   # (tq, K), sorted ascending
        idx = jnp.where(b == sent, jnp.int32(-1), b & jnp.int32(low_mask))
        out_ref[...] = idx.T                                       # (K, tq), lane-dense store


def _tile_bboxes(pos, n, tile, n_pad):
    """Per-tile coordinate bounding boxes over the *real* points only."""
    dim = pos.shape[1]
    pp = jnp.zeros((n_pad, dim), jnp.float32).at[:n].set(pos)
    valid = (jnp.arange(n_pad) < n)[:, None]
    lo = jnp.where(valid, pp, jnp.inf).reshape(n_pad // tile, tile, dim).min(axis=1)
    hi = jnp.where(valid, pp, -jnp.inf).reshape(n_pad // tile, tile, dim).max(axis=1)
    return lo, hi


def fixed_radius_graph(pos, cutoff, *, tq_max=256, tc_max=2048):
    """Returns (nbr_edges, center_edges, nbr_idx_mat) mirroring FixedRadiusGraph."""
    pos = jnp.asarray(pos, jnp.float32)
    n, dim = pos.shape
    d_pad = max(8, _round_up(dim, 8))

    # ---- tile sizes ---------------------------------------------------------
    n128 = _round_up(n, 128)
    # Query tile: as large as tq_max, but keep >=2 query tiles whenever n >= 256
    # so the "parallel" query axis has work for both TensorCores on v7x.
    tq = min(_round_up(tq_max, 128), n128)
    if n128 >= 256:
        tq = min(tq, max(128, ((n128 // 2) // 128) * 128))
    tq = max(tq, 128)
    # Candidate tile: big (fewer grid steps / less per-step overhead); the keys
    # workspace is tq*(tc+128)*4 bytes (~2.2 MiB at 256x2048) -- well inside VMEM.
    tc = max(128, min(_round_up(tc_max, 128), n128))
    n_pad_q = _round_up(n, tq)
    n_pad_c = _round_up(n, tc)
    nq, nc = n_pad_q // tq, n_pad_c // tc

    # Low bits of the combined key hold the global candidate index (this also
    # makes keys unique per row, which the threshold scan relies on).
    idx_bits = max(1, int(n_pad_c - 1).bit_length())
    low_mask = (1 << idx_bits) - 1
    hi_mask = ~low_mask                       # negative python int, fits int32

    # Queries: zero-padded rows (padded rows are sliced off below).
    pos_q = jnp.zeros((n_pad_q, d_pad), jnp.float32).at[:n, :dim].set(pos)
    # Candidates: transposed (coords on sublanes, points on lanes); padded
    # columns get a far-away sentinel coordinate so they never pass the cutoff
    # ((1e18)^2 = 1e36 is still finite in f32).
    pos_t = jnp.full((d_pad, n_pad_c), 1e18, jnp.float32).at[:dim, :n].set(pos.T)

    # cutoff**2 as int32 bits (runtime SMEM scalar -> no recompile per cutoff).
    r2 = jnp.asarray(cutoff, jnp.float32) ** 2
    r2b = lax.bitcast_convert_type(r2, jnp.int32).reshape(1)

    # ---- per-tile-pair skip flags (bounding-box distance test, plain JAX) ----
    qlo, qhi = _tile_bboxes(pos, n, tq, n_pad_q)          # (nq, dim)
    clo, chi = _tile_bboxes(pos, n, tc, n_pad_c)          # (nc, dim)
    gap = jnp.maximum(jnp.maximum(qlo[:, None, :] - chi[None, :, :],
                                  clo[None, :, :] - qhi[:, None, :]), 0.0)
    bbox_d2 = jnp.sum(gap * gap, axis=-1)                 # (nq, nc) lower bound on d^2
    # Tiny slack so fp rounding in the bbox test can never drop a boundary pair.
    flags = (bbox_d2 <= r2 * jnp.float32(1.00001) + jnp.float32(1e-12))
    flags = flags.astype(jnp.int32).reshape(-1)           # (nq*nc,) row-major

    kernel = functools.partial(_frg_kernel, dim=dim, tq=tq, tc=tc,
                               hi_mask=hi_mask, low_mask=low_mask)

    out = pl.pallas_call(
        kernel,
        out_shape=jax.ShapeDtypeStruct((K, n_pad_q), jnp.int32),
        grid_spec=pltpu.PrefetchScalarGridSpec(
            num_scalar_prefetch=2,                       # r2 bits + tile flags -> SMEM
            grid=(nq, nc),                               # candidate (reduction) axis last
            in_specs=[
                pl.BlockSpec((tq, d_pad), lambda qi, ci, r2s, fl: (qi, 0)),
                pl.BlockSpec((d_pad, tc), lambda qi, ci, r2s, fl: (0, ci)),
            ],
            out_specs=pl.BlockSpec((K, tq), lambda qi, ci, r2s, fl: (0, qi)),
            scratch_shapes=[
                pltpu.VMEM((tq, tc + _BEST), jnp.int32),  # keys | running best slab
            ],
        ),
        compiler_params=pltpu.CompilerParams(
            dimension_semantics=("parallel", "arbitrary")),
    )(r2b, flags, pos_q, pos_t)

    nbr_idx_mat = out[:, :n].T                           # (N, K) int32, sorted, -1 padded

    # TODO(synk): dgl.graph construction (dynamic-shaped edge list) has no Pallas
    # equivalent; build it host-side from the padded neighbor-index matrix.
    nbr_np = np.asarray(jax.device_get(nbr_idx_mat))
    center_np = np.broadcast_to(np.arange(n).reshape(-1, 1), nbr_np.shape)
    mask = nbr_np != -1
    return nbr_np[mask], center_np[mask], nbr_idx_mat


# ----------------------------- validation helpers -----------------------------

def _pairwise_sqdist_np(pos):
    pos = np.asarray(pos, np.float32)
    diff = pos[:, None, :] - pos[None, :, :]
    return np.sum(diff * diff, axis=-1, dtype=np.float32)


def _check(pos_np, cutoff, got, tol=1e-4):
    n = pos_np.shape[0]
    r2 = float(np.float32(cutoff) ** 2)
    d = _pairwise_sqdist_np(pos_np)
    assert got.shape == (n, K) and got.dtype == np.int32
    for i in range(n):
        row = got[i]
        valid_mask = row != -1
        if valid_mask.any():
            last = int(np.max(np.nonzero(valid_mask)[0]))
            assert valid_mask[: last + 1].all(), f"row {i}: -1 before a valid entry"
        valid = row[valid_mask]
        assert len(set(valid.tolist())) == len(valid), f"row {i}: duplicate neighbors"
        assert np.all((valid >= 0) & (valid < n)), f"row {i}: index out of range"
        assert i in set(valid.tolist()), f"row {i}: missing self edge"
        dv = d[i, valid]
        assert np.all(dv <= r2 + tol), f"row {i}: neighbor outside radius"
        assert np.all(np.diff(dv) >= -tol), f"row {i}: not sorted by distance"
        n_lo = int(np.sum(d[i] <= r2 - tol))
        n_hi = int(np.sum(d[i] <= r2 + tol))
        assert min(K, n_lo) <= len(valid) <= min(K, n_hi), f"row {i}: bad count"
        unsel = np.setdiff1d(np.nonzero(d[i] <= r2 - tol)[0], valid)
        if len(valid) < K:
            assert unsel.size == 0, f"row {i}: missed in-radius neighbor"
        elif unsel.size:
            assert d[i, unsel].min() >= dv.max() - tol, f"row {i}: not a top-K set"


if __name__ == "__main__":
    key = jax.random.PRNGKey(0)

    # Case 1: the module's typical small input (single query/candidate tile).
    N, D = 48, 3
    cutoff = 0.5
    pos = jax.random.uniform(key, (N, D), dtype=jnp.float32)
    nbr_edges, center_edges, nbr_idx_mat = fixed_radius_graph(pos, cutoff)
    jax.block_until_ready(nbr_idx_mat)
    got = np.asarray(jax.device_get(nbr_idx_mat))
    _check(np.asarray(jax.device_get(pos)), cutoff, got)
    assert nbr_edges.shape == center_edges.shape
    assert nbr_edges.shape[0] == int((got != -1).sum())

    # Case 2: multi-tile streaming merge (3x3 grid of tiles), no tiles skipped.
    N2 = 300
    pos2 = jax.random.uniform(jax.random.fold_in(key, 1), (N2, 3),
                              dtype=jnp.float32) * 2.0
    cutoff2 = 0.35
    _, _, nbr_idx_mat2 = fixed_radius_graph(pos2, cutoff2, tq_max=128, tc_max=128)
    jax.block_until_ready(nbr_idx_mat2)
    _check(np.asarray(jax.device_get(pos2)), cutoff2,
           np.asarray(jax.device_get(nbr_idx_mat2)))

    # Case 3: two well-separated clusters with spatially-ordered input ->
    # exercises the prefetched bounding-box tile-skip path (cross-cluster tile
    # pairs are skipped) plus the saturated-top-K path.
    N3 = 256
    base = jax.random.uniform(jax.random.fold_in(key, 2), (N3, 3),
                              dtype=jnp.float32)
    x_off = jnp.where(jnp.arange(N3)[:, None] < N3 // 2, 0.0, 10.0)
    pos3 = base + jnp.concatenate([x_off, jnp.zeros((N3, 2), jnp.float32)], axis=1)
    cutoff3 = 0.5
    _, _, nbr_idx_mat3 = fixed_radius_graph(pos3, cutoff3, tq_max=128, tc_max=128)
    jax.block_until_ready(nbr_idx_mat3)
    _check(np.asarray(jax.device_get(pos3)), cutoff3,
           np.asarray(jax.device_get(nbr_idx_mat3)))

    print("KERNEL_OK")
</pallas_src>

<mosaic_0001>
module attributes {stable_mosaic.version = 11 : i64} {
  func.func @_frg_kernel(%arg0: i32, %arg1: i32, %arg2: memref<1xi32, #tpu.memory_space<smem>>, %arg3: memref<1xi32, #tpu.memory_space<smem>>, %arg4: memref<128x8xf32, #tpu.memory_space<vmem>>, %arg5: memref<8x128xf32, #tpu.memory_space<vmem>>, %arg6: memref<16x128xi32, #tpu.memory_space<vmem>>, %arg7: memref<128x256xi32, #tpu.memory_space<vmem>>) attributes {dimension_semantics = [#tpu.dimension_semantics<parallel>, #tpu.dimension_semantics<arbitrary>], iteration_bounds = array<i64: 1, 1>, scalar_prefetch = 2 : i64, scratch_operands = 1 : i64, tpu.core_type = #tpu.core_type<tc>, window_params = [{transform_indices = @transform_0, window_bounds = array<i64: 128, 8>}, {transform_indices = @transform_1, window_bounds = array<i64: 8, 128>}, {transform_indices = @transform_2, window_bounds = array<i64: 16, 128>}]} {
    %c0_i32 = arith.constant 0 : i32
    %0 = arith.cmpi eq, %arg1, %c0_i32 : i32
    %1 = arith.extui %0 : i1 to i32
    %c2147483647_i32 = arith.constant 2147483647 : i32
    %c0_i32_0 = arith.constant 0 : i32
    %2 = arith.cmpi ne, %1, %c0_i32_0 : i32
    scf.if %2 {
      %13 = vector.broadcast %c2147483647_i32 : i32 to vector<128x128xi32>
      %c0 = arith.constant 0 : index
      %c128 = arith.constant 128 : index
      %14 = vector.load %arg7[%c0, %c128] : memref<128x256xi32, #tpu.memory_space<vmem>>, vector<128x128xi32>
      tpu.vector_store %arg7[%c0, %c128], %13 {strides = array<i32>} : memref<128x256xi32, #tpu.memory_space<vmem>>, vector<128x128xi32>,
    } else {
    }
    %c1_i32 = arith.constant 1 : i32
    %3 = arith.muli %arg0, %c1_i32 : i32
    %4 = arith.addi %3, %arg1 : i32
    %5 = arith.index_cast %4 : i32 to index
    %6 = memref.load %arg3[%5] : memref<1xi32, #tpu.memory_space<smem>>
    %c0_i32_1 = arith.constant 0 : i32
    %7 = arith.cmpi sgt, %6, %c0_i32_1 : i32
    %8 = arith.extui %7 : i1 to i32
    %c2147483647_i32_2 = arith.constant 2147483647 : i32
    %c0_i32_3 = arith.constant 0 : i32
    %9 = arith.cmpi ne, %8, %c0_i32_3 : i32
    scf.if %9 {
      %c0 = arith.constant 0 : index
      %c0_7 = arith.constant 0 : index
      %13 = vector.load %arg4[%c0, %c0_7] : memref<128x8xf32, #tpu.memory_space<vmem>>, vector<128x1xf32>
      %c0_8 = arith.constant 0 : index
      %c0_9 = arith.constant 0 : index
      %14 = vector.load %arg5[%c0_8, %c0_9] : memref<8x128xf32, #tpu.memory_space<vmem>>, vector<1x128xf32>
      %15 = vector.broadcast %13 : vector<128x1xf32> to vector<128x128xf32>
      %16 = vector.broadcast %14 : vector<1x128xf32> to vector<128x128xf32>
      %17 = arith.subf %15, %16 : vector<128x128xf32>
      %18 = arith.mulf %17, %17 : vector<128x128xf32>
      %c0_10 = arith.constant 0 : index
      %c1 = arith.constant 1 : index
      %19 = vector.load %arg4[%c0_10, %c1] : memref<128x8xf32, #tpu.memory_space<vmem>>, vector<128x1xf32>
      %c1_11 = arith.constant 1 : index
      %c0_12 = arith.constant 0 : index
      %20 = vector.load %arg5[%c1_11, %c0_12] : memref<8x128xf32, #tpu.memory_space<vmem>>, vector<1x128xf32>
      %21 = vector.broadcast %19 : vector<128x1xf32> to vector<128x128xf32>
      %22 = vector.broadcast %20 : vector<1x128xf32> to vector<128x128xf32>
      %23 = arith.subf %21, %22 : vector<128x128xf32>
      %24 = arith.mulf %23, %23 : vector<128x128xf32>
      %25 = arith.addf %18, %24 : vector<128x128xf32>
      %c0_13 = arith.constant 0 : index
      %c2 = arith.constant 2 : index
      %26 = vector.load %arg4[%c0_13, %c2] : memref<128x8xf32, #tpu.memory_space<vmem>>, vector<128x1xf32>
      %c2_14 = arith.constant 2 : index
      %c0_15 = arith.constant 0 : index
      %27 = vector.load %arg5[%c2_14, %c0_15] : memref<8x128xf32, #tpu.memory_space<vmem>>, vector<1x128xf32>
      %28 = vector.broadcast %26 : vector<128x1xf32> to vector<128x128xf32>
      %29 = vector.broadcast %27 : vector<1x128xf32> to vector<128x128xf32>
      %30 = arith.subf %28, %29 : vector<128x128xf32>
      %31 = arith.mulf %30, %30 : vector<128x128xf32>
      %32 = arith.addf %25, %31 : vector<128x128xf32>
      %33 = tpu.bitcast %32 : vector<128x128xf32> -> vector<128x128xi32>
      %34 = tpu.iota {dimensions = array<i32: 1>} : vector<1x128xi32>
      %c128_i32 = arith.constant 128 : i32
      %35 = arith.muli %arg1, %c128_i32 : i32
      %36 = vector.broadcast %35 : i32 to vector<1x128xi32>
      %37 = arith.addi %34, %36 : vector<1x128xi32>
      %c0_16 = arith.constant 0 : index
      %38 = memref.load %arg2[%c0_16] : memref<1xi32, #tpu.memory_space<smem>>
      %39 = vector.broadcast %38 : i32 to vector<128x128xi32>
      %40 = arith.cmpi sle, %33, %39 : vector<128x128xi32>
      %c-128_i32 = arith.constant -128 : i32
      %41 = vector.broadcast %c-128_i32 : i32 to vector<128x128xi32>
      %42 = arith.andi %33, %41 : vector<128x128xi32>
      %43 = vector.broadcast %37 : vector<1x128xi32> to vector<128x128xi32>
      %44 = arith.ori %42, %43 : vector<128x128xi32>
      %45 = vector.broadcast %c2147483647_i32_2 : i32 to vector<128x128xi32>
      %46 = arith.select %40, %44, %45 : vector<128x128xi1>, vector<128x128xi32>
      %c0_17 = arith.constant 0 : index
      %c0_18 = arith.constant 0 : index
      %47 = vector.load %arg7[%c0_17, %c0_18] : memref<128x256xi32, #tpu.memory_space<vmem>>, vector<128x128xi32>
      tpu.vector_store %arg7[%c0_17, %c0_18], %46 {strides = array<i32>} : memref<128x256xi32, #tpu.memory_space<vmem>>, vector<128x128xi32>,
      %48 = tpu.iota {dimensions = array<i32: 1>} : vector<128x128xi32>
      %c-1_i32 = arith.constant -1 : i32
      %49 = vector.broadcast %c-1_i32 : i32 to vector<128x1xi32>
      %50 = vector.broadcast %c2147483647_i32_2 : i32 to vector<128x128xi32>
      %c0_i32_19 = arith.constant 0 : i32
      %c0_20 = arith.constant 0 : index
      %c0_21 = arith.constant 0 : index
      %51 = vector.load %arg7[%c0_20, %c0_21] : memref<128x256xi32, #tpu.memory_space<vmem>>, vector<128x256xi32>
      %52 = vector.broadcast %49 : vector<128x1xi32> to vector<128x256xi32>
      %53 = arith.cmpi sgt, %51, %52 : vector<128x256xi32>
      %54 = vector.broadcast %c2147483647_i32_2 : i32 to vector<128x256xi32>
      %55 = arith.select %53, %51, %54 : vector<128x256xi1>, vector<128x256xi32>
      %cst = arith.constant dense<2147483647> : vector<128xi32>
      %56 = vector.multi_reduction <minsi>, %55, %cst [1] : vector<128x256xi32> to vector<128xi32>
      %57 = vector.shape_cast %56 : vector<128xi32> to vector<128x1xi32>
      %58 = vector.broadcast %c0_i32_19 : i32 to vector<128x128xi32>
      %59 = arith.cmpi eq, %48, %58 : vector<128x128xi32>
      %60 = vector.shape_cast %57 : vector<128x1xi32> to vector<128x1xi32>
      %61 = vector.broadcast %60 : vector<128x1xi32> to vector<128x128xi32>
      %62 = arith.select %59, %61, %50 : vector<128x128xi1>, vector<128x128xi32>
      %c1_i32_22 = arith.constant 1 : i32
      %c0_23 = arith.constant 0 : index
      %c0_24 = arith.constant 0 : index
      %63 = vector.load %arg7[%c0_23, %c0_24] : memref<128x256xi32, #tpu.memory_space<vmem>>, vector<128x256xi32>
      %64 = vector.broadcast %57 : vector<128x1xi32> to vector<128x256xi32>
      %65 = arith.cmpi sgt, %63, %64 : vector<128x256xi32>
      %66 = vector.broadcast %c2147483647_i32_2 : i32 to vector<128x256xi32>
      %67 = arith.select %65, %63, %66 : vector<128x256xi1>, vector<128x256xi32>
      %cst_25 = arith.constant dense<2147483647> : vector<128xi32>
      %68 = vector.multi_reduction <minsi>, %67, %cst_25 [1] : vector<128x256xi32> to vector<128xi32>
      %69 = vector.shape_cast %68 : vector<128xi32> to vector<128x1xi32>
      %70 = vector.broadcast %c1_i32_22 : i32 to vector<128x128xi32>
      %71 = arith.cmpi eq, %48, %70 : vector<128x128xi32>
      %72 = vector.shape_cast %69 : vector<128x1xi32> to vector<128x1xi32>
      %73 = vector.broadcast %72 : vector<128x1xi32> to vector<128x128xi32>
      %74 = arith.select %71, %73, %62 : vector<128x128xi1>, vector<128x128xi32>
      %c2_i32 = arith.constant 2 : i32
      %c0_26 = arith.constant 0 : index
      %c0_27 = arith.constant 0 : index
      %75 = vector.load %arg7[%c0_26, %c0_27] : memref<128x256xi32, #tpu.memory_space<vmem>>, vector<128x256xi32>
      %76 = vector.broadcast %69 : vector<128x1xi32> to vector<128x256xi32>
      %77 = arith.cmpi sgt, %75, %76 : vector<128x256xi32>
      %78 = vector.broadcast %c2147483647_i32_2 : i32 to vector<128x256xi32>
      %79 = arith.select %77, %75, %78 : vector<128x256xi1>, vector<128x256xi32>
      %cst_28 = arith.constant dense<2147483647> : vector<128xi32>
      %80 = vector.multi_reduction <minsi>, %79, %cst_28 [1] : vector<128x256xi32> to vector<128xi32>
      %81 = vector.shape_cast %80 : vector<128xi32> to vector<128x1xi32>
      %82 = vector.broadcast %c2_i32 : i32 to vector<128x128xi32>
      %83 = arith.cmpi eq, %48, %82 : vector<128x128xi32>
      %84 = vector.shape_cast %81 : vector<128x1xi32> to vector<128x1xi32>
      %85 = vector.broadcast %84 : vector<128x1xi32> to vector<128x128xi32>
      %86 = arith.select %83, %85, %74 : vector<128x128xi1>, vector<128x128xi32>
      %c3_i32 = arith.constant 3 : i32
      %c0_29 = arith.constant 0 : index
      %c0_30 = arith.constant 0 : index
      %87 = vector.load %arg7[%c0_29, %c0_30] : memref<128x256xi32, #tpu.memory_space<vmem>>, vector<128x256xi32>
      %88 = vector.broadcast %81 : vector<128x1xi32> to vector<128x256xi32>
      %89 = arith.cmpi sgt, %87, %88 : vector<128x256xi32>
      %90 = vector.broadcast %c2147483647_i32_2 : i32 to vector<128x256xi32>
      %91 = arith.select %89, %87, %90 : vector<128x256xi1>, vector<128x256xi32>
      %cst_31 = arith.constant dense<2147483647> : vector<128xi32>
      %92 = vector.multi_reduction <minsi>, %91, %cst_31 [1] : vector<128x256xi32> to vector<128xi32>
      %93 = vector.shape_cast %92 : vector<128xi32> to vector<128x1xi32>
      %94 = vector.broadcast %c3_i32 : i32 to vector<128x128xi32>
      %95 = arith.cmpi eq, %48, %94 : vector<128x128xi32>
      %96 = vector.shape_cast %93 : vector<128x1xi32> to vector<128x1xi32>
      %97 = vector.broadcast %96 : vector<128x1xi32> to vector<128x128xi32>
      %98 = arith.select %95, %97, %86 : vector<128x128xi1>, vector<128x128xi32>
      %c4_i32 = arith.constant 4 : i32
      %c0_32 = arith.constant 0 : index
      %c0_33 = arith.constant 0 : index
      %99 = vector.load %arg7[%c0_32, %c0_33] : memref<128x256xi32, #tpu.memory_space<vmem>>, vector<128x256xi32>
      %100 = vector.broadcast %93 : vector<128x1xi32> to vector<128x256xi32>
      %101 = arith.cmpi sgt, %99, %100 : vector<128x256xi32>
      %102 = vector.broadcast %c2147483647_i32_2 : i32 to vector<128x256xi32>
      %103 = arith.select %101, %99, %102 : vector<128x256xi1>, vector<128x256xi32>
      %cst_34 = arith.constant dense<2147483647> : vector<128xi32>
      %104 = vector.multi_reduction <minsi>, %103, %cst_34 [1] : vector<128x256xi32> to vector<128xi32>
      %105 = vector.shape_cast %104 : vector<128xi32> to vector<128x1xi32>
      %106 = vector.broadcast %c4_i32 : i32 to vector<128x128xi32>
      %107 = arith.cmpi eq, %48, %106 : vector<128x128xi32>
      %108 = vector.shape_cast %105 : vector<128x1xi32> to vector<128x1xi32>
      %109 = vector.broadcast %108 : vector<128x1xi32> to vector<128x128xi32>
      %110 = arith.select %107, %109, %98 : vector<128x128xi1>, vector<128x128xi32>
      %c5_i32 = arith.constant 5 : i32
      %c0_35 = arith.constant 0 : index
      %c0_36 = arith.constant 0 : index
      %111 = vector.load %arg7[%c0_35, %c0_36] : memref<128x256xi32, #tpu.memory_space<vmem>>, vector<128x256xi32>
      %112 = vector.broadcast %105 : vector<128x1xi32> to vector<128x256xi32>
      %113 = arith.cmpi sgt, %111, %112 : vector<128x256xi32>
      %114 = vector.broadcast %c2147483647_i32_2 : i32 to vector<128x256xi32>
      %115 = arith.select %113, %111, %114 : vector<128x256xi1>, vector<128x256xi32>
      %cst_37 = arith.constant dense<2147483647> : vector<128xi32>
      %116 = vector.multi_reduction <minsi>, %115, %cst_37 [1] : vector<128x256xi32> to vector<128xi32>
      %117 = vector.shape_cast %116 : vector<128xi32> to vector<128x1xi32>
      %118 = vector.broadcast %c5_i32 : i32 to vector<128x128xi32>
      %119 = arith.cmpi eq, %48, %118 : vector<128x128xi32>
      %120 = vector.shape_cast %117 : vector<128x1xi32> to vector<128x1xi32>
      %121 = vector.broadcast %120 : vector<128x1xi32> to vector<128x128xi32>
      %122 = arith.select %119, %121, %110 : vector<128x128xi1>, vector<128x128xi32>
      %c6_i32 = arith.constant 6 : i32
      %c0_38 = arith.constant 0 : index
      %c0_39 = arith.constant 0 : index
      %123 = vector.load %arg7[%c0_38, %c0_39] : memref<128x256xi32, #tpu.memory_space<vmem>>, vector<128x256xi32>
      %124 = vector.broadcast %117 : vector<128x1xi32> to vector<128x256xi32>
      %125 = arith.cmpi sgt, %123, %124 : vector<128x256xi32>
      %126 = vector.broadcast %c2147483647_i32_2 : i32 to vector<128x256xi32>
      %127 = arith.select %125, %123, %126 : vector<128x256xi1>, vector<128x256xi32>
      %cst_40 = arith.constant dense<2147483647> : vector<128xi32>
      %128 = vector.multi_reduction <minsi>, %127, %cst_40 [1] : vector<128x256xi32> to vector<128xi32>
      %129 = vector.shape_cast %128 : vector<128xi32> to vector<128x1xi32>
      %130 = vector.broadcast %c6_i32 : i32 to vector<128x128xi32>
      %131 = arith.cmpi eq, %48, %130 : vector<128x128xi32>
      %132 = vector.shape_cast %129 : vector<128x1xi32> to vector<128x1xi32>
      %133 = vector.broadcast %132 : vector<128x1xi32> to vector<128x128xi32>
      %134 = arith.select %131, %133, %122 : vector<128x128xi1>, vector<128x128xi32>
      %c7_i32 = arith.constant 7 : i32
      %c0_41 = arith.constant 0 : index
      %c0_42 = arith.constant 0 : index
      %135 = vector.load %arg7[%c0_41, %c0_42] : memref<128x256xi32, #tpu.memory_space<vmem>>, vector<128x256xi32>
      %136 = vector.broadcast %129 : vector<128x1xi32> to vector<128x256xi32>
      %137 = arith.cmpi sgt, %135, %136 : vector<128x256xi32>
      %138 = vector.broadcast %c2147483647_i32_2 : i32 to vector<128x256xi32>
      %139 = arith.select %137, %135, %138 : vector<128x256xi1>, vector<128x256xi32>
      %cst_43 = arith.constant dense<2147483647> : vector<128xi32>
      %140 = vector.multi_reduction <minsi>, %139, %cst_43 [1] : vector<128x256xi32> to vector<128xi32>
      %141 = vector.shape_cast %140 : vector<128xi32> to vector<128x1xi32>
      %142 = vector.broadcast %c7_i32 : i32 to vector<128x128xi32>
      %143 = arith.cmpi eq, %48, %142 : vector<128x128xi32>
      %144 = vector.shape_cast %141 : vector<128x1xi32> to vector<128x1xi32>
      %145 = vector.broadcast %144 : vector<128x1xi32> to vector<128x128xi32>
      %146 = arith.select %143, %145, %134 : vector<128x128xi1>, vector<128x128xi32>
      %c8_i32 = arith.constant 8 : i32
      %c0_44 = arith.constant 0 : index
      %c0_45 = arith.constant 0 : index
      %147 = vector.load %arg7[%c0_44, %c0_45] : memref<128x256xi32, #tpu.memory_space<vmem>>, vector<128x256xi32>
      %148 = vector.broadcast %141 : vector<128x1xi32> to vector<128x256xi32>
      %149 = arith.cmpi sgt, %147, %148 : vector<128x256xi32>
      %150 = vector.broadcast %c2147483647_i32_2 : i32 to vector<128x256xi32>
      %151 = arith.select %149, %147, %150 : vector<128x256xi1>, vector<128x256xi32>
      %cst_46 = arith.constant dense<2147483647> : vector<128xi32>
      %152 = vector.multi_reduction <minsi>, %151, %cst_46 [1] : vector<128x256xi32> to vector<128xi32>
      %153 = vector.shape_cast %152 : vector<128xi32> to vector<128x1xi32>
      %154 = vector.broadcast %c8_i32 : i32 to vector<128x128xi32>
      %155 = arith.cmpi eq, %48, %154 : vector<128x128xi32>
      %156 = vector.shape_cast %153 : vector<128x1xi32> to vector<128x1xi32>
      %157 = vector.broadcast %156 : vector<128x1xi32> to vector<128x128xi32>
      %158 = arith.select %155, %157, %146 : vector<128x128xi1>, vector<128x128xi32>
      %c9_i32 = arith.constant 9 : i32
      %c0_47 = arith.constant 0 : index
      %c0_48 = arith.constant 0 : index
      %159 = vector.load %arg7[%c0_47, %c0_48] : memref<128x256xi32, #tpu.memory_space<vmem>>, vector<128x256xi32>
      %160 = vector.broadcast %153 : vector<128x1xi32> to vector<128x256xi32>
      %161 = arith.cmpi sgt, %159, %160 : vector<128x256xi32>
      %162 = vector.broadcast %c2147483647_i32_2 : i32 to vector<128x256xi32>
      %163 = arith.select %161, %159, %162 : vector<128x256xi1>, vector<128x256xi32>
      %cst_49 = arith.constant dense<2147483647> : vector<128xi32>
      %164 = vector.multi_reduction <minsi>, %163, %cst_49 [1] : vector<128x256xi32> to vector<128xi32>
      %165 = vector.shape_cast %164 : vector<128xi32> to vector<128x1xi32>
      %166 = vector.broadcast %c9_i32 : i32 to vector<128x128xi32>
      %167 = arith.cmpi eq, %48, %166 : vector<128x128xi32>
      %168 = vector.shape_cast %165 : vector<128x1xi32> to vector<128x1xi32>
      %169 = vector.broadcast %168 : vector<128x1xi32> to vector<128x128xi32>
      %170 = arith.select %167, %169, %158 : vector<128x128xi1>, vector<128x128xi32>
      %c10_i32 = arith.constant 10 : i32
      %c0_50 = arith.constant 0 : index
      %c0_51 = arith.constant 0 : index
      %171 = vector.load %arg7[%c0_50, %c0_51] : memref<128x256xi32, #tpu.memory_space<vmem>>, vector<128x256xi32>
      %172 = vector.broadcast %165 : vector<128x1xi32> to vector<128x256xi32>
      %173 = arith.cmpi sgt, %171, %172 : vector<128x256xi32>
      %174 = vector.broadcast %c2147483647_i32_2 : i32 to vector<128x256xi32>
      %175 = arith.select %173, %171, %174 : vector<128x256xi1>, vector<128x256xi32>
      %cst_52 = arith.constant dense<2147483647> : vector<128xi32>
      %176 = vector.multi_reduction <minsi>, %175, %cst_52 [1] : vector<128x256xi32> to vector<128xi32>
      %177 = vector.shape_cast %176 : vector<128xi32> to vector<128x1xi32>
      %178 = vector.broadcast %c10_i32 : i32 to vector<128x128xi32>
      %179 = arith.cmpi eq, %48, %178 : vector<128x128xi32>
      %180 = vector.shape_cast %177 : vector<128x1xi32> to vector<128x1xi32>
      %181 = vector.broadcast %180 : vector<128x1xi32> to vector<128x128xi32>
      %182 = arith.select %179, %181, %170 : vector<128x128xi1>, vector<128x128xi32>
      %c11_i32 = arith.constant 11 : i32
      %c0_53 = arith.constant 0 : index
      %c0_54 = arith.constant 0 : index
      %183 = vector.load %arg7[%c0_53, %c0_54] : memref<128x256xi32, #tpu.memory_space<vmem>>, vector<128x256xi32>
      %184 = vector.broadcast %177 : vector<128x1xi32> to vector<128x256xi32>
      %185 = arith.cmpi sgt, %183, %184 : vector<128x256xi32>
      %186 = vector.broadcast %c2147483647_i32_2 : i32 to vector<128x256xi32>
      %187 = arith.select %185, %183, %186 : vector<128x256xi1>, vector<128x256xi32>
      %cst_55 = arith.constant dense<2147483647> : vector<128xi32>
      %188 = vector.multi_reduction <minsi>, %187, %cst_55 [1] : vector<128x256xi32> to vector<128xi32>
      %189 = vector.shape_cast %188 : vector<128xi32> to vector<128x1xi32>
      %190 = vector.broadcast %c11_i32 : i32 to vector<128x128xi32>
      %191 = arith.cmpi eq, %48, %190 : vector<128x128xi32>
      %192 = vector.shape_cast %189 : vector<128x1xi32> to vector<128x1xi32>
      %193 = vector.broadcast %192 : vector<128x1xi32> to vector<128x128xi32>
      %194 = arith.select %191, %193, %182 : vector<128x128xi1>, vector<128x128xi32>
      %c12_i32 = arith.constant 12 : i32
      %c0_56 = arith.constant 0 : index
      %c0_57 = arith.constant 0 : index
      %195 = vector.load %arg7[%c0_56, %c0_57] : memref<128x256xi32, #tpu.memory_space<vmem>>, vector<128x256xi32>
      %196 = vector.broadcast %189 : vector<128x1xi32> to vector<128x256xi32>
      %197 = arith.cmpi sgt, %195, %196 : vector<128x256xi32>
      %198 = vector.broadcast %c2147483647_i32_2 : i32 to vector<128x256xi32>
      %199 = arith.select %197, %195, %198 : vector<128x256xi1>, vector<128x256xi32>
      %cst_58 = arith.constant dense<2147483647> : vector<128xi32>
      %200 = vector.multi_reduction <minsi>, %199, %cst_58 [1] : vector<128x256xi32> to vector<128xi32>
      %201 = vector.shape_cast %200 : vector<128xi32> to vector<128x1xi32>
      %202 = vector.broadcast %c12_i32 : i32 to vector<128x128xi32>
      %203 = arith.cmpi eq, %48, %202 : vector<128x128xi32>
      %204 = vector.shape_cast %201 : vector<128x1xi32> to vector<128x1xi32>
      %205 = vector.broadcast %204 : vector<128x1xi32> to vector<128x128xi32>
      %206 = arith.select %203, %205, %194 : vector<128x128xi1>, vector<128x128xi32>
      %c13_i32 = arith.constant 13 : i32
      %c0_59 = arith.constant 0 : index
      %c0_60 = arith.constant 0 : index
      %207 = vector.load %arg7[%c0_59, %c0_60] : memref<128x256xi32, #tpu.memory_space<vmem>>, vector<128x256xi32>
      %208 = vector.broadcast %201 : vector<128x1xi32> to vector<128x256xi32>
      %209 = arith.cmpi sgt, %207, %208 : vector<128x256xi32>
      %210 = vector.broadcast %c2147483647_i32_2 : i32 to vector<128x256xi32>
      %211 = arith.select %209, %207, %210 : vector<128x256xi1>, vector<128x256xi32>
      %cst_61 = arith.constant dense<2147483647> : vector<128xi32>
      %212 = vector.multi_reduction <minsi>, %211, %cst_61 [1] : vector<128x256xi32> to vector<128xi32>
      %213 = vector.shape_cast %212 : vector<128xi32> to vector<128x1xi32>
      %214 = vector.broadcast %c13_i32 : i32 to vector<128x128xi32>
      %215 = arith.cmpi eq, %48, %214 : vector<128x128xi32>
      %216 = vector.shape_cast %213 : vector<128x1xi32> to vector<128x1xi32>
      %217 = vector.broadcast %216 : vector<128x1xi32> to vector<128x128xi32>
      %218 = arith.select %215, %217, %206 : vector<128x128xi1>, vector<128x128xi32>
      %c14_i32 = arith.constant 14 : i32
      %c0_62 = arith.constant 0 : index
      %c0_63 = arith.constant 0 : index
      %219 = vector.load %arg7[%c0_62, %c0_63] : memref<128x256xi32, #tpu.memory_space<vmem>>, vector<128x256xi32>
      %220 = vector.broadcast %213 : vector<128x1xi32> to vector<128x256xi32>
      %221 = arith.cmpi sgt, %219, %220 : vector<128x256xi32>
      %222 = vector.broadcast %c2147483647_i32_2 : i32 to vector<128x256xi32>
      %223 = arith.select %221, %219, %222 : vector<128x256xi1>, vector<128x256xi32>
      %cst_64 = arith.constant dense<2147483647> : vector<128xi32>
      %224 = vector.multi_reduction <minsi>, %223, %cst_64 [1] : vector<128x256xi32> to vector<128xi32>
      %225 = vector.shape_cast %224 : vector<128xi32> to vector<128x1xi32>
      %226 = vector.broadcast %c14_i32 : i32 to vector<128x128xi32>
      %227 = arith.cmpi eq, %48, %226 : vector<128x128xi32>
      %228 = vector.shape_cast %225 : vector<128x1xi32> to vector<128x1xi32>
      %229 = vector.broadcast %228 : vector<128x1xi32> to vector<128x128xi32>
      %230 = arith.select %227, %229, %218 : vector<128x128xi1>, vector<128x128xi32>
      %c15_i32 = arith.constant 15 : i32
      %c0_65 = arith.constant 0 : index
      %c0_66 = arith.constant 0 : index
      %231 = vector.load %arg7[%c0_65, %c0_66] : memref<128x256xi32, #tpu.memory_space<vmem>>, vector<128x256xi32>
      %232 = vector.broadcast %225 : vector<128x1xi32> to vector<128x256xi32>
      %233 = arith.cmpi sgt, %231, %232 : vector<128x256xi32>
      %234 = vector.broadcast %c2147483647_i32_2 : i32 to vector<128x256xi32>
      %235 = arith.select %233, %231, %234 : vector<128x256xi1>, vector<128x256xi32>
      %cst_67 = arith.constant dense<2147483647> : vector<128xi32>
      %236 = vector.multi_reduction <minsi>, %235, %cst_67 [1] : vector<128x256xi32> to vector<128xi32>
      %237 = vector.shape_cast %236 : vector<128xi32> to vector<128x1xi32>
      %238 = vector.broadcast %c15_i32 : i32 to vector<128x128xi32>
      %239 = arith.cmpi eq, %48, %238 : vector<128x128xi32>
      %240 = vector.shape_cast %237 : vector<128x1xi32> to vector<128x1xi32>
      %241 = vector.broadcast %240 : vector<128x1xi32> to vector<128x128xi32>
      %242 = arith.select %239, %241, %230 : vector<128x128xi1>, vector<128x128xi32>
      %c16_i32 = arith.constant 16 : i32
      %c0_68 = arith.constant 0 : index
      %c128 = arith.constant 128 : index
      %243 = vector.load %arg7[%c0_68, %c128] : memref<128x256xi32, #tpu.memory_space<vmem>>, vector<128x128xi32>
      tpu.vector_store %arg7[%c0_68, %c128], %242 {strides = array<i32>} : memref<128x256xi32, #tpu.memory_space<vmem>>, vector<128x128xi32>,
    } else {
    }
    %c0_i32_4 = arith.constant 0 : i32
    %10 = arith.cmpi eq, %arg1, %c0_i32_4 : i32
    %11 = arith.extui %10 : i1 to i32
    %c2147483647_i32_5 = arith.constant 2147483647 : i32
    %c0_i32_6 = arith.constant 0 : i32
    %12 = arith.cmpi ne, %11, %c0_i32_6 : i32
    scf.if %12 {
      %c0 = arith.constant 0 : index
      %c128 = arith.constant 128 : index
      %13 = vector.load %arg7[%c0, %c128] : memref<128x256xi32, #tpu.memory_space<vmem>>, vector<128x16xi32>
      %14 = vector.broadcast %c2147483647_i32_5 : i32 to vector<128x16xi32>
      %15 = arith.cmpi eq, %13, %14 : vector<128x16xi32>
      %c127_i32 = arith.constant 127 : i32
      %16 = vector.broadcast %c127_i32 : i32 to vector<128x16xi32>
      %17 = arith.andi %13, %16 : vector<128x16xi32>
      %c-1_i32 = arith.constant -1 : i32
      %18 = vector.broadcast %c-1_i32 : i32 to vector<128x16xi32>
      %19 = arith.select %15, %18, %17 : vector<128x16xi1>, vector<128x16xi32>
      %20 = tpu.transpose %19, [1, 0] : vector<128x16xi32> -> vector<16x128xi32>
      %c0_7 = arith.constant 0 : index
      %c0_8 = arith.constant 0 : index
      %21 = vector.load %arg6[%c0_7, %c0_8] : memref<16x128xi32, #tpu.memory_space<vmem>>, vector<16x128xi32>
      tpu.vector_store %arg6[%c0_7, %c0_8], %20 {strides = array<i32>} : memref<16x128xi32, #tpu.memory_space<vmem>>, vector<16x128xi32>,
    } else {
    }
    return
  }
  func.func @transform_0(%arg0: i32, %arg1: i32, %arg2: memref<1xi32, #tpu.memory_space<smem>>, %arg3: memref<1xi32, #tpu.memory_space<smem>>) -> (i32, i32) {
    %c0_i32 = arith.constant 0 : i32
    %c0_i32_0 = arith.constant 0 : i32
    return %arg0, %c0_i32 : i32, i32
  }
  func.func @transform_1(%arg0: i32, %arg1: i32, %arg2: memref<1xi32, #tpu.memory_space<smem>>, %arg3: memref<1xi32, #tpu.memory_space<smem>>) -> (i32, i32) {
    %c0_i32 = arith.constant 0 : i32
    %c0_i32_0 = arith.constant 0 : i32
    return %c0_i32, %arg1 : i32, i32
  }
  func.func @transform_2(%arg0: i32, %arg1: i32, %arg2: memref<1xi32, #tpu.memory_space<smem>>, %arg3: memref<1xi32, #tpu.memory_space<smem>>) -> (i32, i32) {
    %c0_i32 = arith.constant 0 : i32
    %c0_i32_0 = arith.constant 0 : i32
    return %c0_i32, %arg0 : i32, i32
  }
}

</mosaic_0001>

<bundles_post_ra>
// kernel: tpu_custom_call.1
= control target key start
LH: loop header
LB: loop body
LE: loop exit
PB: predicated region body
PF: predicated region fallthrough
CT: control target
= control target key end

     0   :  { %s12621_s0 = inlined_call_operand.<no memory space> [shape: s32[1], index: 0, kind: input, shape index: {}]   ;;  %s12622_s1 = inlined_call_operand.<no memory space> [shape: s32[1], index: 1, kind: input, shape index: {}]   ;;  %s12623_s2 = inlined_call_operand.vmem [shape: f32[128,8], index: 2, kind: input, shape index: {}]   ;;  %s12624_s3 = inlined_call_operand.vmem [shape: f32[8,128], index: 3, kind: input, shape index: {}]   ;;  %s12625_s4 = inlined_call_operand.hbm [shape: s32[16,128], index: 4, kind: output, shape index: {}]  }
   0x1   :  { %9 = sst [smem:[#allocation4]] %s12621_s0 }
   0x2   :  { %11 = vsyncpa [#allocation7], 0  ;;  %v6347_v0 = vmov 2147483647   ;;  %p6069_p0 = scmp.le.s32.totalorder %s12622_s1, 0 }
   0x3   :  { %20 = vst [vmem:[#allocation2 + $0x60] sm:$0xff] %v6347_v0  ;;  %21 = vst [vmem:[#allocation2 + $0x8] sm:$0xff] %v6347_v0 }
   0x4   :  { %22 = vst [vmem:[#allocation2 + $0xb0] sm:$0xff] %v6347_v0  ;;  %23 = vst [vmem:[#allocation2 + $0x38] sm:$0xff] %v6347_v0 }
   0x5   :  { %24 = vst [vmem:[#allocation2 + $0xa8] sm:$0xff] %v6347_v0  ;;  %25 = vst [vmem:[#allocation2 + $0xd8] sm:$0xff] %v6347_v0 }
   0x6   :  { %26 = vst [vmem:[#allocation2 + $0x68] sm:$0xff] %v6347_v0  ;;  %27 = vst [vmem:[#allocation2 + $0x98] sm:$0xff] %v6347_v0  ;;  %41 = sbr.rel (%p6069_p0) target bundleno = 4950 (0x1356), region = 17 }
   0x7   :  { %28 = vst [vmem:[#allocation2] sm:$0xff] %v6347_v0  ;;  %29 = vst [vmem:[#allocation2 + $0x10] sm:$0xff] %v6347_v0 }
   0x8   :  { %30 = vst [vmem:[#allocation2 + $0xd0] sm:$0xff] %v6347_v0  ;;  %31 = vst [vmem:[#allocation2 + $0x70] sm:$0xff] %v6347_v0 }
   0x9   :  { %32 = vst [vmem:[#allocation2 + $0xc8] sm:$0xff] %v6347_v0  ;;  %33 = vst [vmem:[#allocation2 + $0xe0] sm:$0xff] %v6347_v0 }
   0xa   :  { %34 = vst [vmem:[#allocation2 + $0x18] sm:$0xff] %v6347_v0  ;;  %35 = vst [vmem:[#allocation2 + $0xf8] sm:$0xff] %v6347_v0 }
   0xb   :  { %v44_v1 = vld [vmem:[%s12623_s2 + $0x10] sm:$0xff]  ;;  %v42_v2 = vld [vmem:[%s12623_s2] sm:$0xff]  ;;  %v6348_v3 = vmov 0   ;;  %v45_v4 = vld [vmem:[%s12623_s2 + $0x18] sm:$0xff]  ;;  %v6349_v18 = vmov 1   ;;  %v6350_v19 = vmov 2   ;;  %v425_v42 = vlaneseq }
   0xc   :  { %6081 = vset.pattern.permute.xlu1 %v6348_v3  ;;  %6080 = vset.pattern.permute.xlu0 %v6348_v3  ;;  %v43_v5 = vld [vmem:[%s12623_s2 + $0x8] sm:$0xff]  ;;  %v46_v7 = vld [vmem:[%s12623_s2 + $0x20] sm:$0xff]  ;;  %v49_v8 = vld [vmem:[%s12623_s2 + $0x38] sm:$0xff] }
   0xd   :  { %71 = vperm.xlu1 %6081, %v44_v1   ;;  %61 = vperm.xlu0 %6080, %v42_v2   ;;  %v47_v6 = vld [vmem:[%s12623_s2 + $0x28] sm:$0xff]  ;;  %v48_v9 = vld [vmem:[%s12623_s2 + $0x30] sm:$0xff]  ;;  %v50_v11 = vld [vmem:[%s12623_s2 + $0x40] sm:$0xff]  ;;  %v6476_v51 = vand.u32 127, %v425_v42 }
   0xe   :  { %v51_v10 = vld [vmem:[%s12623_s2 + $0x48] sm:$0xff]  ;;  %v53_v12 = vld [vmem:[%s12623_s2 + $0x58] sm:$0xff]  ;;  %v52_v13 = vld [vmem:[%s12623_s2 + $0x50] sm:$0xff] }
   0xf   :  { %v55_v14 = vld [vmem:[%s12623_s2 + $0x68] sm:$0xff]  ;;  %v54_v15 = vld [vmem:[%s12623_s2 + $0x60] sm:$0xff]  ;;  %v57_v16 = vld [vmem:[%s12623_s2 + $0x78] sm:$0xff] }
  0x10   :  { %v56_v17 = vld [vmem:[%s12623_s2 + $0x70] sm:$0xff]  ;;  %v6469_v40 = vld [vmem:[#allocation2 + $0x60] sm:$0xff]  ;;  %v515_v41 = vld [vmem:[#allocation2 + $0x8] sm:$0xff]  ;;  %s6478_s2 = sld [smem:[#allocation4]] }
  0x11   :  { %76 = vperm.xlu1 %6081, %v45_v4   ;;  %66 = vperm.xlu0 %6080, %v43_v5   ;;  %12744 = vst [vmem:[#allocation9_spill] sm:$0xff] %v6469_v40  ;;  %v517_v43 = vld [vmem:[#allocation2 + $0xb0] sm:$0xff]  ;;  %v521_v44 = vld [vmem:[#allocation2 + $0xa8] sm:$0xff]  ;;  %v519_v45 = vld [vmem:[#allocation2 + $0x38] sm:$0xff]  ;;  %vm545_vm0 = vcmp.gt.s32.totalorder %v6469_v40, 4294967295  ;;  %vm547_vm1 = vcmp.gt.s32.totalorder %v515_v41, 4294967295 }
  0x12   :  { %v525_v48 = vld [vmem:[#allocation2 + $0x68] sm:$0xff]  ;;  %v523_v49 = vld [vmem:[#allocation2 + $0xd8] sm:$0xff]  ;;  %vm549_vm2 = vcmp.gt.s32.totalorder %v517_v43, 4294967295  ;;  %v529_v50 = vld [vmem:[#allocation2] sm:$0xff]  ;;  %vm553_vm3 = vcmp.gt.s32.totalorder %v521_v44, 4294967295  ;;  %vm551_vm4 = vcmp.gt.s32.totalorder %v519_v45, 4294967295 }
  0x13   :  { %v6483_v52 = vld [vmem:[%s12624_s3] ss:$0 sm:$0xff]  ;;  %v6486_v53 = vsel %vm545_vm0, %v6469_v40, 2147483647  ;;  %v6488_v54 = vsel %vm547_vm1, %v515_v41, 2147483647 }
  0x14   :  { %vm557_vm5 = vcmp.gt.s32.totalorder %v525_v48, 4294967295  ;;  %vm555_vm6 = vcmp.gt.s32.totalorder %v523_v49, 4294967295  ;;  %v6494_v57 = vsel %vm549_vm2, %v517_v43, 2147483647  ;;  %vm561_vm7 = vcmp.gt.s32.totalorder %v529_v50, 4294967295  ;;  %v527_v58 = vld [vmem:[#allocation2 + $0x98] sm:$0xff] }
  0x15   :  { %86 = vperm.xlu1 %6081, %v47_v6   ;;  %81 = vperm.xlu0 %6080, %v46_v7   ;;  %v533_v59 = vld [vmem:[#allocation2 + $0xd0] sm:$0xff]  ;;  %v6496_v61 = vsel %vm553_vm3, %v521_v44, 2147483647  ;;  %v6498_v62 = vsel %vm551_vm4, %v519_v45, 2147483647  ;;  %v537_v63 = vld [vmem:[#allocation2 + $0xc8] sm:$0xff] }
  0x16   :  { %v531_v60 = vld [vmem:[#allocation2 + $0x10] sm:$0xff]  ;;  %v541_v3 = vld [vmem:[#allocation2 + $0x18] sm:$0xff]  ;;  %vm559_vm8 = vcmp.gt.s32.totalorder %v527_v58, 4294967295  ;;  %vm565_vm9 = vcmp.gt.s32.totalorder %v533_v59, 4294967295  ;;  %vm569_vm11 = vcmp.gt.s32.totalorder %v537_v63, 4294967295 }
  0x17   :  { %v535_v0 = vld [vmem:[#allocation2 + $0x70] sm:$0xff]  ;;  %vm563_vm10 = vcmp.gt.s32.totalorder %v531_v60, 4294967295  ;;  %vm573_vm13 = vcmp.gt.s32.totalorder %v541_v3, 4294967295 }
  0x18   :  { %vm567_vm12 = vcmp.gt.s32.totalorder %v535_v0, 4294967295 }
  0x19   :  { %96 = vperm.xlu1 %6081, %v49_v8   ;;  %91 = vperm.xlu0 %6080, %v48_v9  }
  0x1d   :  { %106 = vperm.xlu1 %6081, %v51_v10   ;;  %101 = vperm.xlu0 %6080, %v50_v11  }
  0x21   :  { %116 = vperm.xlu1 %6081, %v53_v12   ;;  %111 = vperm.xlu0 %6080, %v52_v13  }
  0x25   :  { %126 = vperm.xlu1 %6081, %v55_v14   ;;  %121 = vperm.xlu0 %6080, %v54_v15  }
  0x29   :  { %136 = vperm.xlu1 %6081, %v57_v16   ;;  %131 = vperm.xlu0 %6080, %v56_v17  }
  0x2d   :  { %6083 = vset.pattern.permute.xlu1 %v6349_v18  ;;  %6082 = vset.pattern.permute.xlu0 %v6349_v18  ;;  %v6535_v18 = vsel %vm563_vm10, %v531_v60, 2147483647 }
  0x2e   :  { %181 = vperm.xlu1 %6083, %v43_v5   ;;  %177 = vperm.xlu0 %6082, %v42_v2  }
  0x32   :  { %185 = vperm.xlu1 %6083, %v44_v1   ;;  %189 = vperm.xlu0 %6082, %v45_v4  }
  0x36   :  { %193 = vperm.xlu1 %6083, %v46_v7   ;;  %197 = vperm.xlu0 %6082, %v47_v6  }
  0x3a   :  { %201 = vperm.xlu1 %6083, %v48_v9   ;;  %205 = vperm.xlu0 %6082, %v49_v8  }
  0x3e   :  { %209 = vperm.xlu1 %6083, %v50_v11   ;;  %213 = vperm.xlu0 %6082, %v51_v10  }
  0x42   :  { %217 = vperm.xlu1 %6083, %v52_v13   ;;  %221 = vperm.xlu0 %6082, %v53_v12  }
  0x46   :  { %225 = vperm.xlu1 %6083, %v54_v15   ;;  %229 = vperm.xlu0 %6082, %v55_v14  }
  0x4a   :  { %233 = vperm.xlu1 %6083, %v56_v17   ;;  %237 = vperm.xlu0 %6082, %v57_v16  }
  0x4e   :  { %6084 = vset.pattern.permute.xlu1 %v6350_v19  ;;  %6085 = vset.pattern.permute.xlu0 %v6350_v19  ;;  %v6537_v19 = vsel %vm569_vm11, %v537_v63, 2147483647 }
  0x4f   :  { %294 = vperm.xlu1 %6084, %v42_v2   ;;  %298 = vperm.xlu0 %6085, %v43_v5   ;;  %v6502_v2 = vsel %vm555_vm6, %v523_v49, 2147483647  ;;  %v6504_v5 = vsel %vm561_vm7, %v529_v50, 2147483647 }
  0x53   :  { %302 = vperm.xlu1 %6084, %v44_v1   ;;  %310 = vperm.xlu0 %6085, %v46_v7   ;;  %v6500_v1 = vsel %vm557_vm5, %v525_v48, 2147483647 }
  0x57   :  { %306 = vperm.xlu1 %6084, %v45_v4   ;;  %318 = vperm.xlu0 %6085, %v48_v9   ;;  %v539_v4 = vld [vmem:[#allocation2 + $0xe0] sm:$0xff] }
  0x58   :  { %vm571_vm14 = vcmp.gt.s32.totalorder %v539_v4, 4294967295 }
  0x59   :  { %v6543_v41 = vsel %vm571_vm14, %v539_v4, 2147483647 }
  0x5a   :  { %12745 = vst [vmem:[#allocation10_spill] sm:$0xff] %v6543_v41 }
  0x5b   :  { %314 = vperm.xlu1 %6084, %v47_v6   ;;  %326 = vperm.xlu0 %6085, %v50_v11  }
  0x5f   :  { %322 = vperm.xlu1 %6084, %v49_v8   ;;  %334 = vperm.xlu0 %6085, %v52_v13  }
  0x63   :  { %330 = vperm.xlu1 %6084, %v51_v10   ;;  %342 = vperm.xlu0 %6085, %v54_v15   ;;  %v6526_v15 = vsel %vm559_vm8, %v527_v58, 2147483647 }
  0x67   :  { %338 = vperm.xlu1 %6084, %v53_v12   ;;  %350 = vperm.xlu0 %6085, %v56_v17   ;;  %v6532_v17 = vstv %s6478_s2 }
  0x6b   :  { %346 = vperm.xlu1 %6084, %v55_v14   ;;  %v6523_v14 = vld [vmem:[%s12624_s3 + $0x1] ss:$0 sm:$0xff] }
  0x6f   :  { %354 = vperm.xlu1 %6084, %v57_v16   ;;  %v6529_v16 = vsel %vm565_vm9, %v533_v59, 2147483647 }
  0x88   :  { %v72_v20 = vpop.permute.xlu1 %71  ;;  %v62_v21 = vpop.permute.xlu0 %61 }
  0x89   :  { %v145_v6 = vsub.f32 %v72_v20, %v6483_v52  ;;  %v143_v7 = vsub.f32 %v62_v21, %v6483_v52  ;;  %v6539_v20 = vsel %vm567_vm12, %v535_v0, 2147483647 }
  0x8b   :  { %v161_v21 = vmul.f32 %v145_v6, %v145_v6 }
  0x8c   :  { %v6433_v22 = vpop.permute.xlu1 %76  ;;  %v6435_v23 = vpop.permute.xlu0 %66 }
  0x8d   :  { %v146_v10 = vsub.f32 %v6433_v22, %v6483_v52  ;;  %v144_v11 = vsub.f32 %v6435_v23, %v6483_v52  ;;  %v159_v22 = vmul.f32 %v143_v7, %v143_v7 }
  0x8f   :  { %v162_v42 = vmul.f32 %v146_v10, %v146_v10  ;;  %v160_v43 = vmul.f32 %v144_v11, %v144_v11 }
  0x90   :  { %v6437_v24 = vpop.permute.xlu1 %86  ;;  %v6439_v25 = vpop.permute.xlu0 %81 }
  0x91   :  { %v148_v12 = vsub.f32 %v6437_v24, %v6483_v52  ;;  %v147_v13 = vsub.f32 %v6439_v25, %v6483_v52  ;;  %v6541_v25 = vsel %vm573_vm13, %v541_v3, 2147483647 }
  0x93   :  { %v164_v48 = vmul.f32 %v148_v12, %v148_v12  ;;  %v163_v49 = vmul.f32 %v147_v13, %v147_v13 }
  0x94   :  { %v6441_v26 = vpop.permute.xlu1 %96  ;;  %v6443_v27 = vpop.permute.xlu0 %91 }
  0x95   :  { %v150_v44 = vsub.f32 %v6441_v26, %v6483_v52  ;;  %v149_v45 = vsub.f32 %v6443_v27, %v6483_v52 }
  0x97   :  { %v166_v3 = vmul.f32 %v150_v44, %v150_v44  ;;  %v165_v4 = vmul.f32 %v149_v45, %v149_v45 }
  0x98   :  { %v6445_v28 = vpop.permute.xlu1 %106  ;;  %v6447_v29 = vpop.permute.xlu0 %101 }
  0x99   :  { %v152_v59 = vsub.f32 %v6445_v28, %v6483_v52  ;;  %v151_v60 = vsub.f32 %v6447_v29, %v6483_v52 }
  0x9b   :  { %v168_v7 = vmul.f32 %v152_v59, %v152_v59 }
  0x9c   :  { %v6449_v30 = vpop.permute.xlu1 %116  ;;  %v6451_v31 = vpop.permute.xlu0 %111 }
  0x9d   :  { %v154_v26 = vsub.f32 %v6449_v30, %v6483_v52  ;;  %v153_v27 = vsub.f32 %v6451_v31, %v6483_v52 }
  0x9f   :  { %v170_v10 = vmul.f32 %v154_v26, %v154_v26  ;;  %v169_v11 = vmul.f32 %v153_v27, %v153_v27 }
  0xa0   :  { %v6453_v32 = vpop.permute.xlu1 %126  ;;  %v6455_v33 = vpop.permute.xlu0 %121 }
  0xa1   :  { %v156_v63 = vsub.f32 %v6453_v32, %v6483_v52 }
  0xa3   :  { %v172_v12 = vmul.f32 %v156_v63, %v156_v63 }
  0xa4   :  { %v6457_v34 = vpop.permute.xlu1 %136  ;;  %v6459_v35 = vpop.permute.xlu0 %131 }
  0xa5   :  { %v158_v30 = vsub.f32 %v6457_v34, %v6483_v52  ;;  %v157_v31 = vsub.f32 %v6459_v35, %v6483_v52 }
  0xa7   :  { %v174_v41 = vmul.f32 %v158_v30, %v158_v30  ;;  %v173_v35 = vmul.f32 %v157_v31, %v157_v31 }
  0xa9   :  { %v6461_v36 = vpop.permute.xlu1 %181  ;;  %v6463_v37 = vpop.permute.xlu0 %177 }
  0xaa   :  { %v245_v50 = vsub.f32 %v6461_v36, %v6523_v14  ;;  %v244_v58 = vsub.f32 %v6463_v37, %v6523_v14  ;;  %v155_v36 = vsub.f32 %v6455_v33, %v6483_v52 }
  0xac   :  { %v261_v32 = vmul.f32 %v245_v50, %v245_v50  ;;  %v260_v6 = vmul.f32 %v244_v58, %v244_v58  ;;  %v171_v13 = vmul.f32 %v155_v36, %v155_v36 }
  0xad   :  { %v6465_v38 = vpop.permute.xlu1 %185  ;;  %v6467_v39 = vpop.permute.xlu0 %189 }
  0xae   :  { %v246_v37 = vsub.f32 %v6465_v38, %v6523_v14  ;;  %v247_v28 = vsub.f32 %v6467_v39, %v6523_v14  ;;  %v167_v39 = vmul.f32 %v151_v60, %v151_v60  ;;  %v277_v50 = vadd.f32 %v261_v32, %v160_v43 }
  0xb0   :  { %v262_v44 = vmul.f32 %v246_v37, %v246_v37  ;;  %v263_v45 = vmul.f32 %v247_v28, %v247_v28 }
  0xb1   :  { %v6471_v46 = vpop.permute.xlu1 %193  ;;  %v6473_v47 = vpop.permute.xlu0 %197 }
  0xb2   :  { %v248_v33 = vsub.f32 %v6471_v46, %v6523_v14  ;;  %v249_v38 = vsub.f32 %v6473_v47, %v6523_v14  ;;  %v276_v47 = vadd.f32 %v260_v6, %v159_v22  ;;  %v6592_v43 = vadd.f32 %v263_v45, %v162_v42 }
  0xb4   :  { %v264_v58 = vmul.f32 %v248_v33, %v248_v33  ;;  %v265_v59 = vmul.f32 %v249_v38, %v249_v38 }
  0xb5   :  { %v6490_v55 = vpop.permute.xlu1 %201  ;;  %v6492_v56 = vpop.permute.xlu0 %205 }
  0xb6   :  { %v250_v52 = vsub.f32 %v6490_v55, %v6523_v14  ;;  %v251_v46 = vsub.f32 %v6492_v56, %v6523_v14  ;;  %v6590_v55 = vld [vmem:[%s12624_s3 + $0x2] ss:$0 sm:$0xff]  ;;  %v278_v56 = vadd.f32 %v262_v44, %v161_v21  ;;  %v280_v30 = vadd.f32 %v264_v58, %v163_v49 }
  0xb7   :  { %v6598_v31 = vadd.f32 %v265_v59, %v164_v48 }
  0xb8   :  { %v267_v37 = vmul.f32 %v251_v46, %v251_v46 }
  0xb9   :  { %v6508_v8 = vpop.permute.xlu1 %209  ;;  %v6510_v9 = vpop.permute.xlu0 %213 }
  0xba   :  { %v252_v60 = vsub.f32 %v6508_v8, %v6523_v14  ;;  %v253_v26 = vsub.f32 %v6510_v9, %v6523_v14  ;;  %v266_v8 = vmul.f32 %v250_v52, %v250_v52  ;;  %v6602_v52 = vadd.f32 %v267_v37, %v166_v3 }
  0xbc   :  { %v268_v42 = vmul.f32 %v252_v60, %v252_v60  ;;  %v269_v6 = vmul.f32 %v253_v26, %v253_v26 }
  0xbd   :  { %v218_v23 = vpop.permute.xlu1 %217  ;;  %v222_v24 = vpop.permute.xlu0 %221 }
  0xbe   :  { %v254_v27 = vsub.f32 %v218_v23, %v6523_v14  ;;  %v255_v63 = vsub.f32 %v222_v24, %v6523_v14  ;;  %v284_v26 = vadd.f32 %v268_v42, %v167_v39 }
  0xc0   :  { %v271_v33 = vmul.f32 %v255_v63, %v255_v63 }
  0xc1   :  { %v226_v0 = vpop.permute.xlu1 %225  ;;  %v230_v29 = vpop.permute.xlu0 %229 }
  0xc2   :  { %v256_v22 = vsub.f32 %v226_v0, %v6523_v14  ;;  %v257_v36 = vsub.f32 %v230_v29, %v6523_v14  ;;  %v270_v0 = vmul.f32 %v254_v27, %v254_v27  ;;  %v6606_v27 = vadd.f32 %v269_v6, %v168_v7 }
  0xc4   :  { %v272_v29 = vmul.f32 %v256_v22, %v256_v22  ;;  %v273_v38 = vmul.f32 %v257_v36, %v257_v36  ;;  %v6608_v63 = vadd.f32 %v270_v0, %v169_v11  ;;  %v6610_v22 = vadd.f32 %v271_v33, %v170_v10 }
  0xc5   :  { %v234_v34 = vpop.permute.xlu1 %233  ;;  %v238_v40 = vpop.permute.xlu0 %237 }
  0xc6   :  { %v258_v9 = vsub.f32 %v234_v34, %v6523_v14  ;;  %v259_v23 = vsub.f32 %v238_v40, %v6523_v14  ;;  %v282_v34 = vadd.f32 %v266_v8, %v165_v4  ;;  %v6612_v4 = vadd.f32 %v272_v29, %v171_v13 }
  0xc7   :  { %v6614_v3 = vadd.f32 %v273_v38, %v172_v12 }
  0xc8   :  { %v274_v40 = vmul.f32 %v258_v9, %v258_v9  ;;  %v275_v14 = vmul.f32 %v259_v23, %v259_v23 }
  0xca   :  { %v295_v28 = vpop.permute.xlu1 %294  ;;  %v299_v24 = vpop.permute.xlu0 %298  ;;  %v6616_v37 = vadd.f32 %v274_v40, %v173_v35 }
  0xcb   :  { %v361_v32 = vsub.f32 %v295_v28, %v6590_v55  ;;  %v362_v21 = vsub.f32 %v299_v24, %v6590_v55 }
  0xcd   :  { %v377_v44 = vmul.f32 %v361_v32, %v361_v32  ;;  %v378_v45 = vmul.f32 %v362_v21, %v362_v21 }
  0xce   :  { %v303_v49 = vpop.permute.xlu1 %302  ;;  %v311_v48 = vpop.permute.xlu0 %310 }
  0xcf   :  { %v393_v46 = vadd.f32 %v377_v44, %v276_v47  ;;  %v394_v58 = vadd.f32 %v378_v45, %v277_v50  ;;  %v363_v59 = vsub.f32 %v303_v49, %v6590_v55  ;;  %v365_v60 = vsub.f32 %v311_v48, %v6590_v55 }
  0xd0   :  { %v6618_v50 = vadd.f32 %v275_v14, %v174_v41 }
  0xd1   :  { %v448_v36 = vand.u32 4294967168, %v393_v46  ;;  %v449_v8 = vand.u32 4294967168, %v394_v58  ;;  %v379_v47 = vmul.f32 %v363_v59, %v363_v59  ;;  %v381_v9 = vmul.f32 %v365_v60, %v365_v60 }
  0xd2   :  { %v307_v23 = vpop.permute.xlu1 %306  ;;  %v319_v39 = vpop.permute.xlu0 %318  ;;  %vm432_vm15 = vcmp.le.s32.totalorder %v393_v46, %v6532_v17  ;;  %vm433_vm0 = vcmp.le.s32.totalorder %v394_v58, %v6532_v17 }
  0xd3   :  { %v464_v7 = vor.u32 %v448_v36, %v6476_v51  ;;  %v465_v11 = vor.u32 %v449_v8, %v6476_v51  ;;  %v364_v10 = vsub.f32 %v307_v23, %v6590_v55  ;;  %v367_v13 = vsub.f32 %v319_v39, %v6590_v55 }
  0xd4   :  { %v395_v12 = vadd.f32 %v379_v47, %v278_v56  ;;  %v397_v35 = vadd.f32 %v381_v9, %v280_v30 }
  0xd5   :  { %v6626_v41 = vsel %vm432_vm15, %v464_v7, 2147483647  ;;  %v6628_v28 = vsel %vm433_vm0, %v465_v11, 2147483647  ;;  %v380_v24 = vmul.f32 %v364_v10, %v364_v10  ;;  %v383_v32 = vmul.f32 %v367_v13, %v367_v13 }
  0xd6   :  { %496 = vst [vmem:[#allocation2 + $0x78] sm:$0xff] %v6626_v41  ;;  %497 = vst [vmem:[#allocation2 + $0xb8] sm:$0xff] %v6628_v28  ;;  %vm434_vm1 = vcmp.le.s32.totalorder %v395_v12, %v6532_v17  ;;  %v450_v21 = vand.u32 4294967168, %v395_v12  ;;  %vm436_vm2 = vcmp.le.s32.totalorder %v397_v35, %v6532_v17  ;;  %v452_v42 = vand.u32 4294967168, %v397_v35  ;;  %v315_v6 = vpop.permute.xlu1 %314  ;;  %v327_v0 = vpop.permute.xlu0 %326 }
  0xd7   :  { %v396_v56 = vadd.f32 %v380_v24, %v6592_v43  ;;  %v399_v30 = vadd.f32 %v383_v32, %v282_v34  ;;  %v366_v33 = vsub.f32 %v315_v6, %v6590_v55  ;;  %v369_v29 = vsub.f32 %v327_v0, %v6590_v55 }
  0xd8   :  { %v466_v38 = vor.u32 %v450_v21, %v6476_v51  ;;  %v468_v44 = vor.u32 %v452_v42, %v6476_v51  ;;  %vm544_vm3 = vcmp.gt.s32.totalorder %v6626_v41, 4294967295  ;;  %vm546_vm4 = vcmp.gt.s32.totalorder %v6628_v28, 4294967295 }
  0xd9   :  { %vm435_vm5 = vcmp.le.s32.totalorder %v396_v56, %v6532_v17  ;;  %v451_v45 = vand.u32 4294967168, %v396_v56  ;;  %vm438_vm6 = vcmp.le.s32.totalorder %v399_v30, %v6532_v17  ;;  %v454_v40 = vand.u32 4294967168, %v399_v30 }
  0xda   :  { %v6645_v43 = vsel %vm434_vm1, %v466_v38, 2147483647  ;;  %v6649_v34 = vsel %vm436_vm2, %v468_v44, 2147483647  ;;  %v382_v14 = vmul.f32 %v366_v33, %v366_v33  ;;  %v385_v49 = vmul.f32 %v369_v29, %v369_v29  ;;  %v323_v48 = vpop.permute.xlu1 %322  ;;  %v335_v46 = vpop.permute.xlu0 %334 }
  0xdb   :  { %498 = vst [vmem:[#allocation2 + $0x88] sm:$0xff] %v6645_v43  ;;  %500 = vst [vmem:[#allocation2 + $0xc0] sm:$0xff] %v6649_v34  ;;  %v467_v58 = vor.u32 %v451_v45, %v6476_v51  ;;  %v470_v59 = vor.u32 %v454_v40, %v6476_v51  ;;  %v368_v60 = vsub.f32 %v323_v48, %v6590_v55  ;;  %v576_v9 = vsel %vm544_vm3, %v6626_v41, 2147483647 }
  0xdc   :  { %v371_v36 = vsub.f32 %v335_v46, %v6590_v55  ;;  %v398_v8 = vadd.f32 %v382_v14, %v6598_v31  ;;  %v401_v47 = vadd.f32 %v385_v49, %v284_v26  ;;  %v578_v23 = vsel %vm546_vm4, %v6628_v28, 2147483647 }
  0xdd   :  { %v6666_v39 = vsel %vm435_vm5, %v467_v58, 2147483647  ;;  %v6670_v7 = vsel %vm438_vm6, %v470_v59, 2147483647  ;;  %v384_v11 = vmul.f32 %v368_v60, %v368_v60  ;;  %vm608_vm9 = vcmp.lt.s32.totalorder %v576_v9, %v6486_v53 }
  0xde   :  { %v387_v10 = vmul.f32 %v371_v36, %v371_v36  ;;  %499 = vst [vmem:[#allocation2 + $0x90] sm:$0xff] %v6666_v39  ;;  %502 = vst [vmem:[#allocation2 + $0xe8] sm:$0xff] %v6670_v7  ;;  %vm437_vm7 = vcmp.le.s32.totalorder %v398_v8, %v6532_v17  ;;  %v453_v31 = vand.u32 4294967168, %v398_v8  ;;  %vm440_vm8 = vcmp.le.s32.totalorder %v401_v47, %v6532_v17  ;;  %v331_v13 = vpop.permute.xlu1 %330  ;;  %v343_v12 = vpop.permute.xlu0 %342 }
  0xdf   :  { %v456_v26 = vand.u32 4294967168, %v401_v47  ;;  %v400_v35 = vadd.f32 %v384_v11, %v6602_v52  ;;  %v370_v32 = vsub.f32 %v331_v13, %v6590_v55  ;;  %v373_v21 = vsub.f32 %v343_v12, %v6590_v55 }
  0xe0   :  { %v403_v24 = vadd.f32 %v387_v10, %v6608_v63  ;;  %v469_v42 = vor.u32 %v453_v31, %v6476_v51  ;;  %vm624_vm10 = vcmp.lt.s32.totalorder %v578_v23, %v6488_v54  ;;  %v6705_v46 = vsel %vm608_vm9, %v576_v9, %v6486_v53 }
  0xe1   :  { %v472_v6 = vor.u32 %v456_v26, %v6476_v51  ;;  %vm439_vm11 = vcmp.le.s32.totalorder %v400_v35, %v6532_v17  ;;  %v455_v0 = vand.u32 4294967168, %v400_v35  ;;  %v386_v30 = vmul.f32 %v370_v32, %v370_v32 }
  0xe2   :  { %vm442_vm12 = vcmp.le.s32.totalorder %v403_v24, %v6532_v17  ;;  %v458_v52 = vand.u32 4294967168, %v403_v24  ;;  %v6688_v63 = vsel %vm437_vm7, %v469_v42, 2147483647  ;;  %v389_v33 = vmul.f32 %v373_v21, %v373_v21  ;;  %v339_v29 = vpop.permute.xlu1 %338  ;;  %v351_v38 = vpop.permute.xlu0 %350 }
  0xe3   :  { %v6692_v56 = vsel %vm440_vm8, %v472_v6, 2147483647  ;;  %501 = vst [vmem:[#allocation2 + $0x20] sm:$0xff] %v6688_v63  ;;  %v471_v44 = vor.u32 %v455_v0, %v6476_v51  ;;  %v372_v40 = vsub.f32 %v339_v29, %v6590_v55  ;;  %v375_v14 = vsub.f32 %v351_v38, %v6590_v55 }
  0xe4   :  { %504 = vst [vmem:[#allocation2 + $0x50] sm:$0xff] %v6692_v56  ;;  %v474_v45 = vor.u32 %v458_v52, %v6476_v51  ;;  %v402_v49 = vadd.f32 %v386_v30, %v6606_v27  ;;  %v405_v48 = vadd.f32 %v389_v33, %v6612_v4  ;;  %v6710_v58 = vsel %vm624_vm10, %v578_v23, %v6488_v54 }
  0xe5   :  { %v6714_v59 = vsel %vm439_vm11, %v471_v44, 2147483647  ;;  %v388_v27 = vmul.f32 %v372_v40, %v372_v40  ;;  %v391_v4 = vmul.f32 %v375_v14, %v375_v14  ;;  %v611_v23 = vshra.s32 %v6705_v46, 16 }
  0xe6   :  { %v6718_v60 = vsel %vm442_vm12, %v474_v45, 2147483647  ;;  %503 = vst [vmem:[#allocation2 + $0x80] sm:$0xff] %v6714_v59  ;;  %vm441_vm13 = vcmp.le.s32.totalorder %v402_v49, %v6532_v17  ;;  %v457_v53 = vand.u32 4294967168, %v402_v49  ;;  %vm444_vm14 = vcmp.le.s32.totalorder %v405_v48, %v6532_v17  ;;  %v347_v36 = vpop.permute.xlu1 %346 }
  0xe7   :  { %506 = vst [vmem:[#allocation2 + $0x28] sm:$0xff] %v6718_v60  ;;  %v460_v54 = vand.u32 4294967168, %v405_v48  ;;  %v404_v8 = vadd.f32 %v388_v27, %v6610_v22  ;;  %v407_v47 = vadd.f32 %v391_v4, %v6616_v37  ;;  %v374_v9 = vsub.f32 %v347_v36, %v6590_v55 }
  0xe8   :  { %v473_v11 = vor.u32 %v457_v53, %v6476_v51  ;;  %v627_v31 = vshra.s32 %v6710_v58, 16  ;;  %vm548_vm15 = vcmp.gt.s32.totalorder %v6645_v43, 4294967295  ;;  %v6742_v35 = vcvt.s32.f32 %v611_v23  ;;  %v6798_v53 = vld [vmem:[#allocation2 + $0xf8] sm:$0xff] }
  0xe9   :  { %v476_v10 = vor.u32 %v460_v54, %v6476_v51  ;;  %vm443_vm0 = vcmp.le.s32.totalorder %v404_v8, %v6532_v17  ;;  %v459_v26 = vand.u32 4294967168, %v404_v8  ;;  %vm446_vm1 = vcmp.le.s32.totalorder %v407_v47, %v6532_v17 }
  0xea   :  { %v462_v22 = vand.u32 4294967168, %v407_v47  ;;  %v6736_v37 = vsel %vm441_vm13, %v473_v11, 2147483647  ;;  %v390_v12 = vmul.f32 %v374_v9, %v374_v9  ;;  %v355_v24 = vpop.permute.xlu1 %354  ;;  %v6748_v42 = vcvt.s32.f32 %v627_v31  ;;  %614 = vmin.xlane.f32.xlu0 %v6742_v35 }
  0xeb   :  { %v6740_v13 = vsel %vm444_vm14, %v476_v10, 2147483647  ;;  %505 = vst [vmem:[#allocation2 + $0xa0] sm:$0xff] %v6736_v37  ;;  %v475_v32 = vor.u32 %v459_v26, %v6476_v51  ;;  %v376_v6 = vsub.f32 %v355_v24, %v6590_v55  ;;  %v580_v52 = vsel %vm548_vm15, %v6645_v43, 2147483647 }
  0xec   :  { %508 = vst [vmem:[#allocation2 + $0x40] sm:$0xff] %v6740_v13  ;;  %v478_v21 = vor.u32 %v462_v22, %v6476_v51  ;;  %v406_v0 = vadd.f32 %v390_v12, %v6614_v3  ;;  %vm552_vm2 = vcmp.gt.s32.totalorder %v6649_v34, 4294967295  ;;  %vm550_vm3 = vcmp.gt.s32.totalorder %v6666_v39, 4294967295  ;;  %630 = vmin.xlane.f32.xlu1 %v6748_v42 }
  0xed   :  { %v6760_v30 = vsel %vm443_vm0, %v475_v32, 2147483647  ;;  %v392_v55 = vmul.f32 %v376_v6, %v376_v6  ;;  %vm640_vm4 = vcmp.lt.s32.totalorder %v580_v52, %v6494_v57  ;;  %v584_v38 = vsel %vm552_vm2, %v6649_v34, 2147483647 }
  0xee   :  { %v6764_v33 = vsel %vm446_vm1, %v478_v21, 2147483647  ;;  %507 = vst [vmem:[#allocation2 + $0x58] sm:$0xff] %v6760_v30  ;;  %vm445_vm5 = vcmp.le.s32.totalorder %v406_v0, %v6532_v17  ;;  %v461_v3 = vand.u32 4294967168, %v406_v0  ;;  %v6772_v29 = vsel %vm640_vm4, %v580_v52, %v6494_v57 }
  0xef   :  { %510 = vst [vmem:[#allocation2 + $0x48] sm:$0xff] %v6764_v33  ;;  %v408_v44 = vadd.f32 %v392_v55, %v6618_v50  ;;  %v643_v45 = vshra.s32 %v6772_v29, 16  ;;  %vm672_vm6 = vcmp.lt.s32.totalorder %v584_v38, %v6496_v61  ;;  %v582_v40 = vsel %vm550_vm3, %v6666_v39, 2147483647 }
  0xf0   :  { %v477_v14 = vor.u32 %v461_v3, %v6476_v51  ;;  %v6781_v49 = vsel %vm672_vm6, %v584_v38, %v6496_v61  ;;  %vm656_vm7 = vcmp.lt.s32.totalorder %v582_v40, %v6498_v62  ;;  %vm556_vm8 = vcmp.gt.s32.totalorder %v6670_v7, 4294967295 }
  0xf1   :  { %vm447_vm9 = vcmp.le.s32.totalorder %v408_v44, %v6532_v17  ;;  %v463_v57 = vand.u32 4294967168, %v408_v44  ;;  %v6786_v48 = vcvt.s32.f32 %v643_v45  ;;  %v675_v50 = vshra.s32 %v6781_v49, 16 }
  0xf2   :  { %v6791_v27 = vsel %vm445_vm5, %v477_v14, 2147483647  ;;  %v6794_v4 = vsel %vm656_vm7, %v582_v40, %v6498_v62  ;;  %v588_v61 = vsel %vm556_vm8, %v6670_v7, 2147483647  ;;  %vm554_vm10 = vcmp.gt.s32.totalorder %v6688_v63, 4294967295 }
  0xf3   :  { %509 = vst [vmem:[#allocation2 + $0xf0] sm:$0xff] %v6791_v27  ;;  %v479_v54 = vor.u32 %v463_v57, %v6476_v51  ;;  %646 = vmin.xlane.f32.xlu0 %v6786_v48  ;;  %v6803_v36 = vcvt.s32.f32 %v675_v50  ;;  %v659_v8 = vshra.s32 %v6794_v4, 16  ;;  %vm704_vm11 = vcmp.lt.s32.totalorder %v588_v61, %v6500_v1 }
  0xf4   :  { %v6808_v62 = vsel %vm704_vm11, %v588_v61, %v6500_v1  ;;  %v586_v47 = vsel %vm554_vm10, %v6688_v63, 2147483647  ;;  %vm560_vm12 = vcmp.gt.s32.totalorder %v6692_v56, 4294967295  ;;  %vm558_vm13 = vcmp.gt.s32.totalorder %v6714_v59, 4294967295 }
  0xf5   :  { %v6815_v9 = vsel %vm447_vm9, %v479_v54, 2147483647  ;;  %678 = vmin.xlane.f32.xlu1 %v6803_v36  ;;  %v6818_v23 = vcvt.s32.f32 %v659_v8  ;;  %v707_v11 = vshra.s32 %v6808_v62, 16  ;;  %vm688_vm14 = vcmp.lt.s32.totalorder %v586_v47, %v6502_v2 }
  0xf6   :  { %vm575_vm15 = vcmp.gt.s32.totalorder %v6798_v53, 4294967295  ;;  %511 = vst [vmem:[#allocation2 + $0x30] sm:$0xff] %v6815_v9  ;;  %v6825_v1 = vsel %vm688_vm14, %v586_v47, %v6502_v2  ;;  %v592_v10 = vsel %vm560_vm12, %v6692_v56, 2147483647  ;;  %v590_v17 = vsel %vm558_vm13, %v6714_v59, 2147483647 }
  0xf7   :  { %vm564_vm0 = vcmp.gt.s32.totalorder %v6718_v60, 4294967295  ;;  %662 = vmin.xlane.f32.xlu0 %v6818_v23  ;;  %v6831_v31 = vcvt.s32.f32 %v707_v11  ;;  %v691_v26 = vshra.s32 %v6825_v1, 16  ;;  %vm736_vm1 = vcmp.lt.s32.totalorder %v592_v10, %v6504_v5  ;;  %v12746_v47 = vld [vmem:[#allocation10_spill] sm:$0xff] }
  0xf8   :  { %vm720_vm2 = vcmp.lt.s32.totalorder %v590_v17, %v6526_v15  ;;  %v6837_v22 = vsel %vm736_vm1, %v592_v10, %v6504_v5  ;;  %v596_v12 = vsel %vm564_vm0, %v6718_v60, 2147483647  ;;  %vm562_vm3 = vcmp.gt.s32.totalorder %v6736_v37, 4294967295 }
  0xf9   :  { %v6840_v2 = vsel %vm720_vm2, %v590_v17, %v6526_v15  ;;  %710 = vmin.xlane.f32.xlu1 %v6831_v31  ;;  %v6845_v24 = vcvt.s32.f32 %v691_v26  ;;  %v739_v32 = vshra.s32 %v6837_v22, 16  ;;  %vm768_vm4 = vcmp.lt.s32.totalorder %v596_v12, %v6529_v16 }
  0xfa   :  { %v723_v21 = vshra.s32 %v6840_v2, 16  ;;  %v6851_v5 = vsel %vm768_vm4, %v596_v12, %v6529_v16  ;;  %v594_v15 = vsel %vm562_vm3, %v6736_v37, 2147483647  ;;  %vm568_vm5 = vcmp.gt.s32.totalorder %v6740_v13, 4294967295 }
  0xfb   :  { %vm566_vm6 = vcmp.gt.s32.totalorder %v6760_v30, 4294967295  ;;  %694 = vmin.xlane.f32.xlu0 %v6845_v24  ;;  %v6857_v6 = vcvt.s32.f32 %v739_v32  ;;  %v771_v52 = vshra.s32 %v6851_v5, 16  ;;  %vm752_vm7 = vcmp.lt.s32.totalorder %v594_v15, %v6535_v18 }
  0xfc   :  { %v6859_v0 = vcvt.s32.f32 %v723_v21  ;;  %v6864_v55 = vsel %vm752_vm7, %v594_v15, %v6535_v18  ;;  %v600_v16 = vsel %vm568_vm5, %v6740_v13, 2147483647  ;;  %v598_v3 = vsel %vm566_vm6, %v6760_v30, 2147483647 }
  0xfd   :  { %vm572_vm8 = vcmp.gt.s32.totalorder %v6764_v33, 4294967295  ;;  %742 = vmin.xlane.f32.xlu1 %v6857_v6  ;;  %v6870_v38 = vcvt.s32.f32 %v771_v52  ;;  %v755_v44 = vshra.s32 %v6864_v55, 16  ;;  %vm800_vm9 = vcmp.lt.s32.totalorder %v600_v16, %v6537_v19 }
  0xfe   :  { %vm784_vm10 = vcmp.lt.s32.totalorder %v598_v3, %v6539_v20  ;;  %v6876_v45 = vsel %vm800_vm9, %v600_v16, %v6537_v19  ;;  %v604_v40 = vsel %vm572_vm8, %v6764_v33, 2147483647  ;;  %vm570_vm11 = vcmp.gt.s32.totalorder %v6791_v27, 4294967295 }
  0xff   :  { %v6879_v18 = vsel %vm784_vm10, %v598_v3, %v6539_v20  ;;  %726 = vmin.xlane.f32.xlu0 %v6859_v0  ;;  %v6884_v14 = vcvt.s32.f32 %v755_v44  ;;  %v803_v57 = vshra.s32 %v6876_v45, 16  ;;  %vm832_vm12 = vcmp.lt.s32.totalorder %v604_v40, %v6541_v25 }
 0x100   :  { %v787_v50 = vshra.s32 %v6879_v18, 16  ;;  %v6890_v19 = vsel %vm832_vm12, %v604_v40, %v6541_v25  ;;  %v602_v20 = vsel %vm570_vm11, %v6791_v27, 2147483647  ;;  %vm574_vm13 = vcmp.gt.s32.totalorder %v6815_v9, 4294967295 }
 0x101   :  { %v607_v61 = vsel %vm575_vm15, %v6798_v53, 2147483647  ;;  %774 = vmin.xlane.f32.xlu1 %v6870_v38  ;;  %v6898_v54 = vcvt.s32.f32 %v803_v57  ;;  %v835_v8 = vshra.s32 %v6890_v19, 16  ;;  %vm816_vm14 = vcmp.lt.s32.totalorder %v602_v20, %v12746_v47 }
 0x102   :  { %v6903_v11 = vsel %vm816_vm14, %v602_v20, %v12746_v47  ;;  %v606_v25 = vsel %vm574_vm13, %v6815_v9, 2147483647  ;;  %v6907_v10 = vcvt.s32.f32 %v787_v50  ;;  %v610_v52 = vand.u32 65535, %v6705_v46 }
 0x103   :  { %758 = vmin.xlane.f32.xlu0 %v6884_v14  ;;  %v819_v17 = vshra.s32 %v6903_v11, 16  ;;  %vm848_vm15 = vcmp.lt.s32.totalorder %v606_v25, %v607_v61  ;;  %v6913_v12 = vcvt.s32.f32 %v835_v8  ;;  %v626_v16 = vand.u32 65535, %v6710_v58 }
 0x104   :  { %v6910_v26 = vsel %vm848_vm15, %v606_v25, %v607_v61  ;;  %v612_v44 = vcvt.s32.f32 %v610_v52  ;;  %v642_v61 = vand.u32 65535, %v6772_v29  ;;  %v674_v8 = vand.u32 65535, %v6781_v49 }
 0x105   :  { %806 = vmin.xlane.f32.xlu1 %v6898_v54  ;;  %v6916_v32 = vcvt.s32.f32 %v819_v17  ;;  %v851_v21 = vshra.s32 %v6910_v26, 16  ;;  %v628_v57 = vcvt.s32.f32 %v626_v16  ;;  %v658_v47 = vand.u32 65535, %v6794_v4 }
 0x106   :  { %v644_v58 = vcvt.s32.f32 %v642_v61  ;;  %v676_v29 = vcvt.s32.f32 %v674_v8  ;;  %v690_v49 = vand.u32 65535, %v6825_v1  ;;  %v722_v1 = vand.u32 65535, %v6840_v2 }
 0x107   :  { %790 = vmin.xlane.f32.xlu0 %v6907_v10  ;;  %v6921_v15 = vcvt.s32.f32 %v851_v21  ;;  %v660_v17 = vcvt.s32.f32 %v658_v47  ;;  %v706_v21 = vand.u32 65535, %v6808_v62  ;;  %v738_v62 = vand.u32 65535, %v6837_v22 }
 0x108   :  { %v724_v61 = vcvt.s32.f32 %v722_v1  ;;  %v770_v22 = vand.u32 65535, %v6851_v5  ;;  %v754_v2 = vand.u32 65535, %v6864_v55  ;;  %v802_v5 = vand.u32 65535, %v6876_v45 }
 0x109   :  { %838 = vmin.xlane.f32.xlu1 %v6913_v12  ;;  %v708_v16 = vcvt.s32.f32 %v706_v21  ;;  %v786_v55 = vand.u32 65535, %v6879_v18  ;;  %v834_v45 = vand.u32 65535, %v6890_v19  ;;  %v818_v18 = vand.u32 65535, %v6903_v11 }
 0x10a   :  { %v772_v47 = vcvt.s32.f32 %v770_v22  ;;  %v804_v21 = vcvt.s32.f32 %v802_v5  ;;  %v850_v19 = vand.u32 65535, %v6910_v26 }
 0x10b   :  { %822 = vmin.xlane.f32.xlu0 %v6916_v32 }
 0x10c   :  { %v852_v1 = vcvt.s32.f32 %v850_v19 }
 0x10f   :  { %854 = vmin.xlane.f32.xlu0 %v6921_v15 }
 0x173   :  { %v6926_v3 = vpop.xlane.xlu0 %614 }
 0x174   :  { %vm616_vm0 = vcmp.eq.f32.partialorder %v6742_v35, %v6926_v3 }
 0x175   :  { %v6928_v40 = vpop.xlane.xlu1 %630  ;;  %v617_v50 = vsel %vm616_vm0, %v612_v44, inf  ;;  %v692_v44 = vcvt.s32.f32 %v690_v49  ;;  %v788_v49 = vcvt.s32.f32 %v786_v55 }
 0x176   :  { %vm632_vm1 = vcmp.eq.f32.partialorder %v6748_v42, %v6928_v40  ;;  %618 = vmin.xlane.f32.xlu1 %v617_v50 }
 0x177   :  { %v633_v20 = vsel %vm632_vm1, %v628_v57, inf }
 0x178   :  { %634 = vmin.xlane.f32.xlu0 %v633_v20  ;;  %v740_v20 = vcvt.s32.f32 %v738_v62 }
 0x17c   :  { %v6935_v46 = vpop.xlane.xlu0 %646 }
 0x17d   :  { %vm648_vm2 = vcmp.eq.f32.partialorder %v6786_v48, %v6935_v46 }
 0x17e   :  { %v6941_v35 = vpop.xlane.xlu1 %678  ;;  %v649_v25 = vsel %vm648_vm2, %v644_v58, inf }
 0x17f   :  { %650 = vmin.xlane.f32.xlu1 %v649_v25  ;;  %vm680_vm3 = vcmp.eq.f32.partialorder %v6803_v36, %v6941_v35  ;;  %v756_v25 = vcvt.s32.f32 %v754_v2 }
 0x180   :  { %v6945_v42 = vpop.xlane.xlu0 %662  ;;  %v681_v48 = vsel %vm680_vm3, %v676_v29, inf }
 0x181   :  { %vm664_vm4 = vcmp.eq.f32.partialorder %v6818_v23, %v6945_v42 }
 0x182   :  { %v6951_v4 = vpop.xlane.xlu1 %710  ;;  %v665_v52 = vsel %vm664_vm4, %v660_v17, inf }
 0x183   :  { %682 = vmin.xlane.f32.xlu1 %v681_v48  ;;  %666 = vmin.xlane.f32.xlu0 %v665_v52  ;;  %vm712_vm5 = vcmp.eq.f32.partialorder %v6831_v31, %v6951_v4 }
 0x184   :  { %v6955_v36 = vpop.xlane.xlu0 %694  ;;  %v713_v57 = vsel %vm712_vm5, %v708_v16, inf  ;;  %v836_v16 = vcvt.s32.f32 %v834_v45  ;;  %v717_v45 = vcvt.f32.s32 %v6951_v4 }
 0x185   :  { %vm696_vm6 = vcmp.eq.f32.partialorder %v6845_v24, %v6955_v36 }
 0x186   :  { %v6961_v23 = vpop.xlane.xlu1 %742  ;;  %v697_v50 = vsel %vm696_vm6, %v692_v44, inf  ;;  %v820_v44 = vcvt.s32.f32 %v818_v18 }
 0x187   :  { %714 = vmin.xlane.f32.xlu1 %v713_v57  ;;  %698 = vmin.xlane.f32.xlu0 %v697_v50  ;;  %vm744_vm7 = vcmp.eq.f32.partialorder %v6857_v6, %v6961_v23  ;;  %v621_v57 = vcvt.f32.s32 %v6926_v3  ;;  %v637_v50 = vcvt.f32.s32 %v6928_v40  ;;  %v685_v3 = vcvt.f32.s32 %v6941_v35 }
 0x188   :  { %v6965_v31 = vpop.xlane.xlu0 %726  ;;  %v745_v58 = vsel %vm744_vm7, %v740_v20, inf  ;;  %v669_v35 = vcvt.f32.s32 %v6945_v42 }
 0x189   :  { %vm728_vm8 = vcmp.eq.f32.partialorder %v6859_v0, %v6965_v31  ;;  %v622_v20 = vshll.u32 %v621_v57, 16  ;;  %v638_v22 = vshll.u32 %v637_v50, 16  ;;  %v733_v42 = vcvt.f32.s32 %v6965_v31 }
 0x18a   :  { %v6971_v24 = vpop.xlane.xlu1 %774  ;;  %v729_v8 = vsel %vm728_vm8, %v724_v61, inf }
 0x18b   :  { %746 = vmin.xlane.f32.xlu1 %v745_v58  ;;  %730 = vmin.xlane.f32.xlu0 %v729_v8  ;;  %vm776_vm9 = vcmp.eq.f32.partialorder %v6870_v38, %v6971_v24  ;;  %v653_v58 = vcvt.f32.s32 %v6935_v46 }
 0x18c   :  { %v6975_v6 = vpop.xlane.xlu0 %758  ;;  %v777_v29 = vsel %vm776_vm9, %v772_v47, inf }
 0x18d   :  { %vm760_vm10 = vcmp.eq.f32.partialorder %v6884_v14, %v6975_v6  ;;  %v654_v46 = vshll.u32 %v653_v58, 16  ;;  %v734_v58 = vshll.u32 %v733_v42, 16 }
 0x18e   :  { %v6981_v0 = vpop.xlane.xlu1 %806  ;;  %v761_v17 = vsel %vm760_vm10, %v756_v25, inf  ;;  %v7017_v25 = vld [vmem:[#allocation2 + $0x60] sm:$0xff] }
 0x18f   :  { %778 = vmin.xlane.f32.xlu1 %v777_v29  ;;  %762 = vmin.xlane.f32.xlu0 %v761_v17  ;;  %vm808_vm11 = vcmp.eq.f32.partialorder %v6898_v54, %v6981_v0  ;;  %v7022_v29 = vld [vmem:[#allocation2 + $0x8] sm:$0xff] }
 0x190   :  { %v6985_v38 = vpop.xlane.xlu0 %790  ;;  %v809_v48 = vsel %vm808_vm11, %v804_v21, inf }
 0x191   :  { %vm792_vm12 = vcmp.eq.f32.partialorder %v6907_v10, %v6985_v38 }
 0x192   :  { %v6991_v14 = vpop.xlane.xlu1 %838  ;;  %v793_v52 = vsel %vm792_vm12, %v788_v49, inf  ;;  %vm864_vm12 = vcmp.eq.s32.totalorder %v6476_v51, 0 }
 0x193   :  { %810 = vmin.xlane.f32.xlu1 %v809_v48  ;;  %794 = vmin.xlane.f32.xlu0 %v793_v52  ;;  %vm840_vm13 = vcmp.eq.f32.partialorder %v6913_v12, %v6991_v14  ;;  %v686_v48 = vshll.u32 %v685_v3, 16  ;;  %v701_v52 = vcvt.f32.s32 %v6955_v36  ;;  %v718_v36 = vshll.u32 %v717_v45, 16 }
 0x194   :  { %v6995_v54 = vpop.xlane.xlu0 %822  ;;  %v841_v11 = vsel %vm840_vm13, %v836_v16, inf  ;;  %v845_v42 = vcvt.f32.s32 %v6991_v14 }
 0x195   :  { %vm824_vm14 = vcmp.eq.f32.partialorder %v6916_v32, %v6995_v54 }
 0x196   :  { %v825_v10 = vsel %vm824_vm14, %v820_v44, inf }
 0x197   :  { %842 = vmin.xlane.f32.xlu1 %v841_v11  ;;  %826 = vmin.xlane.f32.xlu0 %v825_v10 }
 0x198   :  { %v7000_v62 = vpop.xlane.xlu0 %854 }
 0x199   :  { %vm856_vm15 = vcmp.eq.f32.partialorder %v6921_v15, %v7000_v62  ;;  %v12747_v15 = vld [vmem:[#allocation9_spill] sm:$0xff] }
 0x19a   :  { %v857_v12 = vsel %vm856_vm15, %v852_v1, inf  ;;  %v670_v1 = vshll.u32 %v669_v35, 16 }
 0x19b   :  { %858 = vmin.xlane.f32.xlu0 %v857_v12 }
 0x1ff   :  { %v619_v26 = vpop.xlane.xlu1 %618 }
 0x200   :  { %v620_v61 = vcvt.f32.s32 %v619_v26  ;;  %v781_v26 = vcvt.f32.s32 %v6971_v24  ;;  %v797_v24 = vcvt.f32.s32 %v6985_v38 }
 0x201   :  { %v635_v32 = vpop.xlane.xlu0 %634 }
 0x202   :  { %v636_v2 = vcvt.f32.s32 %v635_v32  ;;  %v7007_v8 = vadd.s32 %v622_v20, %v620_v61 }
 0x204   :  { %v7009_v47 = vadd.s32 %v638_v22, %v636_v2  ;;  %vm881_vm0 = vcmp.gt.s32.totalorder %v6626_v41, %v7007_v8  ;;  %vm882_vm1 = vcmp.gt.s32.totalorder %v12747_v15, %v7007_v8  ;;  %v702_v2 = vshll.u32 %v701_v52, 16 }
 0x205   :  { %v913_v40 = vsel %vm881_vm0, %v6626_v41, 2147483647  ;;  %v914_v5 = vsel %vm882_vm1, %v7017_v25, 2147483647 }
 0x206   :  { %vm883_vm2 = vcmp.gt.s32.totalorder %v6628_v28, %v7009_v47  ;;  %vm945_vm3 = vcmp.lt.s32.totalorder %v913_v40, %v914_v5  ;;  %vm884_vm4 = vcmp.gt.s32.totalorder %v7022_v29, %v7009_v47 }
 0x207   :  { %v915_v17 = vsel %vm883_vm2, %v6628_v28, 2147483647  ;;  %v7028_v21 = vsel %vm945_vm3, %v913_v40, %v914_v5  ;;  %v916_v49 = vsel %vm884_vm4, %v7022_v29, 2147483647  ;;  %v749_v28 = vcvt.f32.s32 %v6961_v23  ;;  %v7048_v23 = vld [vmem:[#allocation2 + $0xb0] sm:$0xff] }
 0x208   :  { %v651_v55 = vpop.xlane.xlu1 %650  ;;  %v948_v18 = vshra.s32 %v7028_v21, 16  ;;  %vm961_vm5 = vcmp.lt.s32.totalorder %v915_v17, %v916_v49  ;;  %v813_v40 = vcvt.f32.s32 %v6981_v0 }
 0x209   :  { %v652_v41 = vcvt.f32.s32 %v651_v55  ;;  %v7036_v44 = vsel %vm961_vm5, %v915_v17, %v916_v49  ;;  %v750_v22 = vshll.u32 %v749_v28, 16  ;;  %v7067_v55 = vld [vmem:[#allocation2 + $0xa8] sm:$0xff]  ;;  %v782_v17 = vshll.u32 %v781_v26, 16 }
 0x20a   :  { %v7040_v10 = vcvt.s32.f32 %v948_v18  ;;  %v964_v4 = vshra.s32 %v7036_v44, 16  ;;  %v7079_v18 = vld [vmem:[#allocation2 + $0x38] sm:$0xff]  ;;  %v814_v52 = vshll.u32 %v813_v40, 16  ;;  %v7098_v26 = vld [vmem:[#allocation2 + $0x68] sm:$0xff] }
 0x20b   :  { %v7034_v16 = vadd.s32 %v654_v46, %v652_v41 }
 0x20c   :  { %v683_v19 = vpop.xlane.xlu1 %682  ;;  %v667_v11 = vpop.xlane.xlu0 %666  ;;  %951 = vmin.xlane.f32.xlu1 %v7040_v10  ;;  %v7046_v50 = vcvt.s32.f32 %v964_v4 }
 0x20d   :  { %v684_v12 = vcvt.f32.s32 %v683_v19  ;;  %v668_v57 = vcvt.f32.s32 %v667_v11  ;;  %vm885_vm6 = vcmp.gt.s32.totalorder %v6645_v43, %v7034_v16  ;;  %vm886_vm7 = vcmp.gt.s32.totalorder %v7048_v23, %v7034_v16 }
 0x20e   :  { %v917_v31 = vsel %vm885_vm6, %v6645_v43, 2147483647  ;;  %v918_v32 = vsel %vm886_vm7, %v7048_v23, 2147483647  ;;  %967 = vmin.xlane.f32.xlu0 %v7046_v50  ;;  %v765_v43 = vcvt.f32.s32 %v6975_v6  ;;  %v798_v19 = vshll.u32 %v797_v24, 16 }
 0x20f   :  { %v7054_v20 = vadd.s32 %v686_v48, %v684_v12  ;;  %v7056_v61 = vadd.s32 %v670_v1, %v668_v57  ;;  %vm977_vm8 = vcmp.lt.s32.totalorder %v917_v31, %v918_v32 }
 0x210   :  { %v715_v15 = vpop.xlane.xlu1 %714  ;;  %v699_v3 = vpop.xlane.xlu0 %698  ;;  %v7063_v46 = vsel %vm977_vm8, %v917_v31, %v918_v32  ;;  %v766_v28 = vshll.u32 %v765_v43, 16  ;;  %v846_v32 = vshll.u32 %v845_v42, 16 }
 0x211   :  { %v716_v5 = vcvt.f32.s32 %v715_v15  ;;  %vm889_vm9 = vcmp.gt.s32.totalorder %v6649_v34, %v7054_v20  ;;  %vm890_vm10 = vcmp.gt.s32.totalorder %v7067_v55, %v7054_v20  ;;  %vm887_vm11 = vcmp.gt.s32.totalorder %v6666_v39, %v7056_v61 }
 0x212   :  { %v700_v6 = vcvt.f32.s32 %v699_v3  ;;  %v980_v38 = vshra.s32 %v7063_v46, 16  ;;  %v921_v49 = vsel %vm889_vm9, %v6649_v34, 2147483647  ;;  %v922_v45 = vsel %vm890_vm10, %v7067_v55, 2147483647 }
 0x213   :  { %v7073_v0 = vadd.s32 %v718_v36, %v716_v5  ;;  %vm888_vm13 = vcmp.gt.s32.totalorder %v7079_v18, %v7056_v61  ;;  %v919_v48 = vsel %vm887_vm11, %v6666_v39, 2147483647  ;;  %vm1009_vm14 = vcmp.lt.s32.totalorder %v921_v49, %v922_v45 }
 0x214   :  { %v747_v35 = vpop.xlane.xlu1 %746  ;;  %v731_v41 = vpop.xlane.xlu0 %730  ;;  %v7085_v4 = vcvt.s32.f32 %v980_v38  ;;  %v920_v34 = vsel %vm888_vm13, %v7079_v18, 2147483647  ;;  %v7088_v1 = vadd.s32 %v702_v2, %v700_v6  ;;  %v7090_v12 = vsel %vm1009_vm14, %v921_v49, %v922_v45  ;;  %v7123_v49 = vld [vmem:[#allocation2 + $0xd8] sm:$0xff] }
 0x215   :  { %v748_v11 = vcvt.f32.s32 %v747_v35  ;;  %vm993_vm15 = vcmp.lt.s32.totalorder %v919_v48, %v920_v34  ;;  %vm893_vm0 = vcmp.gt.s32.totalorder %v6670_v7, %v7073_v0  ;;  %v732_v39 = vcvt.f32.s32 %v731_v41 }
 0x216   :  { %983 = vmin.xlane.f32.xlu1 %v7085_v4  ;;  %v1012_v36 = vshra.s32 %v7090_v12, 16  ;;  %v7096_v31 = vsel %vm993_vm15, %v919_v48, %v920_v34  ;;  %vm894_vm1 = vcmp.gt.s32.totalorder %v7098_v26, %v7073_v0  ;;  %v829_v2 = vcvt.f32.s32 %v6995_v54 }
 0x217   :  { %v861_v15 = vcvt.f32.s32 %v7000_v62  ;;  %v7104_v40 = vadd.s32 %v750_v22, %v748_v11  ;;  %v996_v24 = vshra.s32 %v7096_v31, 16  ;;  %v925_v5 = vsel %vm893_vm0, %v6670_v7, 2147483647  ;;  %v7139_v11 = vld [vmem:[#allocation2] sm:$0xff] }
 0x218   :  { %v779_v57 = vpop.xlane.xlu1 %778  ;;  %v763_v14 = vpop.xlane.xlu0 %762  ;;  %v7106_v43 = vcvt.s32.f32 %v1012_v36  ;;  %v926_v35 = vsel %vm894_vm1, %v7098_v26, 2147483647  ;;  %vm891_vm2 = vcmp.gt.s32.totalorder %v6688_v63, %v7088_v1  ;;  %v7118_v54 = vadd.s32 %v734_v58, %v732_v39 }
 0x219   :  { %v764_v3 = vcvt.f32.s32 %v763_v14  ;;  %v780_v6 = vcvt.f32.s32 %v779_v57  ;;  %v7121_v62 = vcvt.s32.f32 %v996_v24  ;;  %vm1041_vm3 = vcmp.lt.s32.totalorder %v925_v5, %v926_v35 }
 0x21a   :  { %1015 = vmin.xlane.f32.xlu1 %v7106_v43  ;;  %vm892_vm4 = vcmp.gt.s32.totalorder %v7123_v49, %v7088_v1  ;;  %v923_v48 = vsel %vm891_vm2, %v6688_v63, 2147483647  ;;  %vm897_vm5 = vcmp.gt.s32.totalorder %v6692_v56, %v7104_v40  ;;  %vm898_vm6 = vcmp.gt.s32.totalorder %v7139_v11, %v7104_v40 }
 0x21b   :  { %v7113_v38 = vadd.s32 %v766_v28, %v764_v3  ;;  %999 = vmin.xlane.f32.xlu0 %v7121_v62  ;;  %v7134_v28 = vsel %vm1041_vm3, %v925_v5, %v926_v35  ;;  %v924_v42 = vsel %vm892_vm4, %v7123_v49, 2147483647  ;;  %v7143_v34 = vadd.s32 %v782_v17, %v780_v6 }
 0x21c   :  { %v811_v22 = vpop.xlane.xlu1 %810  ;;  %v795_v41 = vpop.xlane.xlu0 %794  ;;  %v1044_v63 = vshra.s32 %v7134_v28, 16  ;;  %vm1025_vm7 = vcmp.lt.s32.totalorder %v923_v48, %v924_v42  ;;  %v929_v3 = vsel %vm897_vm5, %v6692_v56, 2147483647  ;;  %v930_v24 = vsel %vm898_vm6, %v7139_v11, 2147483647 }
 0x21d   :  { %v7130_v7 = vsel %vm864_vm12, %v7113_v38, 2147483647  ;;  %v812_v45 = vcvt.f32.s32 %v811_v22  ;;  %v796_v58 = vcvt.f32.s32 %v795_v41  ;;  %vm895_vm8 = vcmp.gt.s32.totalorder %v6714_v59, %v7118_v54  ;;  %v7170_v41 = vld [vmem:[#allocation2 + $0x98] sm:$0xff] }
 0x21e   :  { %v7166_v5 = vsel %vm1025_vm7, %v923_v48, %v924_v42  ;;  %v830_v56 = vshll.u32 %v829_v2, 16  ;;  %vm1073_vm9 = vcmp.lt.s32.totalorder %v929_v3, %v930_v24  ;;  %vm896_vm10 = vcmp.gt.s32.totalorder %v7170_v41, %v7118_v54 }
 0x21f   :  { %v7145_v39 = vadd.s32 %v814_v52, %v812_v45  ;;  %v7147_v57 = vadd.s32 %v798_v19, %v796_v58  ;;  %v7164_v19 = vcvt.s32.f32 %v1044_v63  ;;  %v1028_v6 = vshra.s32 %v7166_v5, 16 }
 0x220   :  { %v843_v14 = vpop.xlane.xlu1 %842  ;;  %v827_v36 = vpop.xlane.xlu0 %826  ;;  %v927_v45 = vsel %vm895_vm8, %v6714_v59, 2147483647  ;;  %vm901_vm11 = vcmp.gt.s32.totalorder %v6718_v60, %v7143_v34  ;;  %v7181_v42 = vsel %vm1073_vm9, %v929_v3, %v930_v24  ;;  %v7195_v3 = vld [vmem:[#allocation2 + $0xd0] sm:$0xff]  ;;  %vm899_vm15 = vcmp.gt.s32.totalorder %v6736_v37, %v7113_v38 }
 0x221   :  { %v7157_v17 = vsel %vm864_vm12, %v7145_v39, 2147483647  ;;  %v7162_v52 = vsel %vm864_vm12, %v7147_v57, 2147483647  ;;  %v844_v35 = vcvt.f32.s32 %v843_v14  ;;  %v828_v22 = vcvt.f32.s32 %v827_v36  ;;  %1047 = vmin.xlane.f32.xlu1 %v7164_v19 }
 0x222   :  { %12748 = vst [vmem:[#allocation10_spill] sm:$0xff] %v7157_v17  ;;  %12749 = vst [vmem:[#allocation9_spill] sm:$0xff] %v7162_v52  ;;  %v7177_v58 = vcvt.s32.f32 %v1028_v6  ;;  %v862_v14 = vshll.u32 %v861_v15, 16  ;;  %v1076_v36 = vshra.s32 %v7181_v42, 16  ;;  %v928_v52 = vsel %vm896_vm10, %v7170_v41, 2147483647 }
 0x223   :  { %v847_v2 = vadd.s32 %v846_v32, %v844_v35  ;;  %v7179_v48 = vadd.s32 %v830_v56, %v828_v22  ;;  %vm1057_vm13 = vcmp.lt.s32.totalorder %v927_v45, %v928_v52  ;;  %vm902_vm14 = vcmp.gt.s32.totalorder %v7195_v3, %v7143_v34 }
 0x224   :  { %v859_v63 = vpop.xlane.xlu0 %858  ;;  %1031 = vmin.xlane.f32.xlu0 %v7177_v58  ;;  %v7199_v15 = vcvt.s32.f32 %v1076_v36  ;;  %v7201_v24 = vsel %vm1057_vm13, %v927_v45, %v928_v52  ;;  %v933_v6 = vsel %vm901_vm11, %v6718_v60, 2147483647  ;;  %v934_v22 = vsel %vm902_vm14, %v7195_v3, 2147483647 }
 0x225   :  { %v860_v17 = vcvt.f32.s32 %v859_v63  ;;  %v7188_v59 = vsel %vm864_vm12, %v847_v2, 2147483647  ;;  %v7193_v32 = vsel %vm864_vm12, %v7179_v48, 2147483647  ;;  %v1060_v35 = vshra.s32 %v7201_v24, 16 }
 0x226   :  { %12750 = vst [vmem:[#allocation11_spill] sm:$0xff] %v7188_v59  ;;  %12751 = vst [vmem:[#allocation12_spill] sm:$0xff] %v7193_v32  ;;  %1079 = vmin.xlane.f32.xlu1 %v7199_v15  ;;  %vm1105_vm0 = vcmp.lt.s32.totalorder %v933_v6, %v934_v22  ;;  %v931_v60 = vsel %vm899_vm15, %v6736_v37, 2147483647  ;;  %vm905_vm2 = vcmp.gt.s32.totalorder %v6740_v13, %v7145_v39  ;;  %v7245_v59 = vld [vmem:[#allocation2 + $0x70] sm:$0xff] }
 0x227   :  { %v863_v56 = vadd.s32 %v862_v14, %v860_v17  ;;  %v7216_v17 = vld [vmem:[#allocation2 + $0x10] sm:$0xff]  ;;  %v7221_v52 = vcvt.s32.f32 %v1060_v35  ;;  %v7223_v45 = vsel %vm1105_vm0, %v933_v6, %v934_v22  ;;  %vm903_vm5 = vcmp.gt.s32.totalorder %v6760_v30, %v7147_v57  ;;  %12754 = vst [vmem:[#allocation15_spill] sm:$0xff] %v7245_v59 }
 0x228   :  { %vm900_vm1 = vcmp.gt.s32.totalorder %v7216_v17, %v7113_v38  ;;  %v1108_v36 = vshra.s32 %v7223_v45, 16  ;;  %v937_v38 = vsel %vm905_vm2, %v6740_v13, 2147483647  ;;  %vm904_vm7 = vcmp.gt.s32.totalorder %v7245_v59, %v7147_v57 }
 0x229   :  { %v7214_v63 = vsel %vm864_vm12, %v863_v56, 2147483647  ;;  %v932_v14 = vsel %vm900_vm1, %v7216_v17, 2147483647  ;;  %1063 = vmin.xlane.f32.xlu0 %v7221_v52  ;;  %vm909_vm8 = vcmp.gt.s32.totalorder %v6764_v33, %v847_v2  ;;  %vm907_vm11 = vcmp.gt.s32.totalorder %v6791_v27, %v7179_v48 }
 0x22a   :  { %12752 = vst [vmem:[#allocation13_spill] sm:$0xff] %v7214_v63  ;;  %vm1089_vm3 = vcmp.lt.s32.totalorder %v931_v60, %v932_v14  ;;  %v7229_v63 = vld [vmem:[#allocation2 + $0xc8] sm:$0xff]  ;;  %v7240_v35 = vcvt.s32.f32 %v1108_v36  ;;  %v7256_v36 = vld [vmem:[#allocation2 + $0x18] sm:$0xff]  ;;  %vm911_vm15 = vcmp.gt.s32.totalorder %v6815_v9, %v863_v56  ;;  %vm912_vm0 = vcmp.gt.s32.totalorder %v6798_v53, %v863_v56 }
 0x22b   :  { %12753 = vst [vmem:[#allocation14_spill] sm:$0xff] %v7229_v63  ;;  %vm906_vm4 = vcmp.gt.s32.totalorder %v7229_v63, %v7145_v39  ;;  %v7234_v37 = vsel %vm1089_vm3, %v931_v60, %v932_v14  ;;  %v935_v39 = vsel %vm903_vm5, %v6760_v30, 2147483647  ;;  %v936_v14 = vsel %vm904_vm7, %v7245_v59, 2147483647  ;;  %12755 = vst [vmem:[#allocation16_spill] sm:$0xff] %v7256_v36 }
 0x22c   :  { %v938_v6 = vsel %vm906_vm4, %v7229_v63, 2147483647  ;;  %v1092_v22 = vshra.s32 %v7234_v37, 16  ;;  %1111 = vmin.xlane.f32.xlu1 %v7240_v35  ;;  %vm1121_vm9 = vcmp.lt.s32.totalorder %v935_v39, %v936_v14  ;;  %vm910_vm10 = vcmp.gt.s32.totalorder %v7256_v36, %v847_v2 }
 0x22d   :  { %vm1137_vm6 = vcmp.lt.s32.totalorder %v937_v38, %v938_v6  ;;  %v7265_v57 = vsel %vm1121_vm9, %v935_v39, %v936_v14 }
 0x22e   :  { %v7243_v32 = vsel %vm1137_vm6, %v937_v38, %v938_v6  ;;  %v7252_v13 = vcvt.s32.f32 %v1092_v22  ;;  %v941_v38 = vsel %vm909_vm8, %v6764_v33, 2147483647  ;;  %v942_v6 = vsel %vm910_vm10, %v7256_v36, 2147483647  ;;  %v7268_v22 = vld [vmem:[#allocation2 + $0xe0] sm:$0xff] }
 0x22f   :  { %v1140_v60 = vshra.s32 %v7243_v32, 16  ;;  %12756 = vst [vmem:[#allocation17_spill] sm:$0xff] %v7268_v22  ;;  %vm908_vm13 = vcmp.gt.s32.totalorder %v7268_v22, %v7179_v48  ;;  %v1124_v2 = vshra.s32 %v7265_v57, 16  ;;  %vm1169_vm14 = vcmp.lt.s32.totalorder %v941_v38, %v942_v6 }
 0x230   :  { %1095 = vmin.xlane.f32.xlu0 %v7252_v13  ;;  %v939_v33 = vsel %vm907_vm11, %v6791_v27, 2147483647  ;;  %v7275_v59 = vsel %vm1169_vm14, %v941_v38, %v942_v6  ;;  %v943_v36 = vsel %vm911_vm15, %v6815_v9, 2147483647  ;;  %v944_v27 = vsel %vm912_vm0, %v6798_v53, 2147483647 }
 0x231   :  { %v7263_v30 = vcvt.s32.f32 %v1140_v60  ;;  %v940_v60 = vsel %vm908_vm13, %v7268_v22, 2147483647  ;;  %v7280_v39 = vcvt.s32.f32 %v1124_v2  ;;  %v1172_v14 = vshra.s32 %v7275_v59, 16 }
 0x232   :  { %vm1153_vm1 = vcmp.lt.s32.totalorder %v939_v33, %v940_v60  ;;  %vm1185_vm2 = vcmp.lt.s32.totalorder %v943_v36, %v944_v27  ;;  %v947_v53 = vand.u32 65535, %v7028_v21  ;;  %v979_v21 = vand.u32 65535, %v7063_v46 }
 0x233   :  { %1143 = vmin.xlane.f32.xlu1 %v7263_v30  ;;  %v7283_v48 = vsel %vm1153_vm1, %v939_v33, %v940_v60  ;;  %v7288_v38 = vcvt.s32.f32 %v1172_v14  ;;  %v7291_v22 = vsel %vm1185_vm2, %v943_v36, %v944_v27  ;;  %v963_v33 = vand.u32 65535, %v7036_v44 }
 0x234   :  { %1127 = vmin.xlane.f32.xlu0 %v7280_v39  ;;  %v1156_v6 = vshra.s32 %v7283_v48, 16  ;;  %v1188_v2 = vshra.s32 %v7291_v22, 16  ;;  %v949_v36 = vcvt.s32.f32 %v947_v53  ;;  %v1011_v44 = vand.u32 65535, %v7090_v12 }
 0x235   :  { %v981_v53 = vcvt.s32.f32 %v979_v21 }
 0x236   :  { %v7294_v56 = vcvt.s32.f32 %v1156_v6  ;;  %v7298_v9 = vcvt.s32.f32 %v1188_v2  ;;  %v965_v6 = vcvt.s32.f32 %v963_v33 }
 0x237   :  { %1175 = vmin.xlane.f32.xlu1 %v7288_v38 }
 0x238   :  { %1159 = vmin.xlane.f32.xlu0 %v7294_v56 }
 0x23c   :  { %1191 = vmin.xlane.f32.xlu0 %v7298_v9 }
 0x295   :  { %v7303_v60 = vpop.xlane.xlu1 %951 }
 0x296   :  { %vm953_vm3 = vcmp.eq.f32.partialorder %v7040_v10, %v7303_v60  ;;  %v995_v10 = vand.u32 65535, %v7096_v31  ;;  %v1027_v31 = vand.u32 65535, %v7166_v5 }
 0x297   :  { %v7307_v14 = vpop.xlane.xlu0 %967  ;;  %v954_v27 = vsel %vm953_vm3, %v949_v36, inf }
 0x298   :  { %955 = vmin.xlane.f32.xlu1 %v954_v27  ;;  %vm969_vm4 = vcmp.eq.f32.partialorder %v7046_v50, %v7307_v14  ;;  %v1013_v27 = vcvt.s32.f32 %v1011_v44  ;;  %v997_v12 = vcvt.s32.f32 %v995_v10 }
 0x299   :  { %v970_v2 = vsel %vm969_vm4, %v965_v6, inf  ;;  %v1043_v6 = vand.u32 65535, %v7134_v28  ;;  %v1029_v28 = vcvt.s32.f32 %v1027_v31  ;;  %vm1201_vm4 = vcmp.eq.s32.totalorder %v6476_v51, 1 }
 0x29a   :  { %971 = vmin.xlane.f32.xlu0 %v970_v2 }
 0x29b   :  { %v1045_v21 = vcvt.s32.f32 %v1043_v6 }
 0x29f   :  { %v7313_v63 = vpop.xlane.xlu1 %983 }
 0x2a0   :  { %vm985_vm5 = vcmp.eq.f32.partialorder %v7085_v4, %v7313_v63 }
 0x2a1   :  { %v986_v36 = vsel %vm985_vm5, %v981_v53, inf }
 0x2a2   :  { %987 = vmin.xlane.f32.xlu1 %v986_v36 }
 0x2a3   :  { %v7318_v33 = vpop.xlane.xlu1 %1015 }
 0x2a4   :  { %vm1017_vm6 = vcmp.eq.f32.partialorder %v7106_v43, %v7318_v33  ;;  %v7322_v50 = vpop.xlane.xlu0 %999  ;;  %v1075_v43 = vand.u32 65535, %v7181_v42 }
 0x2a5   :  { %v1018_v46 = vsel %vm1017_vm6, %v1013_v27, inf  ;;  %vm1001_vm7 = vcmp.eq.f32.partialorder %v7121_v62, %v7322_v50  ;;  %v1059_v62 = vand.u32 65535, %v7201_v24  ;;  %v1139_v24 = vand.u32 65535, %v7243_v32 }
 0x2a6   :  { %1019 = vmin.xlane.f32.xlu1 %v1018_v46  ;;  %v1002_v4 = vsel %vm1001_vm7, %v997_v12, inf  ;;  %v1077_v36 = vcvt.s32.f32 %v1075_v43  ;;  %v1091_v12 = vand.u32 65535, %v7234_v37  ;;  %v1171_v43 = vand.u32 65535, %v7275_v59 }
 0x2a7   :  { %1003 = vmin.xlane.f32.xlu0 %v1002_v4  ;;  %v1061_v46 = vcvt.s32.f32 %v1059_v62  ;;  %v1141_v32 = vcvt.s32.f32 %v1139_v24  ;;  %v1187_v59 = vand.u32 65535, %v7291_v22  ;;  %v958_v22 = vcvt.f32.s32 %v7303_v60  ;;  %v7391_v60 = vld [vmem:[#allocation2 + $0x78] sm:$0xff] }
 0x2a8   :  { %v1093_v31 = vcvt.s32.f32 %v1091_v12 }
 0x2aa   :  { %v7328_v2 = vpop.xlane.xlu1 %1047 }
 0x2ab   :  { %vm1049_vm8 = vcmp.eq.f32.partialorder %v7164_v19, %v7328_v2  ;;  %v1107_v19 = vand.u32 65535, %v7223_v45 }
 0x2ac   :  { %v1050_v44 = vsel %vm1049_vm8, %v1045_v21, inf  ;;  %v1123_v21 = vand.u32 65535, %v7265_v57 }
 0x2ad   :  { %v7333_v53 = vpop.xlane.xlu0 %1031  ;;  %1051 = vmin.xlane.f32.xlu1 %v1050_v44  ;;  %v1109_v4 = vcvt.s32.f32 %v1107_v19  ;;  %v1155_v44 = vand.u32 65535, %v7283_v48 }
 0x2ae   :  { %vm1033_vm9 = vcmp.eq.f32.partialorder %v7177_v58, %v7333_v53  ;;  %v1125_v57 = vcvt.s32.f32 %v1123_v21  ;;  %v865_v21 = vsel %vm864_vm12, %v7007_v8, 2147483647 }
 0x2af   :  { %v1034_v10 = vsel %vm1033_vm9, %v1029_v28, inf  ;;  %v7338_v5 = vpop.xlane.xlu1 %1079 }
 0x2b0   :  { %1035 = vmin.xlane.f32.xlu0 %v1034_v10  ;;  %vm1081_vm10 = vcmp.eq.f32.partialorder %v7199_v15, %v7338_v5  ;;  %v1173_v10 = vcvt.s32.f32 %v1171_v43 }
 0x2b1   :  { %v1082_v42 = vsel %vm1081_vm10, %v1077_v36, inf  ;;  %v1157_v36 = vcvt.s32.f32 %v1155_v44  ;;  %v7405_v44 = vld [vmem:[#allocation2 + $0xb8] sm:$0xff] }
 0x2b2   :  { %v7343_v27 = vpop.xlane.xlu0 %1063  ;;  %1083 = vmin.xlane.f32.xlu1 %v1082_v42  ;;  %v1189_v42 = vcvt.s32.f32 %v1187_v59  ;;  %v1022_v59 = vcvt.f32.s32 %v7318_v33  ;;  %v1054_v33 = vcvt.f32.s32 %v7328_v2 }
 0x2b3   :  { %vm1065_vm11 = vcmp.eq.f32.partialorder %v7221_v52, %v7343_v27 }
 0x2b4   :  { %v1066_v58 = vsel %vm1065_vm11, %v1061_v46, inf  ;;  %v1023_v2 = vshll.u32 %v1022_v59, 16 }
 0x2b5   :  { %1067 = vmin.xlane.f32.xlu0 %v1066_v58  ;;  %v7349_v6 = vpop.xlane.xlu1 %1111  ;;  %v959_v58 = vshll.u32 %v958_v22, 16  ;;  %v868_v22 = vsel %vm864_vm12, %v7056_v61, 2147483647 }
 0x2b6   :  { %vm1113_vm13 = vcmp.eq.f32.partialorder %v7240_v35, %v7349_v6 }
 0x2b7   :  { %v1114_v45 = vsel %vm1113_vm13, %v1109_v4, inf }
 0x2b8   :  { %1115 = vmin.xlane.f32.xlu1 %v1114_v45 }
 0x2b9   :  { %v7353_v15 = vpop.xlane.xlu0 %1095 }
 0x2ba   :  { %vm1097_vm14 = vcmp.eq.f32.partialorder %v7252_v13, %v7353_v15 }
 0x2bb   :  { %v1098_v52 = vsel %vm1097_vm14, %v1093_v31, inf }
 0x2bc   :  { %v7358_v37 = vpop.xlane.xlu1 %1143  ;;  %1099 = vmin.xlane.f32.xlu0 %v1098_v52  ;;  %v866_v52 = vsel %vm864_vm12, %v7009_v47, 2147483647 }
 0x2bd   :  { %vm1145_vm15 = vcmp.eq.f32.partialorder %v7263_v30, %v7358_v37  ;;  %v7364_v28 = vpop.xlane.xlu0 %1127 }
 0x2be   :  { %v1146_v35 = vsel %vm1145_vm15, %v1141_v32, inf  ;;  %vm1129_vm0 = vcmp.eq.f32.partialorder %v7280_v39, %v7364_v28  ;;  %v990_v32 = vcvt.f32.s32 %v7313_v63 }
 0x2bf   :  { %1147 = vmin.xlane.f32.xlu1 %v1146_v35  ;;  %v1130_v13 = vsel %vm1129_vm0, %v1125_v57, inf }
 0x2c0   :  { %v7368_v62 = vpop.xlane.xlu1 %1175  ;;  %1131 = vmin.xlane.f32.xlu0 %v1130_v13 }
 0x2c1   :  { %vm1177_vm1 = vcmp.eq.f32.partialorder %v7288_v38, %v7368_v62  ;;  %v7373_v30 = vpop.xlane.xlu0 %1159  ;;  %v974_v38 = vcvt.f32.s32 %v7307_v14 }
 0x2c2   :  { %v1178_v48 = vsel %vm1177_vm1, %v1173_v10, inf  ;;  %vm1161_vm2 = vcmp.eq.f32.partialorder %v7294_v56, %v7373_v30  ;;  %v869_v10 = vsel %vm864_vm12, %v7054_v20, 2147483647  ;;  %v7433_v20 = vsel %vm864_vm12, %v7073_v0, 2147483647 }
 0x2c3   :  { %1179 = vmin.xlane.f32.xlu1 %v1178_v48  ;;  %v1162_v19 = vsel %vm1161_vm2, %v1157_v36, inf  ;;  %v975_v4 = vshll.u32 %v974_v38, 16  ;;  %v1006_v48 = vcvt.f32.s32 %v7322_v50  ;;  %v1038_v50 = vcvt.f32.s32 %v7333_v53 }
 0x2c4   :  { %1163 = vmin.xlane.f32.xlu0 %v1162_v19  ;;  %v7440_v38 = vsel %vm864_vm12, %v7088_v1, 2147483647  ;;  %v7453_v0 = vsel %vm864_vm12, %v7118_v54, 2147483647  ;;  %v7458_v1 = vsel %vm864_vm12, %v7143_v34, 2147483647 }
 0x2c5   :  { %v7377_v39 = vpop.xlane.xlu0 %1191  ;;  %v1007_v53 = vshll.u32 %v1006_v48, 16 }
 0x2c6   :  { %vm1193_vm3 = vcmp.eq.f32.partialorder %v7298_v9, %v7377_v39 }
 0x2c7   :  { %v1194_v46 = vsel %vm1193_vm3, %v1189_v42, inf  ;;  %v991_v42 = vshll.u32 %v990_v32, 16 }
 0x2c8   :  { %1195 = vmin.xlane.f32.xlu0 %v1194_v46 }
 0x321   :  { %v956_v12 = vpop.xlane.xlu1 %955 }
 0x322   :  { %v957_v24 = vcvt.f32.s32 %v956_v12  ;;  %v7445_v12 = vsel %vm864_vm12, %v7104_v40, 2147483647 }
 0x323   :  { %v972_v56 = vpop.xlane.xlu0 %971 }
 0x324   :  { %v960_v45 = vadd.s32 %v959_v58, %v957_v24  ;;  %v973_v31 = vcvt.f32.s32 %v972_v56  ;;  %v7464_v56 = vld [vmem:[#allocation2 + $0x88] sm:$0xff] }
 0x326   :  { %v7389_v9 = vsel %vm1201_vm4, %v960_v45, %v865_v21  ;;  %vm1218_vm5 = vcmp.gt.s32.totalorder %v7391_v60, %v960_v45  ;;  %vm1219_vm6 = vcmp.gt.s32.totalorder %v7017_v25, %v960_v45  ;;  %v976_v14 = vadd.s32 %v975_v4, %v973_v31 }
 0x327   :  { %v1250_v43 = vsel %vm1218_vm5, %v7391_v60, 2147483647  ;;  %v1251_v8 = vsel %vm1219_vm6, %v7017_v25, 2147483647  ;;  %v867_v25 = vsel %vm864_vm12, %v7034_v16, 2147483647 }
 0x328   :  { %v7403_v35 = vsel %vm1201_vm4, %v976_v14, %v866_v52  ;;  %vm1220_vm7 = vcmp.gt.s32.totalorder %v7405_v44, %v976_v14  ;;  %vm1221_vm8 = vcmp.gt.s32.totalorder %v7022_v29, %v976_v14  ;;  %vm1282_vm9 = vcmp.lt.s32.totalorder %v1250_v43, %v1251_v8 }
 0x329   :  { %v7409_v57 = vsel %vm1282_vm9, %v1250_v43, %v1251_v8  ;;  %v1252_v47 = vsel %vm1220_vm7, %v7405_v44, 2147483647  ;;  %v1253_v63 = vsel %vm1221_vm8, %v7022_v29, 2147483647  ;;  %v1055_v4 = vshll.u32 %v1054_v33, 16 }
 0x32a   :  { %v1285_v13 = vshra.s32 %v7409_v57, 16  ;;  %vm1298_vm10 = vcmp.lt.s32.totalorder %v1252_v47, %v1253_v63  ;;  %v1039_v45 = vshll.u32 %v1038_v50, 16  ;;  %v1086_v14 = vcvt.f32.s32 %v7338_v5 }
 0x32b   :  { %v988_v36 = vpop.xlane.xlu1 %987  ;;  %v7422_v19 = vsel %vm1298_vm10, %v1252_v47, %v1253_v63  ;;  %v1070_v43 = vcvt.f32.s32 %v7343_v27  ;;  %v1118_v8 = vcvt.f32.s32 %v7349_v6  ;;  %v1102_v47 = vcvt.f32.s32 %v7353_v15 }
 0x32c   :  { %v989_v29 = vcvt.f32.s32 %v988_v36  ;;  %v7424_v46 = vcvt.s32.f32 %v1285_v13  ;;  %v1301_v16 = vshra.s32 %v7422_v19, 16  ;;  %v7481_v13 = vld [vmem:[#allocation2 + $0xc0] sm:$0xff]  ;;  %v1150_v5 = vcvt.f32.s32 %v7358_v37 }
 0x32d   :  { %v1119_v50 = vshll.u32 %v1118_v8, 16 }
 0x32e   :  { %v992_v61 = vadd.s32 %v991_v42, %v989_v29  ;;  %1288 = vmin.xlane.f32.xlu1 %v7424_v46  ;;  %v7448_v58 = vcvt.s32.f32 %v1301_v16  ;;  %v1071_v16 = vshll.u32 %v1070_v43, 16 }
 0x32f   :  { %v1020_v24 = vpop.xlane.xlu1 %1019 }
 0x330   :  { %v7462_v40 = vsel %vm1201_vm4, %v992_v61, %v867_v25  ;;  %vm1222_vm11 = vcmp.gt.s32.totalorder %v7464_v56, %v992_v61  ;;  %vm1223_vm13 = vcmp.gt.s32.totalorder %v7048_v23, %v992_v61  ;;  %v1021_v54 = vcvt.f32.s32 %v1020_v24  ;;  %1304 = vmin.xlane.f32.xlu0 %v7448_v58  ;;  %v1004_v34 = vpop.xlane.xlu0 %1003 }
 0x331   :  { %v1254_v31 = vsel %vm1222_vm11, %v7464_v56, 2147483647  ;;  %v1255_v21 = vsel %vm1223_vm13, %v7048_v23, 2147483647  ;;  %v1005_v32 = vcvt.f32.s32 %v1004_v34  ;;  %v7504_v61 = vshll.u32 %v1102_v47, 16 }
 0x332   :  { %v1024_v52 = vadd.s32 %v1023_v2, %v1021_v54  ;;  %vm1314_vm12 = vcmp.lt.s32.totalorder %v1254_v31, %v1255_v21  ;;  %v7507_v24 = vshll.u32 %v1150_v5, 16  ;;  %v1182_v47 = vcvt.f32.s32 %v7368_v62 }
 0x333   :  { %v7475_v63 = vsel %vm1314_vm12, %v1254_v31, %v1255_v21  ;;  %v1008_v23 = vadd.s32 %v1007_v53, %v1005_v32 }
 0x334   :  { %v7479_v25 = vsel %vm1201_vm4, %v1024_v52, %v869_v10  ;;  %vm1226_vm14 = vcmp.gt.s32.totalorder %v7481_v13, %v1024_v52  ;;  %vm1227_vm15 = vcmp.gt.s32.totalorder %v7067_v55, %v1024_v52  ;;  %v1317_v27 = vshra.s32 %v7475_v63, 16  ;;  %v7493_v10 = vld [vmem:[#allocation2 + $0x90] sm:$0xff] }
 0x335   :  { %v1258_v6 = vsel %vm1226_vm14, %v7481_v13, 2147483647  ;;  %v1259_v15 = vsel %vm1227_vm15, %v7067_v55, 2147483647  ;;  %v7491_v59 = vsel %vm1201_vm4, %v1008_v23, %v868_v22  ;;  %vm1224_vm0 = vcmp.gt.s32.totalorder %v7493_v10, %v1008_v23 }
 0x336   :  { %vm1225_vm1 = vcmp.gt.s32.totalorder %v7079_v18, %v1008_v23  ;;  %v1052_v48 = vpop.xlane.xlu1 %1051  ;;  %vm1346_vm2 = vcmp.lt.s32.totalorder %v1258_v6, %v1259_v15  ;;  %v7497_v37 = vcvt.s32.f32 %v1317_v27  ;;  %v1256_v29 = vsel %vm1224_vm0, %v7493_v10, 2147483647 }
 0x337   :  { %v1053_v36 = vcvt.f32.s32 %v1052_v48  ;;  %v7499_v42 = vsel %vm1346_vm2, %v1258_v6, %v1259_v15  ;;  %v1087_v55 = vshll.u32 %v1086_v14, 16  ;;  %v1257_v33 = vsel %vm1225_vm1, %v7079_v18, 2147483647  ;;  %v7518_v18 = vld [vmem:[#allocation2 + $0xe8] sm:$0xff] }
 0x338   :  { %v1349_v22 = vshra.s32 %v7499_v42, 16  ;;  %1320 = vmin.xlane.f32.xlu1 %v7497_v37  ;;  %vm1330_vm3 = vcmp.lt.s32.totalorder %v1256_v29, %v1257_v33  ;;  %v1134_v14 = vcvt.f32.s32 %v7364_v28  ;;  %v7535_v28 = vld [vmem:[#allocation2 + $0x20] sm:$0xff]  ;;  %v1166_v48 = vcvt.f32.s32 %v7373_v30 }
 0x339   :  { %v1056_v2 = vadd.s32 %v1055_v4, %v1053_v36  ;;  %v1036_v53 = vpop.xlane.xlu0 %1035  ;;  %v7511_v31 = vsel %vm1330_vm3, %v1256_v29, %v1257_v33 }
 0x33a   :  { %v1037_v54 = vcvt.f32.s32 %v1036_v53  ;;  %v7509_v34 = vcvt.s32.f32 %v1349_v22  ;;  %v1333_v4 = vshra.s32 %v7511_v31, 16 }
 0x33b   :  { %v7516_v21 = vsel %vm1201_vm4, %v1056_v2, %v7433_v20  ;;  %vm1230_vm5 = vcmp.gt.s32.totalorder %v7518_v18, %v1056_v2  ;;  %vm1231_vm6 = vcmp.gt.s32.totalorder %v7098_v26, %v1056_v2  ;;  %v1084_v32 = vpop.xlane.xlu1 %1083 }
 0x33c   :  { %v1040_v52 = vadd.s32 %v1039_v45, %v1037_v54  ;;  %v1262_v43 = vsel %vm1230_vm5, %v7518_v18, 2147483647  ;;  %v1263_v8 = vsel %vm1231_vm6, %v7098_v26, 2147483647  ;;  %v1085_v20 = vcvt.f32.s32 %v1084_v32  ;;  %1352 = vmin.xlane.f32.xlu1 %v7509_v34 }
 0x33d   :  { %v7528_v23 = vcvt.s32.f32 %v1333_v4  ;;  %vm1378_vm7 = vcmp.lt.s32.totalorder %v1262_v43, %v1263_v8  ;;  %v1183_v54 = vshll.u32 %v1182_v47, 16 }
 0x33e   :  { %v7533_v5 = vsel %vm1201_vm4, %v1040_v52, %v7440_v38  ;;  %vm1228_vm8 = vcmp.gt.s32.totalorder %v7535_v28, %v1040_v52  ;;  %vm1229_vm9 = vcmp.gt.s32.totalorder %v7123_v49, %v1040_v52  ;;  %v7539_v26 = vsel %vm1378_vm7, %v1262_v43, %v1263_v8  ;;  %v1068_v45 = vpop.xlane.xlu0 %1067 }
 0x33f   :  { %v1088_v62 = vadd.s32 %v1087_v55, %v1085_v20  ;;  %1336 = vmin.xlane.f32.xlu0 %v7528_v23  ;;  %v1381_v27 = vshra.s32 %v7539_v26, 16  ;;  %v1260_v6 = vsel %vm1228_vm8, %v7535_v28, 2147483647  ;;  %v1261_v15 = vsel %vm1229_vm9, %v7123_v49, 2147483647  ;;  %v7553_v55 = vld [vmem:[#allocation2 + $0x50] sm:$0xff] }
 0x340   :  { %v7545_v38 = vshll.u32 %v1134_v14, 16  ;;  %v1069_v36 = vcvt.f32.s32 %v1068_v45  ;;  %vm1362_vm10 = vcmp.lt.s32.totalorder %v1260_v6, %v1261_v15  ;;  %v1167_v20 = vshll.u32 %v1166_v48, 16 }
 0x341   :  { %v7551_v29 = vsel %vm1201_vm4, %v1088_v62, %v7445_v12  ;;  %vm1234_vm11 = vcmp.gt.s32.totalorder %v7553_v55, %v1088_v62  ;;  %vm1235_vm13 = vcmp.gt.s32.totalorder %v7139_v11, %v1088_v62  ;;  %v7557_v22 = vcvt.s32.f32 %v1381_v27  ;;  %v1116_v33 = vpop.xlane.xlu1 %1115 }
 0x342   :  { %v1072_v49 = vadd.s32 %v1071_v16, %v1069_v36  ;;  %v7559_v2 = vsel %vm1362_vm10, %v1260_v6, %v1261_v15  ;;  %v1266_v30 = vsel %vm1234_vm11, %v7553_v55, 2147483647  ;;  %v1267_v53 = vsel %vm1235_vm13, %v7139_v11, 2147483647  ;;  %v7570_v16 = vld [vmem:[#allocation2 + $0x80] sm:$0xff]  ;;  %v7587_v15 = vld [vmem:[#allocation2 + $0x28] sm:$0xff] }
 0x343   :  { %v1117_v4 = vcvt.f32.s32 %v1116_v33  ;;  %1384 = vmin.xlane.f32.xlu1 %v7557_v22  ;;  %v1365_v12 = vshra.s32 %v7559_v2, 16  ;;  %vm1410_vm12 = vcmp.lt.s32.totalorder %v1266_v30, %v1267_v53  ;;  %v1198_v62 = vcvt.f32.s32 %v7377_v39  ;;  %v7601_v36 = vld [vmem:[#allocation2 + $0xa0] sm:$0xff] }
 0x344   :  { %v7568_v14 = vsel %vm1201_vm4, %v1072_v49, %v7453_v0  ;;  %vm1232_vm14 = vcmp.gt.s32.totalorder %v7570_v16, %v1072_v49  ;;  %vm1233_vm15 = vcmp.gt.s32.totalorder %v7170_v41, %v1072_v49  ;;  %v7574_v11 = vsel %vm1410_vm12, %v1266_v30, %v1267_v53  ;;  %12757 = vst [vmem:[#allocation18_spill] sm:$0xff] %v7601_v36 }
 0x345   :  { %v1100_v52 = vpop.xlane.xlu0 %1099  ;;  %v1120_v32 = vadd.s32 %v1119_v50, %v1117_v4  ;;  %v7576_v8 = vcvt.s32.f32 %v1365_v12  ;;  %v1413_v47 = vshra.s32 %v7574_v11, 16  ;;  %v1264_v45 = vsel %vm1232_vm14, %v7570_v16, 2147483647 }
 0x346   :  { %v1101_v43 = vcvt.f32.s32 %v1100_v52  ;;  %v1265_v27 = vsel %vm1233_vm15, %v7170_v41, 2147483647  ;;  %v1199_v4 = vshll.u32 %v1198_v62, 16 }
 0x347   :  { %v7585_v6 = vsel %vm1201_vm4, %v1120_v32, %v7458_v1  ;;  %vm1238_vm0 = vcmp.gt.s32.totalorder %v7587_v15, %v1120_v32  ;;  %vm1239_vm1 = vcmp.gt.s32.totalorder %v7195_v3, %v1120_v32  ;;  %1368 = vmin.xlane.f32.xlu0 %v7576_v8  ;;  %v7593_v48 = vcvt.s32.f32 %v1413_v47  ;;  %v12758_v47 = vld [vmem:[#allocation10_spill] sm:$0xff] }
 0x348   :  { %v1148_v0 = vpop.xlane.xlu1 %1147  ;;  %v1104_v50 = vadd.s32 %v7504_v61, %v1101_v43  ;;  %vm1394_vm2 = vcmp.lt.s32.totalorder %v1264_v45, %v1265_v27  ;;  %v1270_v41 = vsel %vm1238_vm0, %v7587_v15, 2147483647 }
 0x349   :  { %v1149_v39 = vcvt.f32.s32 %v1148_v0  ;;  %v1132_v61 = vpop.xlane.xlu0 %1131  ;;  %v7605_v49 = vsel %vm1394_vm2, %v1264_v45, %v1265_v27  ;;  %1416 = vmin.xlane.f32.xlu1 %v7593_v48  ;;  %v7620_v0 = vld [vmem:[#allocation2 + $0x40] sm:$0xff]  ;;  %v12761_v45 = vld [vmem:[#allocation14_spill] sm:$0xff] }
 0x34a   :  { %v7599_v1 = vsel %vm1201_vm4, %v1104_v50, %v7130_v7  ;;  %vm1236_vm3 = vcmp.gt.s32.totalorder %v7601_v36, %v1104_v50  ;;  %vm1237_vm5 = vcmp.gt.s32.totalorder %v7216_v17, %v1104_v50  ;;  %v1133_v30 = vcvt.f32.s32 %v1132_v61  ;;  %12760 = vst [vmem:[#allocation19_spill] sm:$0xff] %v7620_v0  ;;  %v7634_v61 = vld [vmem:[#allocation2 + $0x58] sm:$0xff] }
 0x34b   :  { %v1152_v33 = vadd.s32 %v7507_v24, %v1149_v39  ;;  %v1397_v53 = vshra.s32 %v7605_v49, 16  ;;  %v1271_v7 = vsel %vm1239_vm1, %v7195_v3, 2147483647  ;;  %v1268_v52 = vsel %vm1236_vm3, %v7601_v36, 2147483647 }
 0x34c   :  { %v1180_v12 = vpop.xlane.xlu1 %1179  ;;  %vm1442_vm6 = vcmp.lt.s32.totalorder %v1270_v41, %v1271_v7  ;;  %v1269_v43 = vsel %vm1237_vm5, %v7216_v17, 2147483647  ;;  %v1136_v3 = vadd.s32 %v7545_v38, %v1133_v30  ;;  %v12762_v17 = vld [vmem:[#allocation9_spill] sm:$0xff] }
 0x34d   :  { %v7618_v24 = vsel %vm1201_vm4, %v1152_v33, %v12758_v47  ;;  %vm1242_vm7 = vcmp.gt.s32.totalorder %v7620_v0, %v1152_v33  ;;  %vm1243_vm8 = vcmp.gt.s32.totalorder %v12761_v45, %v1152_v33  ;;  %v1181_v32 = vcvt.f32.s32 %v1180_v12  ;;  %v1164_v62 = vpop.xlane.xlu0 %1163  ;;  %12764 = vst [vmem:[#allocation9_spill] sm:$0xff] %v7634_v61  ;;  %v12765_v47 = vld [vmem:[#allocation15_spill] sm:$0xff] }
 0x34e   :  { %12759 = vst [vmem:[#allocation10_spill] sm:$0xff] %v7618_v24  ;;  %v7625_v27 = vcvt.s32.f32 %v1397_v53  ;;  %v7627_v50 = vsel %vm1442_vm6, %v1270_v41, %v1271_v7  ;;  %vm1426_vm9 = vcmp.lt.s32.totalorder %v1268_v52, %v1269_v43  ;;  %v7632_v39 = vsel %vm1201_vm4, %v1136_v3, %v12762_v17 }
 0x34f   :  { %12763 = vst [vmem:[#allocation14_spill] sm:$0xff] %v7632_v39  ;;  %vm1240_vm10 = vcmp.gt.s32.totalorder %v7634_v61, %v1136_v3  ;;  %vm1241_vm11 = vcmp.gt.s32.totalorder %v12765_v47, %v1136_v3  ;;  %v1165_v24 = vcvt.f32.s32 %v1164_v62  ;;  %v1184_v38 = vadd.s32 %v1183_v54, %v1181_v32  ;;  %v12766_v54 = vld [vmem:[#allocation11_spill] sm:$0xff]  ;;  %v12769_v39 = vld [vmem:[#allocation12_spill] sm:$0xff] }
 0x350   :  { %1400 = vmin.xlane.f32.xlu0 %v7625_v27  ;;  %v1445_v30 = vshra.s32 %v7627_v50, 16  ;;  %v7640_v41 = vsel %vm1426_vm9, %v1268_v52, %v1269_v43  ;;  %v1274_v53 = vsel %vm1242_vm7, %v7620_v0, 2147483647  ;;  %v1275_v17 = vsel %vm1243_vm8, %v12761_v45, 2147483647  ;;  %v7655_v52 = vld [vmem:[#allocation2 + $0x48] sm:$0xff] }
 0x351   :  { %v1168_v7 = vadd.s32 %v1167_v20, %v1165_v24  ;;  %v1429_v12 = vshra.s32 %v7640_v41, 16  ;;  %v1272_v62 = vsel %vm1240_vm10, %v7634_v61, 2147483647  ;;  %v7653_v32 = vsel %vm1201_vm4, %v1184_v38, %v12766_v54  ;;  %v12768_v43 = vld [vmem:[#allocation16_spill] sm:$0xff]  ;;  %v1196_v20 = vpop.xlane.xlu0 %1195  ;;  %v7666_v45 = vld [vmem:[#allocation2 + $0xf0] sm:$0xff] }
 0x352   :  { %12767 = vst [vmem:[#allocation15_spill] sm:$0xff] %v7653_v32  ;;  %vm1246_vm13 = vcmp.gt.s32.totalorder %v7655_v52, %v1184_v38  ;;  %vm1247_vm12 = vcmp.gt.s32.totalorder %v12768_v43, %v1184_v38  ;;  %v7659_v24 = vcvt.s32.f32 %v1445_v30  ;;  %12771 = vst [vmem:[#allocation16_spill] sm:$0xff] %v7666_v45  ;;  %v12772_v54 = vld [vmem:[#allocation17_spill] sm:$0xff]  ;;  %v1197_v32 = vcvt.f32.s32 %v1196_v20  ;;  %v7697_v38 = vld [vmem:[#allocation2 + $0xf8] sm:$0xff] }
 0x353   :  { %v7664_v33 = vsel %vm1201_vm4, %v1168_v7, %v12769_v39  ;;  %vm1244_vm14 = vcmp.gt.s32.totalorder %v7666_v45, %v1168_v7  ;;  %vm1245_vm15 = vcmp.gt.s32.totalorder %v12772_v54, %v1168_v7  ;;  %v7671_v61 = vcvt.s32.f32 %v1429_v12 }
 0x354   :  { %12770 = vst [vmem:[#allocation11_spill] sm:$0xff] %v7664_v33  ;;  %1448 = vmin.xlane.f32.xlu1 %v7659_v24  ;;  %vm1474_vm0 = vcmp.lt.s32.totalorder %v1274_v53, %v1275_v17  ;;  %v1273_v30 = vsel %vm1241_vm11, %v12765_v47, 2147483647  ;;  %v1278_v0 = vsel %vm1246_vm13, %v7655_v52, 2147483647  ;;  %v1200_v39 = vadd.s32 %v1199_v4, %v1197_v32  ;;  %v12773_v47 = vld [vmem:[#allocation13_spill] sm:$0xff] }
 0x355   :  { %v7677_v33 = vsel %vm1474_vm0, %v1274_v53, %v1275_v17  ;;  %vm1458_vm1 = vcmp.lt.s32.totalorder %v1272_v62, %v1273_v30  ;;  %v1279_v36 = vsel %vm1247_vm12, %v12768_v43, 2147483647  ;;  %1432 = vmin.xlane.f32.xlu0 %v7671_v61  ;;  %v1276_v3 = vsel %vm1244_vm14, %v7666_v45, 2147483647  ;;  %v7694_v53 = vld [vmem:[#allocation2 + $0x30] sm:$0xff]  ;;  %12776 = vst [vmem:[#allocation13_spill] sm:$0xff] %v7697_v38 }
 0x356   :  { %v1477_v12 = vshra.s32 %v7677_v33, 16  ;;  %v7684_v20 = vsel %vm1458_vm1, %v1272_v62, %v1273_v30  ;;  %vm1506_vm2 = vcmp.lt.s32.totalorder %v1278_v0, %v1279_v36  ;;  %v7692_v4 = vsel %vm1201_vm4, %v1200_v39, %v12773_v47  ;;  %12775 = vst [vmem:[#allocation17_spill] sm:$0xff] %v7694_v53 }
 0x357   :  { %12774 = vst [vmem:[#allocation12_spill] sm:$0xff] %v7692_v4  ;;  %vm1248_vm3 = vcmp.gt.s32.totalorder %v7694_v53, %v1200_v39  ;;  %vm1249_vm5 = vcmp.gt.s32.totalorder %v7697_v38, %v1200_v39  ;;  %v1461_v17 = vshra.s32 %v7684_v20, 16  ;;  %v7703_v32 = vsel %vm1506_vm2, %v1278_v0, %v1279_v36 }
 0x358   :  { %v7701_v62 = vcvt.s32.f32 %v1477_v12  ;;  %v1277_v43 = vsel %vm1245_vm15, %v12772_v54, 2147483647  ;;  %v1280_v30 = vsel %vm1248_vm3, %v7694_v53, 2147483647  ;;  %v1509_v4 = vshra.s32 %v7703_v32, 16 }
 0x359   :  { %v7709_v47 = vcvt.s32.f32 %v1461_v17  ;;  %vm1490_vm4 = vcmp.lt.s32.totalorder %v1276_v3, %v1277_v43  ;;  %v1281_v45 = vsel %vm1249_vm5, %v7697_v38, 2147483647 }
 0x35a   :  { %1480 = vmin.xlane.f32.xlu1 %v7701_v62  ;;  %v7714_v39 = vsel %vm1490_vm4, %v1276_v3, %v1277_v43  ;;  %vm1522_vm6 = vcmp.lt.s32.totalorder %v1280_v30, %v1281_v45  ;;  %v7717_v36 = vcvt.s32.f32 %v1509_v4  ;;  %v1284_v3 = vand.u32 65535, %v7409_v57 }
 0x35b   :  { %1464 = vmin.xlane.f32.xlu0 %v7709_v47  ;;  %v1493_v0 = vshra.s32 %v7714_v39, 16  ;;  %v7720_v7 = vsel %vm1522_vm6, %v1280_v30, %v1281_v45  ;;  %v1300_v4 = vand.u32 65535, %v7422_v19  ;;  %v1316_v57 = vand.u32 65535, %v7475_v63 }
 0x35c   :  { %v1525_v54 = vshra.s32 %v7720_v7, 16  ;;  %v1286_v45 = vcvt.s32.f32 %v1284_v3  ;;  %v1348_v3 = vand.u32 65535, %v7499_v42 }
 0x35d   :  { %v7723_v12 = vcvt.s32.f32 %v1493_v0  ;;  %v1302_v38 = vcvt.s32.f32 %v1300_v4  ;;  %v1318_v19 = vcvt.s32.f32 %v1316_v57  ;;  %v1364_v57 = vand.u32 65535, %v7559_v2 }
 0x35e   :  { %1512 = vmin.xlane.f32.xlu1 %v7717_v36  ;;  %v7727_v17 = vcvt.s32.f32 %v1525_v54 }
 0x35f   :  { %1496 = vmin.xlane.f32.xlu0 %v7723_v12 }
 0x363   :  { %1528 = vmin.xlane.f32.xlu0 %v7727_v17 }
 0x3b7   :  { %v7732_v43 = vpop.xlane.xlu1 %1288 }
 0x3b8   :  { %vm1290_vm7 = vcmp.eq.f32.partialorder %v7424_v46, %v7732_v43 }
 0x3b9   :  { %v7736_v30 = vpop.xlane.xlu0 %1304  ;;  %v1291_v0 = vsel %vm1290_vm7, %v1286_v45, inf  ;;  %v1332_v45 = vand.u32 65535, %v7511_v31  ;;  %vm1538_vm7 = vcmp.eq.s32.totalorder %v6476_v51, 2 }
 0x3ba   :  { %1292 = vmin.xlane.f32.xlu1 %v1291_v0  ;;  %vm1306_vm8 = vcmp.eq.f32.partialorder %v7448_v58, %v7736_v30  ;;  %v1350_v0 = vcvt.s32.f32 %v1348_v3 }
 0x3bb   :  { %v1307_v54 = vsel %vm1306_vm8, %v1302_v38, inf  ;;  %v1334_v38 = vcvt.s32.f32 %v1332_v45 }
 0x3bc   :  { %1308 = vmin.xlane.f32.xlu0 %v1307_v54  ;;  %v1380_v54 = vand.u32 65535, %v7539_v26  ;;  %v1366_v26 = vcvt.s32.f32 %v1364_v57  ;;  %v1476_v57 = vand.u32 65535, %v7677_v33  ;;  %v1492_v33 = vand.u32 65535, %v7714_v39 }
 0x3be   :  { %v1382_v31 = vcvt.s32.f32 %v1380_v54 }
 0x3c1   :  { %v7741_v53 = vpop.xlane.xlu1 %1320 }
 0x3c2   :  { %vm1322_vm9 = vcmp.eq.f32.partialorder %v7497_v37, %v7741_v53 }
 0x3c3   :  { %v1323_v46 = vsel %vm1322_vm9, %v1318_v19, inf  ;;  %v1412_v19 = vand.u32 65535, %v7574_v11 }
 0x3c4   :  { %1324 = vmin.xlane.f32.xlu1 %v1323_v46 }
 0x3c5   :  { %v7747_v4 = vpop.xlane.xlu1 %1352  ;;  %v1414_v45 = vcvt.s32.f32 %v1412_v19  ;;  %v1508_v19 = vand.u32 65535, %v7703_v32  ;;  %v1494_v32 = vcvt.s32.f32 %v1492_v33 }
 0x3c6   :  { %vm1354_vm10 = vcmp.eq.f32.partialorder %v7509_v34, %v7747_v4 }
 0x3c7   :  { %v1355_v63 = vsel %vm1354_vm10, %v1350_v0, inf }
 0x3c8   :  { %v7751_v58 = vpop.xlane.xlu0 %1336  ;;  %1356 = vmin.xlane.f32.xlu1 %v1355_v63  ;;  %v1444_v63 = vand.u32 65535, %v7627_v50 }
 0x3c9   :  { %vm1338_vm11 = vcmp.eq.f32.partialorder %v7528_v23, %v7751_v58 }
 0x3ca   :  { %v1339_v37 = vsel %vm1338_vm11, %v1334_v38, inf  ;;  %v1428_v38 = vand.u32 65535, %v7640_v41 }
 0x3cb   :  { %1340 = vmin.xlane.f32.xlu0 %v1339_v37  ;;  %v1446_v37 = vcvt.s32.f32 %v1444_v63 }
 0x3cc   :  { %v7756_v42 = vpop.xlane.xlu1 %1384 }
 0x3cd   :  { %vm1386_vm13 = vcmp.eq.f32.partialorder %v7557_v22, %v7756_v42  ;;  %v1396_v22 = vand.u32 65535, %v7605_v49 }
 0x3ce   :  { %v1387_v34 = vsel %vm1386_vm13, %v1382_v31, inf  ;;  %v1430_v31 = vcvt.s32.f32 %v1428_v38 }
 0x3cf   :  { %1388 = vmin.xlane.f32.xlu1 %v1387_v34  ;;  %v1398_v11 = vcvt.s32.f32 %v1396_v22  ;;  %v1478_v34 = vcvt.s32.f32 %v1476_v57 }
 0x3d0   :  { %v7762_v3 = vpop.xlane.xlu0 %1368 }
 0x3d1   :  { %vm1370_vm12 = vcmp.eq.f32.partialorder %v7576_v8, %v7762_v3 }
 0x3d2   :  { %v1371_v23 = vsel %vm1370_vm12, %v1366_v26, inf  ;;  %v7766_v46 = vpop.xlane.xlu1 %1416 }
 0x3d3   :  { %1372 = vmin.xlane.f32.xlu0 %v1371_v23  ;;  %vm1418_vm14 = vcmp.eq.f32.partialorder %v7593_v48, %v7766_v46 }
 0x3d4   :  { %v1419_v2 = vsel %vm1418_vm14, %v1414_v45, inf  ;;  %v1510_v45 = vcvt.s32.f32 %v1508_v19  ;;  %v1327_v19 = vcvt.f32.s32 %v7741_v53 }
 0x3d5   :  { %1420 = vmin.xlane.f32.xlu1 %v1419_v2 }
 0x3d9   :  { %v7771_v0 = vpop.xlane.xlu0 %1400 }
 0x3da   :  { %vm1402_vm15 = vcmp.eq.f32.partialorder %v7625_v27, %v7771_v0  ;;  %v1460_v27 = vand.u32 65535, %v7684_v20 }
 0x3db   :  { %v1403_v8 = vsel %vm1402_vm15, %v1398_v11, inf }
 0x3dc   :  { %1404 = vmin.xlane.f32.xlu0 %v1403_v8  ;;  %v1462_v26 = vcvt.s32.f32 %v1460_v27  ;;  %v1311_v8 = vcvt.f32.s32 %v7736_v30 }
 0x3dd   :  { %v7777_v54 = vpop.xlane.xlu1 %1448 }
 0x3de   :  { %vm1450_vm0 = vcmp.eq.f32.partialorder %v7659_v24, %v7777_v54  ;;  %v7781_v48 = vpop.xlane.xlu0 %1432 }
 0x3df   :  { %v1451_v49 = vsel %vm1450_vm0, %v1446_v37, inf  ;;  %vm1434_vm1 = vcmp.eq.f32.partialorder %v7671_v61, %v7781_v48 }
 0x3e0   :  { %1452 = vmin.xlane.f32.xlu1 %v1451_v49  ;;  %v1435_v50 = vsel %vm1434_vm1, %v1430_v31, inf  ;;  %v1312_v49 = vshll.u32 %v1311_v8, 16 }
 0x3e1   :  { %1436 = vmin.xlane.f32.xlu0 %v1435_v50 }
 0x3e3   :  { %v7787_v41 = vpop.xlane.xlu1 %1480 }
 0x3e4   :  { %v7790_v24 = vpop.xlane.xlu0 %1464  ;;  %vm1482_vm2 = vcmp.eq.f32.partialorder %v7701_v62, %v7787_v41  ;;  %v1524_v62 = vand.u32 65535, %v7720_v7 }
 0x3e5   :  { %v1483_v23 = vsel %vm1482_vm2, %v1478_v34, inf  ;;  %vm1466_vm3 = vcmp.eq.f32.partialorder %v7709_v47, %v7790_v24 }
 0x3e6   :  { %1484 = vmin.xlane.f32.xlu1 %v1483_v23  ;;  %v1467_v61 = vsel %vm1466_vm3, %v1462_v26, inf  ;;  %v1526_v11 = vcvt.s32.f32 %v1524_v62 }
 0x3e7   :  { %1468 = vmin.xlane.f32.xlu0 %v1467_v61  ;;  %v7797_v20 = vpop.xlane.xlu1 %1512  ;;  %v1359_v61 = vcvt.f32.s32 %v7747_v4 }
 0x3e8   :  { %v7799_v22 = vpop.xlane.xlu0 %1496  ;;  %vm1514_vm5 = vcmp.eq.f32.partialorder %v7717_v36, %v7797_v20  ;;  %v1295_v36 = vcvt.f32.s32 %v7732_v43 }
 0x3e9   :  { %v1515_v2 = vsel %vm1514_vm5, %v1510_v45, inf  ;;  %vm1498_vm4 = vcmp.eq.f32.partialorder %v7723_v12, %v7799_v22 }
 0x3ea   :  { %1516 = vmin.xlane.f32.xlu1 %v1515_v2  ;;  %v1499_v47 = vsel %vm1498_vm4, %v1494_v32, inf  ;;  %v1296_v38 = vshll.u32 %v1295_v36, 16  ;;  %v1328_v2 = vshll.u32 %v1327_v19, 16  ;;  %v1391_v36 = vcvt.f32.s32 %v7756_v42 }
 0x3eb   :  { %1500 = vmin.xlane.f32.xlu0 %v1499_v47 }
 0x3ec   :  { %v7806_v39 = vpop.xlane.xlu0 %1528 }
 0x3ed   :  { %vm1530_vm6 = vcmp.eq.f32.partialorder %v7727_v17, %v7806_v39  ;;  %v7819_v17 = vld [vmem:[#allocation2 + $0x60] sm:$0xff] }
 0x3ee   :  { %v1531_v63 = vsel %vm1530_vm6, %v1526_v11, inf }
 0x3ef   :  { %1532 = vmin.xlane.f32.xlu0 %v1531_v63  ;;  %v1360_v63 = vshll.u32 %v1359_v61, 16  ;;  %v7883_v61 = vld [vmem:[#allocation2 + $0x38] sm:$0xff] }
 0x443   :  { %v1293_v7 = vpop.xlane.xlu1 %1292 }
 0x444   :  { %v1294_v37 = vcvt.f32.s32 %v1293_v7  ;;  %v7857_v7 = vld [vmem:[#allocation2 + $0xb0] sm:$0xff] }
 0x445   :  { %v1309_v12 = vpop.xlane.xlu0 %1308 }
 0x446   :  { %v1297_v31 = vadd.s32 %v1296_v38, %v1294_v37  ;;  %v1310_v57 = vcvt.f32.s32 %v1309_v12 }
 0x448   :  { %v7816_v27 = vsel %vm1538_vm7, %v1297_v31, %v7389_v9  ;;  %vm1555_vm8 = vcmp.gt.s32.totalorder %v7391_v60, %v1297_v31  ;;  %vm1556_vm9 = vcmp.gt.s32.totalorder %v7819_v17, %v1297_v31  ;;  %v1313_v43 = vadd.s32 %v1312_v49, %v1310_v57  ;;  %v7830_v9 = vld [vmem:[#allocation2 + $0x8] sm:$0xff] }
 0x449   :  { %v1587_v30 = vsel %vm1555_vm8, %v7391_v60, 2147483647  ;;  %v1588_v50 = vsel %vm1556_vm9, %v7819_v17, 2147483647  ;;  %v1392_v57 = vshll.u32 %v1391_v36, 16 }
 0x44a   :  { %v7827_v34 = vsel %vm1538_vm7, %v1313_v43, %v7403_v35  ;;  %vm1557_vm10 = vcmp.gt.s32.totalorder %v7405_v44, %v1313_v43  ;;  %vm1558_vm11 = vcmp.gt.s32.totalorder %v7830_v9, %v1313_v43  ;;  %vm1619_vm13 = vcmp.lt.s32.totalorder %v1587_v30, %v1588_v50 }
 0x44b   :  { %v7834_v26 = vsel %vm1619_vm13, %v1587_v30, %v1588_v50  ;;  %v1589_v60 = vsel %vm1557_vm10, %v7405_v44, 2147483647  ;;  %v1590_v33 = vsel %vm1558_vm11, %v7830_v9, 2147483647  ;;  %v1343_v44 = vcvt.f32.s32 %v7751_v58  ;;  %v7870_v30 = vld [vmem:[#allocation2 + $0xa8] sm:$0xff] }
 0x44c   :  { %v1622_v23 = vshra.s32 %v7834_v26, 16  ;;  %vm1635_vm12 = vcmp.lt.s32.totalorder %v1589_v60, %v1590_v33  ;;  %v1375_v50 = vcvt.f32.s32 %v7762_v3 }
 0x44d   :  { %v7839_v35 = vsel %vm1635_vm12, %v1589_v60, %v1590_v33  ;;  %v1325_v45 = vpop.xlane.xlu1 %1324  ;;  %v1344_v12 = vshll.u32 %v1343_v44, 16  ;;  %v1423_v44 = vcvt.f32.s32 %v7766_v46 }
 0x44e   :  { %v7842_v32 = vcvt.s32.f32 %v1622_v23  ;;  %v1638_v62 = vshra.s32 %v7839_v35, 16  ;;  %v1326_v53 = vcvt.f32.s32 %v1325_v45 }
 0x450   :  { %1625 = vmin.xlane.f32.xlu1 %v7842_v32  ;;  %v7846_v47 = vcvt.s32.f32 %v1638_v62  ;;  %v1329_v11 = vadd.s32 %v1328_v2, %v1326_v53 }
 0x451   :  { %v1357_v8 = vpop.xlane.xlu1 %1356 }
 0x452   :  { %1641 = vmin.xlane.f32.xlu0 %v7846_v47  ;;  %v7854_v4 = vsel %vm1538_vm7, %v1329_v11, %v7462_v40  ;;  %vm1559_vm14 = vcmp.gt.s32.totalorder %v7464_v56, %v1329_v11  ;;  %vm1560_vm15 = vcmp.gt.s32.totalorder %v7857_v7, %v1329_v11  ;;  %v1358_v38 = vcvt.f32.s32 %v1357_v8  ;;  %v7903_v8 = vld [vmem:[#allocation2 + $0x68] sm:$0xff] }
 0x453   :  { %v1591_v37 = vsel %vm1559_vm14, %v7464_v56, 2147483647  ;;  %v1592_v42 = vsel %vm1560_vm15, %v7857_v7, 2147483647 }
 0x454   :  { %v1341_v58 = vpop.xlane.xlu0 %1340  ;;  %v1361_v49 = vadd.s32 %v1360_v63, %v1358_v38  ;;  %vm1651_vm0 = vcmp.lt.s32.totalorder %v1591_v37, %v1592_v42 }
 0x455   :  { %v1342_v31 = vcvt.f32.s32 %v1341_v58  ;;  %v7862_v43 = vsel %vm1651_vm0, %v1591_v37, %v1592_v42 }
 0x456   :  { %v7867_v40 = vsel %vm1538_vm7, %v1361_v49, %v7479_v25  ;;  %vm1563_vm1 = vcmp.gt.s32.totalorder %v7481_v13, %v1361_v49  ;;  %vm1564_vm2 = vcmp.gt.s32.totalorder %v7870_v30, %v1361_v49  ;;  %v1654_v60 = vshra.s32 %v7862_v43, 16 }
 0x457   :  { %v1345_v56 = vadd.s32 %v1344_v12, %v1342_v31  ;;  %v1595_v33 = vsel %vm1563_vm1, %v7481_v13, 2147483647  ;;  %v1596_v23 = vsel %vm1564_vm2, %v7870_v30, 2147483647  ;;  %v1407_v12 = vcvt.f32.s32 %v7771_v0 }
 0x458   :  { %v1389_v19 = vpop.xlane.xlu1 %1388  ;;  %v7886_v3 = vcvt.s32.f32 %v1654_v60  ;;  %vm1683_vm4 = vcmp.lt.s32.totalorder %v1595_v33, %v1596_v23  ;;  %v1424_v31 = vshll.u32 %v1423_v44, 16 }
 0x459   :  { %v7880_v25 = vsel %vm1538_vm7, %v1345_v56, %v7491_v59  ;;  %vm1561_vm3 = vcmp.gt.s32.totalorder %v7493_v10, %v1345_v56  ;;  %vm1562_vm5 = vcmp.gt.s32.totalorder %v7883_v61, %v1345_v56  ;;  %v1390_v45 = vcvt.f32.s32 %v1389_v19 }
 0x45a   :  { %v1593_v62 = vsel %vm1561_vm3, %v7493_v10, 2147483647  ;;  %v1594_v13 = vsel %vm1562_vm5, %v7883_v61, 2147483647  ;;  %v7890_v53 = vsel %vm1683_vm4, %v1595_v33, %v1596_v23  ;;  %v1376_v59 = vshll.u32 %v1375_v50, 16  ;;  %1657 = vmin.xlane.f32.xlu1 %v7886_v3 }
 0x45b   :  { %v1393_v2 = vadd.s32 %v1392_v57, %v1390_v45  ;;  %vm1667_vm6 = vcmp.lt.s32.totalorder %v1593_v62, %v1594_v13  ;;  %v1686_v63 = vshra.s32 %v7890_v53, 16  ;;  %v1408_v45 = vshll.u32 %v1407_v12, 16 }
 0x45c   :  { %v1373_v11 = vpop.xlane.xlu0 %1372  ;;  %v7895_v36 = vsel %vm1667_vm6, %v1593_v62, %v1594_v13  ;;  %v1455_v62 = vcvt.f32.s32 %v7777_v54 }
 0x45d   :  { %v7900_v10 = vsel %vm1538_vm7, %v1393_v2, %v7516_v21  ;;  %vm1567_vm8 = vcmp.gt.s32.totalorder %v7518_v18, %v1393_v2  ;;  %vm1568_vm9 = vcmp.gt.s32.totalorder %v7903_v8, %v1393_v2  ;;  %v1374_v38 = vcvt.f32.s32 %v1373_v11  ;;  %v7939_v2 = vld [vmem:[#allocation2] sm:$0xff] }
 0x45e   :  { %v7906_v46 = vcvt.s32.f32 %v1686_v63  ;;  %v1670_v58 = vshra.s32 %v7895_v36, 16  ;;  %v1599_v37 = vsel %vm1567_vm8, %v7518_v18, 2147483647  ;;  %v1600_v42 = vsel %vm1568_vm9, %v7903_v8, 2147483647  ;;  %v1421_v21 = vpop.xlane.xlu1 %1420  ;;  %v7923_v18 = vld [vmem:[#allocation2 + $0xd8] sm:$0xff] }
 0x45f   :  { %v1377_v49 = vadd.s32 %v1376_v59, %v1374_v38  ;;  %vm1715_vm10 = vcmp.lt.s32.totalorder %v1599_v37, %v1600_v42  ;;  %v1422_v57 = vcvt.f32.s32 %v1421_v21  ;;  %v1487_v38 = vcvt.f32.s32 %v7787_v41  ;;  %v7963_v41 = vld [vmem:[#allocation2 + $0x98] sm:$0xff] }
 0x460   :  { %1689 = vmin.xlane.f32.xlu1 %v7906_v46  ;;  %v7913_v56 = vcvt.s32.f32 %v1670_v58  ;;  %v7915_v50 = vsel %vm1715_vm10, %v1599_v37, %v1600_v42  ;;  %v1456_v12 = vshll.u32 %v1455_v62, 16  ;;  %v1519_v21 = vcvt.f32.s32 %v7797_v20 }
 0x461   :  { %v7920_v19 = vsel %vm1538_vm7, %v1377_v49, %v7533_v5  ;;  %vm1565_vm11 = vcmp.gt.s32.totalorder %v7535_v28, %v1377_v49  ;;  %vm1566_vm13 = vcmp.gt.s32.totalorder %v7923_v18, %v1377_v49  ;;  %v1718_v0 = vshra.s32 %v7915_v50, 16 }
 0x462   :  { %v1425_v60 = vadd.s32 %v1424_v31, %v1422_v57  ;;  %1673 = vmin.xlane.f32.xlu0 %v7913_v56  ;;  %v1597_v33 = vsel %vm1565_vm11, %v7535_v28, 2147483647  ;;  %v1598_v23 = vsel %vm1566_vm13, %v7923_v18, 2147483647  ;;  %v1471_v49 = vcvt.f32.s32 %v7790_v24 }
 0x463   :  { %v7931_v5 = vcvt.s32.f32 %v1718_v0  ;;  %vm1699_vm12 = vcmp.lt.s32.totalorder %v1597_v33, %v1598_v23 }
 0x464   :  { %v7936_v13 = vsel %vm1538_vm7, %v1425_v60, %v7551_v29  ;;  %vm1571_vm14 = vcmp.gt.s32.totalorder %v7553_v55, %v1425_v60  ;;  %vm1572_vm15 = vcmp.gt.s32.totalorder %v7939_v2, %v1425_v60  ;;  %v7942_v59 = vsel %vm1699_vm12, %v1597_v33, %v1598_v23 }
 0x465   :  { %v1405_v28 = vpop.xlane.xlu0 %1404  ;;  %1721 = vmin.xlane.f32.xlu1 %v7931_v5  ;;  %v1702_v54 = vshra.s32 %v7942_v59, 16  ;;  %v1603_v11 = vsel %vm1571_vm14, %v7553_v55, 2147483647  ;;  %v1604_v63 = vsel %vm1572_vm15, %v7939_v2, 2147483647  ;;  %v1439_v29 = vcvt.f32.s32 %v7781_v48 }
 0x466   :  { %v1406_v44 = vcvt.f32.s32 %v1405_v28  ;;  %vm1747_vm0 = vcmp.lt.s32.totalorder %v1603_v11, %v1604_v63  ;;  %v1488_v23 = vshll.u32 %v1487_v38, 16  ;;  %v1472_v62 = vshll.u32 %v1471_v49, 16  ;;  %v12779_v49 = vld [vmem:[#allocation18_spill] sm:$0xff] }
 0x467   :  { %v7950_v37 = vcvt.s32.f32 %v1702_v54  ;;  %v7952_v42 = vsel %vm1747_vm0, %v1603_v11, %v1604_v63  ;;  %v1440_v24 = vshll.u32 %v1439_v29, 16  ;;  %v1520_v28 = vshll.u32 %v1519_v21, 16  ;;  %v7994_v21 = vld [vmem:[#allocation2 + $0x10] sm:$0xff] }
 0x468   :  { %v1409_v58 = vadd.s32 %v1408_v45, %v1406_v44  ;;  %v1750_v55 = vshra.s32 %v7952_v42, 16  ;;  %v1503_v44 = vcvt.f32.s32 %v7799_v22  ;;  %v1535_v29 = vcvt.f32.s32 %v7806_v39  ;;  %12780 = vst [vmem:[#allocation18_spill] sm:$0xff] %v7994_v21 }
 0x469   :  { %v1453_v31 = vpop.xlane.xlu1 %1452  ;;  %1705 = vmin.xlane.f32.xlu0 %v7950_v37 }
 0x46a   :  { %v7960_v48 = vsel %vm1538_vm7, %v1409_v58, %v7568_v14  ;;  %vm1569_vm1 = vcmp.gt.s32.totalorder %v7570_v16, %v1409_v58  ;;  %vm1570_vm2 = vcmp.gt.s32.totalorder %v7963_v41, %v1409_v58  ;;  %v1454_v57 = vcvt.f32.s32 %v1453_v31  ;;  %v1437_v0 = vpop.xlane.xlu0 %1436 }
 0x46b   :  { %v7967_v20 = vcvt.s32.f32 %v1750_v55  ;;  %v1601_v60 = vsel %vm1569_vm1, %v7570_v16, 2147483647  ;;  %v1602_v33 = vsel %vm1570_vm2, %v7963_v41, 2147483647  ;;  %v1438_v45 = vcvt.f32.s32 %v1437_v0  ;;  %v7981_v16 = vld [vmem:[#allocation2 + $0xd0] sm:$0xff] }
 0x46c   :  { %v1457_v14 = vadd.s32 %v1456_v12, %v1454_v57  ;;  %vm1731_vm3 = vcmp.lt.s32.totalorder %v1601_v60, %v1602_v33  ;;  %12777 = vst [vmem:[#allocation20_spill] sm:$0xff] %v7981_v16 }
 0x46d   :  { %1753 = vmin.xlane.f32.xlu1 %v7967_v20  ;;  %v7973_v54 = vsel %vm1731_vm3, %v1601_v60, %v1602_v33  ;;  %v1441_v63 = vadd.s32 %v1440_v24, %v1438_v45  ;;  %v1504_v24 = vshll.u32 %v1503_v44, 16  ;;  %v1536_v33 = vshll.u32 %v1535_v29, 16 }
 0x46e   :  { %v7978_v11 = vsel %vm1538_vm7, %v1457_v14, %v7585_v6  ;;  %vm1575_vm5 = vcmp.gt.s32.totalorder %v7587_v15, %v1457_v14  ;;  %vm1576_vm4 = vcmp.gt.s32.totalorder %v7981_v16, %v1457_v14  ;;  %v1734_v22 = vshra.s32 %v7973_v54, 16 }
 0x46f   :  { %v1485_v38 = vpop.xlane.xlu1 %1484  ;;  %v1607_v58 = vsel %vm1575_vm5, %v7587_v15, 2147483647  ;;  %v1608_v12 = vsel %vm1576_vm4, %v7981_v16, 2147483647  ;;  %v7991_v6 = vsel %vm1538_vm7, %v1441_v63, %v7599_v1  ;;  %vm1573_vm6 = vcmp.gt.s32.totalorder %v12779_v49, %v1441_v63 }
 0x470   :  { %12778 = vst [vmem:[#allocation21_spill] sm:$0xff] %v7991_v6  ;;  %vm1574_vm8 = vcmp.gt.s32.totalorder %v7994_v21, %v1441_v63  ;;  %v1486_v31 = vcvt.f32.s32 %v1485_v38  ;;  %v1469_v39 = vpop.xlane.xlu0 %1468  ;;  %v7997_v57 = vcvt.s32.f32 %v1734_v22  ;;  %vm1779_vm9 = vcmp.lt.s32.totalorder %v1607_v58, %v1608_v12  ;;  %v12781_v38 = vld [vmem:[#allocation10_spill] sm:$0xff]  ;;  %v12787_v6 = vld [vmem:[#allocation15_spill] sm:$0xff] }
 0x471   :  { %v1470_v55 = vcvt.f32.s32 %v1469_v39  ;;  %v1605_v15 = vsel %vm1573_vm6, %v12779_v49, 2147483647  ;;  %v8000_v60 = vsel %vm1779_vm9, %v1607_v58, %v1608_v12  ;;  %v1606_v1 = vsel %vm1574_vm8, %v7994_v21, 2147483647  ;;  %v12783_v49 = vld [vmem:[#allocation19_spill] sm:$0xff]  ;;  %v12786_v12 = vld [vmem:[#allocation9_spill] sm:$0xff] }
 0x472   :  { %v1489_v0 = vadd.s32 %v1488_v23, %v1486_v31  ;;  %1737 = vmin.xlane.f32.xlu0 %v7997_v57  ;;  %v1782_v63 = vshra.s32 %v8000_v60, 16  ;;  %vm1763_vm10 = vcmp.lt.s32.totalorder %v1605_v15, %v1606_v1  ;;  %v8011_v23 = vld [vmem:[#allocation2 + $0xc8] sm:$0xff]  ;;  %v8020_v31 = vld [vmem:[#allocation2 + $0x70] sm:$0xff] }
 0x473   :  { %v1473_v14 = vadd.s32 %v1472_v62, %v1470_v55  ;;  %v1517_v45 = vpop.xlane.xlu1 %1516  ;;  %v12784_v62 = vld [vmem:[#allocation14_spill] sm:$0xff] }
 0x474   :  { %v8008_v22 = vsel %vm1538_vm7, %v1489_v0, %v12781_v38  ;;  %vm1579_vm11 = vcmp.gt.s32.totalorder %v12783_v49, %v1489_v0  ;;  %vm1580_vm13 = vcmp.gt.s32.totalorder %v8011_v23, %v1489_v0  ;;  %v1518_v44 = vcvt.f32.s32 %v1517_v45  ;;  %v1501_v29 = vpop.xlane.xlu0 %1500 }
 0x475   :  { %12782 = vst [vmem:[#allocation10_spill] sm:$0xff] %v8008_v22  ;;  %v8017_v58 = vsel %vm1538_vm7, %v1473_v14, %v12784_v62  ;;  %vm1577_vm12 = vcmp.gt.s32.totalorder %v12786_v12, %v1473_v14  ;;  %vm1578_vm14 = vcmp.gt.s32.totalorder %v8020_v31, %v1473_v14  ;;  %v1502_v39 = vcvt.f32.s32 %v1501_v29 }
 0x476   :  { %12785 = vst [vmem:[#allocation19_spill] sm:$0xff] %v8017_v58  ;;  %v1521_v55 = vadd.s32 %v1520_v28, %v1518_v44  ;;  %v8023_v38 = vcvt.s32.f32 %v1782_v63  ;;  %v8025_v22 = vsel %vm1763_vm10, %v1605_v15, %v1606_v1  ;;  %v1611_v0 = vsel %vm1579_vm11, %v12783_v49, 2147483647  ;;  %v8037_v28 = vld [vmem:[#allocation2 + $0x18] sm:$0xff]  ;;  %v12791_v63 = vld [vmem:[#allocation16_spill] sm:$0xff]  ;;  %v8047_v49 = vld [vmem:[#allocation2 + $0xe0] sm:$0xff] }
 0x477   :  { %v1505_v45 = vadd.s32 %v1504_v24, %v1502_v39  ;;  %v1766_v21 = vshra.s32 %v8025_v22, 16  ;;  %v1612_v62 = vsel %vm1580_vm13, %v8011_v23, 2147483647  ;;  %v1609_v58 = vsel %vm1577_vm12, %v12786_v12, 2147483647  ;;  %v12789_v24 = vld [vmem:[#allocation11_spill] sm:$0xff] }
 0x478   :  { %v8034_v16 = vsel %vm1538_vm7, %v1521_v55, %v12787_v6  ;;  %vm1583_vm15 = vcmp.gt.s32.totalorder %v7655_v52, %v1521_v55  ;;  %vm1584_vm0 = vcmp.gt.s32.totalorder %v8037_v28, %v1521_v55  ;;  %v1533_v15 = vpop.xlane.xlu0 %1532  ;;  %1785 = vmin.xlane.f32.xlu1 %v8023_v38  ;;  %vm1811_vm1 = vcmp.lt.s32.totalorder %v1611_v0, %v1612_v62 }
 0x479   :  { %12788 = vst [vmem:[#allocation14_spill] sm:$0xff] %v8034_v16  ;;  %v8044_v1 = vsel %vm1538_vm7, %v1505_v45, %v12789_v24  ;;  %vm1581_vm2 = vcmp.gt.s32.totalorder %v12791_v63, %v1505_v45  ;;  %12792 = vst [vmem:[#allocation15_spill] sm:$0xff] %v8047_v49  ;;  %vm1582_vm3 = vcmp.gt.s32.totalorder %v8047_v49, %v1505_v45  ;;  %v1534_v6 = vcvt.f32.s32 %v1533_v15  ;;  %v12793_v45 = vld [vmem:[#allocation12_spill] sm:$0xff] }
 0x47a   :  { %12790 = vst [vmem:[#allocation9_spill] sm:$0xff] %v8044_v1  ;;  %v8050_v44 = vcvt.s32.f32 %v1766_v21  ;;  %v8052_v29 = vsel %vm1811_vm1, %v1611_v0, %v1612_v62  ;;  %v1610_v12 = vsel %vm1578_vm14, %v8020_v31, 2147483647  ;;  %v1615_v39 = vsel %vm1583_vm15, %v7655_v52, 2147483647  ;;  %v12796_v62 = vld [vmem:[#allocation13_spill] sm:$0xff] }
 0x47b   :  { %v1537_v16 = vadd.s32 %v1536_v33, %v1534_v6  ;;  %v1814_v24 = vshra.s32 %v8052_v29, 16  ;;  %vm1795_vm5 = vcmp.lt.s32.totalorder %v1609_v58, %v1610_v12  ;;  %v1616_v1 = vsel %vm1584_vm0, %v8037_v28, 2147483647  ;;  %v12795_v33 = vld [vmem:[#allocation17_spill] sm:$0xff] }
 0x47c   :  { %1769 = vmin.xlane.f32.xlu0 %v8050_v44  ;;  %v8063_v21 = vsel %vm1795_vm5, %v1609_v58, %v1610_v12  ;;  %vm1843_vm4 = vcmp.lt.s32.totalorder %v1615_v39, %v1616_v1  ;;  %v1613_v0 = vsel %vm1581_vm2, %v12791_v63, 2147483647  ;;  %v1614_v14 = vsel %vm1582_vm3, %v8047_v49, 2147483647 }
 0x47d   :  { %v8070_v52 = vsel %vm1538_vm7, %v1537_v16, %v12793_v45  ;;  %vm1585_vm6 = vcmp.gt.s32.totalorder %v12795_v33, %v1537_v16  ;;  %vm1586_vm8 = vcmp.gt.s32.totalorder %v12796_v62, %v1537_v16  ;;  %v8074_v55 = vcvt.s32.f32 %v1814_v24 }
 0x47e   :  { %12794 = vst [vmem:[#allocation11_spill] sm:$0xff] %v8070_v52  ;;  %v1798_v15 = vshra.s32 %v8063_v21, 16  ;;  %v8077_v58 = vsel %vm1843_vm4, %v1615_v39, %v1616_v1  ;;  %vm1827_vm9 = vcmp.lt.s32.totalorder %v1613_v0, %v1614_v14  ;;  %v1617_v63 = vsel %vm1585_vm6, %v12795_v33, 2147483647 }
 0x47f   :  { %1817 = vmin.xlane.f32.xlu1 %v8074_v55  ;;  %v1846_v6 = vshra.s32 %v8077_v58, 16  ;;  %v8082_v12 = vsel %vm1827_vm9, %v1613_v0, %v1614_v14  ;;  %v1618_v45 = vsel %vm1586_vm8, %v12796_v62, 2147483647  ;;  %v1621_v14 = vand.u32 65535, %v7834_v26 }
 0x480   :  { %v8085_v52 = vcvt.s32.f32 %v1798_v15  ;;  %v1830_v16 = vshra.s32 %v8082_v12, 16  ;;  %vm1859_vm7 = vcmp.lt.s32.totalorder %v1617_v63, %v1618_v45  ;;  %v1637_v62 = vand.u32 65535, %v7839_v35 }
 0x481   :  { %v8088_v24 = vcvt.s32.f32 %v1846_v6  ;;  %v8090_v1 = vsel %vm1859_vm7, %v1617_v63, %v1618_v45  ;;  %v1623_v63 = vcvt.s32.f32 %v1621_v14  ;;  %v1653_v26 = vand.u32 65535, %v7862_v43 }
 0x482   :  { %1801 = vmin.xlane.f32.xlu0 %v8085_v52  ;;  %v8093_v39 = vcvt.s32.f32 %v1830_v16  ;;  %v1862_v33 = vshra.s32 %v8090_v1, 16  ;;  %v1639_v16 = vcvt.s32.f32 %v1637_v62  ;;  %v1685_v14 = vand.u32 65535, %v7890_v53 }
 0x483   :  { %1849 = vmin.xlane.f32.xlu1 %v8088_v24  ;;  %v1655_v35 = vcvt.s32.f32 %v1653_v26  ;;  %v1701_v26 = vand.u32 65535, %v7942_v59 }
 0x484   :  { %v8098_v0 = vcvt.s32.f32 %v1862_v33 }
 0x486   :  { %1833 = vmin.xlane.f32.xlu0 %v8093_v39 }
 0x48a   :  { %1865 = vmin.xlane.f32.xlu0 %v8098_v0 }
 0x4d9   :  { %v8103_v15 = vpop.xlane.xlu1 %1625 }
 0x4da   :  { %vm1627_vm10 = vcmp.eq.f32.partialorder %v7842_v32, %v8103_v15 }
 0x4db   :  { %v8107_v6 = vpop.xlane.xlu0 %1641  ;;  %v1628_v45 = vsel %vm1627_vm10, %v1623_v63, inf  ;;  %v1669_v63 = vand.u32 65535, %v7895_v36  ;;  %vm1875_vm10 = vcmp.eq.s32.totalorder %v6476_v51, 3 }
 0x4dc   :  { %1629 = vmin.xlane.f32.xlu1 %v1628_v45  ;;  %vm1643_vm11 = vcmp.eq.f32.partialorder %v7846_v47, %v8107_v6  ;;  %v1687_v45 = vcvt.s32.f32 %v1685_v14  ;;  %v1717_v47 = vand.u32 65535, %v7915_v50  ;;  %v1749_v50 = vand.u32 65535, %v7952_v42 }
 0x4dd   :  { %v1644_v33 = vsel %vm1643_vm11, %v1639_v16, inf  ;;  %v1703_v14 = vcvt.s32.f32 %v1701_v26 }
 0x4de   :  { %1645 = vmin.xlane.f32.xlu0 %v1644_v33  ;;  %v1671_v33 = vcvt.s32.f32 %v1669_v63  ;;  %v1719_v36 = vcvt.s32.f32 %v1717_v47  ;;  %v1751_v63 = vcvt.s32.f32 %v1749_v50  ;;  %v1845_v50 = vand.u32 65535, %v8077_v58 }
 0x4e3   :  { %v8112_v49 = vpop.xlane.xlu1 %1657 }
 0x4e4   :  { %vm1659_vm13 = vcmp.eq.f32.partialorder %v7886_v3, %v8112_v49 }
 0x4e5   :  { %v1660_v32 = vsel %vm1659_vm13, %v1655_v35, inf }
 0x4e6   :  { %1661 = vmin.xlane.f32.xlu1 %v1660_v32 }
 0x4e9   :  { %v8118_v62 = vpop.xlane.xlu1 %1689 }
 0x4ea   :  { %vm1691_vm12 = vcmp.eq.f32.partialorder %v7906_v46, %v8118_v62 }
 0x4eb   :  { %v8123_v43 = vpop.xlane.xlu0 %1673  ;;  %v1692_v16 = vsel %vm1691_vm12, %v1687_v45, inf }
 0x4ec   :  { %1693 = vmin.xlane.f32.xlu1 %v1692_v16  ;;  %vm1675_vm14 = vcmp.eq.f32.partialorder %v7913_v56, %v8123_v43 }
 0x4ed   :  { %v1676_v3 = vsel %vm1675_vm14, %v1671_v33, inf }
 0x4ee   :  { %1677 = vmin.xlane.f32.xlu0 %v1676_v3  ;;  %v8127_v53 = vpop.xlane.xlu1 %1721  ;;  %v1765_v3 = vand.u32 65535, %v8025_v22 }
 0x4ef   :  { %vm1723_vm15 = vcmp.eq.f32.partialorder %v7931_v5, %v8127_v53  ;;  %v1733_v5 = vand.u32 65535, %v7973_v54  ;;  %v1813_v54 = vand.u32 65535, %v8052_v29 }
 0x4f0   :  { %v1724_v46 = vsel %vm1723_vm15, %v1719_v36, inf  ;;  %v1767_v26 = vcvt.s32.f32 %v1765_v3 }
 0x4f1   :  { %1725 = vmin.xlane.f32.xlu1 %v1724_v46  ;;  %v1735_v42 = vcvt.s32.f32 %v1733_v5  ;;  %v1815_v22 = vcvt.s32.f32 %v1813_v54  ;;  %v1861_v5 = vand.u32 65535, %v8090_v1 }
 0x4f2   :  { %v8133_v35 = vpop.xlane.xlu0 %1705 }
 0x4f3   :  { %vm1707_vm0 = vcmp.eq.f32.partialorder %v7950_v37, %v8133_v35  ;;  %v1781_v37 = vand.u32 65535, %v8000_v60  ;;  %v1797_v60 = vand.u32 65535, %v8063_v21  ;;  %v1847_v21 = vcvt.s32.f32 %v1845_v50  ;;  %v8200_v50 = vld [vmem:[#allocation2 + $0xb8] sm:$0xff] }
 0x4f4   :  { %v1708_v56 = vsel %vm1707_vm0, %v1703_v14, inf }
 0x4f5   :  { %1709 = vmin.xlane.f32.xlu0 %v1708_v56  ;;  %v1783_v33 = vcvt.s32.f32 %v1781_v37  ;;  %v1799_v14 = vcvt.s32.f32 %v1797_v60  ;;  %v1829_v56 = vand.u32 65535, %v8082_v12  ;;  %v1632_v37 = vcvt.f32.s32 %v8103_v15 }
 0x4f6   :  { %v8137_v32 = vpop.xlane.xlu1 %1753 }
 0x4f7   :  { %vm1755_vm1 = vcmp.eq.f32.partialorder %v7967_v20, %v8137_v32  ;;  %v1633_v3 = vshll.u32 %v1632_v37, 16  ;;  %v1728_v37 = vcvt.f32.s32 %v8127_v53 }
 0x4f8   :  { %v1756_v59 = vsel %vm1755_vm1, %v1751_v63, inf }
 0x4f9   :  { %1757 = vmin.xlane.f32.xlu1 %v1756_v59  ;;  %v1831_v59 = vcvt.s32.f32 %v1829_v56 }
 0x4fb   :  { %v8142_v45 = vpop.xlane.xlu0 %1737 }
 0x4fc   :  { %vm1739_vm2 = vcmp.eq.f32.partialorder %v7997_v57, %v8142_v45 }
 0x4fd   :  { %v1740_v47 = vsel %vm1739_vm2, %v1735_v42, inf  ;;  %v1863_v42 = vcvt.s32.f32 %v1861_v5 }
 0x4fe   :  { %1741 = vmin.xlane.f32.xlu0 %v1740_v47  ;;  %v1648_v47 = vcvt.f32.s32 %v8107_v6 }
 0x501   :  { %v8147_v16 = vpop.xlane.xlu1 %1785 }
 0x502   :  { %vm1787_vm3 = vcmp.eq.f32.partialorder %v8023_v38, %v8147_v16 }
 0x503   :  { %v1788_v20 = vsel %vm1787_vm3, %v1783_v33, inf }
 0x504   :  { %1789 = vmin.xlane.f32.xlu1 %v1788_v20  ;;  %v1649_v20 = vshll.u32 %v1648_v47, 16 }
 0x505   :  { %v8153_v36 = vpop.xlane.xlu0 %1769 }
 0x506   :  { %vm1771_vm5 = vcmp.eq.f32.partialorder %v8050_v44, %v8153_v36 }
 0x507   :  { %v1772_v57 = vsel %vm1771_vm5, %v1767_v26, inf }
 0x508   :  { %1773 = vmin.xlane.f32.xlu0 %v1772_v57  ;;  %v8158_v46 = vpop.xlane.xlu1 %1817 }
 0x509   :  { %vm1819_vm4 = vcmp.eq.f32.partialorder %v8074_v55, %v8158_v46 }
 0x50a   :  { %v1820_v38 = vsel %vm1819_vm4, %v1815_v22, inf }
 0x50b   :  { %v8163_v29 = vpop.xlane.xlu0 %1801  ;;  %1821 = vmin.xlane.f32.xlu1 %v1820_v38 }
 0x50c   :  { %vm1803_vm6 = vcmp.eq.f32.partialorder %v8085_v52, %v8163_v29  ;;  %v8168_v44 = vpop.xlane.xlu1 %1849 }
 0x50d   :  { %v1804_v63 = vsel %vm1803_vm6, %v1799_v14, inf  ;;  %vm1851_vm8 = vcmp.eq.f32.partialorder %v8088_v24, %v8168_v44 }
 0x50e   :  { %1805 = vmin.xlane.f32.xlu0 %v1804_v63  ;;  %v1852_v58 = vsel %vm1851_vm8, %v1847_v21, inf }
 0x50f   :  { %v8172_v55 = vpop.xlane.xlu0 %1833  ;;  %1853 = vmin.xlane.f32.xlu1 %v1852_v58  ;;  %v1696_v58 = vcvt.f32.s32 %v8118_v62 }
 0x510   :  { %vm1835_vm9 = vcmp.eq.f32.partialorder %v8093_v39, %v8172_v55 }
 0x511   :  { %v1836_v12 = vsel %vm1835_vm9, %v1831_v59, inf }
 0x512   :  { %1837 = vmin.xlane.f32.xlu0 %v1836_v12 }
 0x513   :  { %v8177_v52 = vpop.xlane.xlu0 %1865 }
 0x514   :  { %vm1867_vm7 = vcmp.eq.f32.partialorder %v8098_v0, %v8177_v52  ;;  %v8189_v0 = vld [vmem:[#allocation2 + $0x78] sm:$0xff] }
 0x515   :  { %v1868_v24 = vsel %vm1867_vm7, %v1863_v42, inf }
 0x516   :  { %1869 = vmin.xlane.f32.xlu0 %v1868_v24  ;;  %v1697_v24 = vshll.u32 %v1696_v58, 16 }
 0x565   :  { %v1630_v33 = vpop.xlane.xlu1 %1629 }
 0x566   :  { %v1631_v1 = vcvt.f32.s32 %v1630_v33  ;;  %v8227_v33 = vld [vmem:[#allocation2 + $0x88] sm:$0xff] }
 0x567   :  { %v1646_v39 = vpop.xlane.xlu0 %1645 }
 0x568   :  { %v1634_v54 = vadd.s32 %v1633_v3, %v1631_v1  ;;  %v1647_v26 = vcvt.f32.s32 %v1646_v39 }
 0x56a   :  { %v8187_v57 = vsel %vm1875_vm10, %v1634_v54, %v7816_v27  ;;  %vm1892_vm11 = vcmp.gt.s32.totalorder %v8189_v0, %v1634_v54  ;;  %vm1893_vm13 = vcmp.gt.s32.totalorder %v7819_v17, %v1634_v54  ;;  %v1650_v15 = vadd.s32 %v1649_v20, %v1647_v26 }
 0x56b   :  { %v1924_v6 = vsel %vm1892_vm11, %v8189_v0, 2147483647  ;;  %v1925_v60 = vsel %vm1893_vm13, %v7819_v17, 2147483647  ;;  %v1664_v17 = vcvt.f32.s32 %v8112_v49  ;;  %v1729_v26 = vshll.u32 %v1728_v37, 16  ;;  %v8270_v37 = vld [vmem:[#allocation2 + $0xe8] sm:$0xff] }
 0x56c   :  { %v8198_v22 = vsel %vm1875_vm10, %v1650_v15, %v7827_v34  ;;  %vm1894_vm12 = vcmp.gt.s32.totalorder %v8200_v50, %v1650_v15  ;;  %vm1895_vm14 = vcmp.gt.s32.totalorder %v7830_v9, %v1650_v15  ;;  %vm1956_vm15 = vcmp.lt.s32.totalorder %v1924_v6, %v1925_v60 }
 0x56d   :  { %v8204_v27 = vsel %vm1956_vm15, %v1924_v6, %v1925_v60  ;;  %v1926_v38 = vsel %vm1894_vm12, %v8200_v50, 2147483647  ;;  %v1927_v14 = vsel %vm1895_vm14, %v7830_v9, 2147483647  ;;  %v1665_v5 = vshll.u32 %v1664_v17, 16 }
 0x56e   :  { %v1959_v56 = vshra.s32 %v8204_v27, 16  ;;  %vm1972_vm0 = vcmp.lt.s32.totalorder %v1926_v38, %v1927_v14  ;;  %v1680_v9 = vcvt.f32.s32 %v8123_v43  ;;  %v1760_v15 = vcvt.f32.s32 %v8137_v32 }
 0x56f   :  { %v8210_v34 = vsel %vm1972_vm0, %v1926_v38, %v1927_v14  ;;  %v1662_v59 = vpop.xlane.xlu1 %1661  ;;  %v8242_v38 = vld [vmem:[#allocation2 + $0xc0] sm:$0xff] }
 0x570   :  { %v8212_v21 = vcvt.s32.f32 %v1959_v56  ;;  %v1975_v63 = vshra.s32 %v8210_v34, 16  ;;  %v1663_v12 = vcvt.f32.s32 %v1662_v59  ;;  %v1681_v20 = vshll.u32 %v1680_v9, 16 }
 0x572   :  { %1962 = vmin.xlane.f32.xlu1 %v8212_v21  ;;  %v8217_v42 = vcvt.s32.f32 %v1975_v63  ;;  %v1666_v49 = vadd.s32 %v1665_v5, %v1663_v12  ;;  %v8254_v63 = vld [vmem:[#allocation2 + $0x90] sm:$0xff] }
 0x574   :  { %1978 = vmin.xlane.f32.xlu0 %v8217_v42  ;;  %v8225_v62 = vsel %vm1875_vm10, %v1666_v49, %v7854_v4  ;;  %vm1896_vm1 = vcmp.gt.s32.totalorder %v8227_v33, %v1666_v49  ;;  %vm1897_vm2 = vcmp.gt.s32.totalorder %v7857_v7, %v1666_v49  ;;  %v1712_v4 = vcvt.f32.s32 %v8133_v35 }
 0x575   :  { %v1694_v47 = vpop.xlane.xlu1 %1693  ;;  %v1928_v1 = vsel %vm1896_vm1, %v8227_v33, 2147483647  ;;  %v1929_v39 = vsel %vm1897_vm2, %v7857_v7, 2147483647 }
 0x576   :  { %v1695_v3 = vcvt.f32.s32 %v1694_v47  ;;  %vm1988_vm3 = vcmp.lt.s32.totalorder %v1928_v1, %v1929_v39 }
 0x577   :  { %v1678_v43 = vpop.xlane.xlu0 %1677  ;;  %v8235_v6 = vsel %vm1988_vm3, %v1928_v1, %v1929_v39  ;;  %v1761_v1 = vshll.u32 %v1760_v15, 16 }
 0x578   :  { %v1698_v53 = vadd.s32 %v1697_v24, %v1695_v3  ;;  %v1679_v54 = vcvt.f32.s32 %v1678_v43  ;;  %v1991_v35 = vshra.s32 %v8235_v6, 16 }
 0x57a   :  { %v8240_v60 = vsel %vm1875_vm10, %v1698_v53, %v7867_v40  ;;  %vm1900_vm5 = vcmp.gt.s32.totalorder %v8242_v38, %v1698_v53  ;;  %vm1901_vm4 = vcmp.gt.s32.totalorder %v7870_v30, %v1698_v53  ;;  %v1682_v7 = vadd.s32 %v1681_v20, %v1679_v54  ;;  %v1726_v14 = vpop.xlane.xlu1 %1725 }
 0x57b   :  { %v1727_v17 = vcvt.f32.s32 %v1726_v14  ;;  %v1932_v32 = vsel %vm1900_vm5, %v8242_v38, 2147483647  ;;  %v1933_v56 = vsel %vm1901_vm4, %v7870_v30, 2147483647  ;;  %v8258_v59 = vcvt.s32.f32 %v1991_v35  ;;  %v8290_v14 = vld [vmem:[#allocation2 + $0x20] sm:$0xff] }
 0x57c   :  { %v8252_v40 = vsel %vm1875_vm10, %v1682_v7, %v7880_v25  ;;  %vm1898_vm6 = vcmp.gt.s32.totalorder %v8254_v63, %v1682_v7  ;;  %vm1899_vm8 = vcmp.gt.s32.totalorder %v7883_v61, %v1682_v7  ;;  %vm2020_vm9 = vcmp.lt.s32.totalorder %v1932_v32, %v1933_v56 }
 0x57d   :  { %v1730_v58 = vadd.s32 %v1729_v26, %v1727_v17  ;;  %v8260_v5 = vsel %vm2020_vm9, %v1932_v32, %v1933_v56  ;;  %v1930_v12 = vsel %vm1898_vm6, %v8254_v63, 2147483647  ;;  %v1713_v30 = vshll.u32 %v1712_v4, 16  ;;  %1994 = vmin.xlane.f32.xlu1 %v8258_v59  ;;  %v8307_v56 = vld [vmem:[#allocation2 + $0x50] sm:$0xff] }
 0x57e   :  { %v1710_v9 = vpop.xlane.xlu0 %1709  ;;  %v2023_v49 = vshra.s32 %v8260_v5, 16  ;;  %v1931_v25 = vsel %vm1899_vm8, %v7883_v61, 2147483647  ;;  %v1744_v53 = vcvt.f32.s32 %v8142_v45 }
 0x57f   :  { %v8268_v24 = vsel %vm1875_vm10, %v1730_v58, %v7900_v10  ;;  %vm1904_vm7 = vcmp.gt.s32.totalorder %v8270_v37, %v1730_v58  ;;  %vm1905_vm11 = vcmp.gt.s32.totalorder %v7903_v8, %v1730_v58  ;;  %v1711_v47 = vcvt.f32.s32 %v1710_v9 }
 0x580   :  { %v8275_v3 = vcvt.s32.f32 %v2023_v49  ;;  %vm2004_vm13 = vcmp.lt.s32.totalorder %v1930_v12, %v1931_v25  ;;  %v1936_v43 = vsel %vm1904_vm7, %v8270_v37, 2147483647  ;;  %v1937_v61 = vsel %vm1905_vm11, %v7903_v8, 2147483647 }
 0x581   :  { %v1714_v39 = vadd.s32 %v1713_v30, %v1711_v47  ;;  %v8279_v20 = vsel %vm2004_vm13, %v1930_v12, %v1931_v25  ;;  %vm2052_vm12 = vcmp.lt.s32.totalorder %v1936_v43, %v1937_v61  ;;  %v1745_v9 = vshll.u32 %v1744_v53, 16 }
 0x582   :  { %v1758_v10 = vpop.xlane.xlu1 %1757  ;;  %v2007_v26 = vshra.s32 %v8279_v20, 16  ;;  %v8283_v4 = vsel %vm2052_vm12, %v1936_v43, %v1937_v61  ;;  %2026 = vmin.xlane.f32.xlu1 %v8275_v3  ;;  %v1792_v25 = vcvt.f32.s32 %v8147_v16 }
 0x583   :  { %v1759_v54 = vcvt.f32.s32 %v1758_v10  ;;  %v8288_v7 = vsel %vm1875_vm10, %v1714_v39, %v7920_v19  ;;  %vm1902_vm14 = vcmp.gt.s32.totalorder %v8290_v14, %v1714_v39  ;;  %vm1903_vm15 = vcmp.gt.s32.totalorder %v7923_v18, %v1714_v39  ;;  %v8331_v10 = vld [vmem:[#allocation2 + $0x80] sm:$0xff] }
 0x584   :  { %v2055_v8 = vshra.s32 %v8283_v4, 16  ;;  %v8296_v15 = vcvt.s32.f32 %v2007_v26  ;;  %v1934_v17 = vsel %vm1902_vm14, %v8290_v14, 2147483647  ;;  %v1935_v35 = vsel %vm1903_vm15, %v7923_v18, 2147483647 }
 0x585   :  { %v1762_v45 = vadd.s32 %v1761_v1, %v1759_v54  ;;  %vm2036_vm0 = vcmp.lt.s32.totalorder %v1934_v17, %v1935_v35  ;;  %v1776_v39 = vcvt.f32.s32 %v8153_v36  ;;  %v1793_v54 = vshll.u32 %v1792_v25, 16 }
 0x586   :  { %v8300_v32 = vcvt.s32.f32 %v2055_v8  ;;  %2010 = vmin.xlane.f32.xlu0 %v8296_v15  ;;  %v8312_v58 = vsel %vm2036_vm0, %v1934_v17, %v1935_v35 }
 0x587   :  { %v8305_v19 = vsel %vm1875_vm10, %v1762_v45, %v7936_v13  ;;  %vm1908_vm1 = vcmp.gt.s32.totalorder %v8307_v56, %v1762_v45  ;;  %vm1909_vm2 = vcmp.gt.s32.totalorder %v7939_v2, %v1762_v45  ;;  %v1742_v12 = vpop.xlane.xlu0 %1741  ;;  %v2039_v18 = vshra.s32 %v8312_v58, 16 }
 0x588   :  { %2058 = vmin.xlane.f32.xlu1 %v8300_v32  ;;  %v1940_v30 = vsel %vm1908_vm1, %v8307_v56, 2147483647  ;;  %v1941_v13 = vsel %vm1909_vm2, %v7939_v2, 2147483647  ;;  %v1743_v49 = vcvt.f32.s32 %v1742_v12  ;;  %v1777_v35 = vshll.u32 %v1776_v39, 16 }
 0x589   :  { %vm2084_vm3 = vcmp.lt.s32.totalorder %v1940_v30, %v1941_v13  ;;  %v8319_v47 = vcvt.s32.f32 %v2039_v18  ;;  %v1808_v12 = vcvt.f32.s32 %v8163_v29  ;;  %v1856_v18 = vcvt.f32.s32 %v8168_v44 }
 0x58a   :  { %v8321_v43 = vsel %vm2084_vm3, %v1940_v30, %v1941_v13  ;;  %v1746_v61 = vadd.s32 %v1745_v9, %v1743_v49  ;;  %v8351_v9 = vld [vmem:[#allocation2 + $0x28] sm:$0xff] }
 0x58b   :  { %v2087_v1 = vshra.s32 %v8321_v43, 16  ;;  %2042 = vmin.xlane.f32.xlu0 %v8319_v47 }
 0x58c   :  { %v8329_v2 = vsel %vm1875_vm10, %v1746_v61, %v7960_v48  ;;  %vm1906_vm5 = vcmp.gt.s32.totalorder %v8331_v10, %v1746_v61  ;;  %vm1907_vm4 = vcmp.gt.s32.totalorder %v7963_v41, %v1746_v61  ;;  %v1824_v48 = vcvt.f32.s32 %v8158_v46  ;;  %v12797_v46 = vld [vmem:[#allocation20_spill] sm:$0xff] }
 0x58d   :  { %v1790_v16 = vpop.xlane.xlu1 %1789  ;;  %v8335_v53 = vcvt.s32.f32 %v2087_v1  ;;  %v1938_v36 = vsel %vm1906_vm5, %v8331_v10, 2147483647  ;;  %v1939_v8 = vsel %vm1907_vm4, %v7963_v41, 2147483647  ;;  %v1840_v1 = vcvt.f32.s32 %v8172_v55  ;;  %v12801_v55 = vld [vmem:[#allocation18_spill] sm:$0xff] }
 0x58e   :  { %v1791_v26 = vcvt.f32.s32 %v1790_v16  ;;  %vm2068_vm6 = vcmp.lt.s32.totalorder %v1938_v36, %v1939_v8  ;;  %v1825_v61 = vshll.u32 %v1824_v48, 16 }
 0x58f   :  { %2090 = vmin.xlane.f32.xlu1 %v8335_v53  ;;  %v8341_v17 = vsel %vm2068_vm6, %v1938_v36, %v1939_v8  ;;  %v12798_v8 = vld [vmem:[#allocation21_spill] sm:$0xff] }
 0x590   :  { %v1794_v45 = vadd.s32 %v1793_v54, %v1791_v26  ;;  %v2071_v13 = vshra.s32 %v8341_v17, 16  ;;  %v1857_v54 = vshll.u32 %v1856_v18, 16 }
 0x591   :  { %v1774_v30 = vpop.xlane.xlu0 %1773 }
 0x592   :  { %v8349_v41 = vsel %vm1875_vm10, %v1794_v45, %v7978_v11  ;;  %vm1912_vm8 = vcmp.gt.s32.totalorder %v8351_v9, %v1794_v45  ;;  %vm1913_vm9 = vcmp.gt.s32.totalorder %v12797_v46, %v1794_v45  ;;  %v1775_v49 = vcvt.f32.s32 %v1774_v30  ;;  %v8368_v30 = vld [vmem:[#allocation2 + $0xa0] sm:$0xff] }
 0x593   :  { %v8355_v25 = vcvt.s32.f32 %v2071_v13  ;;  %v1944_v29 = vsel %vm1912_vm8, %v8351_v9, 2147483647  ;;  %v1945_v44 = vsel %vm1913_vm9, %v12797_v46, 2147483647  ;;  %v1809_v11 = vshll.u32 %v1808_v12, 16  ;;  %12800 = vst [vmem:[#allocation12_spill] sm:$0xff] %v8368_v30 }
 0x594   :  { %v1778_v39 = vadd.s32 %v1777_v35, %v1775_v49  ;;  %v1822_v16 = vpop.xlane.xlu1 %1821  ;;  %vm2116_vm7 = vcmp.lt.s32.totalorder %v1944_v29, %v1945_v44  ;;  %v1872_v35 = vcvt.f32.s32 %v8177_v52  ;;  %v1841_v49 = vshll.u32 %v1840_v1, 16 }
 0x595   :  { %v1823_v26 = vcvt.f32.s32 %v1822_v16  ;;  %2074 = vmin.xlane.f32.xlu0 %v8355_v25  ;;  %v8361_v36 = vsel %vm2116_vm7, %v1944_v29, %v1945_v44 }
 0x596   :  { %v8366_v45 = vsel %vm1875_vm10, %v1778_v39, %v12798_v8  ;;  %vm1910_vm11 = vcmp.gt.s32.totalorder %v8368_v30, %v1778_v39  ;;  %vm1911_vm13 = vcmp.gt.s32.totalorder %v12801_v55, %v1778_v39  ;;  %v2119_v48 = vshra.s32 %v8361_v36, 16  ;;  %v12802_v8 = vld [vmem:[#allocation10_spill] sm:$0xff] }
 0x597   :  { %12799 = vst [vmem:[#allocation16_spill] sm:$0xff] %v8366_v45  ;;  %v1826_v12 = vadd.s32 %v1825_v61, %v1823_v26  ;;  %v1806_v18 = vpop.xlane.xlu0 %1805  ;;  %v1942_v13 = vsel %vm1910_vm11, %v8368_v30, 2147483647  ;;  %v1943_v46 = vsel %vm1911_vm13, %v12801_v55, 2147483647  ;;  %v8383_v45 = vld [vmem:[#allocation2 + $0x40] sm:$0xff] }
 0x598   :  { %v1807_v29 = vcvt.f32.s32 %v1806_v18  ;;  %v1854_v44 = vpop.xlane.xlu1 %1853  ;;  %v8376_v16 = vcvt.s32.f32 %v2119_v48  ;;  %vm2100_vm12 = vcmp.lt.s32.totalorder %v1942_v13, %v1943_v46  ;;  %v1873_v48 = vshll.u32 %v1872_v35, 16  ;;  %v12804_v30 = vld [vmem:[#allocation19_spill] sm:$0xff] }
 0x599   :  { %v8381_v39 = vsel %vm1875_vm10, %v1826_v12, %v12802_v8  ;;  %vm1916_vm14 = vcmp.gt.s32.totalorder %v8383_v45, %v1826_v12  ;;  %vm1917_vm15 = vcmp.gt.s32.totalorder %v8011_v23, %v1826_v12  ;;  %v1855_v52 = vcvt.f32.s32 %v1854_v44 }
 0x59a   :  { %12803 = vst [vmem:[#allocation17_spill] sm:$0xff] %v8381_v39  ;;  %v1810_v61 = vadd.s32 %v1809_v11, %v1807_v29  ;;  %2122 = vmin.xlane.f32.xlu1 %v8376_v16  ;;  %v8388_v1 = vsel %vm2100_vm12, %v1942_v13, %v1943_v46  ;;  %v1948_v26 = vsel %vm1916_vm14, %v8383_v45, 2147483647  ;;  %v1949_v55 = vsel %vm1917_vm15, %v8011_v23, 2147483647  ;;  %v8398_v11 = vld [vmem:[#allocation2 + $0x58] sm:$0xff] }
 0x59b   :  { %v1858_v18 = vadd.s32 %v1857_v54, %v1855_v52  ;;  %v1838_v8 = vpop.xlane.xlu0 %1837  ;;  %v2103_v39 = vshra.s32 %v8388_v1, 16  ;;  %vm2148_vm0 = vcmp.lt.s32.totalorder %v1948_v26, %v1949_v55  ;;  %12806 = vst [vmem:[#allocation20_spill] sm:$0xff] %v8398_v11  ;;  %v12807_v46 = vld [vmem:[#allocation14_spill] sm:$0xff]  ;;  %v8407_v54 = vld [vmem:[#allocation2 + $0x48] sm:$0xff] }
 0x59c   :  { %v8396_v12 = vsel %vm1875_vm10, %v1810_v61, %v12804_v30  ;;  %vm1914_vm1 = vcmp.gt.s32.totalorder %v8398_v11, %v1810_v61  ;;  %vm1915_vm2 = vcmp.gt.s32.totalorder %v8020_v31, %v1810_v61  ;;  %v1839_v13 = vcvt.f32.s32 %v1838_v8  ;;  %12809 = vst [vmem:[#allocation18_spill] sm:$0xff] %v8407_v54 }
 0x59d   :  { %12805 = vst [vmem:[#allocation13_spill] sm:$0xff] %v8396_v12  ;;  %v8405_v23 = vsel %vm1875_vm10, %v1858_v18, %v12807_v46  ;;  %vm1920_vm3 = vcmp.gt.s32.totalorder %v8407_v54, %v1858_v18  ;;  %vm1921_vm5 = vcmp.gt.s32.totalorder %v8037_v28, %v1858_v18  ;;  %v8411_v30 = vcvt.s32.f32 %v2103_v39  ;;  %v12810_v18 = vld [vmem:[#allocation9_spill] sm:$0xff] }
 0x59e   :  { %12808 = vst [vmem:[#allocation21_spill] sm:$0xff] %v8405_v23  ;;  %v1842_v35 = vadd.s32 %v1841_v49, %v1839_v13  ;;  %v8413_v29 = vsel %vm2148_vm0, %v1948_v26, %v1949_v55  ;;  %v1946_v44 = vsel %vm1914_vm1, %v8398_v11, 2147483647  ;;  %v1947_v52 = vsel %vm1915_vm2, %v8020_v31, 2147483647  ;;  %v8426_v39 = vld [vmem:[#allocation2 + $0xf0] sm:$0xff] }
 0x59f   :  { %v1870_v61 = vpop.xlane.xlu0 %1869  ;;  %2106 = vmin.xlane.f32.xlu0 %v8411_v30  ;;  %v2151_v8 = vshra.s32 %v8413_v29, 16  ;;  %vm2132_vm4 = vcmp.lt.s32.totalorder %v1946_v44, %v1947_v52  ;;  %v1952_v46 = vsel %vm1920_vm3, %v8407_v54, 2147483647  ;;  %v1953_v23 = vsel %vm1921_vm5, %v8037_v28, 2147483647  ;;  %v12812_v31 = vld [vmem:[#allocation15_spill] sm:$0xff] }
 0x5a0   :  { %v8424_v49 = vsel %vm1875_vm10, %v1842_v35, %v12810_v18  ;;  %vm1918_vm6 = vcmp.gt.s32.totalorder %v8426_v39, %v1842_v35  ;;  %vm1919_vm8 = vcmp.gt.s32.totalorder %v12812_v31, %v1842_v35  ;;  %v1871_v26 = vcvt.f32.s32 %v1870_v61  ;;  %v12813_v35 = vld [vmem:[#allocation11_spill] sm:$0xff] }
 0x5a1   :  { %12811 = vst [vmem:[#allocation10_spill] sm:$0xff] %v8424_v49  ;;  %v8430_v55 = vcvt.s32.f32 %v2151_v8  ;;  %v8432_v13 = vsel %vm2132_vm4, %v1946_v44, %v1947_v52  ;;  %vm2180_vm9 = vcmp.lt.s32.totalorder %v1952_v46, %v1953_v23  ;;  %v1950_v54 = vsel %vm1918_vm6, %v8426_v39, 2147483647  ;;  %v8446_v52 = vld [vmem:[#allocation2 + $0x30] sm:$0xff] }
 0x5a2   :  { %v1874_v28 = vadd.s32 %v1873_v48, %v1871_v26  ;;  %v2135_v11 = vshra.s32 %v8432_v13, 16  ;;  %v8436_v12 = vsel %vm2180_vm9, %v1952_v46, %v1953_v23  ;;  %v1951_v18 = vsel %vm1919_vm8, %v12812_v31, 2147483647  ;;  %12815 = vst [vmem:[#allocation14_spill] sm:$0xff] %v8446_v52  ;;  %v8449_v48 = vld [vmem:[#allocation2 + $0xf8] sm:$0xff] }
 0x5a3   :  { %2154 = vmin.xlane.f32.xlu1 %v8430_v55  ;;  %v2183_v49 = vshra.s32 %v8436_v12, 16  ;;  %vm2164_vm7 = vcmp.lt.s32.totalorder %v1950_v54, %v1951_v18  ;;  %12816 = vst [vmem:[#allocation9_spill] sm:$0xff] %v8449_v48 }
 0x5a4   :  { %v8444_v44 = vsel %vm1875_vm10, %v1874_v28, %v12813_v35  ;;  %vm1922_vm11 = vcmp.gt.s32.totalorder %v8446_v52, %v1874_v28  ;;  %vm1923_vm13 = vcmp.gt.s32.totalorder %v8449_v48, %v1874_v28  ;;  %v8452_v23 = vcvt.s32.f32 %v2135_v11 }
 0x5a5   :  { %12814 = vst [vmem:[#allocation19_spill] sm:$0xff] %v8444_v44  ;;  %v8454_v61 = vcvt.s32.f32 %v2183_v49  ;;  %v8456_v8 = vsel %vm2164_vm7, %v1950_v54, %v1951_v18  ;;  %v1954_v46 = vsel %vm1922_vm11, %v8446_v52, 2147483647  ;;  %v1955_v31 = vsel %vm1923_vm13, %v8449_v48, 2147483647 }
 0x5a6   :  { %2138 = vmin.xlane.f32.xlu0 %v8452_v23  ;;  %v2167_v26 = vshra.s32 %v8456_v8, 16  ;;  %vm2196_vm10 = vcmp.lt.s32.totalorder %v1954_v46, %v1955_v31  ;;  %v1958_v49 = vand.u32 65535, %v8204_v27  ;;  %v1974_v18 = vand.u32 65535, %v8210_v34 }
 0x5a7   :  { %2186 = vmin.xlane.f32.xlu1 %v8454_v61  ;;  %v8463_v35 = vsel %vm2196_vm10, %v1954_v46, %v1955_v31  ;;  %v1990_v27 = vand.u32 65535, %v8235_v6 }
 0x5a8   :  { %v8465_v28 = vcvt.s32.f32 %v2167_v26  ;;  %v2199_v11 = vshra.s32 %v8463_v35, 16  ;;  %v1960_v52 = vcvt.s32.f32 %v1958_v49  ;;  %v1976_v26 = vcvt.s32.f32 %v1974_v18 }
 0x5a9   :  { %v1992_v34 = vcvt.s32.f32 %v1990_v27  ;;  %v2022_v49 = vand.u32 65535, %v8260_v5 }
 0x5aa   :  { %2170 = vmin.xlane.f32.xlu0 %v8465_v28  ;;  %v8469_v54 = vcvt.s32.f32 %v2199_v11 }
 0x5ae   :  { %2202 = vmin.xlane.f32.xlu0 %v8469_v54 }
 0x5fb   :  { %v8474_v48 = vpop.xlane.xlu1 %1962 }
 0x5fc   :  { %vm1964_vm12 = vcmp.eq.f32.partialorder %v8212_v21, %v8474_v48 }
 0x5fd   :  { %v8478_v46 = vpop.xlane.xlu0 %1978  ;;  %v1965_v31 = vsel %vm1964_vm12, %v1960_v52, inf  ;;  %v2006_v52 = vand.u32 65535, %v8279_v20  ;;  %v2038_v20 = vand.u32 65535, %v8312_v58  ;;  %vm2212_vm12 = vcmp.eq.s32.totalorder %v6476_v51, 4 }
 0x5fe   :  { %1966 = vmin.xlane.f32.xlu1 %v1965_v31  ;;  %vm1980_vm14 = vcmp.eq.f32.partialorder %v8217_v42, %v8478_v46  ;;  %v2024_v31 = vcvt.s32.f32 %v2022_v49  ;;  %v2054_v42 = vand.u32 65535, %v8283_v4 }
 0x5ff   :  { %v1981_v11 = vsel %vm1980_vm14, %v1976_v26, inf  ;;  %v2008_v5 = vcvt.s32.f32 %v2006_v52  ;;  %v2040_v49 = vcvt.s32.f32 %v2038_v20  ;;  %v2070_v52 = vand.u32 65535, %v8341_v17 }
 0x600   :  { %1982 = vmin.xlane.f32.xlu0 %v1981_v11  ;;  %v2056_v11 = vcvt.s32.f32 %v2054_v42 }
 0x606   :  { %v8483_v44 = vpop.xlane.xlu1 %1994 }
 0x607   :  { %vm1996_vm15 = vcmp.eq.f32.partialorder %v8258_v59, %v8483_v44 }
 0x608   :  { %v1997_v21 = vsel %vm1996_vm15, %v1992_v34, inf }
 0x609   :  { %1998 = vmin.xlane.f32.xlu1 %v1997_v21 }
 0x60b   :  { %v8489_v18 = vpop.xlane.xlu1 %2026 }
 0x60c   :  { %vm2028_vm0 = vcmp.eq.f32.partialorder %v8275_v3, %v8489_v18  ;;  %v2086_v3 = vand.u32 65535, %v8321_v43  ;;  %v2072_v43 = vcvt.s32.f32 %v2070_v52  ;;  %v2198_v52 = vand.u32 65535, %v8463_v35 }
 0x60d   :  { %v2029_v6 = vsel %vm2028_vm0, %v2024_v31, inf }
 0x60e   :  { %2030 = vmin.xlane.f32.xlu1 %v2029_v6  ;;  %v2088_v58 = vcvt.s32.f32 %v2086_v3 }
 0x60f   :  { %v8494_v26 = vpop.xlane.xlu0 %2010 }
 0x610   :  { %vm2012_vm1 = vcmp.eq.f32.partialorder %v8296_v15, %v8494_v26 }
 0x611   :  { %v8498_v59 = vpop.xlane.xlu1 %2058  ;;  %v2013_v27 = vsel %vm2012_vm1, %v2008_v5, inf }
 0x612   :  { %vm2060_vm2 = vcmp.eq.f32.partialorder %v8300_v32, %v8498_v59  ;;  %2014 = vmin.xlane.f32.xlu0 %v2013_v27  ;;  %v2150_v27 = vand.u32 65535, %v8413_v29 }
 0x613   :  { %v2061_v4 = vsel %vm2060_vm2, %v2056_v11, inf }
 0x614   :  { %2062 = vmin.xlane.f32.xlu1 %v2061_v4  ;;  %v8504_v34 = vpop.xlane.xlu0 %2042  ;;  %v2152_v3 = vcvt.s32.f32 %v2150_v27 }
 0x615   :  { %vm2044_vm3 = vcmp.eq.f32.partialorder %v8319_v47, %v8504_v34  ;;  %v2118_v47 = vand.u32 65535, %v8361_v36  ;;  %v2134_v36 = vand.u32 65535, %v8432_v13 }
 0x616   :  { %v2045_v15 = vsel %vm2044_vm3, %v2040_v49, inf }
 0x617   :  { %2046 = vmin.xlane.f32.xlu0 %v2045_v15  ;;  %v2120_v5 = vcvt.s32.f32 %v2118_v47  ;;  %v2136_v29 = vcvt.s32.f32 %v2134_v36  ;;  %v2166_v15 = vand.u32 65535, %v8456_v8  ;;  %v1969_v47 = vcvt.f32.s32 %v8474_v48 }
 0x618   :  { %v8508_v21 = vpop.xlane.xlu1 %2090 }
 0x619   :  { %vm2092_vm5 = vcmp.eq.f32.partialorder %v8335_v53, %v8508_v21  ;;  %v2102_v53 = vand.u32 65535, %v8388_v1 }
 0x61a   :  { %v2093_v32 = vsel %vm2092_vm5, %v2088_v58, inf }
 0x61b   :  { %2094 = vmin.xlane.f32.xlu1 %v2093_v32  ;;  %v2104_v20 = vcvt.s32.f32 %v2102_v53  ;;  %v2168_v32 = vcvt.s32.f32 %v2166_v15  ;;  %v1970_v53 = vshll.u32 %v1969_v47, 16  ;;  %v2001_v15 = vcvt.f32.s32 %v8483_v44 }
 0x61c   :  { %v2017_v44 = vcvt.f32.s32 %v8494_v26  ;;  %v2065_v47 = vcvt.f32.s32 %v8498_v59  ;;  %v2049_v26 = vcvt.f32.s32 %v8504_v34  ;;  %v2097_v59 = vcvt.f32.s32 %v8508_v21 }
 0x61e   :  { %v8513_v31 = vpop.xlane.xlu0 %2074 }
 0x61f   :  { %vm2076_vm4 = vcmp.eq.f32.partialorder %v8355_v25, %v8513_v31 }
 0x620   :  { %v2077_v42 = vsel %vm2076_vm4, %v2072_v43, inf  ;;  %v2200_v43 = vcvt.s32.f32 %v2198_v52 }
 0x621   :  { %2078 = vmin.xlane.f32.xlu0 %v2077_v42  ;;  %v1985_v42 = vcvt.f32.s32 %v8478_v46 }
 0x623   :  { %v8518_v6 = vpop.xlane.xlu1 %2122 }
 0x624   :  { %vm2124_vm6 = vcmp.eq.f32.partialorder %v8376_v16, %v8518_v6  ;;  %v2182_v16 = vand.u32 65535, %v8436_v12 }
 0x625   :  { %v2125_v17 = vsel %vm2124_vm6, %v2120_v5, inf }
 0x626   :  { %2126 = vmin.xlane.f32.xlu1 %v2125_v17  ;;  %v2184_v13 = vcvt.s32.f32 %v2182_v16  ;;  %v1986_v17 = vshll.u32 %v1985_v42, 16 }
 0x628   :  { %v8523_v11 = vpop.xlane.xlu0 %2106 }
 0x629   :  { %vm2108_vm8 = vcmp.eq.f32.partialorder %v8411_v30, %v8523_v11 }
 0x62a   :  { %v2109_v25 = vsel %vm2108_vm8, %v2104_v20, inf }
 0x62b   :  { %2110 = vmin.xlane.f32.xlu0 %v2109_v25 }
 0x62c   :  { %v8529_v4 = vpop.xlane.xlu1 %2154 }
 0x62d   :  { %vm2156_vm9 = vcmp.eq.f32.partialorder %v8430_v55, %v8529_v4 }
 0x62e   :  { %v2157_v1 = vsel %vm2156_vm9, %v2152_v3, inf }
 0x62f   :  { %v8534_v49 = vpop.xlane.xlu0 %2138  ;;  %2158 = vmin.xlane.f32.xlu1 %v2157_v1 }
 0x630   :  { %vm2140_vm7 = vcmp.eq.f32.partialorder %v8452_v23, %v8534_v49  ;;  %v8539_v30 = vpop.xlane.xlu1 %2186 }
 0x631   :  { %v2141_v58 = vsel %vm2140_vm7, %v2136_v29, inf  ;;  %vm2188_vm11 = vcmp.eq.f32.partialorder %v8454_v61, %v8539_v30 }
 0x632   :  { %2142 = vmin.xlane.f32.xlu0 %v2141_v58  ;;  %v2189_v12 = vsel %vm2188_vm11, %v2184_v13, inf }
 0x633   :  { %v8543_v55 = vpop.xlane.xlu0 %2170  ;;  %2190 = vmin.xlane.f32.xlu1 %v2189_v12  ;;  %v2033_v12 = vcvt.f32.s32 %v8489_v18 }
 0x634   :  { %vm2172_vm13 = vcmp.eq.f32.partialorder %v8465_v28, %v8543_v55 }
 0x635   :  { %v2173_v8 = vsel %vm2172_vm13, %v2168_v32, inf }
 0x636   :  { %2174 = vmin.xlane.f32.xlu0 %v2173_v8 }
 0x637   :  { %v8548_v23 = vpop.xlane.xlu0 %2202 }
 0x638   :  { %vm2204_vm10 = vcmp.eq.f32.partialorder %v8469_v54, %v8548_v23  ;;  %v8561_v54 = vld [vmem:[#allocation2 + $0x60] sm:$0xff] }
 0x639   :  { %v2205_v61 = vsel %vm2204_vm10, %v2200_v43, inf }
 0x63a   :  { %2206 = vmin.xlane.f32.xlu0 %v2205_v61  ;;  %v2034_v61 = vshll.u32 %v2033_v12, 16  ;;  %v2098_v12 = vshll.u32 %v2097_v59, 16  ;;  %v2081_v59 = vcvt.f32.s32 %v8513_v31 }
 0x687   :  { %v1967_v5 = vpop.xlane.xlu1 %1966 }
 0x688   :  { %v1968_v35 = vcvt.f32.s32 %v1967_v5  ;;  %v8599_v5 = vld [vmem:[#allocation2 + $0xb0] sm:$0xff] }
 0x689   :  { %v1983_v28 = vpop.xlane.xlu0 %1982 }
 0x68a   :  { %v1971_v20 = vadd.s32 %v1970_v53, %v1968_v35  ;;  %v1984_v27 = vcvt.f32.s32 %v1983_v28 }
 0x68c   :  { %v8558_v25 = vsel %vm2212_vm12, %v1971_v20, %v8187_v57  ;;  %vm2229_vm14 = vcmp.gt.s32.totalorder %v8189_v0, %v1971_v20  ;;  %vm2230_vm15 = vcmp.gt.s32.totalorder %v8561_v54, %v1971_v20  ;;  %v1987_v48 = vadd.s32 %v1986_v17, %v1984_v27  ;;  %v8572_v57 = vld [vmem:[#allocation2 + $0x8] sm:$0xff] }
 0x68d   :  { %v2261_v46 = vsel %vm2229_vm14, %v8189_v0, 2147483647  ;;  %v2262_v36 = vsel %vm2230_vm15, %v8561_v54, 2147483647  ;;  %v2066_v27 = vshll.u32 %v2065_v47, 16 }
 0x68e   :  { %v8569_v3 = vsel %vm2212_vm12, %v1987_v48, %v8198_v22  ;;  %vm2231_vm0 = vcmp.gt.s32.totalorder %v8200_v50, %v1987_v48  ;;  %vm2232_vm1 = vcmp.gt.s32.totalorder %v8572_v57, %v1987_v48  ;;  %vm2293_vm2 = vcmp.lt.s32.totalorder %v2261_v46, %v2262_v36 }
 0x68f   :  { %v8575_v16 = vsel %vm2293_vm2, %v2261_v46, %v2262_v36  ;;  %v2263_v1 = vsel %vm2231_vm0, %v8200_v50, 2147483647  ;;  %v2264_v0 = vsel %vm2232_vm1, %v8572_v57, 2147483647  ;;  %v2002_v50 = vshll.u32 %v2001_v15, 16 }
 0x690   :  { %v2296_v29 = vshra.s32 %v8575_v16, 16  ;;  %vm2309_vm3 = vcmp.lt.s32.totalorder %v2263_v1, %v2264_v0 }
 0x691   :  { %v8581_v22 = vsel %vm2309_vm3, %v2263_v1, %v2264_v0 }
 0x692   :  { %v8583_v13 = vcvt.s32.f32 %v2296_v29  ;;  %v2312_v58 = vshra.s32 %v8581_v22, 16  ;;  %v1999_v32 = vpop.xlane.xlu1 %1998 }
 0x693   :  { %v2000_v8 = vcvt.f32.s32 %v1999_v32 }
 0x694   :  { %2299 = vmin.xlane.f32.xlu1 %v8583_v13  ;;  %v8588_v52 = vcvt.s32.f32 %v2312_v58  ;;  %v2050_v58 = vshll.u32 %v2049_v26, 16 }
 0x695   :  { %v2003_v43 = vadd.s32 %v2002_v50, %v2000_v8  ;;  %v8626_v50 = vld [vmem:[#allocation2 + $0x38] sm:$0xff] }
 0x696   :  { %2315 = vmin.xlane.f32.xlu0 %v8588_v52 }
 0x697   :  { %v2031_v42 = vpop.xlane.xlu1 %2030  ;;  %v8596_v18 = vsel %vm2212_vm12, %v2003_v43, %v8225_v62  ;;  %vm2233_vm5 = vcmp.gt.s32.totalorder %v8227_v33, %v2003_v43  ;;  %vm2234_vm4 = vcmp.gt.s32.totalorder %v8599_v5, %v2003_v43  ;;  %v2018_v62 = vshll.u32 %v2017_v44, 16 }
 0x698   :  { %v2032_v53 = vcvt.f32.s32 %v2031_v42  ;;  %v2265_v35 = vsel %vm2233_vm5, %v8227_v33, 2147483647  ;;  %v2266_v28 = vsel %vm2234_vm4, %v8599_v5, 2147483647  ;;  %v8614_v33 = vld [vmem:[#allocation2 + $0xa8] sm:$0xff] }
 0x699   :  { %vm2325_vm6 = vcmp.lt.s32.totalorder %v2265_v35, %v2266_v28 }
 0x69a   :  { %v2035_v17 = vadd.s32 %v2034_v61, %v2032_v53  ;;  %v8606_v36 = vsel %vm2325_vm6, %v2265_v35, %v2266_v28  ;;  %v8637_v61 = vld [vmem:[#allocation2 + $0x68] sm:$0xff] }
 0x69b   :  { %v2015_v20 = vpop.xlane.xlu0 %2014  ;;  %v2328_v0 = vshra.s32 %v8606_v36, 16 }
 0x69c   :  { %v2016_v48 = vcvt.f32.s32 %v2015_v20  ;;  %v8611_v1 = vsel %vm2212_vm12, %v2035_v17, %v8240_v60  ;;  %vm2237_vm8 = vcmp.gt.s32.totalorder %v8242_v38, %v2035_v17  ;;  %vm2238_vm9 = vcmp.gt.s32.totalorder %v8614_v33, %v2035_v17 }
 0x69d   :  { %v2063_v46 = vpop.xlane.xlu1 %2062  ;;  %v2269_v29 = vsel %vm2237_vm8, %v8242_v38, 2147483647  ;;  %v2270_v15 = vsel %vm2238_vm9, %v8614_v33, 2147483647  ;;  %v8629_v43 = vcvt.s32.f32 %v2328_v0  ;;  %v8675_v0 = vld [vmem:[#allocation2] sm:$0xff] }
 0x69e   :  { %v2064_v34 = vcvt.f32.s32 %v2063_v46  ;;  %v2019_v21 = vadd.s32 %v2018_v62, %v2016_v48  ;;  %vm2357_vm7 = vcmp.lt.s32.totalorder %v2269_v29, %v2270_v15 }
 0x69f   :  { %2331 = vmin.xlane.f32.xlu1 %v8629_v43  ;;  %v8641_v44 = vsel %vm2357_vm7, %v2269_v29, %v2270_v15 }
 0x6a0   :  { %v2067_v32 = vadd.s32 %v2066_v27, %v2064_v34  ;;  %v8623_v60 = vsel %vm2212_vm12, %v2019_v21, %v8252_v40  ;;  %vm2235_vm11 = vcmp.gt.s32.totalorder %v8254_v63, %v2019_v21  ;;  %vm2236_vm13 = vcmp.gt.s32.totalorder %v8626_v50, %v2019_v21  ;;  %v2047_v8 = vpop.xlane.xlu0 %2046 }
 0x6a1   :  { %v2048_v40 = vcvt.f32.s32 %v2047_v8  ;;  %v2267_v47 = vsel %vm2235_vm11, %v8254_v63, 2147483647  ;;  %v2268_v42 = vsel %vm2236_vm13, %v8626_v50, 2147483647  ;;  %v2360_v28 = vshra.s32 %v8641_v44, 16 }
 0x6a2   :  { %v8634_v38 = vsel %vm2212_vm12, %v2067_v32, %v8268_v24  ;;  %vm2241_vm10 = vcmp.gt.s32.totalorder %v8270_v37, %v2067_v32  ;;  %vm2242_vm14 = vcmp.gt.s32.totalorder %v8637_v61, %v2067_v32  ;;  %vm2341_vm15 = vcmp.lt.s32.totalorder %v2267_v47, %v2268_v42 }
 0x6a3   :  { %v2273_v53 = vsel %vm2241_vm10, %v8270_v37, 2147483647  ;;  %v2051_v35 = vadd.s32 %v2050_v58, %v2048_v40  ;;  %v2274_v26 = vsel %vm2242_vm14, %v8637_v61, 2147483647  ;;  %v8649_v20 = vsel %vm2341_vm15, %v2267_v47, %v2268_v42  ;;  %v8657_v37 = vld [vmem:[#allocation2 + $0xd8] sm:$0xff] }
 0x6a4   :  { %v2095_v24 = vpop.xlane.xlu1 %2094  ;;  %vm2389_vm0 = vcmp.lt.s32.totalorder %v2273_v53, %v2274_v26  ;;  %v8660_v62 = vcvt.s32.f32 %v2360_v28  ;;  %v2344_v31 = vshra.s32 %v8649_v20, 16  ;;  %v2082_v32 = vshll.u32 %v2081_v59, 16 }
 0x6a5   :  { %v2096_v17 = vcvt.f32.s32 %v2095_v24  ;;  %v8654_v63 = vsel %vm2212_vm12, %v2051_v35, %v8288_v7  ;;  %vm2239_vm1 = vcmp.gt.s32.totalorder %v8290_v14, %v2051_v35  ;;  %vm2240_vm2 = vcmp.gt.s32.totalorder %v8657_v37, %v2051_v35 }
 0x6a6   :  { %v8663_v48 = vsel %vm2389_vm0, %v2273_v53, %v2274_v26  ;;  %v2271_v46 = vsel %vm2239_vm1, %v8290_v14, 2147483647  ;;  %2363 = vmin.xlane.f32.xlu1 %v8660_v62  ;;  %v2272_v34 = vsel %vm2240_vm2, %v8657_v37, 2147483647  ;;  %v8678_v29 = vcvt.s32.f32 %v2344_v31 }
 0x6a7   :  { %v2099_v27 = vadd.s32 %v2098_v12, %v2096_v17  ;;  %v2392_v7 = vshra.s32 %v8663_v48, 16  ;;  %vm2373_vm4 = vcmp.lt.s32.totalorder %v2271_v46, %v2272_v34  ;;  %v2129_v40 = vcvt.f32.s32 %v8518_v6  ;;  %v8702_v6 = vld [vmem:[#allocation2 + $0x98] sm:$0xff] }
 0x6a8   :  { %2347 = vmin.xlane.f32.xlu0 %v8678_v29  ;;  %v2113_v35 = vcvt.f32.s32 %v8523_v11 }
 0x6a9   :  { %v8672_v21 = vsel %vm2212_vm12, %v2099_v27, %v8305_v19  ;;  %vm2245_vm3 = vcmp.gt.s32.totalorder %v8307_v56, %v2099_v27  ;;  %vm2246_vm5 = vcmp.gt.s32.totalorder %v8675_v0, %v2099_v27  ;;  %v8680_v15 = vcvt.s32.f32 %v2392_v7 }
 0x6aa   :  { %v2079_v14 = vpop.xlane.xlu0 %2078  ;;  %v2277_v58 = vsel %vm2245_vm3, %v8307_v56, 2147483647  ;;  %v2278_v12 = vsel %vm2246_vm5, %v8675_v0, 2147483647  ;;  %v8685_v19 = vsel %vm2373_vm4, %v2271_v46, %v2272_v34  ;;  %v2130_v17 = vshll.u32 %v2129_v40, 16 }
 0x6ab   :  { %v2080_v8 = vcvt.f32.s32 %v2079_v14  ;;  %vm2421_vm6 = vcmp.lt.s32.totalorder %v2277_v58, %v2278_v12  ;;  %2395 = vmin.xlane.f32.xlu1 %v8680_v15  ;;  %v2376_v47 = vshra.s32 %v8685_v19, 16  ;;  %v2114_v7 = vshll.u32 %v2113_v35, 16 }
 0x6ac   :  { %v8690_v42 = vsel %vm2421_vm6, %v2277_v58, %v2278_v12  ;;  %v2161_v14 = vcvt.f32.s32 %v8529_v4  ;;  %v2193_v35 = vcvt.f32.s32 %v8539_v30 }
 0x6ad   :  { %v2083_v53 = vadd.s32 %v2082_v32, %v2080_v8  ;;  %v2424_v56 = vshra.s32 %v8690_v42, 16  ;;  %v8694_v24 = vcvt.s32.f32 %v2376_v47 }
 0x6af   :  { %v8699_v28 = vsel %vm2212_vm12, %v2083_v53, %v8329_v2  ;;  %vm2243_vm8 = vcmp.gt.s32.totalorder %v8331_v10, %v2083_v53  ;;  %vm2244_vm9 = vcmp.gt.s32.totalorder %v8702_v6, %v2083_v53  ;;  %v2127_v26 = vpop.xlane.xlu1 %2126  ;;  %v8705_v59 = vcvt.s32.f32 %v2424_v56  ;;  %2379 = vmin.xlane.f32.xlu0 %v8694_v24 }
 0x6b0   :  { %v2128_v27 = vcvt.f32.s32 %v2127_v26  ;;  %v2275_v11 = vsel %vm2243_vm8, %v8331_v10, 2147483647  ;;  %v2276_v31 = vsel %vm2244_vm9, %v8702_v6, 2147483647  ;;  %v8721_v10 = vld [vmem:[#allocation2 + $0xd0] sm:$0xff]  ;;  %v2162_v53 = vshll.u32 %v2161_v14, 16 }
 0x6b1   :  { %2427 = vmin.xlane.f32.xlu1 %v8705_v59  ;;  %vm2405_vm7 = vcmp.lt.s32.totalorder %v2275_v11, %v2276_v31  ;;  %v2145_v56 = vcvt.f32.s32 %v8534_v49  ;;  %v2209_v14 = vcvt.f32.s32 %v8548_v23 }
 0x6b2   :  { %v2131_v2 = vadd.s32 %v2130_v17, %v2128_v27  ;;  %v8711_v46 = vsel %vm2405_vm7, %v2275_v11, %v2276_v31  ;;  %v12817_v27 = vld [vmem:[#allocation16_spill] sm:$0xff]  ;;  %v8740_v31 = vld [vmem:[#allocation2 + $0x10] sm:$0xff] }
 0x6b3   :  { %v2408_v34 = vshra.s32 %v8711_v46, 16  ;;  %v12819_v11 = vld [vmem:[#allocation12_spill] sm:$0xff]  ;;  %12820 = vst [vmem:[#allocation11_spill] sm:$0xff] %v8740_v31 }
 0x6b4   :  { %v8718_v58 = vsel %vm2212_vm12, %v2131_v2, %v8349_v41  ;;  %vm2249_vm11 = vcmp.gt.s32.totalorder %v8351_v9, %v2131_v2  ;;  %vm2250_vm13 = vcmp.gt.s32.totalorder %v8721_v10, %v2131_v2  ;;  %v2111_v12 = vpop.xlane.xlu0 %2110 }
 0x6b5   :  { %v2112_v32 = vcvt.f32.s32 %v2111_v12  ;;  %v8724_v8 = vcvt.s32.f32 %v2408_v34  ;;  %v2281_v40 = vsel %vm2249_vm11, %v8351_v9, 2147483647  ;;  %v2282_v47 = vsel %vm2250_vm13, %v8721_v10, 2147483647 }
 0x6b6   :  { %vm2453_vm10 = vcmp.lt.s32.totalorder %v2281_v40, %v2282_v47  ;;  %v2177_v34 = vcvt.f32.s32 %v8543_v55  ;;  %v8758_v55 = vld [vmem:[#allocation2 + $0xc8] sm:$0xff] }
 0x6b7   :  { %v2115_v4 = vadd.s32 %v2114_v7, %v2112_v32  ;;  %2411 = vmin.xlane.f32.xlu0 %v8724_v8  ;;  %v8729_v41 = vsel %vm2453_vm10, %v2281_v40, %v2282_v47  ;;  %v2146_v40 = vshll.u32 %v2145_v56, 16  ;;  %v2194_v47 = vshll.u32 %v2193_v35, 16 }
 0x6b8   :  { %v2159_v26 = vpop.xlane.xlu1 %2158  ;;  %v2456_v17 = vshra.s32 %v8729_v41, 16 }
 0x6b9   :  { %v8737_v9 = vsel %vm2212_vm12, %v2115_v4, %v12817_v27  ;;  %vm2247_vm14 = vcmp.gt.s32.totalorder %v12819_v11, %v2115_v4  ;;  %vm2248_vm15 = vcmp.gt.s32.totalorder %v8740_v31, %v2115_v4  ;;  %v2160_v2 = vcvt.f32.s32 %v2159_v26  ;;  %v12821_v26 = vld [vmem:[#allocation17_spill] sm:$0xff] }
 0x6ba   :  { %12818 = vst [vmem:[#allocation15_spill] sm:$0xff] %v8737_v9  ;;  %v8743_v7 = vcvt.s32.f32 %v2456_v17  ;;  %v2279_v49 = vsel %vm2247_vm14, %v12819_v11, 2147483647  ;;  %v2280_v30 = vsel %vm2248_vm15, %v8740_v31, 2147483647  ;;  %v12825_v31 = vld [vmem:[#allocation20_spill] sm:$0xff] }
 0x6bb   :  { %v2163_v12 = vadd.s32 %v2162_v53, %v2160_v2  ;;  %v2143_v32 = vpop.xlane.xlu0 %2142  ;;  %vm2437_vm0 = vcmp.lt.s32.totalorder %v2279_v49, %v2280_v30  ;;  %v2178_v2 = vshll.u32 %v2177_v34, 16 }
 0x6bc   :  { %v2144_v27 = vcvt.f32.s32 %v2143_v32  ;;  %v2191_v9 = vpop.xlane.xlu1 %2190  ;;  %2459 = vmin.xlane.f32.xlu1 %v8743_v7  ;;  %v8750_v4 = vsel %vm2437_vm0, %v2279_v49, %v2280_v30  ;;  %v2210_v49 = vshll.u32 %v2209_v14, 16  ;;  %v12829_v14 = vld [vmem:[#allocation18_spill] sm:$0xff] }
 0x6bd   :  { %v8755_v17 = vsel %vm2212_vm12, %v2163_v12, %v12821_v26  ;;  %vm2253_vm1 = vcmp.gt.s32.totalorder %v8383_v45, %v2163_v12  ;;  %vm2254_vm2 = vcmp.gt.s32.totalorder %v8758_v55, %v2163_v12  ;;  %v2192_v23 = vcvt.f32.s32 %v2191_v9  ;;  %v12823_v26 = vld [vmem:[#allocation13_spill] sm:$0xff] }
 0x6be   :  { %12822 = vst [vmem:[#allocation16_spill] sm:$0xff] %v8755_v17  ;;  %v2147_v53 = vadd.s32 %v2146_v40, %v2144_v27  ;;  %v2440_v56 = vshra.s32 %v8750_v4, 16  ;;  %v2285_v35 = vsel %vm2253_vm1, %v8383_v45, 2147483647  ;;  %v2286_v11 = vsel %vm2254_vm2, %v8758_v55, 2147483647 }
 0x6bf   :  { %v2195_v30 = vadd.s32 %v2194_v47, %v2192_v23  ;;  %v2175_v32 = vpop.xlane.xlu0 %2174  ;;  %vm2485_vm3 = vcmp.lt.s32.totalorder %v2285_v35, %v2286_v11  ;;  %v8770_v9 = vld [vmem:[#allocation2 + $0x70] sm:$0xff]  ;;  %v8779_v40 = vld [vmem:[#allocation2 + $0x18] sm:$0xff] }
 0x6c0   :  { %v8767_v17 = vsel %vm2212_vm12, %v2147_v53, %v12823_v26  ;;  %vm2251_vm5 = vcmp.gt.s32.totalorder %v12825_v31, %v2147_v53  ;;  %12826 = vst [vmem:[#allocation17_spill] sm:$0xff] %v8770_v9  ;;  %vm2252_vm4 = vcmp.gt.s32.totalorder %v8770_v9, %v2147_v53  ;;  %v2176_v12 = vcvt.f32.s32 %v2175_v32  ;;  %v12827_v45 = vld [vmem:[#allocation21_spill] sm:$0xff]  ;;  %12830 = vst [vmem:[#allocation20_spill] sm:$0xff] %v8779_v40 }
 0x6c1   :  { %12824 = vst [vmem:[#allocation12_spill] sm:$0xff] %v8767_v17  ;;  %v8776_v34 = vsel %vm2212_vm12, %v2195_v30, %v12827_v45  ;;  %vm2257_vm6 = vcmp.gt.s32.totalorder %v12829_v14, %v2195_v30  ;;  %vm2258_vm8 = vcmp.gt.s32.totalorder %v8779_v40, %v2195_v30  ;;  %v8782_v47 = vcvt.s32.f32 %v2440_v56  ;;  %v12831_v30 = vld [vmem:[#allocation10_spill] sm:$0xff] }
 0x6c2   :  { %12828 = vst [vmem:[#allocation13_spill] sm:$0xff] %v8776_v34  ;;  %v2179_v27 = vadd.s32 %v2178_v2, %v2176_v12  ;;  %v8784_v23 = vsel %vm2485_vm3, %v2285_v35, %v2286_v11  ;;  %v2283_v26 = vsel %vm2251_vm5, %v12825_v31, 2147483647  ;;  %v2284_v53 = vsel %vm2252_vm4, %v8770_v9, 2147483647  ;;  %v8798_v31 = vld [vmem:[#allocation2 + $0xe0] sm:$0xff] }
 0x6c3   :  { %v2207_v32 = vpop.xlane.xlu0 %2206  ;;  %2443 = vmin.xlane.f32.xlu0 %v8782_v47  ;;  %v2488_v45 = vshra.s32 %v8784_v23, 16  ;;  %vm2469_vm9 = vcmp.lt.s32.totalorder %v2283_v26, %v2284_v53  ;;  %v2289_v34 = vsel %vm2257_vm6, %v12829_v14, 2147483647  ;;  %v2290_v17 = vsel %vm2258_vm8, %v8779_v40, 2147483647 }
 0x6c4   :  { %v8795_v56 = vsel %vm2212_vm12, %v2179_v27, %v12831_v30  ;;  %vm2255_vm7 = vcmp.gt.s32.totalorder %v8426_v39, %v2179_v27  ;;  %vm2256_vm11 = vcmp.gt.s32.totalorder %v8798_v31, %v2179_v27  ;;  %v2208_v35 = vcvt.f32.s32 %v2207_v32  ;;  %v12833_v27 = vld [vmem:[#allocation19_spill] sm:$0xff] }
 0x6c5   :  { %12832 = vst [vmem:[#allocation21_spill] sm:$0xff] %v8795_v56  ;;  %v8801_v11 = vcvt.s32.f32 %v2488_v45  ;;  %v8803_v2 = vsel %vm2469_vm9, %v2283_v26, %v2284_v53  ;;  %vm2517_vm13 = vcmp.lt.s32.totalorder %v2289_v34, %v2290_v17  ;;  %v2287_v12 = vsel %vm2255_vm7, %v8426_v39, 2147483647  ;;  %v12835_v53 = vld [vmem:[#allocation14_spill] sm:$0xff]  ;;  %v12836_v39 = vld [vmem:[#allocation9_spill] sm:$0xff] }
 0x6c6   :  { %v2211_v14 = vadd.s32 %v2210_v49, %v2208_v35  ;;  %v2472_v40 = vshra.s32 %v8803_v2, 16  ;;  %v8807_v9 = vsel %vm2517_vm13, %v2289_v34, %v2290_v17  ;;  %v2288_v30 = vsel %vm2256_vm11, %v8798_v31, 2147483647 }
 0x6c7   :  { %2491 = vmin.xlane.f32.xlu1 %v8801_v11  ;;  %v2520_v56 = vshra.s32 %v8807_v9, 16  ;;  %vm2501_vm10 = vcmp.lt.s32.totalorder %v2287_v12, %v2288_v30 }
 0x6c8   :  { %v8815_v26 = vsel %vm2212_vm12, %v2211_v14, %v12833_v27  ;;  %vm2259_vm14 = vcmp.gt.s32.totalorder %v12835_v53, %v2211_v14  ;;  %vm2260_vm15 = vcmp.gt.s32.totalorder %v12836_v39, %v2211_v14  ;;  %v8819_v49 = vcvt.s32.f32 %v2472_v40 }
 0x6c9   :  { %12834 = vst [vmem:[#allocation18_spill] sm:$0xff] %v8815_v26  ;;  %v8821_v17 = vcvt.s32.f32 %v2520_v56  ;;  %v8823_v34 = vsel %vm2501_vm10, %v2287_v12, %v2288_v30  ;;  %v2291_v32 = vsel %vm2259_vm14, %v12835_v53, 2147483647  ;;  %v2292_v45 = vsel %vm2260_vm15, %v12836_v39, 2147483647 }
 0x6ca   :  { %2475 = vmin.xlane.f32.xlu0 %v8819_v49  ;;  %v2504_v35 = vshra.s32 %v8823_v34, 16  ;;  %vm2533_vm12 = vcmp.lt.s32.totalorder %v2291_v32, %v2292_v45  ;;  %v2295_v12 = vand.u32 65535, %v8575_v16  ;;  %v2311_v30 = vand.u32 65535, %v8581_v22 }
 0x6cb   :  { %2523 = vmin.xlane.f32.xlu1 %v8821_v17  ;;  %v8830_v27 = vsel %vm2533_vm12, %v2291_v32, %v2292_v45  ;;  %v2327_v16 = vand.u32 65535, %v8606_v36 }
 0x6cc   :  { %v8832_v14 = vcvt.s32.f32 %v2504_v35  ;;  %v2536_v40 = vshra.s32 %v8830_v27, 16  ;;  %v2297_v39 = vcvt.s32.f32 %v2295_v12  ;;  %v2313_v35 = vcvt.s32.f32 %v2311_v30 }
 0x6cd   :  { %v2329_v22 = vcvt.s32.f32 %v2327_v16  ;;  %v2343_v30 = vand.u32 65535, %v8649_v20  ;;  %v2375_v20 = vand.u32 65535, %v8685_v19  ;;  %v2407_v19 = vand.u32 65535, %v8711_v46 }
 0x6ce   :  { %2507 = vmin.xlane.f32.xlu0 %v8832_v14  ;;  %v8836_v56 = vcvt.s32.f32 %v2536_v40  ;;  %v2439_v46 = vand.u32 65535, %v8750_v4 }
 0x6d2   :  { %2539 = vmin.xlane.f32.xlu0 %v8836_v56 }
 0x71d   :  { %v8841_v53 = vpop.xlane.xlu1 %2299 }
 0x71e   :  { %vm2301_vm0 = vcmp.eq.f32.partialorder %v8583_v13, %v8841_v53  ;;  %v2359_v13 = vand.u32 65535, %v8641_v44 }
 0x71f   :  { %v8845_v32 = vpop.xlane.xlu0 %2315  ;;  %v2302_v45 = vsel %vm2301_vm0, %v2297_v39, inf  ;;  %vm2549_vm0 = vcmp.eq.s32.totalorder %v6476_v51, 5 }
 0x720   :  { %2303 = vmin.xlane.f32.xlu1 %v2302_v45  ;;  %vm2317_vm1 = vcmp.eq.f32.partialorder %v8588_v52, %v8845_v32  ;;  %v2361_v45 = vcvt.s32.f32 %v2359_v13  ;;  %v2391_v52 = vand.u32 65535, %v8663_v48  ;;  %v2423_v48 = vand.u32 65535, %v8690_v42 }
 0x721   :  { %v2318_v40 = vsel %vm2317_vm1, %v2313_v35, inf  ;;  %v2377_v13 = vcvt.s32.f32 %v2375_v20  ;;  %v2441_v20 = vcvt.s32.f32 %v2439_v46 }
 0x722   :  { %2319 = vmin.xlane.f32.xlu0 %v2318_v40  ;;  %v2345_v40 = vcvt.s32.f32 %v2343_v30  ;;  %v2393_v44 = vcvt.s32.f32 %v2391_v52 }
 0x728   :  { %v8850_v26 = vpop.xlane.xlu1 %2331 }
 0x729   :  { %vm2333_vm2 = vcmp.eq.f32.partialorder %v8629_v43, %v8850_v26 }
 0x72a   :  { %v2334_v12 = vsel %vm2333_vm2, %v2329_v22, inf }
 0x72b   :  { %2335 = vmin.xlane.f32.xlu1 %v2334_v12  ;;  %v2425_v12 = vcvt.s32.f32 %v2423_v48 }
 0x72f   :  { %v8856_v39 = vpop.xlane.xlu1 %2363 }
 0x730   :  { %vm2365_vm3 = vcmp.eq.f32.partialorder %v8660_v62, %v8856_v39 }
 0x731   :  { %v2366_v36 = vsel %vm2365_vm3, %v2361_v45, inf  ;;  %v8861_v35 = vpop.xlane.xlu0 %2347  ;;  %v2409_v45 = vcvt.s32.f32 %v2407_v19  ;;  %v2535_v19 = vand.u32 65535, %v8830_v27 }
 0x732   :  { %2367 = vmin.xlane.f32.xlu1 %v2366_v36  ;;  %vm2349_vm5 = vcmp.eq.f32.partialorder %v8678_v29, %v8861_v35 }
 0x733   :  { %v2350_v16 = vsel %vm2349_vm5, %v2345_v40, inf }
 0x734   :  { %v8865_v43 = vpop.xlane.xlu1 %2395  ;;  %2351 = vmin.xlane.f32.xlu0 %v2350_v16  ;;  %v2487_v16 = vand.u32 65535, %v8784_v23 }
 0x735   :  { %vm2397_vm4 = vcmp.eq.f32.partialorder %v8680_v15, %v8865_v43 }
 0x736   :  { %v2398_v62 = vsel %vm2397_vm4, %v2393_v44, inf }
 0x737   :  { %2399 = vmin.xlane.f32.xlu1 %v2398_v62  ;;  %v2489_v62 = vcvt.s32.f32 %v2487_v16 }
 0x738   :  { %v8871_v22 = vpop.xlane.xlu0 %2379 }
 0x739   :  { %vm2381_vm6 = vcmp.eq.f32.partialorder %v8694_v24, %v8871_v22  ;;  %v2455_v24 = vand.u32 65535, %v8729_v41  ;;  %v2471_v41 = vand.u32 65535, %v8803_v2 }
 0x73a   :  { %v8875_v29 = vpop.xlane.xlu1 %2427  ;;  %v2382_v30 = vsel %vm2381_vm6, %v2377_v13, inf }
 0x73b   :  { %vm2429_vm8 = vcmp.eq.f32.partialorder %v8705_v59, %v8875_v29  ;;  %2383 = vmin.xlane.f32.xlu0 %v2382_v30  ;;  %v2457_v40 = vcvt.s32.f32 %v2455_v24  ;;  %v2473_v23 = vcvt.s32.f32 %v2471_v41  ;;  %v2306_v24 = vcvt.f32.s32 %v8841_v53 }
 0x73c   :  { %v2430_v15 = vsel %vm2429_vm8, %v2425_v12, inf  ;;  %v2503_v12 = vand.u32 65535, %v8823_v34 }
 0x73d   :  { %2431 = vmin.xlane.f32.xlu1 %v2430_v15 }
 0x73e   :  { %v2505_v15 = vcvt.s32.f32 %v2503_v12 }
 0x740   :  { %v8880_v42 = vpop.xlane.xlu0 %2411 }
 0x741   :  { %vm2413_vm9 = vcmp.eq.f32.partialorder %v8724_v8, %v8880_v42 }
 0x742   :  { %v2414_v52 = vsel %vm2413_vm9, %v2409_v45, inf  ;;  %v2537_v45 = vcvt.s32.f32 %v2535_v19 }
 0x743   :  { %2415 = vmin.xlane.f32.xlu0 %v2414_v52  ;;  %v2322_v52 = vcvt.f32.s32 %v8845_v32 }
 0x745   :  { %v8885_v36 = vpop.xlane.xlu1 %2459  ;;  %v2323_v46 = vshll.u32 %v2322_v52, 16  ;;  %v2434_v52 = vcvt.f32.s32 %v8875_v29 }
 0x746   :  { %vm2461_vm7 = vcmp.eq.f32.partialorder %v8743_v7, %v8885_v36  ;;  %v2519_v7 = vand.u32 65535, %v8807_v9 }
 0x747   :  { %v2462_v59 = vsel %vm2461_vm7, %v2457_v40, inf }
 0x748   :  { %2463 = vmin.xlane.f32.xlu1 %v2462_v59  ;;  %v2521_v2 = vcvt.s32.f32 %v2519_v7  ;;  %v2307_v59 = vshll.u32 %v2306_v24, 16  ;;  %v8938_v7 = vld [vmem:[#allocation2 + $0xb8] sm:$0xff]  ;;  %v2386_v24 = vcvt.f32.s32 %v8871_v22 }
 0x74c   :  { %v8890_v44 = vpop.xlane.xlu0 %2443 }
 0x74d   :  { %vm2445_vm11 = vcmp.eq.f32.partialorder %v8782_v47, %v8890_v44 }
 0x74e   :  { %v2446_v8 = vsel %vm2445_vm11, %v2441_v20, inf }
 0x74f   :  { %2447 = vmin.xlane.f32.xlu0 %v2446_v8 }
 0x750   :  { %v8896_v48 = vpop.xlane.xlu1 %2491 }
 0x751   :  { %vm2493_vm13 = vcmp.eq.f32.partialorder %v8801_v11, %v8896_v48 }
 0x752   :  { %v2494_v4 = vsel %vm2493_vm13, %v2489_v62, inf }
 0x753   :  { %v8901_v13 = vpop.xlane.xlu0 %2475  ;;  %2495 = vmin.xlane.f32.xlu1 %v2494_v4 }
 0x754   :  { %vm2477_vm10 = vcmp.eq.f32.partialorder %v8819_v49, %v8901_v13  ;;  %v8906_v47 = vpop.xlane.xlu1 %2523 }
 0x755   :  { %v2478_v30 = vsel %vm2477_vm10, %v2473_v23, inf  ;;  %vm2525_vm14 = vcmp.eq.f32.partialorder %v8821_v17, %v8906_v47 }
 0x756   :  { %2479 = vmin.xlane.f32.xlu0 %v2478_v30  ;;  %v2526_v9 = vsel %vm2525_vm14, %v2521_v2, inf }
 0x757   :  { %v8910_v11 = vpop.xlane.xlu0 %2507  ;;  %2527 = vmin.xlane.f32.xlu1 %v2526_v9 }
 0x758   :  { %vm2509_vm15 = vcmp.eq.f32.partialorder %v8832_v14, %v8910_v11 }
 0x759   :  { %v2510_v34 = vsel %vm2509_vm15, %v2505_v15, inf }
 0x75a   :  { %2511 = vmin.xlane.f32.xlu0 %v2510_v34 }
 0x75b   :  { %v8915_v49 = vpop.xlane.xlu0 %2539 }
 0x75c   :  { %vm2541_vm12 = vcmp.eq.f32.partialorder %v8836_v56, %v8915_v49  ;;  %v8927_v56 = vld [vmem:[#allocation2 + $0x78] sm:$0xff] }
 0x75d   :  { %v2542_v17 = vsel %vm2541_vm12, %v2537_v45, inf  ;;  %v2354_v45 = vcvt.f32.s32 %v8861_v35 }
 0x75e   :  { %2543 = vmin.xlane.f32.xlu0 %v2542_v17 }
 0x7a9   :  { %v2304_v40 = vpop.xlane.xlu1 %2303 }
 0x7aa   :  { %v2305_v27 = vcvt.f32.s32 %v2304_v40 }
 0x7ab   :  { %v2320_v14 = vpop.xlane.xlu0 %2319 }
 0x7ac   :  { %v2308_v20 = vadd.s32 %v2307_v59, %v2305_v27  ;;  %v2321_v16 = vcvt.f32.s32 %v2320_v14  ;;  %v8967_v59 = vld [vmem:[#allocation2 + $0x88] sm:$0xff]  ;;  %v2355_v14 = vshll.u32 %v2354_v45, 16 }
 0x7ae   :  { %v8925_v8 = vsel %vm2549_vm0, %v2308_v20, %v8558_v25  ;;  %vm2566_vm1 = vcmp.gt.s32.totalorder %v8927_v56, %v2308_v20  ;;  %vm2567_vm2 = vcmp.gt.s32.totalorder %v8561_v54, %v2308_v20  ;;  %v2324_v53 = vadd.s32 %v2323_v46, %v2321_v16 }
 0x7af   :  { %v2598_v32 = vsel %vm2566_vm1, %v8927_v56, 2147483647  ;;  %v2599_v41 = vsel %vm2567_vm2, %v8561_v54, 2147483647  ;;  %v2418_v46 = vcvt.f32.s32 %v8880_v42 }
 0x7b0   :  { %v8936_v62 = vsel %vm2549_vm0, %v2324_v53, %v8569_v3  ;;  %vm2568_vm3 = vcmp.gt.s32.totalorder %v8938_v7, %v2324_v53  ;;  %vm2569_vm5 = vcmp.gt.s32.totalorder %v8572_v57, %v2324_v53  ;;  %vm2630_vm4 = vcmp.lt.s32.totalorder %v2598_v32, %v2599_v41 }
 0x7b1   :  { %v8942_v25 = vsel %vm2630_vm4, %v2598_v32, %v2599_v41  ;;  %v2600_v4 = vsel %vm2568_vm3, %v8938_v7, 2147483647  ;;  %v2601_v23 = vsel %vm2569_vm5, %v8572_v57, 2147483647  ;;  %v2338_v3 = vcvt.f32.s32 %v8850_v26 }
 0x7b2   :  { %v2633_v54 = vshra.s32 %v8942_v25, 16  ;;  %vm2646_vm6 = vcmp.lt.s32.totalorder %v2600_v4, %v2601_v23  ;;  %v2370_v57 = vcvt.f32.s32 %v8856_v39  ;;  %v2402_v26 = vcvt.f32.s32 %v8865_v43 }
 0x7b3   :  { %v8947_v12 = vsel %vm2646_vm6, %v2600_v4, %v2601_v23  ;;  %v2339_v19 = vshll.u32 %v2338_v3, 16  ;;  %v2387_v53 = vshll.u32 %v2386_v24, 16  ;;  %v2435_v32 = vshll.u32 %v2434_v52, 16  ;;  %v9008_v24 = vld [vmem:[#allocation2 + $0xe8] sm:$0xff] }
 0x7b4   :  { %v8950_v2 = vcvt.s32.f32 %v2633_v54  ;;  %v2649_v30 = vshra.s32 %v8947_v12, 16  ;;  %v2336_v15 = vpop.xlane.xlu1 %2335  ;;  %v2371_v35 = vshll.u32 %v2370_v57, 16  ;;  %v2403_v29 = vshll.u32 %v2402_v26, 16 }
 0x7b5   :  { %v2337_v34 = vcvt.f32.s32 %v2336_v15  ;;  %v2466_v57 = vcvt.f32.s32 %v8885_v36 }
 0x7b6   :  { %2636 = vmin.xlane.f32.xlu1 %v8950_v2  ;;  %v8954_v9 = vcvt.s32.f32 %v2649_v30 }
 0x7b7   :  { %v2340_v17 = vadd.s32 %v2339_v19, %v2337_v34  ;;  %v2419_v34 = vshll.u32 %v2418_v46, 16 }
 0x7b8   :  { %2652 = vmin.xlane.f32.xlu0 %v8954_v9 }
 0x7b9   :  { %v8965_v40 = vsel %vm2549_vm0, %v2340_v17, %v8596_v18  ;;  %vm2570_vm8 = vcmp.gt.s32.totalorder %v8967_v59, %v2340_v17  ;;  %vm2571_vm9 = vcmp.gt.s32.totalorder %v8599_v5, %v2340_v17  ;;  %v8996_v17 = vld [vmem:[#allocation2 + $0x90] sm:$0xff] }
 0x7ba   :  { %v2602_v43 = vsel %vm2570_vm8, %v8967_v59, 2147483647  ;;  %v2603_v22 = vsel %vm2571_vm9, %v8599_v5, 2147483647  ;;  %v8982_v5 = vld [vmem:[#allocation2 + $0xc0] sm:$0xff] }
 0x7bb   :  { %v2368_v39 = vpop.xlane.xlu1 %2367  ;;  %vm2662_vm7 = vcmp.lt.s32.totalorder %v2602_v43, %v2603_v22 }
 0x7bc   :  { %v2369_v27 = vcvt.f32.s32 %v2368_v39  ;;  %v8974_v16 = vsel %vm2662_vm7, %v2602_v43, %v2603_v22 }
 0x7bd   :  { %v2352_v20 = vpop.xlane.xlu0 %2351  ;;  %v2665_v23 = vshra.s32 %v8974_v16, 16 }
 0x7be   :  { %v2372_v18 = vadd.s32 %v2371_v35, %v2369_v27  ;;  %v2353_v41 = vcvt.f32.s32 %v2352_v20 }
 0x7bf   :  { %v8986_v30 = vcvt.s32.f32 %v2665_v23 }
 0x7c0   :  { %v2400_v4 = vpop.xlane.xlu1 %2399  ;;  %v8980_v54 = vsel %vm2549_vm0, %v2372_v18, %v8611_v1  ;;  %vm2574_vm11 = vcmp.gt.s32.totalorder %v8982_v5, %v2372_v18  ;;  %vm2575_vm13 = vcmp.gt.s32.totalorder %v8614_v33, %v2372_v18  ;;  %v2356_v3 = vadd.s32 %v2355_v14, %v2353_v41  ;;  %v9026_v41 = vld [vmem:[#allocation2 + $0x20] sm:$0xff] }
 0x7c1   :  { %v2401_v42 = vcvt.f32.s32 %v2400_v4  ;;  %v2606_v15 = vsel %vm2574_vm11, %v8982_v5, 2147483647  ;;  %v2607_v19 = vsel %vm2575_vm13, %v8614_v33, 2147483647  ;;  %2668 = vmin.xlane.f32.xlu1 %v8986_v30 }
 0x7c2   :  { %vm2694_vm10 = vcmp.lt.s32.totalorder %v2606_v15, %v2607_v19  ;;  %v8994_v1 = vsel %vm2549_vm0, %v2356_v3, %v8623_v60  ;;  %vm2572_vm14 = vcmp.gt.s32.totalorder %v8996_v17, %v2356_v3  ;;  %vm2573_vm15 = vcmp.gt.s32.totalorder %v8626_v50, %v2356_v3 }
 0x7c3   :  { %v2404_v45 = vadd.s32 %v2403_v29, %v2401_v42  ;;  %v9001_v33 = vsel %vm2694_vm10, %v2606_v15, %v2607_v19  ;;  %v2604_v27 = vsel %vm2572_vm14, %v8996_v17, 2147483647  ;;  %v2605_v43 = vsel %vm2573_vm15, %v8626_v50, 2147483647 }
 0x7c4   :  { %v2384_v26 = vpop.xlane.xlu0 %2383  ;;  %v2697_v35 = vshra.s32 %v9001_v33, 16  ;;  %vm2678_vm2 = vcmp.lt.s32.totalorder %v2604_v27, %v2605_v43 }
 0x7c5   :  { %v9006_v36 = vsel %vm2549_vm0, %v2404_v45, %v8634_v38  ;;  %vm2578_vm12 = vcmp.gt.s32.totalorder %v9008_v24, %v2404_v45  ;;  %vm2579_vm1 = vcmp.gt.s32.totalorder %v8637_v61, %v2404_v45  ;;  %v2385_v60 = vcvt.f32.s32 %v2384_v26 }
 0x7c6   :  { %v2432_v52 = vpop.xlane.xlu1 %2431  ;;  %v2610_v38 = vsel %vm2578_vm12, %v9008_v24, 2147483647  ;;  %v2611_v14 = vsel %vm2579_vm1, %v8637_v61, 2147483647  ;;  %v9017_v46 = vcvt.s32.f32 %v2697_v35  ;;  %v9019_v18 = vsel %vm2678_vm2, %v2604_v27, %v2605_v43  ;;  %v9065_v27 = vld [vmem:[#allocation2 + $0x80] sm:$0xff] }
 0x7c7   :  { %v2433_v39 = vcvt.f32.s32 %v2432_v52  ;;  %v2388_v22 = vadd.s32 %v2387_v53, %v2385_v60  ;;  %vm2726_vm3 = vcmp.lt.s32.totalorder %v2610_v38, %v2611_v14  ;;  %v2681_v50 = vshra.s32 %v9019_v18, 16  ;;  %v9036_v53 = vld [vmem:[#allocation2 + $0x50] sm:$0xff] }
 0x7c8   :  { %2700 = vmin.xlane.f32.xlu1 %v9017_v46  ;;  %v2467_v35 = vshll.u32 %v2466_v57, 16 }
 0x7c9   :  { %v2436_v29 = vadd.s32 %v2435_v32, %v2433_v39  ;;  %v9024_v20 = vsel %vm2549_vm0, %v2388_v22, %v8654_v63  ;;  %vm2576_vm5 = vcmp.gt.s32.totalorder %v9026_v41, %v2388_v22  ;;  %vm2577_vm4 = vcmp.gt.s32.totalorder %v8657_v37, %v2388_v22 }
 0x7ca   :  { %v9041_v63 = vsel %vm2726_vm3, %v2610_v38, %v2611_v14  ;;  %v9043_v4 = vcvt.s32.f32 %v2681_v50  ;;  %v2608_v42 = vsel %vm2576_vm5, %v9026_v41, 2147483647  ;;  %v2450_v50 = vcvt.f32.s32 %v8890_v44 }
 0x7cb   :  { %v9034_v61 = vsel %vm2549_vm0, %v2436_v29, %v8672_v21  ;;  %vm2582_vm6 = vcmp.gt.s32.totalorder %v9036_v53, %v2436_v29  ;;  %vm2583_vm8 = vcmp.gt.s32.totalorder %v8675_v0, %v2436_v29  ;;  %v2729_v23 = vshra.s32 %v9041_v63, 16 }
 0x7cc   :  { %v2416_v32 = vpop.xlane.xlu0 %2415  ;;  %v2609_v21 = vsel %vm2577_vm4, %v8657_v37, 2147483647  ;;  %v2614_v15 = vsel %vm2582_vm6, %v9036_v53, 2147483647  ;;  %v2615_v19 = vsel %vm2583_vm8, %v8675_v0, 2147483647  ;;  %2684 = vmin.xlane.f32.xlu0 %v9043_v4  ;;  %v2498_v44 = vcvt.f32.s32 %v8896_v48 }
 0x7cd   :  { %v2417_v3 = vcvt.f32.s32 %v2416_v32  ;;  %vm2710_vm9 = vcmp.lt.s32.totalorder %v2608_v42, %v2609_v21  ;;  %v9051_v45 = vcvt.s32.f32 %v2729_v23  ;;  %vm2758_vm7 = vcmp.lt.s32.totalorder %v2614_v15, %v2615_v19  ;;  %v12837_v48 = vld [vmem:[#allocation15_spill] sm:$0xff] }
 0x7ce   :  { %v9053_v26 = vsel %vm2710_vm9, %v2608_v42, %v2609_v21  ;;  %v9056_v39 = vsel %vm2758_vm7, %v2614_v15, %v2615_v19  ;;  %v9086_v42 = vld [vmem:[#allocation2 + $0x28] sm:$0xff]  ;;  %v2451_v19 = vshll.u32 %v2450_v50, 16  ;;  %v12840_v50 = vld [vmem:[#allocation11_spill] sm:$0xff] }
 0x7cf   :  { %v2420_v60 = vadd.s32 %v2419_v34, %v2417_v3  ;;  %v2713_v52 = vshra.s32 %v9053_v26, 16  ;;  %2732 = vmin.xlane.f32.xlu1 %v9051_v45  ;;  %v2761_v37 = vshra.s32 %v9056_v39, 16 }
 0x7d1   :  { %v9063_v0 = vsel %vm2549_vm0, %v2420_v60, %v8699_v28  ;;  %vm2580_vm11 = vcmp.gt.s32.totalorder %v9065_v27, %v2420_v60  ;;  %vm2581_vm13 = vcmp.gt.s32.totalorder %v8702_v6, %v2420_v60  ;;  %v2464_v34 = vpop.xlane.xlu1 %2463  ;;  %v9069_v43 = vcvt.s32.f32 %v2713_v52 }
 0x7d2   :  { %v2465_v22 = vcvt.f32.s32 %v2464_v34  ;;  %v9071_v57 = vcvt.s32.f32 %v2761_v37  ;;  %v2612_v38 = vsel %vm2580_vm11, %v9065_v27, 2147483647  ;;  %v2613_v14 = vsel %vm2581_vm13, %v8702_v6, 2147483647 }
 0x7d3   :  { %2716 = vmin.xlane.f32.xlu0 %v9069_v43  ;;  %vm2742_vm10 = vcmp.lt.s32.totalorder %v2612_v38, %v2613_v14  ;;  %v2499_v37 = vshll.u32 %v2498_v44, 16  ;;  %v2482_v34 = vcvt.f32.s32 %v8901_v13 }
 0x7d4   :  { %v2468_v28 = vadd.s32 %v2467_v35, %v2465_v22  ;;  %2764 = vmin.xlane.f32.xlu1 %v9071_v57  ;;  %v9077_v29 = vsel %vm2742_vm10, %v2612_v38, %v2613_v14  ;;  %v2530_v22 = vcvt.f32.s32 %v8906_v47 }
 0x7d5   :  { %v2745_v32 = vshra.s32 %v9077_v29, 16 }
 0x7d6   :  { %v9084_v23 = vsel %vm2549_vm0, %v2468_v28, %v8718_v58  ;;  %vm2586_vm14 = vcmp.gt.s32.totalorder %v9086_v42, %v2468_v28  ;;  %vm2587_vm15 = vcmp.gt.s32.totalorder %v8721_v10, %v2468_v28  ;;  %v9108_v28 = vld [vmem:[#allocation2 + $0xa0] sm:$0xff] }
 0x7d7   :  { %v9090_v6 = vcvt.s32.f32 %v2745_v32  ;;  %v2618_v21 = vsel %vm2586_vm14, %v9086_v42, 2147483647  ;;  %v2619_v3 = vsel %vm2587_vm15, %v8721_v10, 2147483647  ;;  %12839 = vst [vmem:[#allocation19_spill] sm:$0xff] %v9108_v28 }
 0x7d8   :  { %v2448_v15 = vpop.xlane.xlu0 %2447  ;;  %vm2790_vm12 = vcmp.lt.s32.totalorder %v2618_v21, %v2619_v3 }
 0x7d9   :  { %v2449_v60 = vcvt.f32.s32 %v2448_v15  ;;  %2748 = vmin.xlane.f32.xlu0 %v9090_v6  ;;  %v9096_v58 = vsel %vm2790_vm12, %v2618_v21, %v2619_v3  ;;  %v2514_v21 = vcvt.f32.s32 %v8910_v11  ;;  %v2546_v3 = vcvt.f32.s32 %v8915_v49 }
 0x7da   :  { %v2793_v52 = vshra.s32 %v9096_v58, 16 }
 0x7db   :  { %v2452_v35 = vadd.s32 %v2451_v19, %v2449_v60  ;;  %v2483_v19 = vshll.u32 %v2482_v34, 16  ;;  %v2531_v60 = vshll.u32 %v2530_v22, 16 }
 0x7dc   :  { %v2496_v38 = vpop.xlane.xlu1 %2495  ;;  %v9101_v10 = vcvt.s32.f32 %v2793_v52 }
 0x7dd   :  { %v9106_v14 = vsel %vm2549_vm0, %v2452_v35, %v12837_v48  ;;  %vm2584_vm1 = vcmp.gt.s32.totalorder %v9108_v28, %v2452_v35  ;;  %vm2585_vm2 = vcmp.gt.s32.totalorder %v12840_v50, %v2452_v35  ;;  %v2497_v32 = vcvt.f32.s32 %v2496_v38  ;;  %v12841_v35 = vld [vmem:[#allocation16_spill] sm:$0xff] }
 0x7de   :  { %12838 = vst [vmem:[#allocation10_spill] sm:$0xff] %v9106_v14  ;;  %2796 = vmin.xlane.f32.xlu1 %v9101_v10  ;;  %v2616_v13 = vsel %vm2584_vm1, %v9108_v28, 2147483647  ;;  %v2617_v47 = vsel %vm2585_vm2, %v12840_v50, 2147483647  ;;  %v9124_v28 = vld [vmem:[#allocation2 + $0x40] sm:$0xff] }
 0x7df   :  { %v2500_v44 = vadd.s32 %v2499_v37, %v2497_v32  ;;  %v2480_v15 = vpop.xlane.xlu0 %2479  ;;  %vm2774_vm3 = vcmp.lt.s32.totalorder %v2616_v13, %v2617_v47  ;;  %v2515_v50 = vshll.u32 %v2514_v21, 16  ;;  %v2547_v32 = vshll.u32 %v2546_v3, 16  ;;  %v9145_v21 = vld [vmem:[#allocation2 + $0x48] sm:$0xff] }
 0x7e0   :  { %v2481_v52 = vcvt.f32.s32 %v2480_v15  ;;  %v2528_v48 = vpop.xlane.xlu1 %2527  ;;  %v9117_v14 = vsel %vm2774_vm3, %v2616_v13, %v2617_v47  ;;  %v12843_v15 = vld [vmem:[#allocation12_spill] sm:$0xff]  ;;  %12849 = vst [vmem:[#allocation16_spill] sm:$0xff] %v9145_v21 }
 0x7e1   :  { %v9122_v38 = vsel %vm2549_vm0, %v2500_v44, %v12841_v35  ;;  %vm2590_vm5 = vcmp.gt.s32.totalorder %v9124_v28, %v2500_v44  ;;  %vm2591_vm4 = vcmp.gt.s32.totalorder %v8758_v55, %v2500_v44  ;;  %v2529_v11 = vcvt.f32.s32 %v2528_v48  ;;  %v12846_v44 = vld [vmem:[#allocation17_spill] sm:$0xff]  ;;  %v12850_v3 = vld [vmem:[#allocation20_spill] sm:$0xff] }
 0x7e2   :  { %12842 = vst [vmem:[#allocation14_spill] sm:$0xff] %v9122_v38  ;;  %v2484_v49 = vadd.s32 %v2483_v19, %v2481_v52  ;;  %v2777_v37 = vshra.s32 %v9117_v14, 16  ;;  %v2622_v34 = vsel %vm2590_vm5, %v9124_v28, 2147483647  ;;  %v2623_v22 = vsel %vm2591_vm4, %v8758_v55, 2147483647 }
 0x7e3   :  { %v2532_v13 = vadd.s32 %v2531_v60, %v2529_v11  ;;  %v2512_v47 = vpop.xlane.xlu0 %2511  ;;  %vm2822_vm6 = vcmp.lt.s32.totalorder %v2622_v34, %v2623_v22  ;;  %v9136_v38 = vld [vmem:[#allocation2 + $0x58] sm:$0xff]  ;;  %v12847_v52 = vld [vmem:[#allocation13_spill] sm:$0xff] }
 0x7e4   :  { %v9134_v35 = vsel %vm2549_vm0, %v2484_v49, %v12843_v15  ;;  %12845 = vst [vmem:[#allocation15_spill] sm:$0xff] %v9136_v38  ;;  %vm2588_vm8 = vcmp.gt.s32.totalorder %v9136_v38, %v2484_v49  ;;  %vm2589_vm9 = vcmp.gt.s32.totalorder %v12846_v44, %v2484_v49  ;;  %v2513_v19 = vcvt.f32.s32 %v2512_v47 }
 0x7e5   :  { %12844 = vst [vmem:[#allocation9_spill] sm:$0xff] %v9134_v35  ;;  %v9143_v55 = vsel %vm2549_vm0, %v2532_v13, %v12847_v52  ;;  %vm2594_vm7 = vcmp.gt.s32.totalorder %v9145_v21, %v2532_v13  ;;  %vm2595_vm11 = vcmp.gt.s32.totalorder %v12850_v3, %v2532_v13  ;;  %v9149_v60 = vcvt.s32.f32 %v2777_v37  ;;  %v12851_v13 = vld [vmem:[#allocation21_spill] sm:$0xff] }
 0x7e6   :  { %12848 = vst [vmem:[#allocation11_spill] sm:$0xff] %v9143_v55  ;;  %v2516_v48 = vadd.s32 %v2515_v50, %v2513_v19  ;;  %v9151_v11 = vsel %vm2822_vm6, %v2622_v34, %v2623_v22  ;;  %v2620_v15 = vsel %vm2588_vm8, %v9136_v38, 2147483647  ;;  %v2621_v49 = vsel %vm2589_vm9, %v12846_v44, 2147483647  ;;  %v9164_v34 = vld [vmem:[#allocation2 + $0xf0] sm:$0xff] }
 0x7e7   :  { %v2544_v47 = vpop.xlane.xlu0 %2543  ;;  %2780 = vmin.xlane.f32.xlu0 %v9149_v60  ;;  %v2825_v52 = vshra.s32 %v9151_v11, 16  ;;  %vm2806_vm13 = vcmp.lt.s32.totalorder %v2620_v15, %v2621_v49  ;;  %v2626_v55 = vsel %vm2594_vm7, %v9145_v21, 2147483647  ;;  %v2627_v35 = vsel %vm2595_vm11, %v12850_v3, 2147483647 }
 0x7e8   :  { %v9162_v37 = vsel %vm2549_vm0, %v2516_v48, %v12851_v13  ;;  %vm2592_vm10 = vcmp.gt.s32.totalorder %v9164_v34, %v2516_v48  ;;  %vm2593_vm14 = vcmp.gt.s32.totalorder %v8798_v31, %v2516_v48  ;;  %v2545_v22 = vcvt.f32.s32 %v2544_v47  ;;  %v12853_v48 = vld [vmem:[#allocation18_spill] sm:$0xff] }
 0x7e9   :  { %12852 = vst [vmem:[#allocation12_spill] sm:$0xff] %v9162_v37  ;;  %v9168_v50 = vcvt.s32.f32 %v2825_v52  ;;  %v9170_v44 = vsel %vm2806_vm13, %v2620_v15, %v2621_v49  ;;  %vm2854_vm15 = vcmp.lt.s32.totalorder %v2626_v55, %v2627_v35  ;;  %v2624_v19 = vsel %vm2592_vm10, %v9164_v34, 2147483647  ;;  %v9184_v49 = vld [vmem:[#allocation2 + $0x30] sm:$0xff] }
 0x7ea   :  { %v2548_v3 = vadd.s32 %v2547_v32, %v2545_v22  ;;  %v2809_v21 = vshra.s32 %v9170_v44, 16  ;;  %v9174_v38 = vsel %vm2854_vm15, %v2626_v55, %v2627_v35  ;;  %v2625_v13 = vsel %vm2593_vm14, %v8798_v31, 2147483647  ;;  %12855 = vst [vmem:[#allocation13_spill] sm:$0xff] %v9184_v49  ;;  %v9187_v32 = vld [vmem:[#allocation2 + $0xf8] sm:$0xff] }
 0x7eb   :  { %2828 = vmin.xlane.f32.xlu1 %v9168_v50  ;;  %v2857_v37 = vshra.s32 %v9174_v38, 16  ;;  %vm2838_vm12 = vcmp.lt.s32.totalorder %v2624_v19, %v2625_v13  ;;  %12856 = vst [vmem:[#allocation20_spill] sm:$0xff] %v9187_v32 }
 0x7ec   :  { %v9182_v15 = vsel %vm2549_vm0, %v2548_v3, %v12853_v48  ;;  %vm2596_vm1 = vcmp.gt.s32.totalorder %v9184_v49, %v2548_v3  ;;  %vm2597_vm2 = vcmp.gt.s32.totalorder %v9187_v32, %v2548_v3  ;;  %v9190_v35 = vcvt.s32.f32 %v2809_v21 }
 0x7ed   :  { %12854 = vst [vmem:[#allocation17_spill] sm:$0xff] %v9182_v15  ;;  %v9192_v31 = vcvt.s32.f32 %v2857_v37  ;;  %v9194_v55 = vsel %vm2838_vm12, %v2624_v19, %v2625_v13  ;;  %v2628_v47 = vsel %vm2596_vm1, %v9184_v49, 2147483647  ;;  %v2629_v52 = vsel %vm2597_vm2, %v9187_v32, 2147483647 }
 0x7ee   :  { %2812 = vmin.xlane.f32.xlu0 %v9190_v35  ;;  %v2841_v22 = vshra.s32 %v9194_v55, 16  ;;  %vm2870_vm0 = vcmp.lt.s32.totalorder %v2628_v47, %v2629_v52  ;;  %v2632_v19 = vand.u32 65535, %v8942_v25  ;;  %v2648_v13 = vand.u32 65535, %v8947_v12 }
 0x7ef   :  { %2860 = vmin.xlane.f32.xlu1 %v9192_v31  ;;  %v9201_v48 = vsel %vm2870_vm0, %v2628_v47, %v2629_v52  ;;  %v2664_v25 = vand.u32 65535, %v8974_v16 }
 0x7f0   :  { %v9203_v3 = vcvt.s32.f32 %v2841_v22  ;;  %v2873_v21 = vshra.s32 %v9201_v48, 16  ;;  %v2634_v49 = vcvt.s32.f32 %v2632_v19  ;;  %v2650_v22 = vcvt.s32.f32 %v2648_v13 }
 0x7f1   :  { %v2666_v12 = vcvt.s32.f32 %v2664_v25 }
 0x7f2   :  { %2844 = vmin.xlane.f32.xlu0 %v9203_v3  ;;  %v9207_v37 = vcvt.s32.f32 %v2873_v21 }
 0x7f6   :  { %2876 = vmin.xlane.f32.xlu0 %v9207_v37 }
 0x83f   :  { %v9212_v32 = vpop.xlane.xlu1 %2636 }
 0x840   :  { %vm2638_vm3 = vcmp.eq.f32.partialorder %v8950_v2, %v9212_v32  ;;  %v2696_v2 = vand.u32 65535, %v9001_v33 }
 0x841   :  { %v9216_v47 = vpop.xlane.xlu0 %2652  ;;  %v2639_v52 = vsel %vm2638_vm3, %v2634_v49, inf  ;;  %v2680_v49 = vand.u32 65535, %v9019_v18  ;;  %vm2886_vm3 = vcmp.eq.s32.totalorder %v6476_v51, 6 }
 0x842   :  { %2640 = vmin.xlane.f32.xlu1 %v2639_v52  ;;  %vm2654_vm5 = vcmp.eq.f32.partialorder %v8954_v9, %v9216_v47  ;;  %v2698_v52 = vcvt.s32.f32 %v2696_v2  ;;  %v2728_v9 = vand.u32 65535, %v9041_v63 }
 0x843   :  { %v2655_v21 = vsel %vm2654_vm5, %v2650_v22, inf }
 0x844   :  { %2656 = vmin.xlane.f32.xlu0 %v2655_v21  ;;  %v2682_v21 = vcvt.s32.f32 %v2680_v49  ;;  %v2730_v25 = vcvt.s32.f32 %v2728_v9 }
 0x84a   :  { %v9221_v15 = vpop.xlane.xlu1 %2668 }
 0x84b   :  { %vm2670_vm4 = vcmp.eq.f32.partialorder %v8986_v30, %v9221_v15  ;;  %v2712_v30 = vand.u32 65535, %v9053_v26 }
 0x84c   :  { %v2671_v19 = vsel %vm2670_vm4, %v2666_v12, inf  ;;  %v2760_v12 = vand.u32 65535, %v9056_v39  ;;  %v2744_v39 = vand.u32 65535, %v9077_v29  ;;  %v2776_v29 = vand.u32 65535, %v9117_v14 }
 0x84d   :  { %2672 = vmin.xlane.f32.xlu1 %v2671_v19  ;;  %v2714_v19 = vcvt.s32.f32 %v2712_v30 }
 0x84e   :  { %v2762_v26 = vcvt.s32.f32 %v2760_v12 }
 0x851   :  { %v9227_v13 = vpop.xlane.xlu1 %2700 }
 0x852   :  { %vm2702_vm6 = vcmp.eq.f32.partialorder %v9017_v46, %v9227_v13 }
 0x853   :  { %v2703_v16 = vsel %vm2702_vm6, %v2698_v52, inf  ;;  %v2746_v52 = vcvt.s32.f32 %v2744_v39 }
 0x854   :  { %2704 = vmin.xlane.f32.xlu1 %v2703_v16 }
 0x855   :  { %v9232_v22 = vpop.xlane.xlu0 %2684 }
 0x856   :  { %vm2686_vm8 = vcmp.eq.f32.partialorder %v9043_v4, %v9232_v22 }
 0x857   :  { %v2687_v33 = vsel %vm2686_vm8, %v2682_v21, inf }
 0x858   :  { %v9237_v18 = vpop.xlane.xlu1 %2732  ;;  %2688 = vmin.xlane.f32.xlu0 %v2687_v33  ;;  %v2778_v33 = vcvt.s32.f32 %v2776_v29 }
 0x859   :  { %vm2734_vm9 = vcmp.eq.f32.partialorder %v9051_v45, %v9237_v18 }
 0x85a   :  { %v2735_v46 = vsel %vm2734_vm9, %v2730_v25, inf  ;;  %v2824_v25 = vand.u32 65535, %v9151_v11 }
 0x85b   :  { %2736 = vmin.xlane.f32.xlu1 %v2735_v46 }
 0x85c   :  { %v9242_v63 = vpop.xlane.xlu0 %2716  ;;  %v2826_v46 = vcvt.s32.f32 %v2824_v25 }
 0x85d   :  { %vm2718_vm7 = vcmp.eq.f32.partialorder %v9069_v43, %v9242_v63  ;;  %v9246_v4 = vpop.xlane.xlu1 %2764  ;;  %v2792_v43 = vand.u32 65535, %v9096_v58  ;;  %v2808_v58 = vand.u32 65535, %v9170_v44 }
 0x85e   :  { %v2719_v2 = vsel %vm2718_vm7, %v2714_v19, inf  ;;  %vm2766_vm11 = vcmp.eq.f32.partialorder %v9071_v57, %v9246_v4 }
 0x85f   :  { %2720 = vmin.xlane.f32.xlu0 %v2719_v2  ;;  %v2767_v49 = vsel %vm2766_vm11, %v2762_v26, inf  ;;  %v2794_v21 = vcvt.s32.f32 %v2792_v43  ;;  %v2810_v11 = vcvt.s32.f32 %v2808_v58  ;;  %v2840_v26 = vand.u32 65535, %v9194_v55 }
 0x860   :  { %2768 = vmin.xlane.f32.xlu1 %v2767_v49  ;;  %v2872_v49 = vand.u32 65535, %v9201_v48  ;;  %v2643_v43 = vcvt.f32.s32 %v9212_v32 }
 0x861   :  { %v2842_v39 = vcvt.s32.f32 %v2840_v26 }
 0x862   :  { %v9251_v45 = vpop.xlane.xlu0 %2748 }
 0x863   :  { %vm2750_vm13 = vcmp.eq.f32.partialorder %v9090_v6, %v9251_v45 }
 0x864   :  { %v2751_v9 = vsel %vm2750_vm13, %v2746_v52, inf  ;;  %v2874_v52 = vcvt.s32.f32 %v2872_v49 }
 0x865   :  { %2752 = vmin.xlane.f32.xlu0 %v2751_v9  ;;  %v2659_v9 = vcvt.f32.s32 %v9216_v47 }
 0x867   :  { %v9256_v16 = vpop.xlane.xlu1 %2796  ;;  %v2660_v29 = vshll.u32 %v2659_v9, 16  ;;  %v2739_v9 = vcvt.f32.s32 %v9237_v18 }
 0x868   :  { %vm2798_vm10 = vcmp.eq.f32.partialorder %v9101_v10, %v9256_v16  ;;  %v2856_v10 = vand.u32 65535, %v9174_v38 }
 0x869   :  { %v2799_v57 = vsel %vm2798_vm10, %v2794_v21, inf }
 0x86a   :  { %2800 = vmin.xlane.f32.xlu1 %v2799_v57  ;;  %v2858_v44 = vcvt.s32.f32 %v2856_v10  ;;  %v2644_v57 = vshll.u32 %v2643_v43, 16  ;;  %v2691_v43 = vcvt.f32.s32 %v9232_v22 }
 0x870   :  { %v9261_v30 = vpop.xlane.xlu0 %2780 }
 0x871   :  { %vm2782_vm14 = vcmp.eq.f32.partialorder %v9149_v60, %v9261_v30 }
 0x872   :  { %v2783_v6 = vsel %vm2782_vm14, %v2778_v33, inf }
 0x873   :  { %2784 = vmin.xlane.f32.xlu0 %v2783_v6 }
 0x874   :  { %v9267_v12 = vpop.xlane.xlu1 %2828 }
 0x875   :  { %vm2830_vm15 = vcmp.eq.f32.partialorder %v9168_v50, %v9267_v12 }
 0x876   :  { %v2831_v14 = vsel %vm2830_vm15, %v2826_v46, inf }
 0x877   :  { %v9272_v19 = vpop.xlane.xlu0 %2812  ;;  %2832 = vmin.xlane.f32.xlu1 %v2831_v14 }
 0x878   :  { %vm2814_vm12 = vcmp.eq.f32.partialorder %v9190_v35, %v9272_v19  ;;  %v9277_v60 = vpop.xlane.xlu1 %2860 }
 0x879   :  { %v2815_v2 = vsel %vm2814_vm12, %v2810_v11, inf  ;;  %vm2862_vm1 = vcmp.eq.f32.partialorder %v9192_v31, %v9277_v60 }
 0x87a   :  { %2816 = vmin.xlane.f32.xlu0 %v2815_v2  ;;  %v2863_v38 = vsel %vm2862_vm1, %v2858_v44, inf }
 0x87b   :  { %v9281_v50 = vpop.xlane.xlu0 %2844  ;;  %2864 = vmin.xlane.f32.xlu1 %v2863_v38 }
 0x87c   :  { %vm2846_vm2 = vcmp.eq.f32.partialorder %v9203_v3, %v9281_v50 }
 0x87d   :  { %v2847_v55 = vsel %vm2846_vm2, %v2842_v39, inf }
 0x87e   :  { %2848 = vmin.xlane.f32.xlu0 %v2847_v55  ;;  %v2707_v55 = vcvt.f32.s32 %v9227_v13 }
 0x87f   :  { %v9286_v35 = vpop.xlane.xlu0 %2876 }
 0x880   :  { %vm2878_vm0 = vcmp.eq.f32.partialorder %v9207_v37, %v9286_v35  ;;  %v9299_v37 = vld [vmem:[#allocation2 + $0x60] sm:$0xff] }
 0x881   :  { %v2879_v31 = vsel %vm2878_vm0, %v2874_v52, inf }
 0x882   :  { %2880 = vmin.xlane.f32.xlu0 %v2879_v31  ;;  %v9335_v31 = vld [vmem:[#allocation2 + $0xb0] sm:$0xff] }
 0x8cb   :  { %v2641_v21 = vpop.xlane.xlu1 %2640 }
 0x8cc   :  { %v2642_v48 = vcvt.f32.s32 %v2641_v21 }
 0x8cd   :  { %v2657_v3 = vpop.xlane.xlu0 %2656 }
 0x8ce   :  { %v2645_v33 = vadd.s32 %v2644_v57, %v2642_v48  ;;  %v2658_v25 = vcvt.f32.s32 %v2657_v3  ;;  %v2708_v48 = vshll.u32 %v2707_v55, 16  ;;  %v9368_v55 = vld [vmem:[#allocation2 + $0x38] sm:$0xff] }
 0x8d0   :  { %v9296_v6 = vsel %vm2886_vm3, %v2645_v33, %v8925_v8  ;;  %vm2903_vm5 = vcmp.gt.s32.totalorder %v8927_v56, %v2645_v33  ;;  %vm2904_vm4 = vcmp.gt.s32.totalorder %v9299_v37, %v2645_v33  ;;  %v2661_v32 = vadd.s32 %v2660_v29, %v2658_v25  ;;  %v9310_v8 = vld [vmem:[#allocation2 + $0x8] sm:$0xff] }
 0x8d1   :  { %v2935_v47 = vsel %vm2903_vm5, %v8927_v56, 2147483647  ;;  %v2936_v58 = vsel %vm2904_vm4, %v9299_v37, 2147483647  ;;  %v2771_v33 = vcvt.f32.s32 %v9246_v4  ;;  %v2755_v25 = vcvt.f32.s32 %v9251_v45 }
 0x8d2   :  { %v9307_v46 = vsel %vm2886_vm3, %v2661_v32, %v8936_v62  ;;  %vm2905_vm6 = vcmp.gt.s32.totalorder %v8938_v7, %v2661_v32  ;;  %vm2906_vm8 = vcmp.gt.s32.totalorder %v9310_v8, %v2661_v32  ;;  %vm2967_vm9 = vcmp.lt.s32.totalorder %v2935_v47, %v2936_v58 }
 0x8d3   :  { %v9313_v10 = vsel %vm2967_vm9, %v2935_v47, %v2936_v58  ;;  %v2937_v14 = vsel %vm2905_vm6, %v8938_v7, 2147483647  ;;  %v2938_v56 = vsel %vm2906_vm8, %v9310_v8, 2147483647  ;;  %v2675_v62 = vcvt.f32.s32 %v9221_v15 }
 0x8d4   :  { %v2970_v11 = vshra.s32 %v9313_v10, 16  ;;  %vm2983_vm7 = vcmp.lt.s32.totalorder %v2937_v14, %v2938_v56  ;;  %v2692_v47 = vshll.u32 %v2691_v43, 16  ;;  %v2740_v58 = vshll.u32 %v2739_v9, 16 }
 0x8d5   :  { %v9318_v26 = vsel %vm2983_vm7, %v2937_v14, %v2938_v56  ;;  %v2676_v49 = vshll.u32 %v2675_v62, 16 }
 0x8d6   :  { %v9321_v44 = vcvt.s32.f32 %v2970_v11  ;;  %v2986_v2 = vshra.s32 %v9318_v26, 16  ;;  %v2673_v39 = vpop.xlane.xlu1 %2672 }
 0x8d7   :  { %v2674_v7 = vcvt.f32.s32 %v2673_v39 }
 0x8d8   :  { %2973 = vmin.xlane.f32.xlu1 %v9321_v44  ;;  %v9325_v38 = vcvt.s32.f32 %v2986_v2 }
 0x8d9   :  { %v2677_v52 = vadd.s32 %v2676_v49, %v2674_v7  ;;  %v2772_v49 = vshll.u32 %v2771_v33, 16  ;;  %v2756_v7 = vshll.u32 %v2755_v25, 16 }
 0x8da   :  { %2989 = vmin.xlane.f32.xlu0 %v9325_v38 }
 0x8db   :  { %v9332_v15 = vsel %vm2886_vm3, %v2677_v52, %v8965_v40  ;;  %vm2907_vm11 = vcmp.gt.s32.totalorder %v8967_v59, %v2677_v52  ;;  %vm2908_vm13 = vcmp.gt.s32.totalorder %v9335_v31, %v2677_v52  ;;  %v2723_v40 = vcvt.f32.s32 %v9242_v63  ;;  %v9354_v63 = vld [vmem:[#allocation2 + $0xa8] sm:$0xff] }
 0x8dc   :  { %v2939_v57 = vsel %vm2907_vm11, %v8967_v59, 2147483647  ;;  %v2940_v13 = vsel %vm2908_vm13, %v9335_v31, 2147483647 }
 0x8dd   :  { %v2705_v21 = vpop.xlane.xlu1 %2704  ;;  %vm2999_vm10 = vcmp.lt.s32.totalorder %v2939_v57, %v2940_v13  ;;  %v2724_v39 = vshll.u32 %v2723_v40, 16  ;;  %v2803_v40 = vcvt.f32.s32 %v9256_v16 }
 0x8de   :  { %v2706_v3 = vcvt.f32.s32 %v2705_v21  ;;  %v9343_v29 = vsel %vm2999_vm10, %v2939_v57, %v2940_v13 }
 0x8df   :  { %v3002_v18 = vshra.s32 %v9343_v29, 16 }
 0x8e0   :  { %v2709_v32 = vadd.s32 %v2708_v48, %v2706_v3  ;;  %v9381_v48 = vld [vmem:[#allocation2 + $0x68] sm:$0xff] }
 0x8e1   :  { %v2689_v22 = vpop.xlane.xlu0 %2688  ;;  %v9357_v45 = vcvt.s32.f32 %v3002_v18 }
 0x8e2   :  { %v2690_v59 = vcvt.f32.s32 %v2689_v22  ;;  %v9351_v14 = vsel %vm2886_vm3, %v2709_v32, %v8980_v54  ;;  %vm2911_vm14 = vcmp.gt.s32.totalorder %v8982_v5, %v2709_v32  ;;  %vm2912_vm15 = vcmp.gt.s32.totalorder %v9354_v63, %v2709_v32 }
 0x8e3   :  { %v2943_v62 = vsel %vm2911_vm14, %v8982_v5, 2147483647  ;;  %v2944_v2 = vsel %vm2912_vm15, %v9354_v63, 2147483647  ;;  %3005 = vmin.xlane.f32.xlu1 %v9357_v45 }
 0x8e4   :  { %v2737_v4 = vpop.xlane.xlu1 %2736  ;;  %v2693_v56 = vadd.s32 %v2692_v47, %v2690_v59  ;;  %vm3031_vm12 = vcmp.lt.s32.totalorder %v2943_v62, %v2944_v2  ;;  %v9396_v47 = vld [vmem:[#allocation2 + $0xd8] sm:$0xff] }
 0x8e5   :  { %v2738_v11 = vcvt.f32.s32 %v2737_v4  ;;  %v9371_v21 = vsel %vm3031_vm12, %v2943_v62, %v2944_v2 }
 0x8e6   :  { %v9365_v54 = vsel %vm2886_vm3, %v2693_v56, %v8994_v1  ;;  %vm2909_vm1 = vcmp.gt.s32.totalorder %v8996_v17, %v2693_v56  ;;  %vm2910_vm2 = vcmp.gt.s32.totalorder %v9368_v55, %v2693_v56  ;;  %v3034_v25 = vshra.s32 %v9371_v21, 16 }
 0x8e7   :  { %v2741_v5 = vadd.s32 %v2740_v58, %v2738_v11  ;;  %v2941_v57 = vsel %vm2909_vm1, %v8996_v17, 2147483647  ;;  %v2942_v13 = vsel %vm2910_vm2, %v9368_v55, 2147483647 }
 0x8e8   :  { %v2721_v52 = vpop.xlane.xlu0 %2720  ;;  %vm3015_vm4 = vcmp.lt.s32.totalorder %v2941_v57, %v2942_v13  ;;  %v9399_v16 = vcvt.s32.f32 %v3034_v25 }
 0x8e9   :  { %v2722_v43 = vcvt.f32.s32 %v2721_v52  ;;  %v2769_v9 = vpop.xlane.xlu1 %2768  ;;  %v9378_v1 = vsel %vm2886_vm3, %v2741_v5, %v9006_v36  ;;  %vm2915_vm0 = vcmp.gt.s32.totalorder %v9008_v24, %v2741_v5  ;;  %vm2916_vm5 = vcmp.gt.s32.totalorder %v9381_v48, %v2741_v5 }
 0x8ea   :  { %v2770_v3 = vcvt.f32.s32 %v2769_v9  ;;  %v9386_v32 = vsel %vm3015_vm4, %v2941_v57, %v2942_v13  ;;  %v2947_v22 = vsel %vm2915_vm0, %v9008_v24, 2147483647  ;;  %v2948_v36 = vsel %vm2916_vm5, %v9381_v48, 2147483647  ;;  %v9407_v24 = vld [vmem:[#allocation2] sm:$0xff]  ;;  %3037 = vmin.xlane.f32.xlu1 %v9399_v16 }
 0x8eb   :  { %v2725_v33 = vadd.s32 %v2724_v39, %v2722_v43  ;;  %v3018_v59 = vshra.s32 %v9386_v32, 16  ;;  %vm3063_vm11 = vcmp.lt.s32.totalorder %v2947_v22, %v2948_v36  ;;  %v2804_v43 = vshll.u32 %v2803_v40, 16 }
 0x8ec   :  { %v2773_v17 = vadd.s32 %v2772_v49, %v2770_v3 }
 0x8ed   :  { %v9393_v18 = vsel %vm2886_vm3, %v2725_v33, %v9024_v20  ;;  %vm2913_vm6 = vcmp.gt.s32.totalorder %v9026_v41, %v2725_v33  ;;  %vm2914_vm8 = vcmp.gt.s32.totalorder %v9396_v47, %v2725_v33  ;;  %v9414_v62 = vcvt.s32.f32 %v3018_v59 }
 0x8ee   :  { %v9404_v58 = vsel %vm2886_vm3, %v2773_v17, %v9034_v61  ;;  %vm2919_vm9 = vcmp.gt.s32.totalorder %v9036_v53, %v2773_v17  ;;  %vm2920_vm7 = vcmp.gt.s32.totalorder %v9407_v24, %v2773_v17  ;;  %v2753_v20 = vpop.xlane.xlu0 %2752  ;;  %v2945_v56 = vsel %vm2913_vm6, %v9026_v41, 2147483647 }
 0x8ef   :  { %v2754_v4 = vcvt.f32.s32 %v2753_v20  ;;  %v2946_v11 = vsel %vm2914_vm8, %v9396_v47, 2147483647  ;;  %v9416_v61 = vsel %vm3063_vm11, %v2947_v22, %v2948_v36  ;;  %v2951_v2 = vsel %vm2919_vm9, %v9036_v53, 2147483647  ;;  %3021 = vmin.xlane.f32.xlu0 %v9414_v62  ;;  %v9431_v53 = vld [vmem:[#allocation2 + $0x98] sm:$0xff] }
 0x8f0   :  { %vm3047_vm13 = vcmp.lt.s32.totalorder %v2945_v56, %v2946_v11  ;;  %v3066_v49 = vshra.s32 %v9416_v61, 16  ;;  %v2952_v52 = vsel %vm2920_vm7, %v9407_v24, 2147483647 }
 0x8f1   :  { %v2757_v39 = vadd.s32 %v2756_v7, %v2754_v4  ;;  %v9420_v5 = vsel %vm3047_vm13, %v2945_v56, %v2946_v11  ;;  %vm3095_vm10 = vcmp.lt.s32.totalorder %v2951_v2, %v2952_v52  ;;  %v2787_v4 = vcvt.f32.s32 %v9261_v30 }
 0x8f2   :  { %v3050_v41 = vshra.s32 %v9420_v5, 16  ;;  %v9434_v57 = vcvt.s32.f32 %v3066_v49  ;;  %v9438_v40 = vsel %vm3095_vm10, %v2951_v2, %v2952_v52 }
 0x8f3   :  { %v9428_v9 = vsel %vm2886_vm3, %v2757_v39, %v9063_v0  ;;  %vm2917_vm14 = vcmp.gt.s32.totalorder %v9065_v27, %v2757_v39  ;;  %vm2918_vm15 = vcmp.gt.s32.totalorder %v9431_v53, %v2757_v39  ;;  %v2801_v7 = vpop.xlane.xlu1 %2800  ;;  %v3098_v0 = vshra.s32 %v9438_v40, 16 }
 0x8f4   :  { %v2802_v13 = vcvt.f32.s32 %v2801_v7  ;;  %v9436_v3 = vcvt.s32.f32 %v3050_v41  ;;  %v2949_v33 = vsel %vm2917_vm14, %v9065_v27, 2147483647  ;;  %3069 = vmin.xlane.f32.xlu1 %v9434_v57  ;;  %v2950_v25 = vsel %vm2918_vm15, %v9431_v53, 2147483647  ;;  %v9455_v27 = vld [vmem:[#allocation2 + $0xd0] sm:$0xff] }
 0x8f5   :  { %vm3079_vm12 = vcmp.lt.s32.totalorder %v2949_v33, %v2950_v25  ;;  %v9445_v22 = vcvt.s32.f32 %v3098_v0  ;;  %12857 = vst [vmem:[#allocation21_spill] sm:$0xff] %v9455_v27  ;;  %v2835_v39 = vcvt.f32.s32 %v9267_v12 }
 0x8f6   :  { %v2805_v17 = vadd.s32 %v2804_v43, %v2802_v13  ;;  %3053 = vmin.xlane.f32.xlu0 %v9436_v3  ;;  %v9447_v36 = vsel %vm3079_vm12, %v2949_v33, %v2950_v25  ;;  %v2788_v43 = vshll.u32 %v2787_v4, 16  ;;  %v2819_v13 = vcvt.f32.s32 %v9272_v19  ;;  %v12858_v25 = vld [vmem:[#allocation10_spill] sm:$0xff] }
 0x8f7   :  { %v3082_v59 = vshra.s32 %v9447_v36, 16  ;;  %v2867_v33 = vcvt.f32.s32 %v9277_v60  ;;  %v2851_v60 = vcvt.f32.s32 %v9281_v50 }
 0x8f8   :  { %v9452_v20 = vsel %vm2886_vm3, %v2805_v17, %v9084_v23  ;;  %vm2923_vm1 = vcmp.gt.s32.totalorder %v9086_v42, %v2805_v17  ;;  %vm2924_vm2 = vcmp.gt.s32.totalorder %v9455_v27, %v2805_v17  ;;  %3101 = vmin.xlane.f32.xlu1 %v9445_v22  ;;  %v12860_v17 = vld [vmem:[#allocation19_spill] sm:$0xff] }
 0x8f9   :  { %v2955_v56 = vsel %vm2923_vm1, %v9086_v42, 2147483647  ;;  %v2956_v11 = vsel %vm2924_vm2, %v9455_v27, 2147483647  ;;  %v9463_v2 = vcvt.s32.f32 %v3082_v59  ;;  %v2836_v42 = vshll.u32 %v2835_v39, 16  ;;  %v9481_v59 = vld [vmem:[#allocation2 + $0x10] sm:$0xff] }
 0x8fa   :  { %vm3127_vm0 = vcmp.lt.s32.totalorder %v2955_v56, %v2956_v11  ;;  %v12861_v27 = vld [vmem:[#allocation14_spill] sm:$0xff] }
 0x8fb   :  { %v9465_v23 = vsel %vm3127_vm0, %v2955_v56, %v2956_v11  ;;  %3085 = vmin.xlane.f32.xlu0 %v9463_v2  ;;  %v2883_v11 = vcvt.f32.s32 %v9286_v35 }
 0x8fc   :  { %v2785_v49 = vpop.xlane.xlu0 %2784  ;;  %v3130_v52 = vshra.s32 %v9465_v23, 16 }
 0x8fd   :  { %v2786_v30 = vcvt.f32.s32 %v2785_v49 }
 0x8fe   :  { %v9470_v41 = vcvt.s32.f32 %v3130_v52  ;;  %v2820_v52 = vshll.u32 %v2819_v13, 16 }
 0x8ff   :  { %v2789_v7 = vadd.s32 %v2788_v43, %v2786_v30  ;;  %v2868_v43 = vshll.u32 %v2867_v33, 16 }
 0x900   :  { %v2833_v0 = vpop.xlane.xlu1 %2832  ;;  %3133 = vmin.xlane.f32.xlu1 %v9470_v41 }
 0x901   :  { %v9478_v12 = vsel %vm2886_vm3, %v2789_v7, %v12858_v25  ;;  %vm2921_vm5 = vcmp.gt.s32.totalorder %v12860_v17, %v2789_v7  ;;  %vm2922_vm4 = vcmp.gt.s32.totalorder %v9481_v59, %v2789_v7  ;;  %v2834_v4 = vcvt.f32.s32 %v2833_v0  ;;  %v9496_v0 = vld [vmem:[#allocation2 + $0xc8] sm:$0xff] }
 0x902   :  { %12859 = vst [vmem:[#allocation18_spill] sm:$0xff] %v9478_v12  ;;  %v2953_v56 = vsel %vm2921_vm5, %v12860_v17, 2147483647  ;;  %v2954_v19 = vsel %vm2922_vm4, %v9481_v59, 2147483647  ;;  %v2852_v17 = vshll.u32 %v2851_v60, 16 }
 0x903   :  { %v2837_v39 = vadd.s32 %v2836_v42, %v2834_v4  ;;  %v2817_v49 = vpop.xlane.xlu0 %2816  ;;  %vm3111_vm6 = vcmp.lt.s32.totalorder %v2953_v56, %v2954_v19  ;;  %v2884_v4 = vshll.u32 %v2883_v11, 16  ;;  %v12869_v11 = vld [vmem:[#allocation16_spill] sm:$0xff] }
 0x904   :  { %v2818_v30 = vcvt.f32.s32 %v2817_v49  ;;  %v2865_v25 = vpop.xlane.xlu1 %2864  ;;  %v9488_v12 = vsel %vm3111_vm6, %v2953_v56, %v2954_v19 }
 0x905   :  { %v9493_v7 = vsel %vm2886_vm3, %v2837_v39, %v12861_v27  ;;  %vm2927_vm8 = vcmp.gt.s32.totalorder %v9124_v28, %v2837_v39  ;;  %vm2928_vm9 = vcmp.gt.s32.totalorder %v9496_v0, %v2837_v39  ;;  %v2866_v50 = vcvt.f32.s32 %v2865_v25  ;;  %v12863_v27 = vld [vmem:[#allocation9_spill] sm:$0xff] }
 0x906   :  { %12862 = vst [vmem:[#allocation10_spill] sm:$0xff] %v9493_v7  ;;  %v2821_v35 = vadd.s32 %v2820_v52, %v2818_v30  ;;  %v3114_v42 = vshra.s32 %v9488_v12, 16  ;;  %v2959_v13 = vsel %vm2927_vm8, %v9124_v28, 2147483647  ;;  %v2960_v33 = vsel %vm2928_vm9, %v9496_v0, 2147483647 }
 0x907   :  { %v2869_v56 = vadd.s32 %v2868_v43, %v2866_v50  ;;  %v2849_v19 = vpop.xlane.xlu0 %2848  ;;  %vm3159_vm7 = vcmp.lt.s32.totalorder %v2959_v13, %v2960_v33  ;;  %v12865_v7 = vld [vmem:[#allocation15_spill] sm:$0xff]  ;;  %v9508_v39 = vld [vmem:[#allocation2 + $0x70] sm:$0xff]  ;;  %v9517_v43 = vld [vmem:[#allocation2 + $0x18] sm:$0xff] }
 0x908   :  { %v9505_v49 = vsel %vm2886_vm3, %v2821_v35, %v12863_v27  ;;  %vm2925_vm11 = vcmp.gt.s32.totalorder %v12865_v7, %v2821_v35  ;;  %12866 = vst [vmem:[#allocation14_spill] sm:$0xff] %v9508_v39  ;;  %vm2926_vm13 = vcmp.gt.s32.totalorder %v9508_v39, %v2821_v35  ;;  %v2850_v52 = vcvt.f32.s32 %v2849_v19  ;;  %v12867_v28 = vld [vmem:[#allocation11_spill] sm:$0xff]  ;;  %12870 = vst [vmem:[#allocation15_spill] sm:$0xff] %v9517_v43 }
 0x909   :  { %12864 = vst [vmem:[#allocation19_spill] sm:$0xff] %v9505_v49  ;;  %v9514_v60 = vsel %vm2886_vm3, %v2869_v56, %v12867_v28  ;;  %vm2931_vm10 = vcmp.gt.s32.totalorder %v12869_v11, %v2869_v56  ;;  %vm2932_vm14 = vcmp.gt.s32.totalorder %v9517_v43, %v2869_v56  ;;  %v9520_v30 = vcvt.s32.f32 %v3114_v42  ;;  %v12871_v56 = vld [vmem:[#allocation12_spill] sm:$0xff] }
 0x90a   :  { %12868 = vst [vmem:[#allocation9_spill] sm:$0xff] %v9514_v60  ;;  %v2853_v25 = vadd.s32 %v2852_v17, %v2850_v52  ;;  %v9522_v50 = vsel %vm3159_vm7, %v2959_v13, %v2960_v33  ;;  %v2957_v27 = vsel %vm2925_vm11, %v12865_v7, 2147483647  ;;  %v2958_v35 = vsel %vm2926_vm13, %v9508_v39, 2147483647  ;;  %v9536_v7 = vld [vmem:[#allocation2 + $0xe0] sm:$0xff] }
 0x90b   :  { %v2881_v19 = vpop.xlane.xlu0 %2880  ;;  %3117 = vmin.xlane.f32.xlu0 %v9520_v30  ;;  %v3162_v28 = vshra.s32 %v9522_v50, 16  ;;  %vm3143_vm15 = vcmp.lt.s32.totalorder %v2957_v27, %v2958_v35  ;;  %v2963_v60 = vsel %vm2931_vm10, %v12869_v11, 2147483647  ;;  %v2964_v49 = vsel %vm2932_vm14, %v9517_v43, 2147483647 }
 0x90c   :  { %v9533_v42 = vsel %vm2886_vm3, %v2853_v25, %v12871_v56  ;;  %vm2929_vm12 = vcmp.gt.s32.totalorder %v9164_v34, %v2853_v25  ;;  %vm2930_vm1 = vcmp.gt.s32.totalorder %v9536_v7, %v2853_v25  ;;  %v2882_v13 = vcvt.f32.s32 %v2881_v19  ;;  %v12873_v25 = vld [vmem:[#allocation17_spill] sm:$0xff] }
 0x90d   :  { %12872 = vst [vmem:[#allocation11_spill] sm:$0xff] %v9533_v42  ;;  %v9539_v33 = vcvt.s32.f32 %v3162_v28  ;;  %v9541_v17 = vsel %vm3143_vm15, %v2957_v27, %v2958_v35  ;;  %vm3191_vm2 = vcmp.lt.s32.totalorder %v2963_v60, %v2964_v49  ;;  %v2961_v52 = vsel %vm2929_vm12, %v9164_v34, 2147483647  ;;  %v12875_v35 = vld [vmem:[#allocation13_spill] sm:$0xff]  ;;  %v12876_v34 = vld [vmem:[#allocation20_spill] sm:$0xff] }
 0x90e   :  { %v2885_v11 = vadd.s32 %v2884_v4, %v2882_v13  ;;  %v3146_v43 = vshra.s32 %v9541_v17, 16  ;;  %v9545_v39 = vsel %vm3191_vm2, %v2963_v60, %v2964_v49  ;;  %v2962_v56 = vsel %vm2930_vm1, %v9536_v7, 2147483647 }
 0x90f   :  { %3165 = vmin.xlane.f32.xlu1 %v9539_v33  ;;  %v3194_v42 = vshra.s32 %v9545_v39, 16  ;;  %vm3175_vm0 = vcmp.lt.s32.totalorder %v2961_v52, %v2962_v56 }
 0x910   :  { %v9553_v27 = vsel %vm2886_vm3, %v2885_v11, %v12873_v25  ;;  %vm2933_vm5 = vcmp.gt.s32.totalorder %v12875_v35, %v2885_v11  ;;  %vm2934_vm4 = vcmp.gt.s32.totalorder %v12876_v34, %v2885_v11  ;;  %v9557_v4 = vcvt.s32.f32 %v3146_v43 }
 0x911   :  { %12874 = vst [vmem:[#allocation16_spill] sm:$0xff] %v9553_v27  ;;  %v9559_v49 = vcvt.s32.f32 %v3194_v42  ;;  %v9561_v60 = vsel %vm3175_vm0, %v2961_v52, %v2962_v56  ;;  %v2965_v19 = vsel %vm2933_vm5, %v12875_v35, 2147483647  ;;  %v2966_v28 = vsel %vm2934_vm4, %v12876_v34, 2147483647 }
 0x912   :  { %3149 = vmin.xlane.f32.xlu0 %v9557_v4  ;;  %v3178_v13 = vshra.s32 %v9561_v60, 16  ;;  %vm3207_vm3 = vcmp.lt.s32.totalorder %v2965_v19, %v2966_v28  ;;  %v2969_v52 = vand.u32 65535, %v9313_v10  ;;  %v2985_v56 = vand.u32 65535, %v9318_v26 }
 0x913   :  { %3197 = vmin.xlane.f32.xlu1 %v9559_v49  ;;  %v9568_v25 = vsel %vm3207_vm3, %v2965_v19, %v2966_v28  ;;  %v3001_v10 = vand.u32 65535, %v9343_v29  ;;  %v3065_v29 = vand.u32 65535, %v9416_v61 }
 0x914   :  { %v9570_v11 = vcvt.s32.f32 %v3178_v13  ;;  %v3210_v43 = vshra.s32 %v9568_v25, 16  ;;  %v2971_v34 = vcvt.s32.f32 %v2969_v52  ;;  %v2987_v13 = vcvt.s32.f32 %v2985_v56 }
 0x915   :  { %v3003_v26 = vcvt.s32.f32 %v3001_v10  ;;  %v3017_v56 = vand.u32 65535, %v9386_v32  ;;  %v3067_v10 = vcvt.s32.f32 %v3065_v29 }
 0x916   :  { %3181 = vmin.xlane.f32.xlu0 %v9570_v11  ;;  %v9574_v42 = vcvt.s32.f32 %v3210_v43 }
 0x91a   :  { %3213 = vmin.xlane.f32.xlu0 %v9574_v42 }
 0x961   :  { %v9579_v35 = vpop.xlane.xlu1 %2973 }
 0x962   :  { %vm2975_vm6 = vcmp.eq.f32.partialorder %v9321_v44, %v9579_v35  ;;  %v3033_v44 = vand.u32 65535, %v9371_v21 }
 0x963   :  { %v9583_v19 = vpop.xlane.xlu0 %2989  ;;  %v2976_v28 = vsel %vm2975_vm6, %v2971_v34, inf  ;;  %vm3223_vm6 = vcmp.eq.s32.totalorder %v6476_v51, 7 }
 0x964   :  { %2977 = vmin.xlane.f32.xlu1 %v2976_v28  ;;  %vm2991_vm8 = vcmp.eq.f32.partialorder %v9325_v38, %v9583_v19  ;;  %v3035_v28 = vcvt.s32.f32 %v3033_v44 }
 0x965   :  { %v2992_v43 = vsel %vm2991_vm8, %v2987_v13, inf }
 0x966   :  { %2993 = vmin.xlane.f32.xlu0 %v2992_v43  ;;  %v3019_v43 = vcvt.s32.f32 %v3017_v56 }
 0x96c   :  { %v9588_v27 = vpop.xlane.xlu1 %3005 }
 0x96d   :  { %vm3007_vm9 = vcmp.eq.f32.partialorder %v9357_v45, %v9588_v27  ;;  %v3049_v45 = vand.u32 65535, %v9420_v5 }
 0x96e   :  { %v3008_v52 = vsel %vm3007_vm9, %v3003_v26, inf  ;;  %v3097_v26 = vand.u32 65535, %v9438_v40 }
 0x96f   :  { %3009 = vmin.xlane.f32.xlu1 %v3008_v52  ;;  %v3051_v61 = vcvt.s32.f32 %v3049_v45 }
 0x970   :  { %v3099_v56 = vcvt.s32.f32 %v3097_v26 }
 0x973   :  { %v9594_v34 = vpop.xlane.xlu1 %3037 }
 0x974   :  { %vm3039_vm7 = vcmp.eq.f32.partialorder %v9399_v16, %v9594_v34 }
 0x975   :  { %v3040_v38 = vsel %vm3039_vm7, %v3035_v28, inf }
 0x976   :  { %3041 = vmin.xlane.f32.xlu1 %v3040_v38  ;;  %v3129_v38 = vand.u32 65535, %v9465_v23  ;;  %v3161_v23 = vand.u32 65535, %v9522_v50 }
 0x978   :  { %v9599_v13 = vpop.xlane.xlu0 %3021  ;;  %v3131_v29 = vcvt.s32.f32 %v3129_v38  ;;  %v2980_v38 = vcvt.f32.s32 %v9579_v35 }
 0x979   :  { %vm3023_vm11 = vcmp.eq.f32.partialorder %v9414_v62, %v9599_v13  ;;  %v3081_v62 = vand.u32 65535, %v9447_v36 }
 0x97a   :  { %v3024_v21 = vsel %vm3023_vm11, %v3019_v43, inf }
 0x97b   :  { %3025 = vmin.xlane.f32.xlu0 %v3024_v21 }
 0x97d   :  { %v9604_v32 = vpop.xlane.xlu1 %3069 }
 0x97e   :  { %vm3071_vm13 = vcmp.eq.f32.partialorder %v9434_v57, %v9604_v32  ;;  %v3083_v57 = vcvt.s32.f32 %v3081_v62 }
 0x97f   :  { %v9607_v16 = vpop.xlane.xlu0 %3053  ;;  %v3072_v52 = vsel %vm3071_vm13, %v3067_v10, inf  ;;  %v3145_v10 = vand.u32 65535, %v9541_v17 }
 0x980   :  { %vm3055_vm10 = vcmp.eq.f32.partialorder %v9436_v3, %v9607_v16  ;;  %3073 = vmin.xlane.f32.xlu1 %v3072_v52 }
 0x981   :  { %v3056_v5 = vsel %vm3055_vm10, %v3051_v61, inf  ;;  %v9614_v44 = vpop.xlane.xlu1 %3101  ;;  %v3163_v61 = vcvt.s32.f32 %v3161_v23  ;;  %v3147_v50 = vcvt.s32.f32 %v3145_v10 }
 0x982   :  { %3057 = vmin.xlane.f32.xlu0 %v3056_v5  ;;  %vm3103_vm14 = vcmp.eq.f32.partialorder %v9445_v22, %v9614_v44  ;;  %v3113_v22 = vand.u32 65535, %v9488_v12  ;;  %v3177_v5 = vand.u32 65535, %v9561_v60 }
 0x983   :  { %v3104_v40 = vsel %vm3103_vm14, %v3099_v56, inf }
 0x984   :  { %v9618_v28 = vpop.xlane.xlu0 %3085  ;;  %3105 = vmin.xlane.f32.xlu1 %v3104_v40  ;;  %v3115_v21 = vcvt.s32.f32 %v3113_v22  ;;  %v3179_v56 = vcvt.s32.f32 %v3177_v5  ;;  %v3209_v40 = vand.u32 65535, %v9568_v25 }
 0x985   :  { %vm3087_vm15 = vcmp.eq.f32.partialorder %v9463_v2, %v9618_v28 }
 0x986   :  { %v3088_v3 = vsel %vm3087_vm15, %v3083_v57, inf  ;;  %v3211_v57 = vcvt.s32.f32 %v3209_v40 }
 0x987   :  { %3089 = vmin.xlane.f32.xlu0 %v3088_v3  ;;  %v2996_v3 = vcvt.f32.s32 %v9583_v19 }
 0x989   :  { %v9623_v36 = vpop.xlane.xlu1 %3133  ;;  %v2997_v22 = vshll.u32 %v2996_v3, 16 }
 0x98a   :  { %vm3135_vm12 = vcmp.eq.f32.partialorder %v9470_v41, %v9623_v36  ;;  %v3193_v41 = vand.u32 65535, %v9545_v39 }
 0x98b   :  { %v3136_v43 = vsel %vm3135_vm12, %v3131_v29, inf }
 0x98c   :  { %3137 = vmin.xlane.f32.xlu1 %v3136_v43  ;;  %v3195_v17 = vcvt.s32.f32 %v3193_v41  ;;  %v2981_v43 = vshll.u32 %v2980_v38, 16  ;;  %v9676_v41 = vld [vmem:[#allocation2 + $0xb8] sm:$0xff] }
 0x994   :  { %v9628_v45 = vpop.xlane.xlu0 %3117 }
 0x995   :  { %vm3119_vm1 = vcmp.eq.f32.partialorder %v9520_v30, %v9628_v45 }
 0x996   :  { %v3120_v2 = vsel %vm3119_vm1, %v3115_v21, inf }
 0x997   :  { %3121 = vmin.xlane.f32.xlu0 %v3120_v2 }
 0x998   :  { %v9634_v26 = vpop.xlane.xlu1 %3165 }
 0x999   :  { %vm3167_vm2 = vcmp.eq.f32.partialorder %v9539_v33, %v9634_v26 }
 0x99a   :  { %v3168_v12 = vsel %vm3167_vm2, %v3163_v61, inf }
 0x99b   :  { %v9639_v52 = vpop.xlane.xlu0 %3149  ;;  %3169 = vmin.xlane.f32.xlu1 %v3168_v12 }
 0x99c   :  { %vm3151_vm0 = vcmp.eq.f32.partialorder %v9557_v4, %v9639_v52  ;;  %v9644_v30 = vpop.xlane.xlu1 %3197 }
 0x99d   :  { %v3152_v62 = vsel %vm3151_vm0, %v3147_v50, inf  ;;  %vm3199_vm5 = vcmp.eq.f32.partialorder %v9559_v49, %v9644_v30 }
 0x99e   :  { %3153 = vmin.xlane.f32.xlu0 %v3152_v62  ;;  %v3200_v39 = vsel %vm3199_vm5, %v3195_v17, inf }
 0x99f   :  { %v9648_v33 = vpop.xlane.xlu0 %3181  ;;  %3201 = vmin.xlane.f32.xlu1 %v3200_v39 }
 0x9a0   :  { %vm3183_vm4 = vcmp.eq.f32.partialorder %v9570_v11, %v9648_v33 }
 0x9a1   :  { %v3184_v60 = vsel %vm3183_vm4, %v3179_v56, inf }
 0x9a2   :  { %3185 = vmin.xlane.f32.xlu0 %v3184_v60 }
 0x9a3   :  { %v9653_v4 = vpop.xlane.xlu0 %3213 }
 0x9a4   :  { %vm3215_vm3 = vcmp.eq.f32.partialorder %v9574_v42, %v9653_v4  ;;  %v9665_v42 = vld [vmem:[#allocation2 + $0x78] sm:$0xff] }
 0x9a5   :  { %v3216_v49 = vsel %vm3215_vm3, %v3211_v57, inf  ;;  %v3044_v57 = vcvt.f32.s32 %v9594_v34 }
 0x9a6   :  { %3217 = vmin.xlane.f32.xlu0 %v3216_v49  ;;  %v9701_v49 = vld [vmem:[#allocation2 + $0x88] sm:$0xff] }
 0x9ed   :  { %v2978_v29 = vpop.xlane.xlu1 %2977 }
 0x9ee   :  { %v2979_v25 = vcvt.f32.s32 %v2978_v29  ;;  %v3028_v29 = vcvt.f32.s32 %v9599_v13 }
 0x9ef   :  { %v2994_v11 = vpop.xlane.xlu0 %2993 }
 0x9f0   :  { %v2982_v21 = vadd.s32 %v2981_v43, %v2979_v25  ;;  %v2995_v23 = vcvt.f32.s32 %v2994_v11  ;;  %v3045_v25 = vshll.u32 %v3044_v57, 16  ;;  %v3029_v13 = vshll.u32 %v3028_v29, 16  ;;  %v9734_v57 = vld [vmem:[#allocation2 + $0x90] sm:$0xff] }
 0x9f2   :  { %v9663_v2 = vsel %vm3223_vm6, %v2982_v21, %v9296_v6  ;;  %vm3240_vm8 = vcmp.gt.s32.totalorder %v9665_v42, %v2982_v21  ;;  %vm3241_vm9 = vcmp.gt.s32.totalorder %v9299_v37, %v2982_v21  ;;  %v2998_v35 = vadd.s32 %v2997_v22, %v2995_v23 }
 0x9f3   :  { %v3272_v19 = vsel %vm3240_vm8, %v9665_v42, 2147483647  ;;  %v3273_v10 = vsel %vm3241_vm9, %v9299_v37, 2147483647  ;;  %v3060_v21 = vcvt.f32.s32 %v9607_v16  ;;  %v3108_v23 = vcvt.f32.s32 %v9614_v44 }
 0x9f4   :  { %v9674_v61 = vsel %vm3223_vm6, %v2998_v35, %v9307_v46  ;;  %vm3242_vm7 = vcmp.gt.s32.totalorder %v9676_v41, %v2998_v35  ;;  %vm3243_vm11 = vcmp.gt.s32.totalorder %v9310_v8, %v2998_v35  ;;  %vm3304_vm13 = vcmp.lt.s32.totalorder %v3272_v19, %v3273_v10 }
 0x9f5   :  { %v9680_v6 = vsel %vm3304_vm13, %v3272_v19, %v3273_v10  ;;  %v3274_v12 = vsel %vm3242_vm7, %v9676_v41, 2147483647  ;;  %v3275_v50 = vsel %vm3243_vm11, %v9310_v8, 2147483647  ;;  %v3012_v46 = vcvt.f32.s32 %v9588_v27 }
 0x9f6   :  { %v3307_v37 = vshra.s32 %v9680_v6, 16  ;;  %vm3320_vm10 = vcmp.lt.s32.totalorder %v3274_v12, %v3275_v50  ;;  %v3092_v35 = vcvt.f32.s32 %v9618_v28  ;;  %v3061_v16 = vshll.u32 %v3060_v21, 16  ;;  %v9749_v21 = vld [vmem:[#allocation2 + $0xe8] sm:$0xff] }
 0x9f7   :  { %v9685_v5 = vsel %vm3320_vm10, %v3274_v12, %v3275_v50  ;;  %v3013_v40 = vshll.u32 %v3012_v46, 16 }
 0x9f8   :  { %v9688_v17 = vcvt.s32.f32 %v3307_v37  ;;  %v3323_v62 = vshra.s32 %v9685_v5, 16  ;;  %v3010_v56 = vpop.xlane.xlu1 %3009  ;;  %v9722_v37 = vld [vmem:[#allocation2 + $0xc0] sm:$0xff] }
 0x9f9   :  { %v3011_v60 = vcvt.f32.s32 %v3010_v56  ;;  %v3109_v56 = vshll.u32 %v3108_v23, 16 }
 0x9fa   :  { %3310 = vmin.xlane.f32.xlu1 %v9688_v17  ;;  %v9692_v39 = vcvt.s32.f32 %v3323_v62 }
 0x9fb   :  { %v3014_v8 = vadd.s32 %v3013_v40, %v3011_v60  ;;  %v3093_v40 = vshll.u32 %v3092_v35, 16 }
 0x9fc   :  { %3326 = vmin.xlane.f32.xlu0 %v9692_v39 }
 0x9fd   :  { %v9699_v27 = vsel %vm3223_vm6, %v3014_v8, %v9332_v15  ;;  %vm3244_vm14 = vcmp.gt.s32.totalorder %v9701_v49, %v3014_v8  ;;  %vm3245_vm15 = vcmp.gt.s32.totalorder %v9335_v31, %v3014_v8  ;;  %v3076_v15 = vcvt.f32.s32 %v9604_v32 }
 0x9fe   :  { %v3276_v38 = vsel %vm3244_vm14, %v9701_v49, 2147483647  ;;  %v3277_v3 = vsel %vm3245_vm15, %v9335_v31, 2147483647 }
 0x9ff   :  { %vm3336_vm12 = vcmp.lt.s32.totalorder %v3276_v38, %v3277_v3  ;;  %v3042_v43 = vpop.xlane.xlu1 %3041  ;;  %v3077_v50 = vshll.u32 %v3076_v15, 16 }
 0xa00   :  { %v9708_v34 = vsel %vm3336_vm12, %v3276_v38, %v3277_v3  ;;  %v3043_v11 = vcvt.f32.s32 %v3042_v43 }
 0xa01   :  { %v3339_v22 = vshra.s32 %v9708_v34, 16 }
 0xa02   :  { %v3046_v19 = vadd.s32 %v3045_v25, %v3043_v11  ;;  %v3140_v25 = vcvt.f32.s32 %v9623_v36  ;;  %v9758_v36 = vld [vmem:[#allocation2 + $0x20] sm:$0xff] }
 0xa03   :  { %v9715_v10 = vcvt.s32.f32 %v3339_v22 }
 0xa04   :  { %v3026_v31 = vpop.xlane.xlu0 %3025  ;;  %v9720_v32 = vsel %vm3223_vm6, %v3046_v19, %v9351_v14  ;;  %vm3248_vm1 = vcmp.gt.s32.totalorder %v9722_v37, %v3046_v19  ;;  %vm3249_vm2 = vcmp.gt.s32.totalorder %v9354_v63, %v3046_v19 }
 0xa05   :  { %v3027_v12 = vcvt.f32.s32 %v3026_v31  ;;  %3342 = vmin.xlane.f32.xlu1 %v9715_v10  ;;  %v3280_v46 = vsel %vm3248_vm1, %v9722_v37, 2147483647  ;;  %v3281_v62 = vsel %vm3249_vm2, %v9354_v63, 2147483647 }
 0xa06   :  { %vm3368_vm0 = vcmp.lt.s32.totalorder %v3280_v46, %v3281_v62 }
 0xa07   :  { %v3030_v44 = vadd.s32 %v3029_v13, %v3027_v12  ;;  %v9738_v29 = vsel %vm3368_vm0, %v3280_v46, %v3281_v62 }
 0xa09   :  { %v3074_v28 = vpop.xlane.xlu1 %3073  ;;  %v9732_v8 = vsel %vm3223_vm6, %v3030_v44, %v9365_v54  ;;  %vm3246_vm5 = vcmp.gt.s32.totalorder %v9734_v57, %v3030_v44  ;;  %vm3247_vm4 = vcmp.gt.s32.totalorder %v9368_v55, %v3030_v44  ;;  %v3371_v54 = vshra.s32 %v9738_v29, 16 }
 0xa0a   :  { %v3075_v60 = vcvt.f32.s32 %v3074_v28  ;;  %v3278_v63 = vsel %vm3246_vm5, %v9734_v57, 2147483647  ;;  %v3279_v43 = vsel %vm3247_vm4, %v9368_v55, 2147483647  ;;  %v9776_v28 = vld [vmem:[#allocation2 + $0x50] sm:$0xff] }
 0xa0b   :  { %v3058_v14 = vpop.xlane.xlu0 %3057  ;;  %vm3352_vm3 = vcmp.lt.s32.totalorder %v3278_v63, %v3279_v43 }
 0xa0c   :  { %v3059_v38 = vcvt.f32.s32 %v3058_v14  ;;  %v3078_v3 = vadd.s32 %v3077_v50, %v3075_v60  ;;  %v9764_v31 = vsel %vm3352_vm3, %v3278_v63, %v3279_v43  ;;  %v3141_v14 = vshll.u32 %v3140_v25, 16 }
 0xa0d   :  { %v3106_v11 = vpop.xlane.xlu1 %3105 }
 0xa0e   :  { %v3062_v15 = vadd.s32 %v3061_v16, %v3059_v38  ;;  %v9747_v22 = vsel %vm3223_vm6, %v3078_v3, %v9378_v1  ;;  %vm3252_vm8 = vcmp.gt.s32.totalorder %v9749_v21, %v3078_v3  ;;  %vm3253_vm9 = vcmp.gt.s32.totalorder %v9381_v48, %v3078_v3 }
 0xa0f   :  { %v3107_v23 = vcvt.f32.s32 %v3106_v11  ;;  %v9762_v1 = vcvt.s32.f32 %v3371_v54  ;;  %v3284_v13 = vsel %vm3252_vm8, %v9749_v21, 2147483647  ;;  %v3285_v12 = vsel %vm3253_vm9, %v9381_v48, 2147483647 }
 0xa10   :  { %v9756_v55 = vsel %vm3223_vm6, %v3062_v15, %v9393_v18  ;;  %vm3250_vm7 = vcmp.gt.s32.totalorder %v9758_v36, %v3062_v15  ;;  %vm3251_vm11 = vcmp.gt.s32.totalorder %v9396_v47, %v3062_v15  ;;  %v3090_v19 = vpop.xlane.xlu0 %3089  ;;  %v3355_v18 = vshra.s32 %v9764_v31, 16 }
 0xa11   :  { %v3110_v35 = vadd.s32 %v3109_v56, %v3107_v23  ;;  %v3091_v50 = vcvt.f32.s32 %v3090_v19  ;;  %3374 = vmin.xlane.f32.xlu1 %v9762_v1  ;;  %vm3400_vm13 = vcmp.lt.s32.totalorder %v3284_v13, %v3285_v12  ;;  %v3282_v16 = vsel %vm3250_vm7, %v9758_v36, 2147483647  ;;  %v9816_v19 = vld [vmem:[#allocation2 + $0x28] sm:$0xff] }
 0xa12   :  { %v9780_v48 = vsel %vm3400_vm13, %v3284_v13, %v3285_v12  ;;  %v9782_v62 = vcvt.s32.f32 %v3355_v18  ;;  %v3283_v60 = vsel %vm3251_vm11, %v9396_v47, 2147483647  ;;  %12877 = vst [vmem:[#allocation12_spill] sm:$0xff] %v9816_v19  ;;  %v12878_v13 = vld [vmem:[#allocation21_spill] sm:$0xff] }
 0xa13   :  { %v9774_v44 = vsel %vm3223_vm6, %v3110_v35, %v9404_v58  ;;  %vm3256_vm10 = vcmp.gt.s32.totalorder %v9776_v28, %v3110_v35  ;;  %vm3257_vm14 = vcmp.gt.s32.totalorder %v9407_v24, %v3110_v35  ;;  %v3094_v46 = vadd.s32 %v3093_v40, %v3091_v50  ;;  %v9795_v40 = vld [vmem:[#allocation2 + $0x80] sm:$0xff] }
 0xa14   :  { %v3403_v56 = vshra.s32 %v9780_v48, 16  ;;  %vm3384_vm15 = vcmp.lt.s32.totalorder %v3282_v16, %v3283_v60  ;;  %v3288_v38 = vsel %vm3256_vm10, %v9776_v28, 2147483647  ;;  %v3289_v3 = vsel %vm3257_vm14, %v9407_v24, 2147483647  ;;  %3358 = vmin.xlane.f32.xlu0 %v9782_v62 }
 0xa15   :  { %v3138_v58 = vpop.xlane.xlu1 %3137  ;;  %v9793_v63 = vsel %vm3223_vm6, %v3094_v46, %v9428_v9  ;;  %vm3254_vm12 = vcmp.gt.s32.totalorder %v9795_v40, %v3094_v46  ;;  %vm3255_vm1 = vcmp.gt.s32.totalorder %v9431_v53, %v3094_v46  ;;  %v9802_v25 = vsel %vm3384_vm15, %v3282_v16, %v3283_v60 }
 0xa16   :  { %v3139_v43 = vcvt.f32.s32 %v3138_v58  ;;  %v9800_v47 = vcvt.s32.f32 %v3403_v56  ;;  %vm3432_vm2 = vcmp.lt.s32.totalorder %v3288_v38, %v3289_v3  ;;  %v3286_v24 = vsel %vm3254_vm12, %v9795_v40, 2147483647 }
 0xa17   :  { %v3387_v9 = vshra.s32 %v9802_v25, 16  ;;  %v9806_v11 = vsel %vm3432_vm2, %v3288_v38, %v3289_v3  ;;  %v3287_v54 = vsel %vm3255_vm1, %v9431_v53, 2147483647  ;;  %v3124_v46 = vcvt.f32.s32 %v9628_v45 }
 0xa18   :  { %v3142_v15 = vadd.s32 %v3141_v14, %v3139_v43  ;;  %3406 = vmin.xlane.f32.xlu1 %v9800_v47  ;;  %v3435_v23 = vshra.s32 %v9806_v11, 16  ;;  %vm3416_vm0 = vcmp.lt.s32.totalorder %v3286_v24, %v3287_v54  ;;  %v3172_v58 = vcvt.f32.s32 %v9634_v26 }
 0xa19   :  { %v9820_v12 = vcvt.s32.f32 %v3387_v9  ;;  %v9824_v53 = vsel %vm3416_vm0, %v3286_v24, %v3287_v54  ;;  %v3125_v43 = vshll.u32 %v3124_v46, 16  ;;  %v3156_v9 = vcvt.f32.s32 %v9639_v52 }
 0xa1a   :  { %v9814_v35 = vsel %vm3223_vm6, %v3142_v15, %v9452_v20  ;;  %vm3260_vm5 = vcmp.gt.s32.totalorder %v9816_v19, %v3142_v15  ;;  %vm3261_vm4 = vcmp.gt.s32.totalorder %v12878_v13, %v3142_v15  ;;  %v9822_v50 = vcvt.s32.f32 %v3435_v23 }
 0xa1b   :  { %v3292_v18 = vsel %vm3260_vm5, %v9816_v19, 2147483647  ;;  %v3293_v16 = vsel %vm3261_vm4, %v12878_v13, 2147483647  ;;  %3390 = vmin.xlane.f32.xlu0 %v9820_v12  ;;  %v3419_v20 = vshra.s32 %v9824_v53, 16  ;;  %v3173_v15 = vshll.u32 %v3172_v58, 16 }
 0xa1c   :  { %vm3464_vm3 = vcmp.lt.s32.totalorder %v3292_v18, %v3293_v16  ;;  %3438 = vmin.xlane.f32.xlu1 %v9822_v50  ;;  %v3204_v54 = vcvt.f32.s32 %v9644_v30  ;;  %v12879_v13 = vld [vmem:[#allocation18_spill] sm:$0xff]  ;;  %v3188_v52 = vcvt.f32.s32 %v9648_v33  ;;  %v3220_v30 = vcvt.f32.s32 %v9653_v4 }
 0xa1d   :  { %v9832_v56 = vsel %vm3464_vm3, %v3292_v18, %v3293_v16  ;;  %v9834_v60 = vcvt.s32.f32 %v3419_v20  ;;  %v9849_v18 = vld [vmem:[#allocation2 + $0xa0] sm:$0xff]  ;;  %v12881_v19 = vld [vmem:[#allocation10_spill] sm:$0xff] }
 0xa1e   :  { %v3467_v14 = vshra.s32 %v9832_v56, 16 }
 0xa1f   :  { %3422 = vmin.xlane.f32.xlu0 %v9834_v60 }
 0xa20   :  { %v3122_v38 = vpop.xlane.xlu0 %3121  ;;  %v9839_v3 = vcvt.s32.f32 %v3467_v14 }
 0xa21   :  { %v3123_v24 = vcvt.f32.s32 %v3122_v38  ;;  %v3157_v38 = vshll.u32 %v3156_v9, 16 }
 0xa22   :  { %3470 = vmin.xlane.f32.xlu1 %v9839_v3 }
 0xa23   :  { %v3126_v45 = vadd.s32 %v3125_v43, %v3123_v24  ;;  %v3205_v43 = vshll.u32 %v3204_v54, 16  ;;  %v3189_v54 = vshll.u32 %v3188_v52, 16  ;;  %v9885_v52 = vld [vmem:[#allocation2 + $0x48] sm:$0xff] }
 0xa24   :  { %v3170_v23 = vpop.xlane.xlu1 %3169  ;;  %12889 = vst [vmem:[#allocation10_spill] sm:$0xff] %v9885_v52 }
 0xa25   :  { %v9847_v26 = vsel %vm3223_vm6, %v3126_v45, %v12879_v13  ;;  %vm3258_vm8 = vcmp.gt.s32.totalorder %v9849_v18, %v3126_v45  ;;  %vm3259_vm9 = vcmp.gt.s32.totalorder %v9481_v59, %v3126_v45  ;;  %v3171_v16 = vcvt.f32.s32 %v3170_v23  ;;  %v9864_v23 = vld [vmem:[#allocation2 + $0x40] sm:$0xff] }
 0xa26   :  { %12880 = vst [vmem:[#allocation17_spill] sm:$0xff] %v9847_v26  ;;  %v3290_v20 = vsel %vm3258_vm8, %v9849_v18, 2147483647  ;;  %v3291_v46 = vsel %vm3259_vm9, %v9481_v59, 2147483647 }
 0xa27   :  { %v3174_v14 = vadd.s32 %v3173_v15, %v3171_v16  ;;  %v3154_v58 = vpop.xlane.xlu0 %3153  ;;  %vm3448_vm7 = vcmp.lt.s32.totalorder %v3290_v20, %v3291_v46  ;;  %v3221_v16 = vshll.u32 %v3220_v30, 16  ;;  %v12890_v30 = vld [vmem:[#allocation15_spill] sm:$0xff] }
 0xa28   :  { %v3155_v24 = vcvt.f32.s32 %v3154_v58  ;;  %v3202_v13 = vpop.xlane.xlu1 %3201  ;;  %v9857_v26 = vsel %vm3448_vm7, %v3290_v20, %v3291_v46 }
 0xa29   :  { %v9862_v45 = vsel %vm3223_vm6, %v3174_v14, %v12881_v19  ;;  %vm3264_vm11 = vcmp.gt.s32.totalorder %v9864_v23, %v3174_v14  ;;  %vm3265_vm13 = vcmp.gt.s32.totalorder %v9496_v0, %v3174_v14  ;;  %v3203_v59 = vcvt.f32.s32 %v3202_v13  ;;  %v12883_v19 = vld [vmem:[#allocation19_spill] sm:$0xff]  ;;  %v12886_v14 = vld [vmem:[#allocation14_spill] sm:$0xff] }
 0xa2a   :  { %12882 = vst [vmem:[#allocation13_spill] sm:$0xff] %v9862_v45  ;;  %v3158_v33 = vadd.s32 %v3157_v38, %v3155_v24  ;;  %v3451_v4 = vshra.s32 %v9857_v26, 16  ;;  %v3296_v15 = vsel %vm3264_vm11, %v9864_v23, 2147483647  ;;  %v3297_v9 = vsel %vm3265_vm13, %v9496_v0, 2147483647 }
 0xa2b   :  { %v3206_v20 = vadd.s32 %v3205_v43, %v3203_v59  ;;  %v3186_v46 = vpop.xlane.xlu0 %3185  ;;  %vm3496_vm10 = vcmp.lt.s32.totalorder %v3296_v15, %v3297_v9  ;;  %v9876_v45 = vld [vmem:[#allocation2 + $0x58] sm:$0xff]  ;;  %v12887_v24 = vld [vmem:[#allocation9_spill] sm:$0xff] }
 0xa2c   :  { %v9874_v58 = vsel %vm3223_vm6, %v3158_v33, %v12883_v19  ;;  %12885 = vst [vmem:[#allocation21_spill] sm:$0xff] %v9876_v45  ;;  %vm3262_vm14 = vcmp.gt.s32.totalorder %v9876_v45, %v3158_v33  ;;  %vm3263_vm15 = vcmp.gt.s32.totalorder %v12886_v14, %v3158_v33  ;;  %v3187_v38 = vcvt.f32.s32 %v3186_v46 }
 0xa2d   :  { %12884 = vst [vmem:[#allocation20_spill] sm:$0xff] %v9874_v58  ;;  %v9883_v0 = vsel %vm3223_vm6, %v3206_v20, %v12887_v24  ;;  %vm3268_vm12 = vcmp.gt.s32.totalorder %v9885_v52, %v3206_v20  ;;  %vm3269_vm1 = vcmp.gt.s32.totalorder %v12890_v30, %v3206_v20  ;;  %v9889_v43 = vcvt.s32.f32 %v3451_v4  ;;  %v12891_v20 = vld [vmem:[#allocation11_spill] sm:$0xff] }
 0xa2e   :  { %12888 = vst [vmem:[#allocation18_spill] sm:$0xff] %v9883_v0  ;;  %v3190_v13 = vadd.s32 %v3189_v54, %v3187_v38  ;;  %v9891_v59 = vsel %vm3496_vm10, %v3296_v15, %v3297_v9  ;;  %v3294_v19 = vsel %vm3262_vm14, %v9876_v45, 2147483647  ;;  %v3295_v33 = vsel %vm3263_vm15, %v12886_v14, 2147483647  ;;  %v9904_v15 = vld [vmem:[#allocation2 + $0xf0] sm:$0xff] }
 0xa2f   :  { %v3218_v46 = vpop.xlane.xlu0 %3217  ;;  %3454 = vmin.xlane.f32.xlu0 %v9889_v43  ;;  %v3499_v24 = vshra.s32 %v9891_v59, 16  ;;  %vm3480_vm2 = vcmp.lt.s32.totalorder %v3294_v19, %v3295_v33  ;;  %v3300_v0 = vsel %vm3268_vm12, %v9885_v52, 2147483647  ;;  %v3301_v58 = vsel %vm3269_vm1, %v12890_v30, 2147483647 }
 0xa30   :  { %v9902_v4 = vsel %vm3223_vm6, %v3190_v13, %v12891_v20  ;;  %vm3266_vm0 = vcmp.gt.s32.totalorder %v9904_v15, %v3190_v13  ;;  %vm3267_vm5 = vcmp.gt.s32.totalorder %v9536_v7, %v3190_v13  ;;  %v3219_v9 = vcvt.f32.s32 %v3218_v46  ;;  %v12893_v13 = vld [vmem:[#allocation16_spill] sm:$0xff] }
 0xa31   :  { %12892 = vst [vmem:[#allocation19_spill] sm:$0xff] %v9902_v4  ;;  %v9908_v54 = vcvt.s32.f32 %v3499_v24  ;;  %v9910_v14 = vsel %vm3480_vm2, %v3294_v19, %v3295_v33  ;;  %vm3528_vm4 = vcmp.lt.s32.totalorder %v3300_v0, %v3301_v58  ;;  %v3298_v38 = vsel %vm3266_vm0, %v9904_v15, 2147483647  ;;  %v9924_v33 = vld [vmem:[#allocation2 + $0x30] sm:$0xff] }
 0xa32   :  { %v3222_v30 = vadd.s32 %v3221_v16, %v3219_v9  ;;  %v3483_v52 = vshra.s32 %v9910_v14, 16  ;;  %v9914_v45 = vsel %vm3528_vm4, %v3300_v0, %v3301_v58  ;;  %v3299_v20 = vsel %vm3267_vm5, %v9536_v7, 2147483647  ;;  %12895 = vst [vmem:[#allocation9_spill] sm:$0xff] %v9924_v33  ;;  %v9927_v16 = vld [vmem:[#allocation2 + $0xf8] sm:$0xff] }
 0xa33   :  { %3502 = vmin.xlane.f32.xlu1 %v9908_v54  ;;  %v3531_v4 = vshra.s32 %v9914_v45, 16  ;;  %vm3512_vm3 = vcmp.lt.s32.totalorder %v3298_v38, %v3299_v20  ;;  %12896 = vst [vmem:[#allocation15_spill] sm:$0xff] %v9927_v16 }
 0xa34   :  { %v9922_v19 = vsel %vm3223_vm6, %v3222_v30, %v12893_v13  ;;  %vm3270_vm8 = vcmp.gt.s32.totalorder %v9924_v33, %v3222_v30  ;;  %vm3271_vm9 = vcmp.gt.s32.totalorder %v9927_v16, %v3222_v30  ;;  %v9930_v58 = vcvt.s32.f32 %v3483_v52 }
 0xa35   :  { %12894 = vst [vmem:[#allocation14_spill] sm:$0xff] %v9922_v19  ;;  %v9932_v7 = vcvt.s32.f32 %v3531_v4  ;;  %v9934_v0 = vsel %vm3512_vm3, %v3298_v38, %v3299_v20  ;;  %v3302_v46 = vsel %vm3270_vm8, %v9924_v33, 2147483647  ;;  %v3303_v24 = vsel %vm3271_vm9, %v9927_v16, 2147483647 }
 0xa36   :  { %3486 = vmin.xlane.f32.xlu0 %v9930_v58  ;;  %v3515_v9 = vshra.s32 %v9934_v0, 16  ;;  %vm3544_vm6 = vcmp.lt.s32.totalorder %v3302_v46, %v3303_v24  ;;  %v3306_v38 = vand.u32 65535, %v9680_v6  ;;  %v3322_v20 = vand.u32 65535, %v9685_v5 }
 0xa37   :  { %3534 = vmin.xlane.f32.xlu1 %v9932_v7  ;;  %v9941_v13 = vsel %vm3544_vm6, %v3302_v46, %v3303_v24  ;;  %v3338_v6 = vand.u32 65535, %v9708_v34  ;;  %v3402_v34 = vand.u32 65535, %v9780_v48 }
 0xa38   :  { %v9943_v30 = vcvt.s32.f32 %v3515_v9  ;;  %v3547_v52 = vshra.s32 %v9941_v13, 16  ;;  %v3308_v33 = vcvt.s32.f32 %v3306_v38  ;;  %v3324_v9 = vcvt.s32.f32 %v3322_v20 }
 0xa39   :  { %v3340_v5 = vcvt.s32.f32 %v3338_v6 }
 0xa3a   :  { %3518 = vmin.xlane.f32.xlu0 %v9943_v30  ;;  %v9947_v4 = vcvt.s32.f32 %v3547_v52 }
 0xa3e   :  { %3550 = vmin.xlane.f32.xlu0 %v9947_v4 }
 0xa83   :  { %v9952_v16 = vpop.xlane.xlu1 %3310 }
 0xa84   :  { %vm3312_vm7 = vcmp.eq.f32.partialorder %v9688_v17, %v9952_v16  ;;  %v3370_v17 = vand.u32 65535, %v9738_v29  ;;  %v3386_v29 = vand.u32 65535, %v9802_v25 }
 0xa85   :  { %v9956_v46 = vpop.xlane.xlu0 %3326  ;;  %v3313_v24 = vsel %vm3312_vm7, %v3308_v33, inf  ;;  %vm3560_vm7 = vcmp.eq.s32.totalorder %v6476_v51, 8 }
 0xa86   :  { %3314 = vmin.xlane.f32.xlu1 %v3313_v24  ;;  %vm3328_vm11 = vcmp.eq.f32.partialorder %v9692_v39, %v9956_v46  ;;  %v3372_v20 = vcvt.s32.f32 %v3370_v17  ;;  %v3354_v24 = vand.u32 65535, %v9764_v31  ;;  %v3404_v31 = vcvt.s32.f32 %v3402_v34 }
 0xa87   :  { %v3329_v52 = vsel %vm3328_vm11, %v3324_v9, inf  ;;  %v3418_v17 = vand.u32 65535, %v9824_v53 }
 0xa88   :  { %3330 = vmin.xlane.f32.xlu0 %v3329_v52  ;;  %v3356_v52 = vcvt.s32.f32 %v3354_v24 }
 0xa8e   :  { %v9961_v19 = vpop.xlane.xlu1 %3342 }
 0xa8f   :  { %vm3344_vm13 = vcmp.eq.f32.partialorder %v9715_v10, %v9961_v19 }
 0xa90   :  { %v3345_v38 = vsel %vm3344_vm13, %v3340_v5, inf  ;;  %v3434_v5 = vand.u32 65535, %v9806_v11  ;;  %v3466_v11 = vand.u32 65535, %v9832_v56  ;;  %v3450_v56 = vand.u32 65535, %v9857_v26 }
 0xa91   :  { %3346 = vmin.xlane.f32.xlu1 %v3345_v38  ;;  %v3388_v38 = vcvt.s32.f32 %v3386_v29  ;;  %v3498_v29 = vand.u32 65535, %v9891_v59 }
 0xa92   :  { %v3436_v25 = vcvt.s32.f32 %v3434_v5  ;;  %v3468_v34 = vcvt.s32.f32 %v3466_v11  ;;  %v3546_v11 = vand.u32 65535, %v9941_v13 }
 0xa9a   :  { %v9966_v33 = vpop.xlane.xlu1 %3374 }
 0xa9b   :  { %vm3376_vm10 = vcmp.eq.f32.partialorder %v9762_v1, %v9966_v33 }
 0xa9c   :  { %v3377_v39 = vsel %vm3376_vm10, %v3372_v20, inf }
 0xa9d   :  { %3378 = vmin.xlane.f32.xlu1 %v3377_v39  ;;  %v9972_v9 = vpop.xlane.xlu0 %3358  ;;  %v3420_v39 = vcvt.s32.f32 %v3418_v17  ;;  %v3514_v17 = vand.u32 65535, %v9934_v0 }
 0xa9e   :  { %vm3360_vm14 = vcmp.eq.f32.partialorder %v9782_v62, %v9972_v9 }
 0xa9f   :  { %v3361_v10 = vsel %vm3360_vm14, %v3356_v52, inf }
 0xaa0   :  { %3362 = vmin.xlane.f32.xlu0 %v3361_v10  ;;  %v3452_v10 = vcvt.s32.f32 %v3450_v56 }
 0xaa1   :  { %v9977_v6 = vpop.xlane.xlu1 %3406 }
 0xaa2   :  { %vm3408_vm15 = vcmp.eq.f32.partialorder %v9800_v47, %v9977_v6 }
 0xaa3   :  { %v3409_v1 = vsel %vm3408_vm15, %v3404_v31, inf  ;;  %v3482_v31 = vand.u32 65535, %v9910_v14 }
 0xaa4   :  { %v9982_v48 = vpop.xlane.xlu0 %3390  ;;  %3410 = vmin.xlane.f32.xlu1 %v3409_v1  ;;  %v3500_v1 = vcvt.s32.f32 %v3498_v29 }
 0xaa5   :  { %vm3392_vm12 = vcmp.eq.f32.partialorder %v9820_v12, %v9982_v48  ;;  %v9987_v62 = vpop.xlane.xlu1 %3438  ;;  %v3484_v59 = vcvt.s32.f32 %v3482_v31 }
 0xaa6   :  { %v3393_v20 = vsel %vm3392_vm12, %v3388_v38, inf  ;;  %vm3440_vm1 = vcmp.eq.f32.partialorder %v9822_v50, %v9987_v62 }
 0xaa7   :  { %3394 = vmin.xlane.f32.xlu0 %v3393_v20  ;;  %v3441_v47 = vsel %vm3440_vm1, %v3436_v25, inf  ;;  %v3516_v20 = vcvt.s32.f32 %v3514_v17 }
 0xaa8   :  { %v9992_v24 = vpop.xlane.xlu0 %3422  ;;  %3442 = vmin.xlane.f32.xlu1 %v3441_v47  ;;  %v3548_v47 = vcvt.s32.f32 %v3546_v11 }
 0xaa9   :  { %vm3424_vm2 = vcmp.eq.f32.partialorder %v9834_v60, %v9992_v24 }
 0xaaa   :  { %v3425_v53 = vsel %vm3424_vm2, %v3420_v39, inf  ;;  %v3317_v39 = vcvt.f32.s32 %v9952_v16 }
 0xaab   :  { %v9996_v12 = vpop.xlane.xlu1 %3470  ;;  %3426 = vmin.xlane.f32.xlu0 %v3425_v53  ;;  %v3333_v53 = vcvt.f32.s32 %v9956_v46 }
 0xaac   :  { %vm3472_vm0 = vcmp.eq.f32.partialorder %v9839_v3, %v9996_v12  ;;  %v3530_v3 = vand.u32 65535, %v9914_v45 }
 0xaad   :  { %v3473_v50 = vsel %vm3472_vm0, %v3468_v34, inf  ;;  %v3334_v56 = vshll.u32 %v3333_v53, 16 }
 0xaae   :  { %3474 = vmin.xlane.f32.xlu1 %v3473_v50  ;;  %v3532_v14 = vcvt.s32.f32 %v3530_v3  ;;  %v3318_v50 = vshll.u32 %v3317_v39, 16 }
 0xab8   :  { %v10001_v52 = vpop.xlane.xlu0 %3454 }
 0xab9   :  { %vm3456_vm5 = vcmp.eq.f32.partialorder %v9889_v43, %v10001_v52 }
 0xaba   :  { %v3457_v60 = vsel %vm3456_vm5, %v3452_v10, inf }
 0xabb   :  { %3458 = vmin.xlane.f32.xlu0 %v3457_v60 }
 0xabc   :  { %v10007_v5 = vpop.xlane.xlu1 %3502 }
 0xabd   :  { %vm3504_vm4 = vcmp.eq.f32.partialorder %v9908_v54, %v10007_v5 }
 0xabe   :  { %v3505_v26 = vsel %vm3504_vm4, %v3500_v1, inf }
 0xabf   :  { %v10012_v38 = vpop.xlane.xlu0 %3486  ;;  %3506 = vmin.xlane.f32.xlu1 %v3505_v26 }
 0xac0   :  { %vm3488_vm3 = vcmp.eq.f32.partialorder %v9930_v58, %v10012_v38  ;;  %v10017_v43 = vpop.xlane.xlu1 %3534 }
 0xac1   :  { %v3489_v25 = vsel %vm3488_vm3, %v3484_v59, inf  ;;  %vm3536_vm8 = vcmp.eq.f32.partialorder %v9932_v7, %v10017_v43 }
 0xac2   :  { %3490 = vmin.xlane.f32.xlu0 %v3489_v25  ;;  %v3537_v45 = vsel %vm3536_vm8, %v3532_v14, inf }
 0xac3   :  { %v10021_v54 = vpop.xlane.xlu0 %3518  ;;  %3538 = vmin.xlane.f32.xlu1 %v3537_v45 }
 0xac4   :  { %vm3520_vm9 = vcmp.eq.f32.partialorder %v9943_v30, %v10021_v54 }
 0xac5   :  { %v3521_v0 = vsel %vm3520_vm9, %v3516_v20, inf }
 0xac6   :  { %3522 = vmin.xlane.f32.xlu0 %v3521_v0 }
 0xac7   :  { %v10026_v58 = vpop.xlane.xlu0 %3550 }
 0xac8   :  { %vm3552_vm6 = vcmp.eq.f32.partialorder %v9947_v4, %v10026_v58  ;;  %v10039_v4 = vld [vmem:[#allocation2 + $0x60] sm:$0xff] }
 0xac9   :  { %v3553_v7 = vsel %vm3552_vm6, %v3548_v47, inf }
 0xaca   :  { %3554 = vmin.xlane.f32.xlu0 %v3553_v7  ;;  %v3381_v7 = vcvt.f32.s32 %v9966_v33 }
 0xb0f   :  { %v3315_v34 = vpop.xlane.xlu1 %3314 }
 0xb10   :  { %v3316_v13 = vcvt.f32.s32 %v3315_v34 }
 0xb11   :  { %v3331_v30 = vpop.xlane.xlu0 %3330 }
 0xb12   :  { %v3319_v10 = vadd.s32 %v3318_v50, %v3316_v13  ;;  %v3332_v29 = vcvt.f32.s32 %v3331_v30  ;;  %v3365_v50 = vcvt.f32.s32 %v9972_v9  ;;  %v3382_v30 = vshll.u32 %v3381_v7, 16 }
 0xb13   :  { %v3477_v7 = vcvt.f32.s32 %v9996_v12  ;;  %v10125_v12 = vld [vmem:[#allocation2 + $0x68] sm:$0xff] }
 0xb14   :  { %v10036_v60 = vsel %vm3560_vm7, %v3319_v10, %v9663_v2  ;;  %vm3577_vm11 = vcmp.gt.s32.totalorder %v9665_v42, %v3319_v10  ;;  %vm3578_vm13 = vcmp.gt.s32.totalorder %v10039_v4, %v3319_v10  ;;  %v3335_v16 = vadd.s32 %v3334_v56, %v3332_v29  ;;  %v10050_v2 = vld [vmem:[#allocation2 + $0x8] sm:$0xff] }
 0xb15   :  { %v3609_v46 = vsel %vm3577_vm11, %v9665_v42, 2147483647  ;;  %v3610_v31 = vsel %vm3578_vm13, %v10039_v4, 2147483647  ;;  %v3413_v29 = vcvt.f32.s32 %v9977_v6  ;;  %v3366_v33 = vshll.u32 %v3365_v50, 16 }
 0xb16   :  { %v10047_v1 = vsel %vm3560_vm7, %v3335_v16, %v9674_v61  ;;  %vm3579_vm10 = vcmp.gt.s32.totalorder %v9676_v41, %v3335_v16  ;;  %vm3580_vm14 = vcmp.gt.s32.totalorder %v10050_v2, %v3335_v16  ;;  %vm3641_vm15 = vcmp.lt.s32.totalorder %v3609_v46, %v3610_v31 }
 0xb17   :  { %v10053_v3 = vsel %vm3641_vm15, %v3609_v46, %v3610_v31  ;;  %v3611_v26 = vsel %vm3579_vm10, %v9676_v41, 2147483647  ;;  %v3612_v42 = vsel %vm3580_vm14, %v10050_v2, 2147483647  ;;  %v3349_v61 = vcvt.f32.s32 %v9961_v19  ;;  %v10074_v19 = vld [vmem:[#allocation2 + $0xb0] sm:$0xff] }
 0xb18   :  { %v3644_v59 = vshra.s32 %v10053_v3, 16  ;;  %vm3657_vm12 = vcmp.lt.s32.totalorder %v3611_v26, %v3612_v42  ;;  %v3445_v46 = vcvt.f32.s32 %v9987_v62  ;;  %v3414_v62 = vshll.u32 %v3413_v29, 16 }
 0xb19   :  { %v10058_v17 = vsel %vm3657_vm12, %v3611_v26, %v3612_v42  ;;  %v3350_v11 = vshll.u32 %v3349_v61, 16  ;;  %v10096_v26 = vld [vmem:[#allocation2 + $0xa8] sm:$0xff] }
 0xb1a   :  { %v10061_v14 = vcvt.s32.f32 %v3644_v59  ;;  %v3660_v25 = vshra.s32 %v10058_v17, 16  ;;  %v3347_v20 = vpop.xlane.xlu1 %3346  ;;  %v3429_v59 = vcvt.f32.s32 %v9992_v24 }
 0xb1b   :  { %v3348_v41 = vcvt.f32.s32 %v3347_v20 }
 0xb1c   :  { %3647 = vmin.xlane.f32.xlu1 %v10061_v14  ;;  %v10065_v45 = vcvt.s32.f32 %v3660_v25 }
 0xb1d   :  { %v3351_v0 = vadd.s32 %v3350_v11, %v3348_v41 }
 0xb1e   :  { %3663 = vmin.xlane.f32.xlu0 %v10065_v45 }
 0xb1f   :  { %v10071_v47 = vsel %vm3560_vm7, %v3351_v0, %v9699_v27  ;;  %vm3581_vm1 = vcmp.gt.s32.totalorder %v9701_v49, %v3351_v0  ;;  %vm3582_vm2 = vcmp.gt.s32.totalorder %v10074_v19, %v3351_v0 }
 0xb20   :  { %v3613_v39 = vsel %vm3581_vm1, %v9701_v49, 2147483647  ;;  %v3614_v53 = vsel %vm3582_vm2, %v10074_v19, 2147483647  ;;  %v3397_v49 = vcvt.f32.s32 %v9982_v48 }
 0xb21   :  { %vm3673_vm0 = vcmp.lt.s32.totalorder %v3613_v39, %v3614_v53 }
 0xb22   :  { %v10080_v34 = vsel %vm3673_vm0, %v3613_v39, %v3614_v53  ;;  %v3398_v20 = vshll.u32 %v3397_v49, 16 }
 0xb23   :  { %v3676_v27 = vshra.s32 %v10080_v34, 16 }
 0xb25   :  { %v10084_v10 = vcvt.s32.f32 %v3676_v27  ;;  %v3430_v27 = vshll.u32 %v3429_v59, 16 }
 0xb26   :  { %v3379_v13 = vpop.xlane.xlu1 %3378 }
 0xb27   :  { %v3380_v56 = vcvt.f32.s32 %v3379_v13  ;;  %3679 = vmin.xlane.f32.xlu1 %v10084_v10 }
 0xb29   :  { %v3383_v16 = vadd.s32 %v3382_v30, %v3380_v56  ;;  %v3363_v31 = vpop.xlane.xlu0 %3362 }
 0xb2a   :  { %v3364_v6 = vcvt.f32.s32 %v3363_v31  ;;  %v3478_v31 = vshll.u32 %v3477_v7, 16 }
 0xb2b   :  { %v10093_v9 = vsel %vm3560_vm7, %v3383_v16, %v9720_v32  ;;  %vm3585_vm5 = vcmp.gt.s32.totalorder %v9722_v37, %v3383_v16  ;;  %vm3586_vm4 = vcmp.gt.s32.totalorder %v10096_v26, %v3383_v16  ;;  %v3446_v32 = vshll.u32 %v3445_v46, 16 }
 0xb2c   :  { %v3617_v42 = vsel %vm3585_vm5, %v9722_v37, 2147483647  ;;  %v3618_v48 = vsel %vm3586_vm4, %v10096_v26, 2147483647  ;;  %v3367_v61 = vadd.s32 %v3366_v33, %v3364_v6  ;;  %v10110_v37 = vld [vmem:[#allocation2 + $0x38] sm:$0xff] }
 0xb2d   :  { %v3411_v25 = vpop.xlane.xlu1 %3410  ;;  %vm3705_vm3 = vcmp.lt.s32.totalorder %v3617_v42, %v3618_v48 }
 0xb2e   :  { %v3412_v11 = vcvt.f32.s32 %v3411_v25  ;;  %v10102_v41 = vsel %vm3705_vm3, %v3617_v42, %v3618_v48  ;;  %v10107_v0 = vsel %vm3560_vm7, %v3367_v61, %v9732_v8  ;;  %vm3583_vm8 = vcmp.gt.s32.totalorder %v9734_v57, %v3367_v61 }
 0xb2f   :  { %vm3584_vm9 = vcmp.gt.s32.totalorder %v10110_v37, %v3367_v61  ;;  %v3708_v24 = vshra.s32 %v10102_v41, 16  ;;  %v3615_v50 = vsel %vm3583_vm8, %v9734_v57, 2147483647  ;;  %v10149_v61 = vld [vmem:[#allocation2] sm:$0xff] }
 0xb30   :  { %v3415_v39 = vadd.s32 %v3414_v62, %v3412_v11  ;;  %v3395_v53 = vpop.xlane.xlu0 %3394  ;;  %v3616_v13 = vsel %vm3584_vm9, %v10110_v37, 2147483647  ;;  %v10140_v62 = vld [vmem:[#allocation2 + $0xd8] sm:$0xff] }
 0xb31   :  { %v3396_v30 = vcvt.f32.s32 %v3395_v53  ;;  %v3443_v8 = vpop.xlane.xlu1 %3442  ;;  %v10117_v56 = vcvt.s32.f32 %v3708_v24  ;;  %vm3689_vm6 = vcmp.lt.s32.totalorder %v3615_v50, %v3616_v13 }
 0xb32   :  { %v10122_v29 = vsel %vm3560_vm7, %v3415_v39, %v9747_v22  ;;  %vm3589_vm11 = vcmp.gt.s32.totalorder %v9749_v21, %v3415_v39  ;;  %vm3590_vm13 = vcmp.gt.s32.totalorder %v10125_v12, %v3415_v39  ;;  %v3444_v57 = vcvt.f32.s32 %v3443_v8  ;;  %v10182_v8 = vld [vmem:[#allocation2 + $0xd0] sm:$0xff] }
 0xb33   :  { %v3399_v16 = vadd.s32 %v3398_v20, %v3396_v30  ;;  %3711 = vmin.xlane.f32.xlu1 %v10117_v56  ;;  %v10129_v33 = vsel %vm3689_vm6, %v3615_v50, %v3616_v13  ;;  %v3621_v49 = vsel %vm3589_vm11, %v9749_v21, 2147483647  ;;  %v3622_v46 = vsel %vm3590_vm13, %v10125_v12, 2147483647  ;;  %v10167_v50 = vld [vmem:[#allocation2 + $0x98] sm:$0xff]  ;;  %v12897_v30 = vld [vmem:[#allocation12_spill] sm:$0xff] }
 0xb34   :  { %v3447_v6 = vadd.s32 %v3446_v32, %v3444_v57  ;;  %v3427_v22 = vpop.xlane.xlu0 %3426  ;;  %v3692_v42 = vshra.s32 %v10129_v33, 16  ;;  %vm3737_vm10 = vcmp.lt.s32.totalorder %v3621_v49, %v3622_v46  ;;  %12898 = vst [vmem:[#allocation11_spill] sm:$0xff] %v10182_v8 }
 0xb35   :  { %v10137_v48 = vsel %vm3560_vm7, %v3399_v16, %v9756_v55  ;;  %vm3587_vm14 = vcmp.gt.s32.totalorder %v9758_v36, %v3399_v16  ;;  %vm3588_vm15 = vcmp.gt.s32.totalorder %v10140_v62, %v3399_v16  ;;  %v3428_v21 = vcvt.f32.s32 %v3427_v22 }
 0xb36   :  { %v10146_v59 = vsel %vm3560_vm7, %v3447_v6, %v9774_v44  ;;  %vm3593_vm12 = vcmp.gt.s32.totalorder %v9776_v28, %v3447_v6  ;;  %vm3594_vm1 = vcmp.gt.s32.totalorder %v10149_v61, %v3447_v6  ;;  %v10152_v25 = vcvt.s32.f32 %v3692_v42 }
 0xb37   :  { %v3475_v55 = vpop.xlane.xlu1 %3474  ;;  %v3431_v20 = vadd.s32 %v3430_v27, %v3428_v21  ;;  %v10154_v11 = vsel %vm3737_vm10, %v3621_v49, %v3622_v46  ;;  %v3619_v24 = vsel %vm3587_vm14, %v9758_v36, 2147483647  ;;  %v3620_v7 = vsel %vm3588_vm15, %v10140_v62, 2147483647 }
 0xb38   :  { %v3476_v32 = vcvt.f32.s32 %v3475_v55  ;;  %3695 = vmin.xlane.f32.xlu0 %v10152_v25  ;;  %v3740_v44 = vshra.s32 %v10154_v11, 16  ;;  %v3625_v39 = vsel %vm3593_vm12, %v9776_v28, 2147483647  ;;  %vm3721_vm5 = vcmp.lt.s32.totalorder %v3619_v24, %v3620_v7 }
 0xb39   :  { %v10164_v53 = vsel %vm3560_vm7, %v3431_v20, %v9793_v63  ;;  %vm3591_vm2 = vcmp.gt.s32.totalorder %v9795_v40, %v3431_v20  ;;  %vm3592_vm0 = vcmp.gt.s32.totalorder %v10167_v50, %v3431_v20  ;;  %v3626_v27 = vsel %vm3594_vm1, %v10149_v61, 2147483647 }
 0xb3a   :  { %v3479_v36 = vadd.s32 %v3478_v31, %v3476_v32  ;;  %v10170_v13 = vcvt.s32.f32 %v3740_v44  ;;  %v3623_v28 = vsel %vm3591_vm2, %v9795_v40, 2147483647  ;;  %v10185_v57 = vsel %vm3721_vm5, %v3619_v24, %v3620_v7 }
 0xb3b   :  { %v3724_v16 = vshra.s32 %v10185_v57, 16  ;;  %vm3769_vm8 = vcmp.lt.s32.totalorder %v3625_v39, %v3626_v27  ;;  %v3624_v40 = vsel %vm3592_vm0, %v10167_v50, 2147483647  ;;  %v3461_v55 = vcvt.f32.s32 %v10001_v52 }
 0xb3c   :  { %v10179_v63 = vsel %vm3560_vm7, %v3479_v36, %v9814_v35  ;;  %vm3597_vm4 = vcmp.gt.s32.totalorder %v12897_v30, %v3479_v36  ;;  %vm3598_vm3 = vcmp.gt.s32.totalorder %v10182_v8, %v3479_v36  ;;  %3743 = vmin.xlane.f32.xlu1 %v10170_v13  ;;  %v10191_v46 = vsel %vm3769_vm8, %v3625_v39, %v3626_v27 }
 0xb3d   :  { %v3629_v49 = vsel %vm3597_vm4, %v12897_v30, 2147483647  ;;  %vm3753_vm9 = vcmp.lt.s32.totalorder %v3623_v28, %v3624_v40  ;;  %v3630_v35 = vsel %vm3598_vm3, %v10182_v8, 2147483647  ;;  %v10194_v31 = vcvt.s32.f32 %v3724_v16  ;;  %v12901_v8 = vld [vmem:[#allocation13_spill] sm:$0xff] }
 0xb3e   :  { %v3772_v6 = vshra.s32 %v10191_v46, 16  ;;  %v10197_v22 = vsel %vm3753_vm9, %v3623_v28, %v3624_v40  ;;  %vm3801_vm6 = vcmp.lt.s32.totalorder %v3629_v49, %v3630_v35  ;;  %v3509_v7 = vcvt.f32.s32 %v10007_v5  ;;  %v10223_v5 = vld [vmem:[#allocation2 + $0x10] sm:$0xff] }
 0xb3f   :  { %v3756_v42 = vshra.s32 %v10197_v22, 16  ;;  %v10200_v21 = vsel %vm3801_vm6, %v3629_v49, %v3630_v35  ;;  %3727 = vmin.xlane.f32.xlu0 %v10194_v31  ;;  %v3462_v36 = vshll.u32 %v3461_v55, 16  ;;  %v3493_v30 = vcvt.f32.s32 %v10012_v38  ;;  %v12899_v49 = vld [vmem:[#allocation17_spill] sm:$0xff] }
 0xb40   :  { %v10204_v20 = vcvt.s32.f32 %v3772_v6  ;;  %v3804_v32 = vshra.s32 %v10200_v21, 16  ;;  %v3510_v28 = vshll.u32 %v3509_v7, 16  ;;  %v3541_v16 = vcvt.f32.s32 %v10017_v43 }
 0xb41   :  { %v10207_v24 = vcvt.s32.f32 %v3756_v42  ;;  %v3525_v38 = vcvt.f32.s32 %v10021_v54  ;;  %v3557_v43 = vcvt.f32.s32 %v10026_v58 }
 0xb42   :  { %3775 = vmin.xlane.f32.xlu1 %v10204_v20  ;;  %v10210_v44 = vcvt.s32.f32 %v3804_v32 }
 0xb43   :  { %3759 = vmin.xlane.f32.xlu0 %v10207_v24 }
 0xb44   :  { %v3459_v39 = vpop.xlane.xlu0 %3458 }
 0xb45   :  { %v3460_v27 = vcvt.f32.s32 %v3459_v39  ;;  %v3494_v39 = vshll.u32 %v3493_v30, 16 }
 0xb46   :  { %3807 = vmin.xlane.f32.xlu1 %v10210_v44 }
 0xb47   :  { %v3463_v52 = vadd.s32 %v3462_v36, %v3460_v27  ;;  %v3542_v36 = vshll.u32 %v3541_v16, 16 }
 0xb48   :  { %v3507_v40 = vpop.xlane.xlu1 %3506 }
 0xb49   :  { %v10220_v35 = vsel %vm3560_vm7, %v3463_v52, %v12899_v49  ;;  %vm3595_vm11 = vcmp.gt.s32.totalorder %v9849_v18, %v3463_v52  ;;  %vm3596_vm13 = vcmp.gt.s32.totalorder %v10223_v5, %v3463_v52  ;;  %v3508_v6 = vcvt.f32.s32 %v3507_v40 }
 0xb4a   :  { %12900 = vst [vmem:[#allocation16_spill] sm:$0xff] %v10220_v35  ;;  %v3627_v42 = vsel %vm3595_vm11, %v9849_v18, 2147483647  ;;  %v3628_v55 = vsel %vm3596_vm13, %v10223_v5, 2147483647  ;;  %v10238_v18 = vld [vmem:[#allocation2 + $0xc8] sm:$0xff] }
 0xb4b   :  { %v3511_v32 = vadd.s32 %v3510_v28, %v3508_v6  ;;  %v3491_v7 = vpop.xlane.xlu0 %3490  ;;  %vm3785_vm10 = vcmp.lt.s32.totalorder %v3627_v42, %v3628_v55  ;;  %v3526_v40 = vshll.u32 %v3525_v38, 16  ;;  %v3558_v6 = vshll.u32 %v3557_v43, 16  ;;  %v12909_v43 = vld [vmem:[#allocation10_spill] sm:$0xff] }
 0xb4c   :  { %v3492_v27 = vcvt.f32.s32 %v3491_v7  ;;  %v3539_v49 = vpop.xlane.xlu1 %3538  ;;  %v10230_v35 = vsel %vm3785_vm10, %v3627_v42, %v3628_v55 }
 0xb4d   :  { %v10235_v52 = vsel %vm3560_vm7, %v3511_v32, %v12901_v8  ;;  %vm3601_vm14 = vcmp.gt.s32.totalorder %v9864_v23, %v3511_v32  ;;  %vm3602_vm15 = vcmp.gt.s32.totalorder %v10238_v18, %v3511_v32  ;;  %v3540_v54 = vcvt.f32.s32 %v3539_v49  ;;  %v12903_v8 = vld [vmem:[#allocation20_spill] sm:$0xff]  ;;  %v10250_v32 = vld [vmem:[#allocation2 + $0x70] sm:$0xff] }
 0xb4e   :  { %12902 = vst [vmem:[#allocation12_spill] sm:$0xff] %v10235_v52  ;;  %v3495_v58 = vadd.s32 %v3494_v39, %v3492_v27  ;;  %v3788_v28 = vshra.s32 %v10230_v35, 16  ;;  %v3633_v30 = vsel %vm3601_vm14, %v9864_v23, 2147483647  ;;  %v3634_v16 = vsel %vm3602_vm15, %v10238_v18, 2147483647 }
 0xb4f   :  { %v3543_v42 = vadd.s32 %v3542_v36, %v3540_v54  ;;  %v3523_v55 = vpop.xlane.xlu0 %3522  ;;  %vm3833_vm12 = vcmp.lt.s32.totalorder %v3633_v30, %v3634_v16  ;;  %v12905_v52 = vld [vmem:[#allocation21_spill] sm:$0xff]  ;;  %12906 = vst [vmem:[#allocation13_spill] sm:$0xff] %v10250_v32  ;;  %v12907_v23 = vld [vmem:[#allocation18_spill] sm:$0xff] }
 0xb50   :  { %v10247_v7 = vsel %vm3560_vm7, %v3495_v58, %v12903_v8  ;;  %vm3599_vm1 = vcmp.gt.s32.totalorder %v12905_v52, %v3495_v58  ;;  %vm3600_vm2 = vcmp.gt.s32.totalorder %v10250_v32, %v3495_v58  ;;  %v3524_v39 = vcvt.f32.s32 %v3523_v55  ;;  %v10259_v36 = vld [vmem:[#allocation2 + $0x18] sm:$0xff] }
 0xb51   :  { %12904 = vst [vmem:[#allocation17_spill] sm:$0xff] %v10247_v7  ;;  %v10256_v38 = vsel %vm3560_vm7, %v3543_v42, %v12907_v23  ;;  %vm3605_vm0 = vcmp.gt.s32.totalorder %v12909_v43, %v3543_v42  ;;  %12910 = vst [vmem:[#allocation21_spill] sm:$0xff] %v10259_v36  ;;  %vm3606_vm5 = vcmp.gt.s32.totalorder %v10259_v36, %v3543_v42  ;;  %v10262_v27 = vcvt.s32.f32 %v3788_v28  ;;  %v12911_v42 = vld [vmem:[#allocation19_spill] sm:$0xff] }
 0xb52   :  { %12908 = vst [vmem:[#allocation20_spill] sm:$0xff] %v10256_v38  ;;  %v3527_v49 = vadd.s32 %v3526_v40, %v3524_v39  ;;  %v10264_v54 = vsel %vm3833_vm12, %v3633_v30, %v3634_v16  ;;  %v3631_v8 = vsel %vm3599_vm1, %v12905_v52, 2147483647  ;;  %v3632_v58 = vsel %vm3600_vm2, %v10250_v32, 2147483647  ;;  %v10278_v52 = vld [vmem:[#allocation2 + $0xe0] sm:$0xff] }
 0xb53   :  { %v3555_v55 = vpop.xlane.xlu0 %3554  ;;  %3791 = vmin.xlane.f32.xlu0 %v10262_v27  ;;  %v3836_v23 = vshra.s32 %v10264_v54, 16  ;;  %vm3817_vm4 = vcmp.lt.s32.totalorder %v3631_v8, %v3632_v58  ;;  %v3637_v38 = vsel %vm3605_vm0, %v12909_v43, 2147483647  ;;  %v3638_v7 = vsel %vm3606_vm5, %v10259_v36, 2147483647 }
 0xb54   :  { %v10275_v28 = vsel %vm3560_vm7, %v3527_v49, %v12911_v42  ;;  %vm3603_vm3 = vcmp.gt.s32.totalorder %v9904_v15, %v3527_v49  ;;  %vm3604_vm8 = vcmp.gt.s32.totalorder %v10278_v52, %v3527_v49  ;;  %v3556_v30 = vcvt.f32.s32 %v3555_v55  ;;  %v12913_v49 = vld [vmem:[#allocation14_spill] sm:$0xff] }
 0xb55   :  { %12912 = vst [vmem:[#allocation18_spill] sm:$0xff] %v10275_v28  ;;  %v10281_v16 = vcvt.s32.f32 %v3836_v23  ;;  %v10283_v40 = vsel %vm3817_vm4, %v3631_v8, %v3632_v58  ;;  %vm3865_vm9 = vcmp.lt.s32.totalorder %v3637_v38, %v3638_v7  ;;  %v3635_v39 = vsel %vm3603_vm3, %v9904_v15, 2147483647  ;;  %v12915_v58 = vld [vmem:[#allocation9_spill] sm:$0xff]  ;;  %v12916_v15 = vld [vmem:[#allocation15_spill] sm:$0xff] }
 0xb56   :  { %v3559_v43 = vadd.s32 %v3558_v6, %v3556_v30  ;;  %v3820_v36 = vshra.s32 %v10283_v40, 16  ;;  %v10287_v32 = vsel %vm3865_vm9, %v3637_v38, %v3638_v7  ;;  %v3636_v42 = vsel %vm3604_vm8, %v10278_v52, 2147483647 }
 0xb57   :  { %3839 = vmin.xlane.f32.xlu1 %v10281_v16  ;;  %v3868_v28 = vshra.s32 %v10287_v32, 16  ;;  %vm3849_vm6 = vcmp.lt.s32.totalorder %v3635_v39, %v3636_v42 }
 0xb58   :  { %v10295_v8 = vsel %vm3560_vm7, %v3559_v43, %v12913_v49  ;;  %vm3607_vm11 = vcmp.gt.s32.totalorder %v12915_v58, %v3559_v43  ;;  %vm3608_vm13 = vcmp.gt.s32.totalorder %v12916_v15, %v3559_v43  ;;  %v10299_v6 = vcvt.s32.f32 %v3820_v36 }
 0xb59   :  { %12914 = vst [vmem:[#allocation10_spill] sm:$0xff] %v10295_v8  ;;  %v10301_v7 = vcvt.s32.f32 %v3868_v28  ;;  %v10303_v38 = vsel %vm3849_vm6, %v3635_v39, %v3636_v42  ;;  %v3639_v55 = vsel %vm3607_vm11, %v12915_v58, 2147483647  ;;  %v3640_v23 = vsel %vm3608_vm13, %v12916_v15, 2147483647 }
 0xb5a   :  { %3823 = vmin.xlane.f32.xlu0 %v10299_v6  ;;  %v3852_v30 = vshra.s32 %v10303_v38, 16  ;;  %vm3881_vm7 = vcmp.lt.s32.totalorder %v3639_v55, %v3640_v23  ;;  %v3643_v39 = vand.u32 65535, %v10053_v3  ;;  %v3659_v42 = vand.u32 65535, %v10058_v17 }
 0xb5b   :  { %3871 = vmin.xlane.f32.xlu1 %v10301_v7  ;;  %v10310_v49 = vsel %vm3881_vm7, %v3639_v55, %v3640_v23  ;;  %v3675_v3 = vand.u32 65535, %v10080_v34 }
 0xb5c   :  { %v10312_v43 = vcvt.s32.f32 %v3852_v30  ;;  %v3884_v36 = vshra.s32 %v10310_v49, 16  ;;  %v3645_v15 = vcvt.s32.f32 %v3643_v39  ;;  %v3661_v30 = vcvt.s32.f32 %v3659_v42 }
 0xb5d   :  { %v3677_v17 = vcvt.s32.f32 %v3675_v3 }
 0xb5e   :  { %3855 = vmin.xlane.f32.xlu0 %v10312_v43  ;;  %v10316_v28 = vcvt.s32.f32 %v3884_v36 }
 0xb62   :  { %3887 = vmin.xlane.f32.xlu0 %v10316_v28 }
 0xba5   :  { %v10321_v58 = vpop.xlane.xlu1 %3647 }
 0xba6   :  { %vm3649_vm10 = vcmp.eq.f32.partialorder %v10061_v14, %v10321_v58  ;;  %v3707_v14 = vand.u32 65535, %v10102_v41 }
 0xba7   :  { %v10325_v55 = vpop.xlane.xlu0 %3663  ;;  %v3650_v23 = vsel %vm3649_vm10, %v3645_v15, inf  ;;  %vm3897_vm10 = vcmp.eq.s32.totalorder %v6476_v51, 9 }
 0xba8   :  { %3651 = vmin.xlane.f32.xlu1 %v3650_v23  ;;  %vm3665_vm14 = vcmp.eq.f32.partialorder %v10065_v45, %v10325_v55  ;;  %v3709_v42 = vcvt.s32.f32 %v3707_v14  ;;  %v3691_v45 = vand.u32 65535, %v10129_v33  ;;  %v3771_v33 = vand.u32 65535, %v10191_v46 }
 0xba9   :  { %v3666_v36 = vsel %vm3665_vm14, %v3661_v30, inf  ;;  %v3755_v14 = vand.u32 65535, %v10197_v22 }
 0xbaa   :  { %3667 = vmin.xlane.f32.xlu0 %v3666_v36  ;;  %v3693_v30 = vcvt.s32.f32 %v3691_v45  ;;  %v3739_v36 = vand.u32 65535, %v10154_v11  ;;  %v3773_v45 = vcvt.s32.f32 %v3771_v33 }
 0xbac   :  { %v3741_v3 = vcvt.s32.f32 %v3739_v36 }
 0xbb0   :  { %v10330_v8 = vpop.xlane.xlu1 %3679 }
 0xbb1   :  { %vm3681_vm15 = vcmp.eq.f32.partialorder %v10084_v10, %v10330_v8 }
 0xbb2   :  { %v3682_v39 = vsel %vm3681_vm15, %v3677_v17, inf  ;;  %v3723_v17 = vand.u32 65535, %v10185_v57  ;;  %v3803_v57 = vand.u32 65535, %v10200_v21 }
 0xbb3   :  { %3683 = vmin.xlane.f32.xlu1 %v3682_v39 }
 0xbb4   :  { %v3725_v11 = vcvt.s32.f32 %v3723_v17  ;;  %v3819_v17 = vand.u32 65535, %v10283_v40 }
 0xbbc   :  { %v10335_v15 = vpop.xlane.xlu1 %3711 }
 0xbbd   :  { %vm3713_vm12 = vcmp.eq.f32.partialorder %v10117_v56, %v10335_v15 }
 0xbbe   :  { %v3714_v23 = vsel %vm3713_vm12, %v3709_v42, inf }
 0xbbf   :  { %3715 = vmin.xlane.f32.xlu1 %v3714_v23  ;;  %v3757_v23 = vcvt.s32.f32 %v3755_v14  ;;  %v3851_v14 = vand.u32 65535, %v10303_v38 }
 0xbc1   :  { %v10340_v34 = vpop.xlane.xlu0 %3695 }
 0xbc2   :  { %vm3697_vm1 = vcmp.eq.f32.partialorder %v10152_v25, %v10340_v34 }
 0xbc3   :  { %v3698_v10 = vsel %vm3697_vm1, %v3693_v30, inf  ;;  %v3805_v30 = vcvt.s32.f32 %v3803_v57  ;;  %v3883_v57 = vand.u32 65535, %v10310_v49 }
 0xbc4   :  { %3699 = vmin.xlane.f32.xlu0 %v3698_v10 }
 0xbc5   :  { %v10345_v41 = vpop.xlane.xlu1 %3743 }
 0xbc6   :  { %vm3745_vm2 = vcmp.eq.f32.partialorder %v10170_v13, %v10345_v41 }
 0xbc7   :  { %v3746_v56 = vsel %vm3745_vm2, %v3741_v3, inf  ;;  %v3835_v3 = vand.u32 65535, %v10264_v54  ;;  %v3821_v54 = vcvt.s32.f32 %v3819_v17 }
 0xbc8   :  { %3747 = vmin.xlane.f32.xlu1 %v3746_v56  ;;  %v10351_v39 = vpop.xlane.xlu0 %3727 }
 0xbc9   :  { %vm3729_vm0 = vcmp.eq.f32.partialorder %v10194_v31, %v10351_v39  ;;  %v3837_v33 = vcvt.s32.f32 %v3835_v3 }
 0xbca   :  { %v3730_v25 = vsel %vm3729_vm0, %v3725_v11, inf }
 0xbcb   :  { %v10356_v42 = vpop.xlane.xlu1 %3775  ;;  %3731 = vmin.xlane.f32.xlu0 %v3730_v25 }
 0xbcc   :  { %vm3777_vm5 = vcmp.eq.f32.partialorder %v10204_v20, %v10356_v42  ;;  %v10361_v13 = vpop.xlane.xlu0 %3759  ;;  %v3787_v20 = vand.u32 65535, %v10230_v35 }
 0xbcd   :  { %v3778_v46 = vsel %vm3777_vm5, %v3773_v45, inf  ;;  %vm3761_vm4 = vcmp.eq.f32.partialorder %v10207_v24, %v10361_v13  ;;  %v3853_v45 = vcvt.s32.f32 %v3851_v14 }
 0xbce   :  { %3779 = vmin.xlane.f32.xlu1 %v3778_v46  ;;  %v3762_v22 = vsel %vm3761_vm4, %v3757_v23, inf  ;;  %v3789_v10 = vcvt.s32.f32 %v3787_v20  ;;  %v3885_v46 = vcvt.s32.f32 %v3883_v57  ;;  %v3654_v23 = vcvt.f32.s32 %v10321_v58 }
 0xbcf   :  { %v10365_v31 = vpop.xlane.xlu1 %3807  ;;  %3763 = vmin.xlane.f32.xlu0 %v3762_v22  ;;  %v3670_v22 = vcvt.f32.s32 %v10325_v55 }
 0xbd0   :  { %vm3809_vm3 = vcmp.eq.f32.partialorder %v10210_v44, %v10365_v31  ;;  %v3867_v44 = vand.u32 65535, %v10287_v32 }
 0xbd1   :  { %v3810_v21 = vsel %vm3809_vm3, %v3805_v30, inf  ;;  %v3671_v20 = vshll.u32 %v3670_v22, 16 }
 0xbd2   :  { %3811 = vmin.xlane.f32.xlu1 %v3810_v21  ;;  %v3869_v40 = vcvt.s32.f32 %v3867_v44  ;;  %v3655_v21 = vshll.u32 %v3654_v23, 16  ;;  %v10418_v44 = vld [vmem:[#allocation2 + $0xb8] sm:$0xff] }
 0xbdc   :  { %v10370_v36 = vpop.xlane.xlu0 %3791 }
 0xbdd   :  { %vm3793_vm8 = vcmp.eq.f32.partialorder %v10262_v27, %v10370_v36 }
 0xbde   :  { %v3794_v24 = vsel %vm3793_vm8, %v3789_v10, inf }
 0xbdf   :  { %3795 = vmin.xlane.f32.xlu0 %v3794_v24 }
 0xbe0   :  { %v10376_v56 = vpop.xlane.xlu1 %3839 }
 0xbe1   :  { %vm3841_vm9 = vcmp.eq.f32.partialorder %v10281_v16, %v10376_v56 }
 0xbe2   :  { %v3842_v35 = vsel %vm3841_vm9, %v3837_v33, inf }
 0xbe3   :  { %v10381_v11 = vpop.xlane.xlu0 %3823  ;;  %3843 = vmin.xlane.f32.xlu1 %v3842_v35 }
 0xbe4   :  { %vm3825_vm6 = vcmp.eq.f32.partialorder %v10299_v6, %v10381_v11  ;;  %v10386_v27 = vpop.xlane.xlu1 %3871 }
 0xbe5   :  { %v3826_v25 = vsel %vm3825_vm6, %v3821_v54, inf  ;;  %vm3873_vm11 = vcmp.eq.f32.partialorder %v10301_v7, %v10386_v27 }
 0xbe6   :  { %3827 = vmin.xlane.f32.xlu0 %v3826_v25  ;;  %v3874_v32 = vsel %vm3873_vm11, %v3869_v40, inf }
 0xbe7   :  { %v10390_v16 = vpop.xlane.xlu0 %3855  ;;  %3875 = vmin.xlane.f32.xlu1 %v3874_v32 }
 0xbe8   :  { %vm3857_vm13 = vcmp.eq.f32.partialorder %v10312_v43, %v10390_v16 }
 0xbe9   :  { %v3858_v38 = vsel %vm3857_vm13, %v3853_v45, inf }
 0xbea   :  { %3859 = vmin.xlane.f32.xlu0 %v3858_v38 }
 0xbeb   :  { %v10395_v6 = vpop.xlane.xlu0 %3887 }
 0xbec   :  { %vm3889_vm7 = vcmp.eq.f32.partialorder %v10316_v28, %v10395_v6  ;;  %v10407_v28 = vld [vmem:[#allocation2 + $0x78] sm:$0xff] }
 0xbed   :  { %v3890_v7 = vsel %vm3889_vm7, %v3885_v46, inf }
 0xbee   :  { %3891 = vmin.xlane.f32.xlu0 %v3890_v7  ;;  %v3718_v7 = vcvt.f32.s32 %v10335_v15  ;;  %v3750_v15 = vcvt.f32.s32 %v10345_v41 }
 0xc31   :  { %v3652_v30 = vpop.xlane.xlu1 %3651 }
 0xc32   :  { %v3653_v49 = vcvt.f32.s32 %v3652_v30 }
 0xc33   :  { %v3668_v43 = vpop.xlane.xlu0 %3667 }
 0xc34   :  { %v3656_v10 = vadd.s32 %v3655_v21, %v3653_v49  ;;  %v3669_v3 = vcvt.f32.s32 %v3668_v43 }
 0xc36   :  { %v10405_v24 = vsel %vm3897_vm10, %v3656_v10, %v10036_v60  ;;  %vm3914_vm14 = vcmp.gt.s32.totalorder %v10407_v28, %v3656_v10  ;;  %vm3915_vm15 = vcmp.gt.s32.totalorder %v10039_v4, %v3656_v10  ;;  %v3672_v58 = vadd.s32 %v3671_v20, %v3669_v3 }
 0xc37   :  { %v3946_v55 = vsel %vm3914_vm14, %v10407_v28, 2147483647  ;;  %v3947_v17 = vsel %vm3915_vm15, %v10039_v4, 2147483647  ;;  %v3702_v20 = vcvt.f32.s32 %v10340_v34 }
 0xc38   :  { %v10416_v33 = vsel %vm3897_vm10, %v3672_v58, %v10047_v1  ;;  %vm3916_vm12 = vcmp.gt.s32.totalorder %v10418_v44, %v3672_v58  ;;  %vm3917_vm1 = vcmp.gt.s32.totalorder %v10050_v2, %v3672_v58  ;;  %vm3978_vm2 = vcmp.lt.s32.totalorder %v3946_v55, %v3947_v17  ;;  %v10462_v58 = vld [vmem:[#allocation2 + $0xc0] sm:$0xff] }
 0xc39   :  { %v10422_v60 = vsel %vm3978_vm2, %v3946_v55, %v3947_v17  ;;  %v3948_v35 = vsel %vm3916_vm12, %v10418_v44, 2147483647  ;;  %v3949_v54 = vsel %vm3917_vm1, %v10050_v2, 2147483647  ;;  %v3686_v1 = vcvt.f32.s32 %v10330_v8  ;;  %v10442_v8 = vld [vmem:[#allocation2 + $0x88] sm:$0xff] }
 0xc3a   :  { %v3981_v4 = vshra.s32 %v10422_v60, 16  ;;  %vm3994_vm0 = vcmp.lt.s32.totalorder %v3948_v35, %v3949_v54  ;;  %v3703_v34 = vshll.u32 %v3702_v20, 16 }
 0xc3b   :  { %v10427_v14 = vsel %vm3994_vm0, %v3948_v35, %v3949_v54  ;;  %v3687_v57 = vshll.u32 %v3686_v1, 16  ;;  %v3751_v1 = vshll.u32 %v3750_v15, 16 }
 0xc3c   :  { %v10430_v40 = vcvt.s32.f32 %v3981_v4  ;;  %v3997_v25 = vshra.s32 %v10427_v14, 16  ;;  %v3684_v45 = vpop.xlane.xlu1 %3683 }
 0xc3d   :  { %v3685_v38 = vcvt.f32.s32 %v3684_v45 }
 0xc3e   :  { %3984 = vmin.xlane.f32.xlu1 %v10430_v40  ;;  %v10434_v32 = vcvt.s32.f32 %v3997_v25 }
 0xc3f   :  { %v3688_v2 = vadd.s32 %v3687_v57, %v3685_v38  ;;  %v10477_v38 = vld [vmem:[#allocation2 + $0x90] sm:$0xff] }
 0xc40   :  { %4000 = vmin.xlane.f32.xlu0 %v10434_v32 }
 0xc41   :  { %v10440_v46 = vsel %vm3897_vm10, %v3688_v2, %v10071_v47  ;;  %vm3918_vm5 = vcmp.gt.s32.totalorder %v10442_v8, %v3688_v2  ;;  %vm3919_vm4 = vcmp.gt.s32.totalorder %v10074_v19, %v3688_v2  ;;  %v3719_v47 = vshll.u32 %v3718_v7, 16 }
 0xc42   :  { %v3950_v23 = vsel %vm3918_vm5, %v10442_v8, 2147483647  ;;  %v3951_v22 = vsel %vm3919_vm4, %v10074_v19, 2147483647 }
 0xc43   :  { %vm4010_vm3 = vcmp.lt.s32.totalorder %v3950_v23, %v3951_v22 }
 0xc44   :  { %v10449_v30 = vsel %vm4010_vm3, %v3950_v23, %v3951_v22  ;;  %v3782_v23 = vcvt.f32.s32 %v10356_v42 }
 0xc45   :  { %v4013_v49 = vshra.s32 %v10449_v30, 16 }
 0xc47   :  { %v10453_v10 = vcvt.s32.f32 %v4013_v49  ;;  %v3814_v49 = vcvt.f32.s32 %v10365_v31 }
 0xc48   :  { %v3716_v21 = vpop.xlane.xlu1 %3715 }
 0xc49   :  { %v3717_v43 = vcvt.f32.s32 %v3716_v21  ;;  %4016 = vmin.xlane.f32.xlu1 %v10453_v10 }
 0xc4b   :  { %v3720_v3 = vadd.s32 %v3719_v47, %v3717_v43 }
 0xc4d   :  { %v10460_v19 = vsel %vm3897_vm10, %v3720_v3, %v10093_v9  ;;  %vm3922_vm8 = vcmp.gt.s32.totalorder %v10462_v58, %v3720_v3  ;;  %vm3923_vm9 = vcmp.gt.s32.totalorder %v10096_v26, %v3720_v3  ;;  %v3700_v55 = vpop.xlane.xlu0 %3699  ;;  %v3734_v9 = vcvt.f32.s32 %v10351_v39 }
 0xc4e   :  { %v3701_v17 = vcvt.f32.s32 %v3700_v55  ;;  %v3954_v35 = vsel %vm3922_vm8, %v10462_v58, 2147483647  ;;  %v3955_v54 = vsel %vm3923_vm9, %v10096_v26, 2147483647  ;;  %v3783_v55 = vshll.u32 %v3782_v23, 16 }
 0xc4f   :  { %vm4042_vm6 = vcmp.lt.s32.totalorder %v3954_v35, %v3955_v54  ;;  %v3735_v21 = vshll.u32 %v3734_v9, 16 }
 0xc50   :  { %v3704_v41 = vadd.s32 %v3703_v34, %v3701_v17  ;;  %v10468_v4 = vsel %vm4042_vm6, %v3954_v35, %v3955_v54  ;;  %v3815_v35 = vshll.u32 %v3814_v49, 16 }
 0xc51   :  { %v3748_v25 = vpop.xlane.xlu1 %3747  ;;  %v4045_v45 = vshra.s32 %v10468_v4, 16 }
 0xc52   :  { %v10475_v57 = vsel %vm3897_vm10, %v3704_v41, %v10107_v0  ;;  %vm3920_vm11 = vcmp.gt.s32.totalorder %v10477_v38, %v3704_v41  ;;  %vm3921_vm13 = vcmp.gt.s32.totalorder %v10110_v37, %v3704_v41  ;;  %v3749_v26 = vcvt.f32.s32 %v3748_v25  ;;  %v10512_v25 = vld [vmem:[#allocation2 + $0x20] sm:$0xff] }
 0xc53   :  { %v10481_v2 = vcvt.s32.f32 %v4045_v45  ;;  %v3952_v7 = vsel %vm3920_vm11, %v10477_v38, 2147483647  ;;  %v3953_v39 = vsel %vm3921_vm13, %v10110_v37, 2147483647  ;;  %v3766_v0 = vcvt.f32.s32 %v10361_v13  ;;  %v10496_v37 = vld [vmem:[#allocation2 + $0xe8] sm:$0xff] }
 0xc54   :  { %v3752_v22 = vadd.s32 %v3751_v1, %v3749_v26  ;;  %vm4026_vm7 = vcmp.lt.s32.totalorder %v3952_v7, %v3953_v39  ;;  %v3732_v47 = vpop.xlane.xlu0 %3731 }
 0xc55   :  { %4048 = vmin.xlane.f32.xlu1 %v10481_v2  ;;  %v10489_v43 = vsel %vm4026_vm7, %v3952_v7, %v3953_v39  ;;  %v3733_v42 = vcvt.f32.s32 %v3732_v47 }
 0xc56   :  { %v10494_v20 = vsel %vm3897_vm10, %v3752_v22, %v10122_v29  ;;  %vm3926_vm14 = vcmp.gt.s32.totalorder %v10496_v37, %v3752_v22  ;;  %vm3927_vm15 = vcmp.gt.s32.totalorder %v10125_v12, %v3752_v22  ;;  %v4029_v31 = vshra.s32 %v10489_v43, 16  ;;  %v10525_v22 = vld [vmem:[#allocation2 + $0x50] sm:$0xff] }
 0xc57   :  { %v3780_v13 = vpop.xlane.xlu1 %3779  ;;  %v3958_v3 = vsel %vm3926_vm14, %v10496_v37, 2147483647  ;;  %v3959_v15 = vsel %vm3927_vm15, %v10125_v12, 2147483647  ;;  %v3736_v34 = vadd.s32 %v3735_v21, %v3733_v42  ;;  %v3767_v29 = vshll.u32 %v3766_v0, 16 }
 0xc58   :  { %v3781_v17 = vcvt.f32.s32 %v3780_v13  ;;  %vm4074_vm12 = vcmp.lt.s32.totalorder %v3958_v3, %v3959_v15  ;;  %v3764_v54 = vpop.xlane.xlu0 %3763  ;;  %v10503_v41 = vcvt.s32.f32 %v4029_v31  ;;  %v10540_v31 = vld [vmem:[#allocation2 + $0x80] sm:$0xff] }
 0xc59   :  { %v10505_v1 = vsel %vm4074_vm12, %v3958_v3, %v3959_v15  ;;  %v10510_v9 = vsel %vm3897_vm10, %v3736_v34, %v10137_v48  ;;  %vm3924_vm1 = vcmp.gt.s32.totalorder %v10512_v25, %v3736_v34  ;;  %vm3925_vm2 = vcmp.gt.s32.totalorder %v10140_v62, %v3736_v34 }
 0xc5a   :  { %v3784_v12 = vadd.s32 %v3783_v55, %v3781_v17  ;;  %v3765_v45 = vcvt.f32.s32 %v3764_v54  ;;  %4032 = vmin.xlane.f32.xlu0 %v10503_v41  ;;  %v4077_v7 = vshra.s32 %v10505_v1, 16  ;;  %v3956_v39 = vsel %vm3924_vm1, %v10512_v25, 2147483647 }
 0xc5b   :  { %v3812_v26 = vpop.xlane.xlu1 %3811  ;;  %v3957_v23 = vsel %vm3925_vm2, %v10140_v62, 2147483647 }
 0xc5c   :  { %v10523_v48 = vsel %vm3897_vm10, %v3784_v12, %v10146_v59  ;;  %vm3930_vm0 = vcmp.gt.s32.totalorder %v10525_v22, %v3784_v12  ;;  %vm3931_vm5 = vcmp.gt.s32.totalorder %v10149_v61, %v3784_v12  ;;  %v3813_v21 = vcvt.f32.s32 %v3812_v26 }
 0xc5d   :  { %v3768_v0 = vadd.s32 %v3767_v29, %v3765_v45  ;;  %v10529_v49 = vcvt.s32.f32 %v4077_v7  ;;  %vm4058_vm4 = vcmp.lt.s32.totalorder %v3956_v39, %v3957_v23  ;;  %v3962_v47 = vsel %vm3930_vm0, %v10525_v22, 2147483647 }
 0xc5e   :  { %v3816_v42 = vadd.s32 %v3815_v35, %v3813_v21  ;;  %v10532_v62 = vsel %vm4058_vm4, %v3956_v39, %v3957_v23  ;;  %v3963_v13 = vsel %vm3931_vm5, %v10149_v61, 2147483647  ;;  %v10551_v61 = vld [vmem:[#allocation2 + $0x28] sm:$0xff]  ;;  %v3798_v45 = vcvt.f32.s32 %v10370_v36 }
 0xc5f   :  { %v10538_v59 = vsel %vm3897_vm10, %v3768_v0, %v10164_v53  ;;  %vm3928_vm3 = vcmp.gt.s32.totalorder %v10540_v31, %v3768_v0  ;;  %vm3929_vm8 = vcmp.gt.s32.totalorder %v10167_v50, %v3768_v0  ;;  %4080 = vmin.xlane.f32.xlu1 %v10529_v49  ;;  %v4061_v3 = vshra.s32 %v10532_v62, 16  ;;  %12917 = vst [vmem:[#allocation19_spill] sm:$0xff] %v10551_v61  ;;  %v12918_v53 = vld [vmem:[#allocation11_spill] sm:$0xff] }
 0xc60   :  { %v10549_v15 = vsel %vm3897_vm10, %v3816_v42, %v10179_v63  ;;  %vm3934_vm9 = vcmp.gt.s32.totalorder %v10551_v61, %v3816_v42  ;;  %vm3935_vm6 = vcmp.gt.s32.totalorder %v12918_v53, %v3816_v42  ;;  %vm4106_vm11 = vcmp.lt.s32.totalorder %v3962_v47, %v3963_v13 }
 0xc61   :  { %v10555_v55 = vcvt.s32.f32 %v4061_v3  ;;  %v10557_v34 = vsel %vm4106_vm11, %v3962_v47, %v3963_v13  ;;  %v3960_v17 = vsel %vm3928_vm3, %v10540_v31, 2147483647  ;;  %v3961_v29 = vsel %vm3929_vm8, %v10167_v50, 2147483647 }
 0xc62   :  { %v4109_v35 = vshra.s32 %v10557_v34, 16  ;;  %vm4090_vm13 = vcmp.lt.s32.totalorder %v3960_v17, %v3961_v29  ;;  %v3966_v63 = vsel %vm3934_vm9, %v10551_v61, 2147483647  ;;  %v3967_v54 = vsel %vm3935_vm6, %v12918_v53, 2147483647  ;;  %v12921_v61 = vld [vmem:[#allocation12_spill] sm:$0xff] }
 0xc63   :  { %4064 = vmin.xlane.f32.xlu0 %v10555_v55  ;;  %v10565_v12 = vsel %vm4090_vm13, %v3960_v17, %v3961_v29  ;;  %vm4138_vm7 = vcmp.lt.s32.totalorder %v3966_v63, %v3967_v54  ;;  %v3846_v21 = vcvt.f32.s32 %v10376_v56  ;;  %v3799_v42 = vshll.u32 %v3798_v45, 16 }
 0xc64   :  { %v10568_v26 = vcvt.s32.f32 %v4109_v35  ;;  %v4093_v7 = vshra.s32 %v10565_v12, 16  ;;  %v10571_v39 = vsel %vm4138_vm7, %v3966_v63, %v3967_v54  ;;  %v3830_v53 = vcvt.f32.s32 %v10381_v11  ;;  %v12919_v35 = vld [vmem:[#allocation16_spill] sm:$0xff]  ;;  %v10589_v63 = vld [vmem:[#allocation2 + $0xa0] sm:$0xff] }
 0xc65   :  { %v4141_v50 = vshra.s32 %v10571_v39, 16  ;;  %v3847_v3 = vshll.u32 %v3846_v21, 16  ;;  %v3878_v17 = vcvt.f32.s32 %v10386_v27  ;;  %v3862_v11 = vcvt.f32.s32 %v10390_v16 }
 0xc66   :  { %4112 = vmin.xlane.f32.xlu1 %v10568_v26  ;;  %v10575_v23 = vcvt.s32.f32 %v4093_v7  ;;  %v3894_v27 = vcvt.f32.s32 %v10395_v6 }
 0xc67   :  { %v10578_v47 = vcvt.s32.f32 %v4141_v50 }
 0xc68   :  { %v3796_v0 = vpop.xlane.xlu0 %3795  ;;  %4096 = vmin.xlane.f32.xlu0 %v10575_v23 }
 0xc69   :  { %v3797_v13 = vcvt.f32.s32 %v3796_v0  ;;  %v3831_v0 = vshll.u32 %v3830_v53, 16 }
 0xc6a   :  { %4144 = vmin.xlane.f32.xlu1 %v10578_v47 }
 0xc6b   :  { %v3800_v36 = vadd.s32 %v3799_v42, %v3797_v13  ;;  %v3879_v42 = vshll.u32 %v3878_v17, 16  ;;  %v3863_v17 = vshll.u32 %v3862_v11, 16  ;;  %v10625_v11 = vld [vmem:[#allocation2 + $0x48] sm:$0xff] }
 0xc6c   :  { %v3844_v29 = vpop.xlane.xlu1 %3843  ;;  %12929 = vst [vmem:[#allocation12_spill] sm:$0xff] %v10625_v11 }
 0xc6d   :  { %v10587_v56 = vsel %vm3897_vm10, %v3800_v36, %v12919_v35  ;;  %vm3932_vm14 = vcmp.gt.s32.totalorder %v10589_v63, %v3800_v36  ;;  %vm3933_vm15 = vcmp.gt.s32.totalorder %v10223_v5, %v3800_v36  ;;  %v3845_v54 = vcvt.f32.s32 %v3844_v29  ;;  %v10604_v29 = vld [vmem:[#allocation2 + $0x40] sm:$0xff] }
 0xc6e   :  { %12920 = vst [vmem:[#allocation14_spill] sm:$0xff] %v10587_v56  ;;  %v3964_v45 = vsel %vm3932_vm14, %v10589_v63, 2147483647  ;;  %v3965_v7 = vsel %vm3933_vm15, %v10223_v5, 2147483647 }
 0xc6f   :  { %v3848_v50 = vadd.s32 %v3847_v3, %v3845_v54  ;;  %v3828_v21 = vpop.xlane.xlu0 %3827  ;;  %vm4122_vm12 = vcmp.lt.s32.totalorder %v3964_v45, %v3965_v7  ;;  %v3895_v54 = vshll.u32 %v3894_v27, 16  ;;  %v12930_v27 = vld [vmem:[#allocation21_spill] sm:$0xff] }
 0xc70   :  { %v3829_v13 = vcvt.f32.s32 %v3828_v21  ;;  %v3876_v35 = vpop.xlane.xlu1 %3875  ;;  %v10597_v56 = vsel %vm4122_vm12, %v3964_v45, %v3965_v7 }
 0xc71   :  { %v10602_v36 = vsel %vm3897_vm10, %v3848_v50, %v12921_v61  ;;  %vm3938_vm1 = vcmp.gt.s32.totalorder %v10604_v29, %v3848_v50  ;;  %vm3939_vm2 = vcmp.gt.s32.totalorder %v10238_v18, %v3848_v50  ;;  %v3877_v5 = vcvt.f32.s32 %v3876_v35  ;;  %v12923_v61 = vld [vmem:[#allocation17_spill] sm:$0xff] }
 0xc72   :  { %12922 = vst [vmem:[#allocation9_spill] sm:$0xff] %v10602_v36  ;;  %v3832_v16 = vadd.s32 %v3831_v0, %v3829_v13  ;;  %v4125_v6 = vshra.s32 %v10597_v56, 16  ;;  %v3970_v3 = vsel %vm3938_vm1, %v10604_v29, 2147483647  ;;  %v3971_v53 = vsel %vm3939_vm2, %v10238_v18, 2147483647 }
 0xc73   :  { %v3880_v45 = vadd.s32 %v3879_v42, %v3877_v5  ;;  %v3860_v7 = vpop.xlane.xlu0 %3859  ;;  %vm4170_vm0 = vcmp.lt.s32.totalorder %v3970_v3, %v3971_v53  ;;  %v10616_v36 = vld [vmem:[#allocation2 + $0x58] sm:$0xff]  ;;  %v12926_v50 = vld [vmem:[#allocation13_spill] sm:$0xff]  ;;  %v12927_v13 = vld [vmem:[#allocation20_spill] sm:$0xff] }
 0xc74   :  { %v10614_v21 = vsel %vm3897_vm10, %v3832_v16, %v12923_v61  ;;  %12925 = vst [vmem:[#allocation11_spill] sm:$0xff] %v10616_v36  ;;  %vm3936_vm5 = vcmp.gt.s32.totalorder %v10616_v36, %v3832_v16  ;;  %vm3937_vm4 = vcmp.gt.s32.totalorder %v12926_v50, %v3832_v16  ;;  %v3861_v0 = vcvt.f32.s32 %v3860_v7 }
 0xc75   :  { %12924 = vst [vmem:[#allocation15_spill] sm:$0xff] %v10614_v21  ;;  %v10623_v18 = vsel %vm3897_vm10, %v3880_v45, %v12927_v13  ;;  %vm3942_vm3 = vcmp.gt.s32.totalorder %v10625_v11, %v3880_v45  ;;  %vm3943_vm8 = vcmp.gt.s32.totalorder %v12930_v27, %v3880_v45  ;;  %v10629_v42 = vcvt.s32.f32 %v4125_v6  ;;  %v12931_v45 = vld [vmem:[#allocation18_spill] sm:$0xff] }
 0xc76   :  { %12928 = vst [vmem:[#allocation16_spill] sm:$0xff] %v10623_v18  ;;  %v3864_v35 = vadd.s32 %v3863_v17, %v3861_v0  ;;  %v10631_v5 = vsel %vm4170_vm0, %v3970_v3, %v3971_v53  ;;  %v3968_v61 = vsel %vm3936_vm5, %v10616_v36, 2147483647  ;;  %v3969_v16 = vsel %vm3937_vm4, %v12926_v50, 2147483647  ;;  %v10644_v3 = vld [vmem:[#allocation2 + $0xf0] sm:$0xff] }
 0xc77   :  { %v3892_v7 = vpop.xlane.xlu0 %3891  ;;  %4128 = vmin.xlane.f32.xlu0 %v10629_v42  ;;  %v4173_v13 = vshra.s32 %v10631_v5, 16  ;;  %vm4154_vm9 = vcmp.lt.s32.totalorder %v3968_v61, %v3969_v16  ;;  %v3974_v18 = vsel %vm3942_vm3, %v10625_v11, 2147483647  ;;  %v3975_v21 = vsel %vm3943_vm8, %v12930_v27, 2147483647 }
 0xc78   :  { %v10642_v6 = vsel %vm3897_vm10, %v3864_v35, %v12931_v45  ;;  %vm3940_vm6 = vcmp.gt.s32.totalorder %v10644_v3, %v3864_v35  ;;  %vm3941_vm11 = vcmp.gt.s32.totalorder %v10278_v52, %v3864_v35  ;;  %v3893_v53 = vcvt.f32.s32 %v3892_v7  ;;  %v12933_v35 = vld [vmem:[#allocation10_spill] sm:$0xff] }
 0xc79   :  { %12932 = vst [vmem:[#allocation17_spill] sm:$0xff] %v10642_v6  ;;  %v10648_v17 = vcvt.s32.f32 %v4173_v13  ;;  %v10650_v50 = vsel %vm4154_vm9, %v3968_v61, %v3969_v16  ;;  %vm4202_vm13 = vcmp.lt.s32.totalorder %v3974_v18, %v3975_v21  ;;  %v3972_v0 = vsel %vm3940_vm6, %v10644_v3, 2147483647  ;;  %v10664_v16 = vld [vmem:[#allocation2 + $0x30] sm:$0xff] }
 0xc7a   :  { %v3896_v27 = vadd.s32 %v3895_v54, %v3893_v53  ;;  %v4157_v11 = vshra.s32 %v10650_v50, 16  ;;  %v10654_v36 = vsel %vm4202_vm13, %v3974_v18, %v3975_v21  ;;  %v3973_v45 = vsel %vm3941_vm11, %v10278_v52, 2147483647  ;;  %12935 = vst [vmem:[#allocation20_spill] sm:$0xff] %v10664_v16  ;;  %v10667_v54 = vld [vmem:[#allocation2 + $0xf8] sm:$0xff] }
 0xc7b   :  { %4176 = vmin.xlane.f32.xlu1 %v10648_v17  ;;  %v4205_v6 = vshra.s32 %v10654_v36, 16  ;;  %vm4186_vm7 = vcmp.lt.s32.totalorder %v3972_v0, %v3973_v45  ;;  %12936 = vst [vmem:[#allocation21_spill] sm:$0xff] %v10667_v54 }
 0xc7c   :  { %v10662_v61 = vsel %vm3897_vm10, %v3896_v27, %v12933_v35  ;;  %vm3944_vm14 = vcmp.gt.s32.totalorder %v10664_v16, %v3896_v27  ;;  %vm3945_vm15 = vcmp.gt.s32.totalorder %v10667_v54, %v3896_v27  ;;  %v10670_v21 = vcvt.s32.f32 %v4157_v11 }
 0xc7d   :  { %12934 = vst [vmem:[#allocation13_spill] sm:$0xff] %v10662_v61  ;;  %v10672_v52 = vcvt.s32.f32 %v4205_v6  ;;  %v10674_v18 = vsel %vm4186_vm7, %v3972_v0, %v3973_v45  ;;  %v3976_v7 = vsel %vm3944_vm14, %v10664_v16, 2147483647  ;;  %v3977_v13 = vsel %vm3945_vm15, %v10667_v54, 2147483647 }
 0xc7e   :  { %4160 = vmin.xlane.f32.xlu0 %v10670_v21  ;;  %v4189_v53 = vshra.s32 %v10674_v18, 16  ;;  %vm4218_vm10 = vcmp.lt.s32.totalorder %v3976_v7, %v3977_v13  ;;  %v3980_v0 = vand.u32 65535, %v10422_v60  ;;  %v3996_v45 = vand.u32 65535, %v10427_v14 }
 0xc7f   :  { %4208 = vmin.xlane.f32.xlu1 %v10672_v52  ;;  %v10681_v35 = vsel %vm4218_vm10, %v3976_v7, %v3977_v13  ;;  %v4012_v60 = vand.u32 65535, %v10449_v30 }
 0xc80   :  { %v10683_v27 = vcvt.s32.f32 %v4189_v53  ;;  %v4221_v11 = vshra.s32 %v10681_v35, 16  ;;  %v3982_v16 = vcvt.s32.f32 %v3980_v0  ;;  %v3998_v53 = vcvt.s32.f32 %v3996_v45 }
 0xc81   :  { %v4014_v14 = vcvt.s32.f32 %v4012_v60 }
 0xc82   :  { %4192 = vmin.xlane.f32.xlu0 %v10683_v27  ;;  %v10687_v6 = vcvt.s32.f32 %v4221_v11 }
 0xc86   :  { %4224 = vmin.xlane.f32.xlu0 %v10687_v6 }
 0xcc7   :  { %v10692_v54 = vpop.xlane.xlu1 %3984 }
 0xcc8   :  { %vm3986_vm12 = vcmp.eq.f32.partialorder %v10430_v40, %v10692_v54  ;;  %v4044_v40 = vand.u32 65535, %v10468_v4 }
 0xcc9   :  { %v10696_v7 = vpop.xlane.xlu0 %4000  ;;  %v3987_v13 = vsel %vm3986_vm12, %v3982_v16, inf  ;;  %vm4234_vm12 = vcmp.eq.s32.totalorder %v6476_v51, 10 }
 0xcca   :  { %3988 = vmin.xlane.f32.xlu1 %v3987_v13  ;;  %vm4002_vm1 = vcmp.eq.f32.partialorder %v10434_v32, %v10696_v7  ;;  %v4046_v45 = vcvt.s32.f32 %v4044_v40  ;;  %v4028_v13 = vand.u32 65535, %v10489_v43  ;;  %v4108_v43 = vand.u32 65535, %v10557_v34 }
 0xccb   :  { %v4003_v11 = vsel %vm4002_vm1, %v3998_v53, inf }
 0xccc   :  { %4004 = vmin.xlane.f32.xlu0 %v4003_v11  ;;  %v4030_v53 = vcvt.s32.f32 %v4028_v13  ;;  %v4076_v11 = vand.u32 65535, %v10505_v1 }
 0xcce   :  { %v4078_v60 = vcvt.s32.f32 %v4076_v11 }
 0xcd2   :  { %v10701_v61 = vpop.xlane.xlu1 %4016 }
 0xcd3   :  { %vm4018_vm2 = vcmp.eq.f32.partialorder %v10453_v10, %v10701_v61 }
 0xcd4   :  { %v4019_v0 = vsel %vm4018_vm2, %v4014_v14, inf  ;;  %v4060_v14 = vand.u32 65535, %v10532_v62  ;;  %v4110_v62 = vcvt.s32.f32 %v4108_v43 }
 0xcd5   :  { %4020 = vmin.xlane.f32.xlu1 %v4019_v0 }
 0xcd6   :  { %v4062_v1 = vcvt.s32.f32 %v4060_v14  ;;  %v4156_v14 = vand.u32 65535, %v10650_v50 }
 0xcde   :  { %v10706_v16 = vpop.xlane.xlu1 %4048 }
 0xcdf   :  { %vm4050_vm0 = vcmp.eq.f32.partialorder %v10481_v2, %v10706_v16 }
 0xce0   :  { %v4051_v32 = vsel %vm4050_vm0, %v4046_v45, inf }
 0xce1   :  { %4052 = vmin.xlane.f32.xlu1 %v4051_v32  ;;  %v4140_v32 = vand.u32 65535, %v10571_v39 }
 0xce3   :  { %v10711_v30 = vpop.xlane.xlu0 %4032 }
 0xce4   :  { %vm4034_vm5 = vcmp.eq.f32.partialorder %v10503_v41, %v10711_v30  ;;  %v4092_v41 = vand.u32 65535, %v10565_v12 }
 0xce5   :  { %v4035_v10 = vsel %vm4034_vm5, %v4030_v53, inf  ;;  %v4142_v53 = vcvt.s32.f32 %v4140_v32  ;;  %v4220_v32 = vand.u32 65535, %v10681_v35 }
 0xce6   :  { %4036 = vmin.xlane.f32.xlu0 %v4035_v10  ;;  %v4094_v13 = vcvt.s32.f32 %v4092_v41  ;;  %v4188_v41 = vand.u32 65535, %v10674_v18 }
 0xce8   :  { %v10716_v4 = vpop.xlane.xlu1 %4080 }
 0xce9   :  { %vm4082_vm4 = vcmp.eq.f32.partialorder %v10529_v49, %v10716_v4 }
 0xcea   :  { %v4083_v2 = vsel %vm4082_vm4, %v4078_v60, inf  ;;  %v4172_v60 = vand.u32 65535, %v10631_v5  ;;  %v4158_v5 = vcvt.s32.f32 %v4156_v14 }
 0xceb   :  { %4084 = vmin.xlane.f32.xlu1 %v4083_v2 }
 0xcec   :  { %v10722_v0 = vpop.xlane.xlu0 %4064  ;;  %v4174_v43 = vcvt.s32.f32 %v4172_v60 }
 0xced   :  { %vm4066_vm3 = vcmp.eq.f32.partialorder %v10555_v55, %v10722_v0 }
 0xcee   :  { %v4067_v40 = vsel %vm4066_vm3, %v4062_v1, inf }
 0xcef   :  { %4068 = vmin.xlane.f32.xlu0 %v4067_v40  ;;  %v10727_v45 = vpop.xlane.xlu1 %4112 }
 0xcf0   :  { %vm4114_vm8 = vcmp.eq.f32.partialorder %v10568_v26, %v10727_v45  ;;  %v4124_v26 = vand.u32 65535, %v10597_v56 }
 0xcf1   :  { %v10732_v49 = vpop.xlane.xlu0 %4096  ;;  %v4115_v34 = vsel %vm4114_vm8, %v4110_v62, inf  ;;  %v4190_v62 = vcvt.s32.f32 %v4188_v41 }
 0xcf2   :  { %4116 = vmin.xlane.f32.xlu1 %v4115_v34  ;;  %vm4098_vm9 = vcmp.eq.f32.partialorder %v10575_v23, %v10732_v49  ;;  %v4126_v10 = vcvt.s32.f32 %v4124_v26  ;;  %v4222_v34 = vcvt.s32.f32 %v4220_v32 }
 0xcf3   :  { %v4099_v55 = vsel %vm4098_vm9, %v4094_v13, inf  ;;  %v10736_v12 = vpop.xlane.xlu1 %4144  ;;  %v3991_v13 = vcvt.f32.s32 %v10692_v54 }
 0xcf4   :  { %4100 = vmin.xlane.f32.xlu0 %v4099_v55  ;;  %vm4146_vm6 = vcmp.eq.f32.partialorder %v10578_v47, %v10736_v12  ;;  %v4204_v47 = vand.u32 65535, %v10654_v36  ;;  %v4007_v55 = vcvt.f32.s32 %v10696_v7 }
 0xcf5   :  { %v4147_v39 = vsel %vm4146_vm6, %v4142_v53, inf }
 0xcf6   :  { %4148 = vmin.xlane.f32.xlu1 %v4147_v39  ;;  %v4206_v50 = vcvt.s32.f32 %v4204_v47  ;;  %v3992_v39 = vshll.u32 %v3991_v13, 16  ;;  %v4008_v26 = vshll.u32 %v4007_v55, 16 }
 0xd00   :  { %v10741_v11 = vpop.xlane.xlu0 %4128 }
 0xd01   :  { %vm4130_vm11 = vcmp.eq.f32.partialorder %v10629_v42, %v10741_v11 }
 0xd02   :  { %v4131_v23 = vsel %vm4130_vm11, %v4126_v10, inf }
 0xd03   :  { %4132 = vmin.xlane.f32.xlu0 %v4131_v23 }
 0xd04   :  { %v10747_v2 = vpop.xlane.xlu1 %4176 }
 0xd05   :  { %vm4178_vm13 = vcmp.eq.f32.partialorder %v10648_v17, %v10747_v2 }
 0xd06   :  { %v4179_v56 = vsel %vm4178_vm13, %v4174_v43, inf }
 0xd07   :  { %v10752_v1 = vpop.xlane.xlu0 %4160  ;;  %4180 = vmin.xlane.f32.xlu1 %v4179_v56 }
 0xd08   :  { %vm4162_vm7 = vcmp.eq.f32.partialorder %v10670_v21, %v10752_v1  ;;  %v10757_v42 = vpop.xlane.xlu1 %4208 }
 0xd09   :  { %v4163_v40 = vsel %vm4162_vm7, %v4158_v5, inf  ;;  %vm4210_vm14 = vcmp.eq.f32.partialorder %v10672_v52, %v10757_v42 }
 0xd0a   :  { %4164 = vmin.xlane.f32.xlu0 %v4163_v40  ;;  %v4211_v36 = vsel %vm4210_vm14, %v4206_v50, inf }
 0xd0b   :  { %v10761_v17 = vpop.xlane.xlu0 %4192  ;;  %4212 = vmin.xlane.f32.xlu1 %v4211_v36 }
 0xd0c   :  { %vm4194_vm15 = vcmp.eq.f32.partialorder %v10683_v27, %v10761_v17 }
 0xd0d   :  { %v4195_v18 = vsel %vm4194_vm15, %v4190_v62, inf }
 0xd0e   :  { %4196 = vmin.xlane.f32.xlu0 %v4195_v18 }
 0xd0f   :  { %v10766_v21 = vpop.xlane.xlu0 %4224 }
 0xd10   :  { %vm4226_vm10 = vcmp.eq.f32.partialorder %v10687_v6, %v10766_v21  ;;  %v10779_v6 = vld [vmem:[#allocation2 + $0x60] sm:$0xff] }
 0xd11   :  { %v4227_v52 = vsel %vm4226_vm10, %v4222_v34, inf }
 0xd12   :  { %4228 = vmin.xlane.f32.xlu0 %v4227_v52  ;;  %v4055_v52 = vcvt.f32.s32 %v10706_v16  ;;  %v10833_v16 = vld [vmem:[#allocation2 + $0xa8] sm:$0xff] }
 0xd53   :  { %v3989_v53 = vpop.xlane.xlu1 %3988 }
 0xd54   :  { %v3990_v35 = vcvt.f32.s32 %v3989_v53 }
 0xd55   :  { %v4005_v27 = vpop.xlane.xlu0 %4004 }
 0xd56   :  { %v3993_v10 = vadd.s32 %v3992_v39, %v3990_v35  ;;  %v4006_v60 = vcvt.f32.s32 %v4005_v27 }
 0xd58   :  { %v10776_v23 = vsel %vm4234_vm12, %v3993_v10, %v10405_v24  ;;  %vm4251_vm1 = vcmp.gt.s32.totalorder %v10407_v28, %v3993_v10  ;;  %vm4252_vm2 = vcmp.gt.s32.totalorder %v10779_v6, %v3993_v10  ;;  %v4009_v54 = vadd.s32 %v4008_v26, %v4006_v60  ;;  %v10790_v24 = vld [vmem:[#allocation2 + $0x8] sm:$0xff] }
 0xd59   :  { %v4283_v7 = vsel %vm4251_vm1, %v10407_v28, 2147483647  ;;  %v4284_v14 = vsel %vm4252_vm2, %v10779_v6, 2147483647  ;;  %v4039_v10 = vcvt.f32.s32 %v10711_v30 }
 0xd5a   :  { %v10787_v43 = vsel %vm4234_vm12, %v4009_v54, %v10416_v33  ;;  %vm4253_vm0 = vcmp.gt.s32.totalorder %v10418_v44, %v4009_v54  ;;  %vm4254_vm5 = vcmp.gt.s32.totalorder %v10790_v24, %v4009_v54  ;;  %vm4315_vm4 = vcmp.lt.s32.totalorder %v4283_v7, %v4284_v14 }
 0xd5b   :  { %v10793_v47 = vsel %vm4315_vm4, %v4283_v7, %v4284_v14  ;;  %v4285_v56 = vsel %vm4253_vm0, %v10418_v44, 2147483647  ;;  %v4286_v28 = vsel %vm4254_vm5, %v10790_v24, 2147483647  ;;  %v4023_v33 = vcvt.f32.s32 %v10701_v61  ;;  %v10814_v61 = vld [vmem:[#allocation2 + $0xb0] sm:$0xff] }
 0xd5c   :  { %v4318_v5 = vshra.s32 %v10793_v47, 16  ;;  %vm4331_vm3 = vcmp.lt.s32.totalorder %v4285_v56, %v4286_v28  ;;  %v4087_v54 = vcvt.f32.s32 %v10716_v4 }
 0xd5d   :  { %v10798_v41 = vsel %vm4331_vm3, %v4285_v56, %v4286_v28  ;;  %v4024_v32 = vshll.u32 %v4023_v33, 16  ;;  %v4040_v56 = vshll.u32 %v4039_v10, 16 }
 0xd5e   :  { %v10801_v50 = vcvt.s32.f32 %v4318_v5  ;;  %v4334_v40 = vshra.s32 %v10798_v41, 16  ;;  %v4021_v62 = vpop.xlane.xlu1 %4020 }
 0xd5f   :  { %v4022_v44 = vcvt.f32.s32 %v4021_v62  ;;  %v4071_v62 = vcvt.f32.s32 %v10722_v0  ;;  %v4119_v0 = vcvt.f32.s32 %v10727_v45 }
 0xd60   :  { %4321 = vmin.xlane.f32.xlu1 %v10801_v50  ;;  %v10805_v36 = vcvt.s32.f32 %v4334_v40  ;;  %v4088_v40 = vshll.u32 %v4087_v54, 16 }
 0xd61   :  { %v4025_v18 = vadd.s32 %v4024_v32, %v4022_v44  ;;  %v4120_v54 = vshll.u32 %v4119_v0, 16 }
 0xd62   :  { %4337 = vmin.xlane.f32.xlu0 %v10805_v36 }
 0xd63   :  { %v10811_v34 = vsel %vm4234_vm12, %v4025_v18, %v10440_v46  ;;  %vm4255_vm8 = vcmp.gt.s32.totalorder %v10442_v8, %v4025_v18  ;;  %vm4256_vm9 = vcmp.gt.s32.totalorder %v10814_v61, %v4025_v18  ;;  %v4056_v46 = vshll.u32 %v4055_v52, 16 }
 0xd64   :  { %v4287_v13 = vsel %vm4255_vm8, %v10442_v8, 2147483647  ;;  %v4288_v55 = vsel %vm4256_vm9, %v10814_v61, 2147483647 }
 0xd65   :  { %vm4347_vm6 = vcmp.lt.s32.totalorder %v4287_v13, %v4288_v55 }
 0xd66   :  { %v10820_v53 = vsel %vm4347_vm6, %v4287_v13, %v4288_v55 }
 0xd67   :  { %v4350_v35 = vshra.s32 %v10820_v53, 16 }
 0xd69   :  { %v10823_v26 = vcvt.s32.f32 %v4350_v35 }
 0xd6a   :  { %v4053_v39 = vpop.xlane.xlu1 %4052 }
 0xd6b   :  { %v4054_v27 = vcvt.f32.s32 %v4053_v39  ;;  %4353 = vmin.xlane.f32.xlu1 %v10823_v26  ;;  %v4072_v39 = vshll.u32 %v4071_v62, 16 }
 0xd6d   :  { %v4057_v60 = vadd.s32 %v4056_v46, %v4054_v27 }
 0xd6f   :  { %v10830_v8 = vsel %vm4234_vm12, %v4057_v60, %v10460_v19  ;;  %vm4259_vm11 = vcmp.gt.s32.totalorder %v10462_v58, %v4057_v60  ;;  %vm4260_vm13 = vcmp.gt.s32.totalorder %v10833_v16, %v4057_v60  ;;  %v4037_v7 = vpop.xlane.xlu0 %4036 }
 0xd70   :  { %v4291_v14 = vsel %vm4259_vm11, %v10462_v58, 2147483647  ;;  %v4292_v30 = vsel %vm4260_vm13, %v10833_v16, 2147483647  ;;  %v4038_v28 = vcvt.f32.s32 %v4037_v7  ;;  %v10849_v58 = vld [vmem:[#allocation2 + $0x38] sm:$0xff]  ;;  %v4151_v7 = vcvt.f32.s32 %v10736_v12 }
 0xd71   :  { %vm4379_vm7 = vcmp.lt.s32.totalorder %v4291_v14, %v4292_v30 }
 0xd72   :  { %v10839_v5 = vsel %vm4379_vm7, %v4291_v14, %v4292_v30  ;;  %v4041_v19 = vadd.s32 %v4040_v56, %v4038_v28 }
 0xd73   :  { %v4382_v33 = vshra.s32 %v10839_v5, 16 }
 0xd74   :  { %v4085_v32 = vpop.xlane.xlu1 %4084  ;;  %v10846_v4 = vsel %vm4234_vm12, %v4041_v19, %v10475_v57  ;;  %vm4257_vm14 = vcmp.gt.s32.totalorder %v10477_v38, %v4041_v19  ;;  %vm4258_vm15 = vcmp.gt.s32.totalorder %v10849_v58, %v4041_v19  ;;  %v4103_v57 = vcvt.f32.s32 %v10732_v49 }
 0xd75   :  { %v4086_v44 = vcvt.f32.s32 %v4085_v32  ;;  %v10852_v18 = vcvt.s32.f32 %v4382_v33  ;;  %v4289_v52 = vsel %vm4257_vm14, %v10477_v38, 2147483647  ;;  %v4290_v13 = vsel %vm4258_vm15, %v10849_v58, 2147483647  ;;  %v10867_v38 = vld [vmem:[#allocation2 + $0x68] sm:$0xff] }
 0xd76   :  { %vm4363_vm10 = vcmp.lt.s32.totalorder %v4289_v52, %v4290_v13 }
 0xd77   :  { %v4089_v55 = vadd.s32 %v4088_v40, %v4086_v44  ;;  %4385 = vmin.xlane.f32.xlu1 %v10852_v18  ;;  %v10859_v46 = vsel %vm4363_vm10, %v4289_v52, %v4290_v13  ;;  %v4152_v13 = vshll.u32 %v4151_v7, 16 }
 0xd78   :  { %v4069_v35 = vpop.xlane.xlu0 %4068  ;;  %v4366_v10 = vshra.s32 %v10859_v46, 16 }
 0xd79   :  { %v10864_v27 = vsel %vm4234_vm12, %v4089_v55, %v10494_v20  ;;  %vm4263_vm1 = vcmp.gt.s32.totalorder %v10496_v37, %v4089_v55  ;;  %vm4264_vm2 = vcmp.gt.s32.totalorder %v10867_v38, %v4089_v55  ;;  %v4070_v45 = vcvt.f32.s32 %v4069_v35 }
 0xd7a   :  { %v4295_v49 = vsel %vm4263_vm1, %v10496_v37, 2147483647  ;;  %v4296_v60 = vsel %vm4264_vm2, %v10867_v38, 2147483647  ;;  %v4104_v20 = vshll.u32 %v4103_v57, 16  ;;  %v10874_v28 = vcvt.s32.f32 %v4366_v10  ;;  %v10884_v37 = vld [vmem:[#allocation2 + $0xd8] sm:$0xff] }
 0xd7b   :  { %v4073_v14 = vadd.s32 %v4072_v39, %v4070_v45  ;;  %v4117_v30 = vpop.xlane.xlu1 %4116  ;;  %vm4411_vm0 = vcmp.lt.s32.totalorder %v4295_v49, %v4296_v60  ;;  %v10899_v39 = vld [vmem:[#allocation2] sm:$0xff] }
 0xd7c   :  { %v4118_v56 = vcvt.f32.s32 %v4117_v30  ;;  %v10876_v19 = vsel %vm4411_vm0, %v4295_v49, %v4296_v60  ;;  %4369 = vmin.xlane.f32.xlu0 %v10874_v28  ;;  %v10913_v49 = vld [vmem:[#allocation2 + $0x98] sm:$0xff] }
 0xd7d   :  { %v10881_v33 = vsel %vm4234_vm12, %v4073_v14, %v10510_v9  ;;  %vm4261_vm5 = vcmp.gt.s32.totalorder %v10512_v25, %v4073_v14  ;;  %vm4262_vm4 = vcmp.gt.s32.totalorder %v10884_v37, %v4073_v14  ;;  %v4101_v12 = vpop.xlane.xlu0 %4100  ;;  %v4414_v40 = vshra.s32 %v10876_v19, 16 }
 0xd7e   :  { %v4121_v62 = vadd.s32 %v4120_v54, %v4118_v56  ;;  %v4102_v32 = vcvt.f32.s32 %v4101_v12  ;;  %v4293_v44 = vsel %vm4261_vm5, %v10512_v25, 2147483647  ;;  %v4294_v52 = vsel %vm4262_vm4, %v10884_v37, 2147483647  ;;  %v10929_v56 = vld [vmem:[#allocation2 + $0xd0] sm:$0xff] }
 0xd7f   :  { %v4149_v9 = vpop.xlane.xlu1 %4148  ;;  %v10891_v0 = vcvt.s32.f32 %v4414_v40  ;;  %vm4395_vm3 = vcmp.lt.s32.totalorder %v4293_v44, %v4294_v52  ;;  %12938 = vst [vmem:[#allocation18_spill] sm:$0xff] %v10929_v56 }
 0xd80   :  { %v10896_v55 = vsel %vm4234_vm12, %v4121_v62, %v10523_v48  ;;  %vm4267_vm8 = vcmp.gt.s32.totalorder %v10525_v22, %v4121_v62  ;;  %vm4268_vm9 = vcmp.gt.s32.totalorder %v10899_v39, %v4121_v62  ;;  %v4105_v57 = vadd.s32 %v4104_v20, %v4102_v32  ;;  %v12937_v20 = vld [vmem:[#allocation19_spill] sm:$0xff] }
 0xd81   :  { %v4150_v25 = vcvt.f32.s32 %v4149_v9  ;;  %4417 = vmin.xlane.f32.xlu1 %v10891_v0  ;;  %v10903_v35 = vsel %vm4395_vm3, %v4293_v44, %v4294_v52  ;;  %v4299_v45 = vsel %vm4267_vm8, %v10525_v22, 2147483647  ;;  %v4300_v10 = vsel %vm4268_vm9, %v10899_v39, 2147483647 }
 0xd82   :  { %v10910_v48 = vsel %vm4234_vm12, %v4105_v57, %v10538_v59  ;;  %vm4265_vm6 = vcmp.gt.s32.totalorder %v10540_v31, %v4105_v57  ;;  %vm4266_vm11 = vcmp.gt.s32.totalorder %v10913_v49, %v4105_v57  ;;  %v4398_v60 = vshra.s32 %v10903_v35, 16 }
 0xd83   :  { %v4153_v54 = vadd.s32 %v4152_v13, %v4150_v25  ;;  %vm4443_vm13 = vcmp.lt.s32.totalorder %v4299_v45, %v4300_v10  ;;  %v4297_v7 = vsel %vm4265_vm6, %v10540_v31, 2147483647  ;;  %v4298_v22 = vsel %vm4266_vm11, %v10913_v49, 2147483647 }
 0xd84   :  { %v10919_v14 = vcvt.s32.f32 %v4398_v60  ;;  %v10921_v30 = vsel %vm4443_vm13, %v4299_v45, %v4300_v10  ;;  %vm4427_vm7 = vcmp.lt.s32.totalorder %v4297_v7, %v4298_v22  ;;  %v4135_v44 = vcvt.f32.s32 %v10741_v11 }
 0xd85   :  { %v10926_v59 = vsel %vm4234_vm12, %v4153_v54, %v10549_v15  ;;  %vm4271_vm14 = vcmp.gt.s32.totalorder %v12937_v20, %v4153_v54  ;;  %vm4272_vm15 = vcmp.gt.s32.totalorder %v10929_v56, %v4153_v54  ;;  %v4446_v31 = vshra.s32 %v10921_v30, 16 }
 0xd86   :  { %4401 = vmin.xlane.f32.xlu0 %v10919_v14  ;;  %v10934_v12 = vsel %vm4427_vm7, %v4297_v7, %v4298_v22  ;;  %v4303_v40 = vsel %vm4271_vm14, %v12937_v20, 2147483647  ;;  %v4304_v62 = vsel %vm4272_vm15, %v10929_v56, 2147483647  ;;  %v4183_v57 = vcvt.f32.s32 %v10747_v2  ;;  %v12941_v56 = vld [vmem:[#allocation9_spill] sm:$0xff] }
 0xd87   :  { %v10938_v32 = vcvt.s32.f32 %v4446_v31  ;;  %v4430_v15 = vshra.s32 %v10934_v12, 16  ;;  %vm4475_vm10 = vcmp.lt.s32.totalorder %v4303_v40, %v4304_v62  ;;  %v4136_v10 = vshll.u32 %v4135_v44, 16  ;;  %v12939_v31 = vld [vmem:[#allocation14_spill] sm:$0xff] }
 0xd88   :  { %v10942_v52 = vsel %vm4475_vm10, %v4303_v40, %v4304_v62  ;;  %v4184_v54 = vshll.u32 %v4183_v57, 16  ;;  %v4167_v7 = vcvt.f32.s32 %v10752_v1  ;;  %v4215_v22 = vcvt.f32.s32 %v10757_v42  ;;  %v10961_v40 = vld [vmem:[#allocation2 + $0x10] sm:$0xff] }
 0xd89   :  { %4449 = vmin.xlane.f32.xlu1 %v10938_v32  ;;  %v10945_v13 = vcvt.s32.f32 %v4430_v15  ;;  %v4478_v9 = vshra.s32 %v10942_v52, 16  ;;  %v4199_v1 = vcvt.f32.s32 %v10761_v17  ;;  %v4231_v42 = vcvt.f32.s32 %v10766_v21 }
 0xd8b   :  { %4433 = vmin.xlane.f32.xlu0 %v10945_v13  ;;  %v10950_v45 = vcvt.s32.f32 %v4478_v9 }
 0xd8c   :  { %v4133_v25 = vpop.xlane.xlu0 %4132 }
 0xd8d   :  { %v4134_v60 = vcvt.f32.s32 %v4133_v25  ;;  %4481 = vmin.xlane.f32.xlu1 %v10950_v45  ;;  %v4168_v25 = vshll.u32 %v4167_v7, 16 }
 0xd8f   :  { %v4137_v11 = vadd.s32 %v4136_v10, %v4134_v60  ;;  %v4216_v10 = vshll.u32 %v4215_v22, 16 }
 0xd90   :  { %v4181_v20 = vpop.xlane.xlu1 %4180 }
 0xd91   :  { %v10958_v2 = vsel %vm4234_vm12, %v4137_v11, %v12939_v31  ;;  %vm4269_vm1 = vcmp.gt.s32.totalorder %v10589_v63, %v4137_v11  ;;  %vm4270_vm2 = vcmp.gt.s32.totalorder %v10961_v40, %v4137_v11  ;;  %v4182_v62 = vcvt.f32.s32 %v4181_v20 }
 0xd92   :  { %12940 = vst [vmem:[#allocation10_spill] sm:$0xff] %v10958_v2  ;;  %v4301_v15 = vsel %vm4269_vm1, %v10589_v63, 2147483647  ;;  %v4302_v44 = vsel %vm4270_vm2, %v10961_v40, 2147483647  ;;  %v10976_v63 = vld [vmem:[#allocation2 + $0xc8] sm:$0xff] }
 0xd93   :  { %v4185_v9 = vadd.s32 %v4184_v54, %v4182_v62  ;;  %v4165_v57 = vpop.xlane.xlu0 %4164  ;;  %vm4459_vm0 = vcmp.lt.s32.totalorder %v4301_v15, %v4302_v44  ;;  %v4200_v20 = vshll.u32 %v4199_v1, 16  ;;  %v4232_v62 = vshll.u32 %v4231_v42, 16  ;;  %v12949_v42 = vld [vmem:[#allocation12_spill] sm:$0xff] }
 0xd94   :  { %v4166_v60 = vcvt.f32.s32 %v4165_v57  ;;  %v4213_v31 = vpop.xlane.xlu1 %4212  ;;  %v10968_v2 = vsel %vm4459_vm0, %v4301_v15, %v4302_v44 }
 0xd95   :  { %v10973_v11 = vsel %vm4234_vm12, %v4185_v9, %v12941_v56  ;;  %vm4275_vm5 = vcmp.gt.s32.totalorder %v10604_v29, %v4185_v9  ;;  %vm4276_vm4 = vcmp.gt.s32.totalorder %v10976_v63, %v4185_v9  ;;  %v4214_v17 = vcvt.f32.s32 %v4213_v31  ;;  %v12943_v56 = vld [vmem:[#allocation15_spill] sm:$0xff]  ;;  %v10988_v9 = vld [vmem:[#allocation2 + $0x70] sm:$0xff] }
 0xd96   :  { %12942 = vst [vmem:[#allocation19_spill] sm:$0xff] %v10973_v11  ;;  %v4169_v21 = vadd.s32 %v4168_v25, %v4166_v60  ;;  %v4462_v54 = vshra.s32 %v10968_v2, 16  ;;  %v4307_v7 = vsel %vm4275_vm5, %v10604_v29, 2147483647  ;;  %v4308_v22 = vsel %vm4276_vm4, %v10976_v63, 2147483647 }
 0xd97   :  { %v4217_v15 = vadd.s32 %v4216_v10, %v4214_v17  ;;  %v4197_v44 = vpop.xlane.xlu0 %4196  ;;  %vm4507_vm3 = vcmp.lt.s32.totalorder %v4307_v7, %v4308_v22  ;;  %v12945_v11 = vld [vmem:[#allocation11_spill] sm:$0xff]  ;;  %12946 = vst [vmem:[#allocation9_spill] sm:$0xff] %v10988_v9  ;;  %v12947_v29 = vld [vmem:[#allocation16_spill] sm:$0xff]  ;;  %v10997_v10 = vld [vmem:[#allocation2 + $0x18] sm:$0xff] }
 0xd98   :  { %v10985_v57 = vsel %vm4234_vm12, %v4169_v21, %v12943_v56  ;;  %vm4273_vm8 = vcmp.gt.s32.totalorder %v12945_v11, %v4169_v21  ;;  %vm4274_vm9 = vcmp.gt.s32.totalorder %v10988_v9, %v4169_v21  ;;  %v4198_v25 = vcvt.f32.s32 %v4197_v44  ;;  %12950 = vst [vmem:[#allocation11_spill] sm:$0xff] %v10997_v10 }
 0xd99   :  { %12944 = vst [vmem:[#allocation14_spill] sm:$0xff] %v10985_v57  ;;  %v10994_v1 = vsel %vm4234_vm12, %v4217_v15, %v12947_v29  ;;  %vm4279_vm6 = vcmp.gt.s32.totalorder %v12949_v42, %v4217_v15  ;;  %vm4280_vm11 = vcmp.gt.s32.totalorder %v10997_v10, %v4217_v15  ;;  %v11000_v60 = vcvt.s32.f32 %v4462_v54  ;;  %v12951_v15 = vld [vmem:[#allocation17_spill] sm:$0xff] }
 0xd9a   :  { %12948 = vst [vmem:[#allocation15_spill] sm:$0xff] %v10994_v1  ;;  %v4201_v31 = vadd.s32 %v4200_v20, %v4198_v25  ;;  %v11002_v17 = vsel %vm4507_vm3, %v4307_v7, %v4308_v22  ;;  %v4305_v56 = vsel %vm4273_vm8, %v12945_v11, 2147483647  ;;  %v4306_v21 = vsel %vm4274_vm9, %v10988_v9, 2147483647  ;;  %v11016_v11 = vld [vmem:[#allocation2 + $0xe0] sm:$0xff] }
 0xd9b   :  { %v4229_v44 = vpop.xlane.xlu0 %4228  ;;  %4465 = vmin.xlane.f32.xlu0 %v11000_v60  ;;  %v4510_v29 = vshra.s32 %v11002_v17, 16  ;;  %vm4491_vm13 = vcmp.lt.s32.totalorder %v4305_v56, %v4306_v21  ;;  %v4311_v1 = vsel %vm4279_vm6, %v12949_v42, 2147483647  ;;  %v4312_v57 = vsel %vm4280_vm11, %v10997_v10, 2147483647 }
 0xd9c   :  { %v11013_v54 = vsel %vm4234_vm12, %v4201_v31, %v12951_v15  ;;  %vm4277_vm7 = vcmp.gt.s32.totalorder %v10644_v3, %v4201_v31  ;;  %vm4278_vm14 = vcmp.gt.s32.totalorder %v11016_v11, %v4201_v31  ;;  %v4230_v7 = vcvt.f32.s32 %v4229_v44  ;;  %v12953_v31 = vld [vmem:[#allocation13_spill] sm:$0xff] }
 0xd9d   :  { %12952 = vst [vmem:[#allocation16_spill] sm:$0xff] %v11013_v54  ;;  %v11019_v22 = vcvt.s32.f32 %v4510_v29  ;;  %v11021_v20 = vsel %vm4491_vm13, %v4305_v56, %v4306_v21  ;;  %vm4539_vm15 = vcmp.lt.s32.totalorder %v4311_v1, %v4312_v57  ;;  %v4309_v25 = vsel %vm4277_vm7, %v10644_v3, 2147483647  ;;  %v12955_v21 = vld [vmem:[#allocation20_spill] sm:$0xff]  ;;  %v12956_v3 = vld [vmem:[#allocation21_spill] sm:$0xff] }
 0xd9e   :  { %v4233_v42 = vadd.s32 %v4232_v62, %v4230_v7  ;;  %v4494_v10 = vshra.s32 %v11021_v20, 16  ;;  %v11025_v9 = vsel %vm4539_vm15, %v4311_v1, %v4312_v57  ;;  %v4310_v15 = vsel %vm4278_vm14, %v11016_v11, 2147483647 }
 0xd9f   :  { %4513 = vmin.xlane.f32.xlu1 %v11019_v22  ;;  %v4542_v54 = vshra.s32 %v11025_v9, 16  ;;  %vm4523_vm10 = vcmp.lt.s32.totalorder %v4309_v25, %v4310_v15 }
 0xda0   :  { %v11033_v56 = vsel %vm4234_vm12, %v4233_v42, %v12953_v31  ;;  %vm4281_vm1 = vcmp.gt.s32.totalorder %v12955_v21, %v4233_v42  ;;  %vm4282_vm2 = vcmp.gt.s32.totalorder %v12956_v3, %v4233_v42  ;;  %v11037_v62 = vcvt.s32.f32 %v4494_v10 }
 0xda1   :  { %12954 = vst [vmem:[#allocation12_spill] sm:$0xff] %v11033_v56  ;;  %v11039_v57 = vcvt.s32.f32 %v4542_v54  ;;  %v11041_v1 = vsel %vm4523_vm10, %v4309_v25, %v4310_v15  ;;  %v4313_v44 = vsel %vm4281_vm1, %v12955_v21, 2147483647  ;;  %v4314_v29 = vsel %vm4282_vm2, %v12956_v3, 2147483647 }
 0xda2   :  { %4497 = vmin.xlane.f32.xlu0 %v11037_v62  ;;  %v4526_v7 = vshra.s32 %v11041_v1, 16  ;;  %vm4555_vm12 = vcmp.lt.s32.totalorder %v4313_v44, %v4314_v29  ;;  %v4317_v25 = vand.u32 65535, %v10793_v47  ;;  %v4333_v15 = vand.u32 65535, %v10798_v41 }
 0xda3   :  { %4545 = vmin.xlane.f32.xlu1 %v11039_v57  ;;  %v11048_v31 = vsel %vm4555_vm12, %v4313_v44, %v4314_v29  ;;  %v4349_v47 = vand.u32 65535, %v10820_v53  ;;  %v4413_v53 = vand.u32 65535, %v10876_v19  ;;  %v4445_v19 = vand.u32 65535, %v10921_v30 }
 0xda4   :  { %v11050_v42 = vcvt.s32.f32 %v4526_v7  ;;  %v4558_v10 = vshra.s32 %v11048_v31, 16  ;;  %v4319_v3 = vcvt.s32.f32 %v4317_v25  ;;  %v4335_v7 = vcvt.s32.f32 %v4333_v15 }
 0xda5   :  { %v4351_v41 = vcvt.s32.f32 %v4349_v47  ;;  %v4415_v47 = vcvt.s32.f32 %v4413_v53 }
 0xda6   :  { %4529 = vmin.xlane.f32.xlu0 %v11050_v42  ;;  %v11054_v54 = vcvt.s32.f32 %v4558_v10 }
 0xdaa   :  { %4561 = vmin.xlane.f32.xlu0 %v11054_v54 }
 0xde9   :  { %v11059_v21 = vpop.xlane.xlu1 %4321 }
 0xdea   :  { %vm4323_vm0 = vcmp.eq.f32.partialorder %v10801_v50, %v11059_v21  ;;  %v4381_v50 = vand.u32 65535, %v10839_v5 }
 0xdeb   :  { %v11063_v44 = vpop.xlane.xlu0 %4337  ;;  %v4324_v29 = vsel %vm4323_vm0, %v4319_v3, inf  ;;  %vm4571_vm0 = vcmp.eq.s32.totalorder %v6476_v51, 11 }
 0xdec   :  { %4325 = vmin.xlane.f32.xlu1 %v4324_v29  ;;  %vm4339_vm5 = vcmp.eq.f32.partialorder %v10805_v36, %v11063_v44  ;;  %v4383_v15 = vcvt.s32.f32 %v4381_v50  ;;  %v4365_v29 = vand.u32 65535, %v10859_v46 }
 0xded   :  { %v4340_v10 = vsel %vm4339_vm5, %v4335_v7, inf }
 0xdee   :  { %4341 = vmin.xlane.f32.xlu0 %v4340_v10  ;;  %v4367_v10 = vcvt.s32.f32 %v4365_v29 }
 0xdf4   :  { %v11068_v56 = vpop.xlane.xlu1 %4353 }
 0xdf5   :  { %vm4355_vm4 = vcmp.eq.f32.partialorder %v10823_v26, %v11068_v56 }
 0xdf6   :  { %v4356_v25 = vsel %vm4355_vm4, %v4351_v41, inf }
 0xdf7   :  { %4357 = vmin.xlane.f32.xlu1 %v4356_v25 }
 0xe00   :  { %v11073_v3 = vpop.xlane.xlu1 %4385 }
 0xe01   :  { %vm4387_vm3 = vcmp.eq.f32.partialorder %v10852_v18, %v11073_v3  ;;  %v4397_v18 = vand.u32 65535, %v10903_v35 }
 0xe02   :  { %v4388_v36 = vsel %vm4387_vm3, %v4383_v15, inf }
 0xe03   :  { %4389 = vmin.xlane.f32.xlu1 %v4388_v36  ;;  %v4399_v25 = vcvt.s32.f32 %v4397_v18  ;;  %v4447_v36 = vcvt.s32.f32 %v4445_v19  ;;  %v4493_v18 = vand.u32 65535, %v11021_v20 }
 0xe05   :  { %v11079_v7 = vpop.xlane.xlu0 %4369 }
 0xe06   :  { %vm4371_vm8 = vcmp.eq.f32.partialorder %v10874_v28, %v11079_v7  ;;  %v4429_v28 = vand.u32 65535, %v10934_v12 }
 0xe07   :  { %v4372_v26 = vsel %vm4371_vm8, %v4367_v10, inf }
 0xe08   :  { %4373 = vmin.xlane.f32.xlu0 %v4372_v26  ;;  %v4431_v29 = vcvt.s32.f32 %v4429_v28  ;;  %v4525_v28 = vand.u32 65535, %v11041_v1 }
 0xe0a   :  { %v11083_v5 = vpop.xlane.xlu1 %4417 }
 0xe0b   :  { %vm4419_vm9 = vcmp.eq.f32.partialorder %v10891_v0, %v11083_v5  ;;  %v4477_v0 = vand.u32 65535, %v10942_v52 }
 0xe0c   :  { %v4420_v46 = vsel %vm4419_vm9, %v4415_v47, inf  ;;  %v4509_v47 = vand.u32 65535, %v11002_v17  ;;  %v4495_v17 = vcvt.s32.f32 %v4493_v18 }
 0xe0d   :  { %4421 = vmin.xlane.f32.xlu1 %v4420_v46  ;;  %v4479_v53 = vcvt.s32.f32 %v4477_v0  ;;  %v4557_v0 = vand.u32 65535, %v11048_v31 }
 0xe0e   :  { %v4511_v19 = vcvt.s32.f32 %v4509_v47 }
 0xe0f   :  { %v11089_v41 = vpop.xlane.xlu0 %4401 }
 0xe10   :  { %vm4403_vm6 = vcmp.eq.f32.partialorder %v10919_v14, %v11089_v41 }
 0xe11   :  { %v4404_v50 = vsel %vm4403_vm6, %v4399_v25, inf }
 0xe12   :  { %4405 = vmin.xlane.f32.xlu0 %v4404_v50  ;;  %v11094_v15 = vpop.xlane.xlu1 %4449 }
 0xe13   :  { %vm4451_vm11 = vcmp.eq.f32.partialorder %v10938_v32, %v11094_v15  ;;  %v4461_v32 = vand.u32 65535, %v10968_v2 }
 0xe14   :  { %v11099_v35 = vpop.xlane.xlu0 %4433  ;;  %v4452_v30 = vsel %vm4451_vm11, %v4447_v36, inf  ;;  %v4527_v36 = vcvt.s32.f32 %v4525_v28 }
 0xe15   :  { %4453 = vmin.xlane.f32.xlu1 %v4452_v30  ;;  %vm4435_vm13 = vcmp.eq.f32.partialorder %v10945_v13, %v11099_v35  ;;  %v4463_v26 = vcvt.s32.f32 %v4461_v32  ;;  %v4559_v30 = vcvt.s32.f32 %v4557_v0 }
 0xe16   :  { %v4436_v14 = vsel %vm4435_vm13, %v4431_v29, inf  ;;  %v11103_v12 = vpop.xlane.xlu1 %4481  ;;  %v4328_v29 = vcvt.f32.s32 %v11059_v21 }
 0xe17   :  { %4437 = vmin.xlane.f32.xlu0 %v4436_v14  ;;  %vm4483_vm7 = vcmp.eq.f32.partialorder %v10950_v45, %v11103_v12  ;;  %v4541_v45 = vand.u32 65535, %v11025_v9  ;;  %v4344_v14 = vcvt.f32.s32 %v11063_v44 }
 0xe18   :  { %v4484_v52 = vsel %vm4483_vm7, %v4479_v53, inf }
 0xe19   :  { %4485 = vmin.xlane.f32.xlu1 %v4484_v52  ;;  %v4543_v20 = vcvt.s32.f32 %v4541_v45  ;;  %v4329_v52 = vshll.u32 %v4328_v29, 16  ;;  %v4345_v32 = vshll.u32 %v4344_v14, 16  ;;  %v11156_v45 = vld [vmem:[#allocation2 + $0xb8] sm:$0xff]  ;;  %v4392_v14 = vcvt.f32.s32 %v11073_v3  ;;  %v11199_v3 = vld [vmem:[#allocation2 + $0xc0] sm:$0xff] }
 0xe24   :  { %v11108_v10 = vpop.xlane.xlu0 %4465 }
 0xe25   :  { %vm4467_vm14 = vcmp.eq.f32.partialorder %v11000_v60, %v11108_v10 }
 0xe26   :  { %v4468_v13 = vsel %vm4467_vm14, %v4463_v26, inf }
 0xe27   :  { %4469 = vmin.xlane.f32.xlu0 %v4468_v13 }
 0xe28   :  { %v11114_v46 = vpop.xlane.xlu1 %4513 }
 0xe29   :  { %vm4515_vm15 = vcmp.eq.f32.partialorder %v11019_v22, %v11114_v46 }
 0xe2a   :  { %v4516_v2 = vsel %vm4515_vm15, %v4511_v19, inf }
 0xe2b   :  { %v11119_v25 = vpop.xlane.xlu0 %4497  ;;  %4517 = vmin.xlane.f32.xlu1 %v4516_v2 }
 0xe2c   :  { %vm4499_vm10 = vcmp.eq.f32.partialorder %v11037_v62, %v11119_v25  ;;  %v11124_v60 = vpop.xlane.xlu1 %4545 }
 0xe2d   :  { %v4500_v50 = vsel %vm4499_vm10, %v4495_v17, inf  ;;  %vm4547_vm1 = vcmp.eq.f32.partialorder %v11039_v57, %v11124_v60 }
 0xe2e   :  { %4501 = vmin.xlane.f32.xlu0 %v4500_v50  ;;  %v4548_v9 = vsel %vm4547_vm1, %v4543_v20, inf }
 0xe2f   :  { %v11128_v22 = vpop.xlane.xlu0 %4529  ;;  %4549 = vmin.xlane.f32.xlu1 %v4548_v9 }
 0xe30   :  { %vm4531_vm2 = vcmp.eq.f32.partialorder %v11050_v42, %v11128_v22 }
 0xe31   :  { %v4532_v1 = vsel %vm4531_vm2, %v4527_v36, inf }
 0xe32   :  { %4533 = vmin.xlane.f32.xlu0 %v4532_v1 }
 0xe33   :  { %v11133_v62 = vpop.xlane.xlu0 %4561 }
 0xe34   :  { %vm4563_vm12 = vcmp.eq.f32.partialorder %v11054_v54, %v11133_v62  ;;  %v11145_v54 = vld [vmem:[#allocation2 + $0x78] sm:$0xff] }
 0xe35   :  { %v4564_v57 = vsel %vm4563_vm12, %v4559_v30, inf }
 0xe36   :  { %4565 = vmin.xlane.f32.xlu0 %v4564_v57 }
 0xe75   :  { %v4326_v53 = vpop.xlane.xlu1 %4325 }
 0xe76   :  { %v4327_v31 = vcvt.f32.s32 %v4326_v53 }
 0xe77   :  { %v4342_v42 = vpop.xlane.xlu0 %4341 }
 0xe78   :  { %v4330_v26 = vadd.s32 %v4329_v52, %v4327_v31  ;;  %v4343_v47 = vcvt.f32.s32 %v4342_v42 }
 0xe7a   :  { %v11143_v13 = vsel %vm4571_vm0, %v4330_v26, %v10776_v23  ;;  %vm4588_vm5 = vcmp.gt.s32.totalorder %v11145_v54, %v4330_v26  ;;  %vm4589_vm4 = vcmp.gt.s32.totalorder %v10779_v6, %v4330_v26  ;;  %v4346_v21 = vadd.s32 %v4345_v32, %v4343_v47 }
 0xe7b   :  { %v4620_v44 = vsel %vm4588_vm5, %v11145_v54, 2147483647  ;;  %v4621_v18 = vsel %vm4589_vm4, %v10779_v6, 2147483647  ;;  %v4376_v26 = vcvt.f32.s32 %v11079_v7 }
 0xe7c   :  { %v11154_v19 = vsel %vm4571_vm0, %v4346_v21, %v10787_v43  ;;  %vm4590_vm3 = vcmp.gt.s32.totalorder %v11156_v45, %v4346_v21  ;;  %vm4591_vm8 = vcmp.gt.s32.totalorder %v10790_v24, %v4346_v21  ;;  %vm4652_vm9 = vcmp.lt.s32.totalorder %v4620_v44, %v4621_v18 }
 0xe7d   :  { %v11160_v23 = vsel %vm4652_vm9, %v4620_v44, %v4621_v18  ;;  %v4622_v2 = vsel %vm4590_vm3, %v11156_v45, 2147483647  ;;  %v4623_v17 = vsel %vm4591_vm8, %v10790_v24, 2147483647  ;;  %v4360_v43 = vcvt.f32.s32 %v11068_v56  ;;  %v11180_v56 = vld [vmem:[#allocation2 + $0x88] sm:$0xff] }
 0xe7e   :  { %v4655_v6 = vshra.s32 %v11160_v23, 16  ;;  %vm4668_vm6 = vcmp.lt.s32.totalorder %v4622_v2, %v4623_v17  ;;  %v4424_v21 = vcvt.f32.s32 %v11083_v5 }
 0xe7f   :  { %v11165_v28 = vsel %vm4668_vm6, %v4622_v2, %v4623_v17  ;;  %v4361_v0 = vshll.u32 %v4360_v43, 16  ;;  %v4377_v2 = vshll.u32 %v4376_v26, 16 }
 0xe80   :  { %v11168_v20 = vcvt.s32.f32 %v4655_v6  ;;  %v4671_v50 = vshra.s32 %v11165_v28, 16  ;;  %v4358_v36 = vpop.xlane.xlu1 %4357 }
 0xe81   :  { %v4359_v1 = vcvt.f32.s32 %v4358_v36 }
 0xe82   :  { %4658 = vmin.xlane.f32.xlu1 %v11168_v20  ;;  %v11172_v9 = vcvt.s32.f32 %v4671_v50 }
 0xe83   :  { %v4362_v24 = vadd.s32 %v4361_v0, %v4359_v1  ;;  %v4425_v0 = vshll.u32 %v4424_v21, 16 }
 0xe84   :  { %4674 = vmin.xlane.f32.xlu0 %v11172_v9 }
 0xe85   :  { %v11178_v30 = vsel %vm4571_vm0, %v4362_v24, %v10811_v34  ;;  %vm4592_vm11 = vcmp.gt.s32.totalorder %v11180_v56, %v4362_v24  ;;  %vm4593_vm13 = vcmp.gt.s32.totalorder %v10814_v61, %v4362_v24  ;;  %v4393_v34 = vshll.u32 %v4392_v14, 16  ;;  %v11215_v24 = vld [vmem:[#allocation2 + $0x90] sm:$0xff] }
 0xe86   :  { %v4624_v57 = vsel %vm4592_vm11, %v11180_v56, 2147483647  ;;  %v4625_v29 = vsel %vm4593_vm13, %v10814_v61, 2147483647 }
 0xe87   :  { %vm4684_vm7 = vcmp.lt.s32.totalorder %v4624_v57, %v4625_v29 }
 0xe88   :  { %v11187_v53 = vsel %vm4684_vm7, %v4624_v57, %v4625_v29 }
 0xe89   :  { %v4687_v52 = vshra.s32 %v11187_v53, 16 }
 0xe8b   :  { %v11190_v32 = vcvt.s32.f32 %v4687_v52  ;;  %v4456_v52 = vcvt.f32.s32 %v11094_v15 }
 0xe8c   :  { %v4390_v31 = vpop.xlane.xlu1 %4389 }
 0xe8d   :  { %v4391_v42 = vcvt.f32.s32 %v4390_v31  ;;  %4690 = vmin.xlane.f32.xlu1 %v11190_v32  ;;  %v4440_v31 = vcvt.f32.s32 %v11099_v35 }
 0xe8f   :  { %v4394_v47 = vadd.s32 %v4393_v34, %v4391_v42  ;;  %v11231_v34 = vld [vmem:[#allocation2 + $0xe8] sm:$0xff] }
 0xe91   :  { %v11197_v61 = vsel %vm4571_vm0, %v4394_v47, %v10830_v8  ;;  %vm4596_vm14 = vcmp.gt.s32.totalorder %v11199_v3, %v4394_v47  ;;  %vm4597_vm15 = vcmp.gt.s32.totalorder %v10833_v16, %v4394_v47  ;;  %v4374_v44 = vpop.xlane.xlu0 %4373  ;;  %v4408_v8 = vcvt.f32.s32 %v11089_v41 }
 0xe92   :  { %v4628_v18 = vsel %vm4596_vm14, %v11199_v3, 2147483647  ;;  %v4629_v7 = vsel %vm4597_vm15, %v10833_v16, 2147483647  ;;  %v4375_v17 = vcvt.f32.s32 %v4374_v44 }
 0xe93   :  { %vm4716_vm10 = vcmp.lt.s32.totalorder %v4628_v18, %v4629_v7  ;;  %v4409_v14 = vshll.u32 %v4408_v8, 16 }
 0xe94   :  { %v11206_v6 = vsel %vm4716_vm10, %v4628_v18, %v4629_v7  ;;  %v4378_v43 = vadd.s32 %v4377_v2, %v4375_v17  ;;  %v4457_v2 = vshll.u32 %v4456_v52, 16  ;;  %v11265_v52 = vld [vmem:[#allocation2 + $0x50] sm:$0xff] }
 0xe95   :  { %v4719_v36 = vshra.s32 %v11206_v6, 16 }
 0xe96   :  { %v4422_v50 = vpop.xlane.xlu1 %4421  ;;  %v11213_v5 = vsel %vm4571_vm0, %v4378_v43, %v10846_v4  ;;  %vm4594_vm1 = vcmp.gt.s32.totalorder %v11215_v24, %v4378_v43  ;;  %vm4595_vm2 = vcmp.gt.s32.totalorder %v10849_v58, %v4378_v43  ;;  %v4441_v43 = vshll.u32 %v4440_v31, 16 }
 0xe97   :  { %v4423_v1 = vcvt.f32.s32 %v4422_v50  ;;  %v11219_v16 = vcvt.s32.f32 %v4719_v36  ;;  %v4626_v57 = vsel %vm4594_vm1, %v11215_v24, 2147483647  ;;  %v4627_v29 = vsel %vm4595_vm2, %v10849_v58, 2147483647 }
 0xe98   :  { %vm4700_vm12 = vcmp.lt.s32.totalorder %v4626_v57, %v4627_v29 }
 0xe99   :  { %v4426_v41 = vadd.s32 %v4425_v0, %v4423_v1  ;;  %4722 = vmin.xlane.f32.xlu1 %v11219_v16  ;;  %v11235_v42 = vsel %vm4700_vm12, %v4626_v57, %v4627_v29 }
 0xe9a   :  { %v4703_v35 = vshra.s32 %v11235_v42, 16 }
 0xe9b   :  { %v11229_v4 = vsel %vm4571_vm0, %v4426_v41, %v10864_v27  ;;  %vm4600_vm5 = vcmp.gt.s32.totalorder %v11231_v34, %v4426_v41  ;;  %vm4601_vm4 = vcmp.gt.s32.totalorder %v10867_v38, %v4426_v41  ;;  %v4406_v58 = vpop.xlane.xlu0 %4405  ;;  %v4488_v27 = vcvt.f32.s32 %v11103_v12 }
 0xe9c   :  { %v4407_v15 = vcvt.f32.s32 %v4406_v58  ;;  %v4632_v26 = vsel %vm4600_vm5, %v11231_v34, 2147483647  ;;  %v4633_v47 = vsel %vm4601_vm4, %v10867_v38, 2147483647  ;;  %v11241_v18 = vcvt.s32.f32 %v4703_v35  ;;  %v11251_v38 = vld [vmem:[#allocation2 + $0x20] sm:$0xff] }
 0xe9d   :  { %vm4748_vm3 = vcmp.lt.s32.totalorder %v4632_v26, %v4633_v47  ;;  %v4489_v57 = vshll.u32 %v4488_v27, 16  ;;  %v11277_v35 = vld [vmem:[#allocation2 + $0x80] sm:$0xff] }
 0xe9e   :  { %v4410_v21 = vadd.s32 %v4409_v14, %v4407_v15  ;;  %v4454_v44 = vpop.xlane.xlu1 %4453  ;;  %v11243_v7 = vsel %vm4748_vm3, %v4632_v26, %v4633_v47  ;;  %4706 = vmin.xlane.f32.xlu0 %v11241_v18 }
 0xe9f   :  { %v4455_v17 = vcvt.f32.s32 %v4454_v44  ;;  %v4751_v8 = vshra.s32 %v11243_v7, 16 }
 0xea0   :  { %v11249_v50 = vsel %vm4571_vm0, %v4410_v21, %v10881_v33  ;;  %vm4598_vm8 = vcmp.gt.s32.totalorder %v11251_v38, %v4410_v21  ;;  %vm4599_vm9 = vcmp.gt.s32.totalorder %v10884_v37, %v4410_v21  ;;  %v4438_v12 = vpop.xlane.xlu0 %4437 }
 0xea1   :  { %v4458_v36 = vadd.s32 %v4457_v2, %v4455_v17  ;;  %v4439_v0 = vcvt.f32.s32 %v4438_v12  ;;  %v11256_v1 = vcvt.s32.f32 %v4751_v8  ;;  %v4630_v41 = vsel %vm4598_vm8, %v11251_v38, 2147483647  ;;  %v11293_v2 = vld [vmem:[#allocation2 + $0x28] sm:$0xff]  ;;  %v12958_v17 = vld [vmem:[#allocation18_spill] sm:$0xff] }
 0xea2   :  { %v4486_v29 = vpop.xlane.xlu1 %4485  ;;  %v4631_v33 = vsel %vm4599_vm9, %v10884_v37, 2147483647  ;;  %12957 = vst [vmem:[#allocation17_spill] sm:$0xff] %v11293_v2 }
 0xea3   :  { %v11263_v14 = vsel %vm4571_vm0, %v4458_v36, %v10896_v55  ;;  %vm4604_vm6 = vcmp.gt.s32.totalorder %v11265_v52, %v4458_v36  ;;  %vm4605_vm11 = vcmp.gt.s32.totalorder %v10899_v39, %v4458_v36  ;;  %v4442_v31 = vadd.s32 %v4441_v43, %v4439_v0  ;;  %4754 = vmin.xlane.f32.xlu1 %v11256_v1 }
 0xea4   :  { %v4487_v58 = vcvt.f32.s32 %v4486_v29  ;;  %vm4732_vm13 = vcmp.lt.s32.totalorder %v4630_v41, %v4631_v33  ;;  %v4636_v15 = vsel %vm4604_vm6, %v11265_v52, 2147483647  ;;  %v4637_v37 = vsel %vm4605_vm11, %v10899_v39, 2147483647 }
 0xea5   :  { %v11275_v55 = vsel %vm4571_vm0, %v4442_v31, %v10910_v48  ;;  %vm4602_vm7 = vcmp.gt.s32.totalorder %v11277_v35, %v4442_v31  ;;  %vm4603_vm14 = vcmp.gt.s32.totalorder %v10913_v49, %v4442_v31  ;;  %v11281_v26 = vsel %vm4732_vm13, %v4630_v41, %v4631_v33 }
 0xea6   :  { %v4490_v47 = vadd.s32 %v4489_v57, %v4487_v58  ;;  %v4735_v27 = vshra.s32 %v11281_v26, 16  ;;  %vm4780_vm15 = vcmp.lt.s32.totalorder %v4636_v15, %v4637_v37  ;;  %v4634_v21 = vsel %vm4602_vm7, %v11277_v35, 2147483647 }
 0xea7   :  { %v11285_v39 = vsel %vm4780_vm15, %v4636_v15, %v4637_v37  ;;  %v4635_v44 = vsel %vm4603_vm14, %v10913_v49, 2147483647  ;;  %v4472_v57 = vcvt.f32.s32 %v11108_v10  ;;  %v4520_v58 = vcvt.f32.s32 %v11114_v46  ;;  %v11327_v46 = vld [vmem:[#allocation2 + $0xa0] sm:$0xff] }
 0xea8   :  { %v11291_v48 = vsel %vm4571_vm0, %v4490_v47, %v10926_v59  ;;  %vm4608_vm10 = vcmp.gt.s32.totalorder %v11293_v2, %v4490_v47  ;;  %vm4609_vm1 = vcmp.gt.s32.totalorder %v12958_v17, %v4490_v47  ;;  %v11297_v8 = vcvt.s32.f32 %v4735_v27 }
 0xea9   :  { %v4783_v43 = vshra.s32 %v11285_v39, 16  ;;  %vm4764_vm2 = vcmp.lt.s32.totalorder %v4634_v21, %v4635_v44  ;;  %v4640_v12 = vsel %vm4608_vm10, %v11293_v2, 2147483647  ;;  %v4641_v49 = vsel %vm4609_vm1, %v12958_v17, 2147483647  ;;  %v12961_v2 = vld [vmem:[#allocation19_spill] sm:$0xff] }
 0xeaa   :  { %4738 = vmin.xlane.f32.xlu0 %v11297_v8  ;;  %v11303_v36 = vsel %vm4764_vm2, %v4634_v21, %v4635_v44  ;;  %vm4812_vm12 = vcmp.lt.s32.totalorder %v4640_v12, %v4641_v49  ;;  %v4473_v37 = vshll.u32 %v4472_v57, 16  ;;  %v4521_v21 = vshll.u32 %v4520_v58, 16 }
 0xeab   :  { %v11305_v59 = vcvt.s32.f32 %v4783_v43  ;;  %v4767_v0 = vshra.s32 %v11303_v36, 16  ;;  %v11308_v41 = vsel %vm4812_vm12, %v4640_v12, %v4641_v49  ;;  %v4504_v10 = vcvt.f32.s32 %v11119_v25  ;;  %v12959_v43 = vld [vmem:[#allocation10_spill] sm:$0xff] }
 0xeac   :  { %v4815_v29 = vshra.s32 %v11308_v41, 16  ;;  %v4552_v44 = vcvt.f32.s32 %v11124_v60  ;;  %v4536_v25 = vcvt.f32.s32 %v11128_v22  ;;  %v4568_v60 = vcvt.f32.s32 %v11133_v62 }
 0xead   :  { %4786 = vmin.xlane.f32.xlu1 %v11305_v59  ;;  %v11313_v33 = vcvt.s32.f32 %v4767_v0 }
 0xeae   :  { %v11315_v31 = vcvt.s32.f32 %v4815_v29 }
 0xeaf   :  { %4770 = vmin.xlane.f32.xlu0 %v11313_v33 }
 0xeb0   :  { %v4470_v15 = vpop.xlane.xlu0 %4469 }
 0xeb1   :  { %v4471_v47 = vcvt.f32.s32 %v4470_v15  ;;  %4818 = vmin.xlane.f32.xlu1 %v11315_v31  ;;  %v4505_v15 = vshll.u32 %v4504_v10, 16 }
 0xeb3   :  { %v4474_v27 = vadd.s32 %v4473_v37, %v4471_v47  ;;  %v4553_v37 = vshll.u32 %v4552_v44, 16  ;;  %v4537_v44 = vshll.u32 %v4536_v25, 16  ;;  %v11363_v25 = vld [vmem:[#allocation2 + $0x48] sm:$0xff] }
 0xeb4   :  { %v4518_v17 = vpop.xlane.xlu1 %4517  ;;  %12969 = vst [vmem:[#allocation19_spill] sm:$0xff] %v11363_v25 }
 0xeb5   :  { %v11325_v12 = vsel %vm4571_vm0, %v4474_v27, %v12959_v43  ;;  %vm4606_vm5 = vcmp.gt.s32.totalorder %v11327_v46, %v4474_v27  ;;  %vm4607_vm4 = vcmp.gt.s32.totalorder %v10961_v40, %v4474_v27  ;;  %v4519_v49 = vcvt.f32.s32 %v4518_v17  ;;  %v11342_v17 = vld [vmem:[#allocation2 + $0x40] sm:$0xff] }
 0xeb6   :  { %12960 = vst [vmem:[#allocation13_spill] sm:$0xff] %v11325_v12  ;;  %v4638_v0 = vsel %vm4606_vm5, %v11327_v46, 2147483647  ;;  %v4639_v57 = vsel %vm4607_vm4, %v10961_v40, 2147483647 }
 0xeb7   :  { %v4522_v29 = vadd.s32 %v4521_v21, %v4519_v49  ;;  %v4502_v58 = vpop.xlane.xlu0 %4501  ;;  %vm4796_vm3 = vcmp.lt.s32.totalorder %v4638_v0, %v4639_v57  ;;  %v4569_v49 = vshll.u32 %v4568_v60, 16  ;;  %v12970_v60 = vld [vmem:[#allocation11_spill] sm:$0xff] }
 0xeb8   :  { %v4503_v47 = vcvt.f32.s32 %v4502_v58  ;;  %v4550_v43 = vpop.xlane.xlu1 %4549  ;;  %v11335_v12 = vsel %vm4796_vm3, %v4638_v0, %v4639_v57 }
 0xeb9   :  { %v11340_v27 = vsel %vm4571_vm0, %v4522_v29, %v12961_v2  ;;  %vm4612_vm8 = vcmp.gt.s32.totalorder %v11342_v17, %v4522_v29  ;;  %vm4613_vm9 = vcmp.gt.s32.totalorder %v10976_v63, %v4522_v29  ;;  %v4551_v40 = vcvt.f32.s32 %v4550_v43  ;;  %v12963_v2 = vld [vmem:[#allocation14_spill] sm:$0xff]  ;;  %v12966_v29 = vld [vmem:[#allocation9_spill] sm:$0xff] }
 0xeba   :  { %12962 = vst [vmem:[#allocation20_spill] sm:$0xff] %v11340_v27  ;;  %v4506_v22 = vadd.s32 %v4505_v15, %v4503_v47  ;;  %v4799_v62 = vshra.s32 %v11335_v12, 16  ;;  %v4644_v21 = vsel %vm4612_vm8, %v11342_v17, 2147483647  ;;  %v4645_v10 = vsel %vm4613_vm9, %v10976_v63, 2147483647 }
 0xebb   :  { %v4554_v0 = vadd.s32 %v4553_v37, %v4551_v40  ;;  %v4534_v57 = vpop.xlane.xlu0 %4533  ;;  %vm4844_vm6 = vcmp.lt.s32.totalorder %v4644_v21, %v4645_v10  ;;  %v11354_v27 = vld [vmem:[#allocation2 + $0x58] sm:$0xff]  ;;  %v12967_v47 = vld [vmem:[#allocation15_spill] sm:$0xff] }
 0xebc   :  { %v11352_v58 = vsel %vm4571_vm0, %v4506_v22, %v12963_v2  ;;  %12965 = vst [vmem:[#allocation18_spill] sm:$0xff] %v11354_v27  ;;  %vm4610_vm11 = vcmp.gt.s32.totalorder %v11354_v27, %v4506_v22  ;;  %vm4611_vm13 = vcmp.gt.s32.totalorder %v12966_v29, %v4506_v22  ;;  %v4535_v15 = vcvt.f32.s32 %v4534_v57 }
 0xebd   :  { %12964 = vst [vmem:[#allocation21_spill] sm:$0xff] %v11352_v58  ;;  %v11361_v63 = vsel %vm4571_vm0, %v4554_v0, %v12967_v47  ;;  %vm4616_vm7 = vcmp.gt.s32.totalorder %v11363_v25, %v4554_v0  ;;  %vm4617_vm14 = vcmp.gt.s32.totalorder %v12970_v60, %v4554_v0  ;;  %v11367_v37 = vcvt.s32.f32 %v4799_v62  ;;  %v12971_v0 = vld [vmem:[#allocation16_spill] sm:$0xff] }
 0xebe   :  { %12968 = vst [vmem:[#allocation10_spill] sm:$0xff] %v11361_v63  ;;  %v4538_v43 = vadd.s32 %v4537_v44, %v4535_v15  ;;  %v11369_v40 = vsel %vm4844_vm6, %v4644_v21, %v4645_v10  ;;  %v4642_v2 = vsel %vm4610_vm11, %v11354_v27, 2147483647  ;;  %v4643_v22 = vsel %vm4611_vm13, %v12966_v29, 2147483647  ;;  %v11382_v21 = vld [vmem:[#allocation2 + $0xf0] sm:$0xff] }
 0xebf   :  { %v4566_v57 = vpop.xlane.xlu0 %4565  ;;  %4802 = vmin.xlane.f32.xlu0 %v11367_v37  ;;  %v4847_v47 = vshra.s32 %v11369_v40, 16  ;;  %vm4828_vm15 = vcmp.lt.s32.totalorder %v4642_v2, %v4643_v22  ;;  %v4648_v63 = vsel %vm4616_vm7, %v11363_v25, 2147483647  ;;  %v4649_v58 = vsel %vm4617_vm14, %v12970_v60, 2147483647 }
 0xec0   :  { %v11380_v62 = vsel %vm4571_vm0, %v4538_v43, %v12971_v0  ;;  %vm4614_vm10 = vcmp.gt.s32.totalorder %v11382_v21, %v4538_v43  ;;  %vm4615_vm1 = vcmp.gt.s32.totalorder %v11016_v11, %v4538_v43  ;;  %v4567_v10 = vcvt.f32.s32 %v4566_v57  ;;  %v12973_v43 = vld [vmem:[#allocation12_spill] sm:$0xff] }
 0xec1   :  { %12972 = vst [vmem:[#allocation14_spill] sm:$0xff] %v11380_v62  ;;  %v11386_v44 = vcvt.s32.f32 %v4847_v47  ;;  %v11388_v29 = vsel %vm4828_vm15, %v4642_v2, %v4643_v22  ;;  %vm4876_vm2 = vcmp.lt.s32.totalorder %v4648_v63, %v4649_v58  ;;  %v4646_v15 = vsel %vm4614_vm10, %v11382_v21, 2147483647  ;;  %v11402_v22 = vld [vmem:[#allocation2 + $0x30] sm:$0xff] }
 0xec2   :  { %v4570_v60 = vadd.s32 %v4569_v49, %v4567_v10  ;;  %v4831_v25 = vshra.s32 %v11388_v29, 16  ;;  %v11392_v27 = vsel %vm4876_vm2, %v4648_v63, %v4649_v58  ;;  %v4647_v0 = vsel %vm4615_vm1, %v11016_v11, 2147483647  ;;  %12975 = vst [vmem:[#allocation15_spill] sm:$0xff] %v11402_v22  ;;  %v11405_v49 = vld [vmem:[#allocation2 + $0xf8] sm:$0xff] }
 0xec3   :  { %4850 = vmin.xlane.f32.xlu1 %v11386_v44  ;;  %v4879_v62 = vshra.s32 %v11392_v27, 16  ;;  %vm4860_vm12 = vcmp.lt.s32.totalorder %v4646_v15, %v4647_v0  ;;  %12976 = vst [vmem:[#allocation11_spill] sm:$0xff] %v11405_v49 }
 0xec4   :  { %v11400_v2 = vsel %vm4571_vm0, %v4570_v60, %v12973_v43  ;;  %vm4618_vm5 = vcmp.gt.s32.totalorder %v11402_v22, %v4570_v60  ;;  %vm4619_vm4 = vcmp.gt.s32.totalorder %v11405_v49, %v4570_v60  ;;  %v11408_v58 = vcvt.s32.f32 %v4831_v25 }
 0xec5   :  { %12974 = vst [vmem:[#allocation9_spill] sm:$0xff] %v11400_v2  ;;  %v11410_v11 = vcvt.s32.f32 %v4879_v62  ;;  %v11412_v63 = vsel %vm4860_vm12, %v4646_v15, %v4647_v0  ;;  %v4650_v57 = vsel %vm4618_vm5, %v11402_v22, 2147483647  ;;  %v4651_v47 = vsel %vm4619_vm4, %v11405_v49, 2147483647 }
 0xec6   :  { %4834 = vmin.xlane.f32.xlu0 %v11408_v58  ;;  %v4863_v10 = vshra.s32 %v11412_v63, 16  ;;  %vm4892_vm0 = vcmp.lt.s32.totalorder %v4650_v57, %v4651_v47  ;;  %v4654_v15 = vand.u32 65535, %v11160_v23  ;;  %v4670_v0 = vand.u32 65535, %v11165_v28 }
 0xec7   :  { %4882 = vmin.xlane.f32.xlu1 %v11410_v11  ;;  %v11419_v43 = vsel %vm4892_vm0, %v4650_v57, %v4651_v47  ;;  %v4686_v23 = vand.u32 65535, %v11187_v53  ;;  %v4750_v53 = vand.u32 65535, %v11243_v7  ;;  %v4782_v7 = vand.u32 65535, %v11285_v39 }
 0xec8   :  { %v11421_v60 = vcvt.s32.f32 %v4863_v10  ;;  %v4895_v25 = vshra.s32 %v11419_v43, 16  ;;  %v4656_v22 = vcvt.s32.f32 %v4654_v15  ;;  %v4672_v10 = vcvt.s32.f32 %v4670_v0 }
 0xec9   :  { %v4688_v28 = vcvt.s32.f32 %v4686_v23  ;;  %v4752_v23 = vcvt.s32.f32 %v4750_v53 }
 0xeca   :  { %4866 = vmin.xlane.f32.xlu0 %v11421_v60  ;;  %v11425_v62 = vcvt.s32.f32 %v4895_v25 }
 0xece   :  { %4898 = vmin.xlane.f32.xlu0 %v11425_v62 }
 0xf0b   :  { %v11430_v49 = vpop.xlane.xlu1 %4658 }
 0xf0c   :  { %vm4660_vm3 = vcmp.eq.f32.partialorder %v11168_v20, %v11430_v49  ;;  %v4718_v20 = vand.u32 65535, %v11206_v6 }
 0xf0d   :  { %v11434_v57 = vpop.xlane.xlu0 %4674  ;;  %v4661_v47 = vsel %vm4660_vm3, %v4656_v22, inf  ;;  %vm4908_vm3 = vcmp.eq.s32.totalorder %v6476_v51, 12 }
 0xf0e   :  { %4662 = vmin.xlane.f32.xlu1 %v4661_v47  ;;  %vm4676_vm8 = vcmp.eq.f32.partialorder %v11172_v9, %v11434_v57  ;;  %v4720_v0 = vcvt.s32.f32 %v4718_v20  ;;  %v4702_v47 = vand.u32 65535, %v11235_v42  ;;  %v4734_v42 = vand.u32 65535, %v11281_v26 }
 0xf0f   :  { %v4677_v25 = vsel %vm4676_vm8, %v4672_v10, inf }
 0xf10   :  { %4678 = vmin.xlane.f32.xlu0 %v4677_v25  ;;  %v4704_v25 = vcvt.s32.f32 %v4702_v47 }
 0xf16   :  { %v11439_v2 = vpop.xlane.xlu1 %4690 }
 0xf17   :  { %vm4692_vm9 = vcmp.eq.f32.partialorder %v11190_v32, %v11439_v2 }
 0xf18   :  { %v4693_v15 = vsel %vm4692_vm9, %v4688_v28, inf }
 0xf19   :  { %4694 = vmin.xlane.f32.xlu1 %v4693_v15  ;;  %v4736_v15 = vcvt.s32.f32 %v4734_v42 }
 0xf22   :  { %v11444_v22 = vpop.xlane.xlu1 %4722 }
 0xf23   :  { %vm4724_vm6 = vcmp.eq.f32.partialorder %v11219_v16, %v11444_v22 }
 0xf24   :  { %v4725_v9 = vsel %vm4724_vm6, %v4720_v0, inf }
 0xf25   :  { %4726 = vmin.xlane.f32.xlu1 %v4725_v9  ;;  %v4784_v9 = vcvt.s32.f32 %v4782_v7 }
 0xf27   :  { %v11450_v10 = vpop.xlane.xlu0 %4706 }
 0xf28   :  { %vm4708_vm11 = vcmp.eq.f32.partialorder %v11241_v18, %v11450_v10  ;;  %v4766_v18 = vand.u32 65535, %v11303_v36 }
 0xf29   :  { %v4709_v32 = vsel %vm4708_vm11, %v4704_v25, inf }
 0xf2a   :  { %4710 = vmin.xlane.f32.xlu0 %v4709_v32  ;;  %v4768_v47 = vcvt.s32.f32 %v4766_v18  ;;  %v4862_v18 = vand.u32 65535, %v11412_v63 }
 0xf2c   :  { %v11454_v6 = vpop.xlane.xlu1 %4754 }
 0xf2d   :  { %vm4756_vm13 = vcmp.eq.f32.partialorder %v11256_v1, %v11454_v6  ;;  %v4814_v1 = vand.u32 65535, %v11308_v41 }
 0xf2e   :  { %v4757_v16 = vsel %vm4756_vm13, %v4752_v23, inf  ;;  %v4846_v23 = vand.u32 65535, %v11369_v40 }
 0xf2f   :  { %4758 = vmin.xlane.f32.xlu1 %v4757_v16  ;;  %v4816_v53 = vcvt.s32.f32 %v4814_v1  ;;  %v4830_v16 = vand.u32 65535, %v11388_v29  ;;  %v4894_v1 = vand.u32 65535, %v11419_v43 }
 0xf30   :  { %v4848_v7 = vcvt.s32.f32 %v4846_v23 }
 0xf31   :  { %v4832_v40 = vcvt.s32.f32 %v4830_v16 }
 0xf33   :  { %v11460_v28 = vpop.xlane.xlu0 %4738 }
 0xf34   :  { %vm4740_vm7 = vcmp.eq.f32.partialorder %v11297_v8, %v11460_v28 }
 0xf35   :  { %v4741_v20 = vsel %vm4740_vm7, %v4736_v15, inf }
 0xf36   :  { %4742 = vmin.xlane.f32.xlu0 %v4741_v20  ;;  %v11465_v0 = vpop.xlane.xlu1 %4786 }
 0xf37   :  { %vm4788_vm14 = vcmp.eq.f32.partialorder %v11305_v59, %v11465_v0  ;;  %v4798_v59 = vand.u32 65535, %v11335_v12 }
 0xf38   :  { %v11470_v26 = vpop.xlane.xlu0 %4770  ;;  %v4789_v39 = vsel %vm4788_vm14, %v4784_v9, inf  ;;  %v4864_v9 = vcvt.s32.f32 %v4862_v18 }
 0xf39   :  { %4790 = vmin.xlane.f32.xlu1 %v4789_v39  ;;  %vm4772_vm15 = vcmp.eq.f32.partialorder %v11313_v33, %v11470_v26  ;;  %v4800_v32 = vcvt.s32.f32 %v4798_v59  ;;  %v4896_v39 = vcvt.s32.f32 %v4894_v1 }
 0xf3a   :  { %v4773_v8 = vsel %vm4772_vm15, %v4768_v47, inf  ;;  %v11474_v36 = vpop.xlane.xlu1 %4818  ;;  %v4665_v47 = vcvt.f32.s32 %v11430_v49 }
 0xf3b   :  { %4774 = vmin.xlane.f32.xlu0 %v4773_v8  ;;  %vm4820_vm10 = vcmp.eq.f32.partialorder %v11315_v31, %v11474_v36  ;;  %v4878_v31 = vand.u32 65535, %v11392_v27  ;;  %v4681_v8 = vcvt.f32.s32 %v11434_v57 }
 0xf3c   :  { %v4821_v41 = vsel %vm4820_vm10, %v4816_v53, inf }
 0xf3d   :  { %4822 = vmin.xlane.f32.xlu1 %v4821_v41  ;;  %v4880_v29 = vcvt.s32.f32 %v4878_v31  ;;  %v4666_v41 = vshll.u32 %v4665_v47, 16  ;;  %v4682_v59 = vshll.u32 %v4681_v8, 16  ;;  %v4729_v8 = vcvt.f32.s32 %v11444_v22  ;;  %v11571_v22 = vld [vmem:[#allocation2 + $0xa8] sm:$0xff] }
 0xf48   :  { %v11479_v25 = vpop.xlane.xlu0 %4802 }
 0xf49   :  { %vm4804_vm1 = vcmp.eq.f32.partialorder %v11367_v37, %v11479_v25 }
 0xf4a   :  { %v4805_v33 = vsel %vm4804_vm1, %v4800_v32, inf }
 0xf4b   :  { %4806 = vmin.xlane.f32.xlu0 %v4805_v33 }
 0xf4c   :  { %v11485_v42 = vpop.xlane.xlu1 %4850 }
 0xf4d   :  { %vm4852_vm2 = vcmp.eq.f32.partialorder %v11386_v44, %v11485_v42 }
 0xf4e   :  { %v4853_v12 = vsel %vm4852_vm2, %v4848_v7, inf }
 0xf4f   :  { %v11490_v15 = vpop.xlane.xlu0 %4834  ;;  %4854 = vmin.xlane.f32.xlu1 %v4853_v12 }
 0xf50   :  { %vm4836_vm12 = vcmp.eq.f32.partialorder %v11408_v58, %v11490_v15  ;;  %v11495_v37 = vpop.xlane.xlu1 %4882 }
 0xf51   :  { %v4837_v20 = vsel %vm4836_vm12, %v4832_v40, inf  ;;  %vm4884_vm5 = vcmp.eq.f32.partialorder %v11410_v11, %v11495_v37 }
 0xf52   :  { %4838 = vmin.xlane.f32.xlu0 %v4837_v20  ;;  %v4885_v27 = vsel %vm4884_vm5, %v4880_v29, inf }
 0xf53   :  { %v11499_v44 = vpop.xlane.xlu0 %4866  ;;  %4886 = vmin.xlane.f32.xlu1 %v4885_v27 }
 0xf54   :  { %vm4868_vm4 = vcmp.eq.f32.partialorder %v11421_v60, %v11499_v44 }
 0xf55   :  { %v4869_v63 = vsel %vm4868_vm4, %v4864_v9, inf }
 0xf56   :  { %4870 = vmin.xlane.f32.xlu0 %v4869_v63 }
 0xf57   :  { %v11504_v58 = vpop.xlane.xlu0 %4898 }
 0xf58   :  { %vm4900_vm0 = vcmp.eq.f32.partialorder %v11425_v62, %v11504_v58  ;;  %v11517_v62 = vld [vmem:[#allocation2 + $0x60] sm:$0xff] }
 0xf59   :  { %v4901_v11 = vsel %vm4900_vm0, %v4896_v39, inf }
 0xf5a   :  { %4902 = vmin.xlane.f32.xlu0 %v4901_v11 }
 0xf97   :  { %v4663_v53 = vpop.xlane.xlu1 %4662 }
 0xf98   :  { %v4664_v43 = vcvt.f32.s32 %v4663_v53 }
 0xf99   :  { %v4679_v60 = vpop.xlane.xlu0 %4678 }
 0xf9a   :  { %v4667_v32 = vadd.s32 %v4666_v41, %v4664_v43  ;;  %v4680_v23 = vcvt.f32.s32 %v4679_v60 }
 0xf9c   :  { %v11514_v33 = vsel %vm4908_vm3, %v4667_v32, %v11143_v13  ;;  %vm4925_vm8 = vcmp.gt.s32.totalorder %v11145_v54, %v4667_v32  ;;  %vm4926_vm9 = vcmp.gt.s32.totalorder %v11517_v62, %v4667_v32  ;;  %v4683_v49 = vadd.s32 %v4682_v59, %v4680_v23  ;;  %v11528_v13 = vld [vmem:[#allocation2 + $0x8] sm:$0xff] }
 0xf9d   :  { %v4957_v57 = vsel %vm4925_vm8, %v11145_v54, 2147483647  ;;  %v4958_v16 = vsel %vm4926_vm9, %v11517_v62, 2147483647  ;;  %v4713_v32 = vcvt.f32.s32 %v11450_v10 }
 0xf9e   :  { %v11525_v7 = vsel %vm4908_vm3, %v4683_v49, %v11154_v19  ;;  %vm4927_vm6 = vcmp.gt.s32.totalorder %v11156_v45, %v4683_v49  ;;  %vm4928_vm11 = vcmp.gt.s32.totalorder %v11528_v13, %v4683_v49  ;;  %vm4989_vm13 = vcmp.lt.s32.totalorder %v4957_v57, %v4958_v16 }
 0xf9f   :  { %v11531_v31 = vsel %vm4989_vm13, %v4957_v57, %v4958_v16  ;;  %v4959_v12 = vsel %vm4927_vm6, %v11156_v45, 2147483647  ;;  %v4960_v54 = vsel %vm4928_vm11, %v11528_v13, 2147483647  ;;  %v4697_v19 = vcvt.f32.s32 %v11439_v2  ;;  %v11552_v2 = vld [vmem:[#allocation2 + $0xb0] sm:$0xff] }
 0xfa0   :  { %v4992_v40 = vshra.s32 %v11531_v31, 16  ;;  %vm5005_vm7 = vcmp.lt.s32.totalorder %v4959_v12, %v4960_v54  ;;  %v4761_v49 = vcvt.f32.s32 %v11454_v6 }
 0xfa1   :  { %v11536_v18 = vsel %vm5005_vm7, %v4959_v12, %v4960_v54  ;;  %v4698_v1 = vshll.u32 %v4697_v19, 16  ;;  %v4714_v12 = vshll.u32 %v4713_v32, 16  ;;  %v4793_v32 = vcvt.f32.s32 %v11465_v0 }
 0xfa2   :  { %v11539_v29 = vcvt.s32.f32 %v4992_v40  ;;  %v5008_v20 = vshra.s32 %v11536_v18, 16  ;;  %v4695_v9 = vpop.xlane.xlu1 %4694 }
 0xfa3   :  { %v4696_v45 = vcvt.f32.s32 %v4695_v9  ;;  %v4762_v9 = vshll.u32 %v4761_v49, 16 }
 0xfa4   :  { %4995 = vmin.xlane.f32.xlu1 %v11539_v29  ;;  %v11543_v27 = vcvt.s32.f32 %v5008_v20 }
 0xfa5   :  { %v4699_v63 = vadd.s32 %v4698_v1, %v4696_v45 }
 0xfa6   :  { %5011 = vmin.xlane.f32.xlu0 %v11543_v27 }
 0xfa7   :  { %v11549_v39 = vsel %vm4908_vm3, %v4699_v63, %v11178_v30  ;;  %vm4929_vm14 = vcmp.gt.s32.totalorder %v11180_v56, %v4699_v63  ;;  %vm4930_vm15 = vcmp.gt.s32.totalorder %v11552_v2, %v4699_v63  ;;  %v4730_v30 = vshll.u32 %v4729_v8, 16 }
 0xfa8   :  { %v4961_v11 = vsel %vm4929_vm14, %v11180_v56, 2147483647  ;;  %v4962_v47 = vsel %vm4930_vm15, %v11552_v2, 2147483647  ;;  %v4745_v63 = vcvt.f32.s32 %v11460_v28 }
 0xfa9   :  { %vm5021_vm10 = vcmp.lt.s32.totalorder %v4961_v11, %v4962_v47 }
 0xfaa   :  { %v11558_v53 = vsel %vm5021_vm10, %v4961_v11, %v4962_v47 }
 0xfab   :  { %v5024_v41 = vshra.s32 %v11558_v53, 16 }
 0xfad   :  { %v11561_v59 = vcvt.s32.f32 %v5024_v41  ;;  %v11601_v41 = vld [vmem:[#allocation2 + $0x68] sm:$0xff] }
 0xfae   :  { %v4727_v43 = vpop.xlane.xlu1 %4726 }
 0xfaf   :  { %v4728_v60 = vcvt.f32.s32 %v4727_v43  ;;  %5027 = vmin.xlane.f32.xlu1 %v11561_v59 }
 0xfb1   :  { %v4731_v23 = vadd.s32 %v4730_v30, %v4728_v60  ;;  %v4746_v60 = vshll.u32 %v4745_v63, 16 }
 0xfb3   :  { %v11568_v56 = vsel %vm4908_vm3, %v4731_v23, %v11197_v61  ;;  %vm4933_vm1 = vcmp.gt.s32.totalorder %v11199_v3, %v4731_v23  ;;  %vm4934_vm2 = vcmp.gt.s32.totalorder %v11571_v22, %v4731_v23  ;;  %v4711_v57 = vpop.xlane.xlu0 %4710 }
 0xfb4   :  { %v4965_v16 = vsel %vm4933_vm1, %v11199_v3, 2147483647  ;;  %v4966_v10 = vsel %vm4934_vm2, %v11571_v22, 2147483647  ;;  %v4712_v54 = vcvt.f32.s32 %v4711_v57  ;;  %v11586_v3 = vld [vmem:[#allocation2 + $0x38] sm:$0xff] }
 0xfb5   :  { %vm5053_vm12 = vcmp.lt.s32.totalorder %v4965_v16, %v4966_v10 }
 0xfb6   :  { %v11577_v40 = vsel %vm5053_vm12, %v4965_v16, %v4966_v10  ;;  %v4715_v61 = vadd.s32 %v4714_v12, %v4712_v54  ;;  %v4825_v12 = vcvt.f32.s32 %v11474_v36 }
 0xfb7   :  { %v5056_v20 = vshra.s32 %v11577_v40, 16 }
 0xfb8   :  { %v4759_v19 = vpop.xlane.xlu1 %4758  ;;  %v11583_v6 = vsel %vm4908_vm3, %v4715_v61, %v11213_v5  ;;  %vm4931_vm5 = vcmp.gt.s32.totalorder %v11215_v24, %v4715_v61  ;;  %vm4932_vm4 = vcmp.gt.s32.totalorder %v11586_v3, %v4715_v61  ;;  %v4794_v61 = vshll.u32 %v4793_v32, 16 }
 0xfb9   :  { %v4760_v1 = vcvt.f32.s32 %v4759_v19  ;;  %v11589_v45 = vcvt.s32.f32 %v5056_v20  ;;  %v4963_v47 = vsel %vm4931_vm5, %v11215_v24, 2147483647  ;;  %v4964_v8 = vsel %vm4932_vm4, %v11586_v3, 2147483647 }
 0xfba   :  { %vm5037_vm0 = vcmp.lt.s32.totalorder %v4963_v47, %v4964_v8 }
 0xfbb   :  { %v4763_v11 = vadd.s32 %v4762_v9, %v4760_v1  ;;  %5059 = vmin.xlane.f32.xlu1 %v11589_v45  ;;  %v11604_v28 = vsel %vm5037_vm0, %v4963_v47, %v4964_v8  ;;  %v11626_v9 = vld [vmem:[#allocation2 + $0xd8] sm:$0xff]  ;;  %v4826_v8 = vshll.u32 %v4825_v12, 16 }
 0xfbc   :  { %v5040_v24 = vshra.s32 %v11604_v28, 16 }
 0xfbd   :  { %v11598_v5 = vsel %vm4908_vm3, %v4763_v11, %v11229_v4  ;;  %vm4937_vm8 = vcmp.gt.s32.totalorder %v11231_v34, %v4763_v11  ;;  %vm4938_vm9 = vcmp.gt.s32.totalorder %v11601_v41, %v4763_v11  ;;  %v4777_v4 = vcvt.f32.s32 %v11470_v26 }
 0xfbe   :  { %v4969_v43 = vsel %vm4937_vm8, %v11231_v34, 2147483647  ;;  %v4970_v30 = vsel %vm4938_vm9, %v11601_v41, 2147483647  ;;  %v11611_v57 = vcvt.s32.f32 %v5040_v24 }
 0xfbf   :  { %v4743_v23 = vpop.xlane.xlu0 %4742  ;;  %vm5085_vm6 = vcmp.lt.s32.totalorder %v4969_v43, %v4970_v30  ;;  %v4778_v20 = vshll.u32 %v4777_v4, 16 }
 0xfc0   :  { %v4744_v49 = vcvt.f32.s32 %v4743_v23  ;;  %v11613_v16 = vsel %vm5085_vm6, %v4969_v43, %v4970_v30  ;;  %5043 = vmin.xlane.f32.xlu0 %v11611_v57  ;;  %v11638_v43 = vld [vmem:[#allocation2] sm:$0xff] }
 0xfc1   :  { %v5088_v10 = vshra.s32 %v11613_v16, 16 }
 0xfc2   :  { %v4747_v54 = vadd.s32 %v4746_v60, %v4744_v49  ;;  %v4791_v34 = vpop.xlane.xlu1 %4790 }
 0xfc3   :  { %v4792_v19 = vcvt.f32.s32 %v4791_v34  ;;  %v11618_v0 = vcvt.s32.f32 %v5088_v10 }
 0xfc4   :  { %v11623_v26 = vsel %vm4908_vm3, %v4747_v54, %v11249_v50  ;;  %vm4935_vm11 = vcmp.gt.s32.totalorder %v11251_v38, %v4747_v54  ;;  %vm4936_vm13 = vcmp.gt.s32.totalorder %v11626_v9, %v4747_v54  ;;  %v4775_v36 = vpop.xlane.xlu0 %4774 }
 0xfc5   :  { %v4795_v1 = vadd.s32 %v4794_v61, %v4792_v19  ;;  %v4776_v63 = vcvt.f32.s32 %v4775_v36  ;;  %5091 = vmin.xlane.f32.xlu1 %v11618_v0  ;;  %v4967_v11 = vsel %vm4935_vm11, %v11251_v38, 2147483647  ;;  %v4968_v47 = vsel %vm4936_vm13, %v11626_v9, 2147483647  ;;  %v12977_v61 = vld [vmem:[#allocation17_spill] sm:$0xff] }
 0xfc6   :  { %v4823_v24 = vpop.xlane.xlu1 %4822  ;;  %vm5069_vm7 = vcmp.lt.s32.totalorder %v4967_v11, %v4968_v47  ;;  %v11667_v19 = vld [vmem:[#allocation2 + $0xd0] sm:$0xff] }
 0xfc7   :  { %v11635_v50 = vsel %vm4908_vm3, %v4795_v1, %v11263_v14  ;;  %vm4941_vm14 = vcmp.gt.s32.totalorder %v11265_v52, %v4795_v1  ;;  %vm4942_vm15 = vcmp.gt.s32.totalorder %v11638_v43, %v4795_v1  ;;  %v4779_v30 = vadd.s32 %v4778_v20, %v4776_v63  ;;  %v11651_v14 = vld [vmem:[#allocation2 + $0x98] sm:$0xff]  ;;  %12978 = vst [vmem:[#allocation16_spill] sm:$0xff] %v11667_v19 }
 0xfc8   :  { %v4824_v60 = vcvt.f32.s32 %v4823_v24  ;;  %v11641_v32 = vsel %vm5069_vm7, %v4967_v11, %v4968_v47  ;;  %v4973_v38 = vsel %vm4941_vm14, %v11265_v52, 2147483647  ;;  %v4974_v23 = vsel %vm4942_vm15, %v11638_v43, 2147483647 }
 0xfc9   :  { %v11648_v4 = vsel %vm4908_vm3, %v4779_v30, %v11275_v55  ;;  %vm4939_vm10 = vcmp.gt.s32.totalorder %v11277_v35, %v4779_v30  ;;  %vm4940_vm1 = vcmp.gt.s32.totalorder %v11651_v14, %v4779_v30  ;;  %v5072_v49 = vshra.s32 %v11641_v32, 16 }
 0xfca   :  { %v4827_v10 = vadd.s32 %v4826_v8, %v4824_v60  ;;  %vm5117_vm2 = vcmp.lt.s32.totalorder %v4973_v38, %v4974_v23  ;;  %v4971_v12 = vsel %vm4939_vm10, %v11277_v35, 2147483647  ;;  %v4972_v52 = vsel %vm4940_vm1, %v11651_v14, 2147483647 }
 0xfcb   :  { %v11657_v54 = vcvt.s32.f32 %v5072_v49  ;;  %v11659_v34 = vsel %vm5117_vm2, %v4973_v38, %v4974_v23  ;;  %vm5101_vm12 = vcmp.lt.s32.totalorder %v4971_v12, %v4972_v52  ;;  %v4809_v47 = vcvt.f32.s32 %v11479_v25 }
 0xfcc   :  { %v11664_v55 = vsel %vm4908_vm3, %v4827_v10, %v11291_v48  ;;  %vm4945_vm5 = vcmp.gt.s32.totalorder %v12977_v61, %v4827_v10  ;;  %vm4946_vm4 = vcmp.gt.s32.totalorder %v11667_v19, %v4827_v10  ;;  %v5120_v35 = vshra.s32 %v11659_v34, 16 }
 0xfcd   :  { %5075 = vmin.xlane.f32.xlu0 %v11657_v54  ;;  %v11672_v20 = vsel %vm5101_vm12, %v4971_v12, %v4972_v52  ;;  %v4977_v36 = vsel %vm4945_vm5, %v12977_v61, 2147483647  ;;  %v4978_v1 = vsel %vm4946_vm4, %v11667_v19, 2147483647  ;;  %v4857_v60 = vcvt.f32.s32 %v11485_v42  ;;  %v11699_v42 = vld [vmem:[#allocation2 + $0x10] sm:$0xff]  ;;  %v12981_v19 = vld [vmem:[#allocation20_spill] sm:$0xff] }
 0xfce   :  { %v11676_v63 = vcvt.s32.f32 %v5120_v35  ;;  %v5104_v48 = vshra.s32 %v11672_v20, 16  ;;  %vm5149_vm0 = vcmp.lt.s32.totalorder %v4977_v36, %v4978_v1  ;;  %v4810_v23 = vshll.u32 %v4809_v47, 16  ;;  %v12979_v35 = vld [vmem:[#allocation13_spill] sm:$0xff] }
 0xfcf   :  { %v11679_v11 = vsel %vm5149_vm0, %v4977_v36, %v4978_v1  ;;  %v4858_v12 = vshll.u32 %v4857_v60, 16  ;;  %v4841_v25 = vcvt.f32.s32 %v11490_v15  ;;  %v4889_v52 = vcvt.f32.s32 %v11495_v37 }
 0xfd0   :  { %5123 = vmin.xlane.f32.xlu1 %v11676_v63  ;;  %v11683_v8 = vcvt.s32.f32 %v5104_v48  ;;  %v5152_v24 = vshra.s32 %v11679_v11, 16  ;;  %v4873_v15 = vcvt.f32.s32 %v11499_v44  ;;  %v4905_v37 = vcvt.f32.s32 %v11504_v58 }
 0xfd2   :  { %5107 = vmin.xlane.f32.xlu0 %v11683_v8  ;;  %v11687_v30 = vcvt.s32.f32 %v5152_v24 }
 0xfd4   :  { %v4807_v38 = vpop.xlane.xlu0 %4806  ;;  %5155 = vmin.xlane.f32.xlu1 %v11687_v30 }
 0xfd5   :  { %v4808_v49 = vcvt.f32.s32 %v4807_v38  ;;  %v4842_v38 = vshll.u32 %v4841_v25, 16 }
 0xfd7   :  { %v4811_v10 = vadd.s32 %v4810_v23, %v4808_v49  ;;  %v4890_v23 = vshll.u32 %v4889_v52, 16 }
 0xfd8   :  { %v4855_v61 = vpop.xlane.xlu1 %4854 }
 0xfd9   :  { %v11696_v36 = vsel %vm4908_vm3, %v4811_v10, %v12979_v35  ;;  %vm4943_vm8 = vcmp.gt.s32.totalorder %v11327_v46, %v4811_v10  ;;  %vm4944_vm9 = vcmp.gt.s32.totalorder %v11699_v42, %v4811_v10  ;;  %v4856_v1 = vcvt.f32.s32 %v4855_v61 }
 0xfda   :  { %12980 = vst [vmem:[#allocation12_spill] sm:$0xff] %v11696_v36  ;;  %v4975_v48 = vsel %vm4943_vm8, %v11327_v46, 2147483647  ;;  %v4976_v47 = vsel %vm4944_vm9, %v11699_v42, 2147483647  ;;  %v11714_v46 = vld [vmem:[#allocation2 + $0xc8] sm:$0xff] }
 0xfdb   :  { %v4859_v24 = vadd.s32 %v4858_v12, %v4856_v1  ;;  %v4839_v60 = vpop.xlane.xlu0 %4838  ;;  %vm5133_vm6 = vcmp.lt.s32.totalorder %v4975_v48, %v4976_v47  ;;  %v4874_v61 = vshll.u32 %v4873_v15, 16  ;;  %v4906_v1 = vshll.u32 %v4905_v37, 16  ;;  %v12989_v37 = vld [vmem:[#allocation19_spill] sm:$0xff] }
 0xfdc   :  { %v4840_v49 = vcvt.f32.s32 %v4839_v60  ;;  %v4887_v35 = vpop.xlane.xlu1 %4886  ;;  %v11706_v36 = vsel %vm5133_vm6, %v4975_v48, %v4976_v47 }
 0xfdd   :  { %v11711_v10 = vsel %vm4908_vm3, %v4859_v24, %v12981_v19  ;;  %vm4949_vm11 = vcmp.gt.s32.totalorder %v11342_v17, %v4859_v24  ;;  %vm4950_vm13 = vcmp.gt.s32.totalorder %v11714_v46, %v4859_v24  ;;  %v4888_v44 = vcvt.f32.s32 %v4887_v35  ;;  %v12983_v19 = vld [vmem:[#allocation21_spill] sm:$0xff] }
 0xfde   :  { %12982 = vst [vmem:[#allocation17_spill] sm:$0xff] %v11711_v10  ;;  %v4843_v58 = vadd.s32 %v4842_v38, %v4840_v49  ;;  %v5136_v12 = vshra.s32 %v11706_v36, 16  ;;  %v4981_v25 = vsel %vm4949_vm11, %v11342_v17, 2147483647  ;;  %v4982_v52 = vsel %vm4950_vm13, %v11714_v46, 2147483647 }
 0xfdf   :  { %v4891_v48 = vadd.s32 %v4890_v23, %v4888_v44  ;;  %v4871_v47 = vpop.xlane.xlu0 %4870  ;;  %vm5181_vm7 = vcmp.lt.s32.totalorder %v4981_v25, %v4982_v52  ;;  %v12985_v10 = vld [vmem:[#allocation18_spill] sm:$0xff]  ;;  %v11726_v24 = vld [vmem:[#allocation2 + $0x70] sm:$0xff] }
 0xfe0   :  { %v11723_v60 = vsel %vm4908_vm3, %v4843_v58, %v12983_v19  ;;  %vm4947_vm14 = vcmp.gt.s32.totalorder %v12985_v10, %v4843_v58  ;;  %12986 = vst [vmem:[#allocation20_spill] sm:$0xff] %v11726_v24  ;;  %vm4948_vm15 = vcmp.gt.s32.totalorder %v11726_v24, %v4843_v58  ;;  %v4872_v38 = vcvt.f32.s32 %v4871_v47  ;;  %v12987_v17 = vld [vmem:[#allocation10_spill] sm:$0xff] }
 0xfe1   :  { %12984 = vst [vmem:[#allocation13_spill] sm:$0xff] %v11723_v60  ;;  %v11732_v15 = vsel %vm4908_vm3, %v4891_v48, %v12987_v17  ;;  %vm4953_vm10 = vcmp.gt.s32.totalorder %v12989_v37, %v4891_v48  ;;  %v11735_v23 = vld [vmem:[#allocation2 + $0x18] sm:$0xff]  ;;  %v11738_v49 = vcvt.s32.f32 %v5136_v12  ;;  %v11740_v44 = vsel %vm5181_vm7, %v4981_v25, %v4982_v52 }
 0xfe2   :  { %12988 = vst [vmem:[#allocation21_spill] sm:$0xff] %v11732_v15  ;;  %12990 = vst [vmem:[#allocation18_spill] sm:$0xff] %v11735_v23  ;;  %vm4954_vm1 = vcmp.gt.s32.totalorder %v11735_v23, %v4891_v48  ;;  %v4875_v35 = vadd.s32 %v4874_v61, %v4872_v38  ;;  %v4979_v19 = vsel %vm4947_vm14, %v12985_v10, 2147483647  ;;  %v4980_v58 = vsel %vm4948_vm15, %v11726_v24, 2147483647 }
 0xfe3   :  { %v4903_v47 = vpop.xlane.xlu0 %4902  ;;  %5139 = vmin.xlane.f32.xlu0 %v11738_v49  ;;  %v5184_v17 = vshra.s32 %v11740_v44, 16  ;;  %vm5165_vm2 = vcmp.lt.s32.totalorder %v4979_v19, %v4980_v58  ;;  %v4985_v15 = vsel %vm4953_vm10, %v12989_v37, 2147483647  ;;  %v4986_v60 = vsel %vm4954_vm1, %v11735_v23, 2147483647  ;;  %v12991_v48 = vld [vmem:[#allocation14_spill] sm:$0xff] }
 0xfe4   :  { %v11751_v12 = vsel %vm4908_vm3, %v4875_v35, %v12991_v48  ;;  %vm4951_vm12 = vcmp.gt.s32.totalorder %v11382_v21, %v4875_v35  ;;  %v11754_v10 = vld [vmem:[#allocation2 + $0xe0] sm:$0xff]  ;;  %v4904_v25 = vcvt.f32.s32 %v4903_v47  ;;  %v11759_v61 = vsel %vm5165_vm2, %v4979_v19, %v4980_v58 }
 0xfe5   :  { %12992 = vst [vmem:[#allocation10_spill] sm:$0xff] %v11751_v12  ;;  %vm4952_vm5 = vcmp.gt.s32.totalorder %v11754_v10, %v4875_v35  ;;  %v11757_v52 = vcvt.s32.f32 %v5184_v17  ;;  %vm5213_vm4 = vcmp.lt.s32.totalorder %v4985_v15, %v4986_v60  ;;  %v4983_v38 = vsel %vm4951_vm12, %v11382_v21, 2147483647  ;;  %v12993_v35 = vld [vmem:[#allocation9_spill] sm:$0xff]  ;;  %v12995_v58 = vld [vmem:[#allocation15_spill] sm:$0xff] }
 0xfe6   :  { %v4907_v37 = vadd.s32 %v4906_v1, %v4904_v25  ;;  %v5168_v23 = vshra.s32 %v11759_v61, 16  ;;  %v11763_v24 = vsel %vm5213_vm4, %v4985_v15, %v4986_v60  ;;  %v4984_v48 = vsel %vm4952_vm5, %v11754_v10, 2147483647  ;;  %v12996_v21 = vld [vmem:[#allocation11_spill] sm:$0xff] }
 0xfe7   :  { %5187 = vmin.xlane.f32.xlu1 %v11757_v52  ;;  %v5216_v12 = vshra.s32 %v11763_v24, 16  ;;  %vm5197_vm0 = vcmp.lt.s32.totalorder %v4983_v38, %v4984_v48 }
 0xfe8   :  { %v11771_v19 = vsel %vm4908_vm3, %v4907_v37, %v12993_v35  ;;  %vm4955_vm8 = vcmp.gt.s32.totalorder %v12995_v58, %v4907_v37  ;;  %vm4956_vm9 = vcmp.gt.s32.totalorder %v12996_v21, %v4907_v37  ;;  %v11775_v1 = vcvt.s32.f32 %v5168_v23 }
 0xfe9   :  { %12994 = vst [vmem:[#allocation19_spill] sm:$0xff] %v11771_v19  ;;  %v11777_v60 = vcvt.s32.f32 %v5216_v12  ;;  %v11779_v15 = vsel %vm5197_vm0, %v4983_v38, %v4984_v48  ;;  %v4987_v47 = vsel %vm4955_vm8, %v12995_v58, 2147483647  ;;  %v4988_v17 = vsel %vm4956_vm9, %v12996_v21, 2147483647 }
 0xfea   :  { %5171 = vmin.xlane.f32.xlu0 %v11775_v1  ;;  %v5200_v25 = vshra.s32 %v11779_v15, 16  ;;  %vm5229_vm3 = vcmp.lt.s32.totalorder %v4987_v47, %v4988_v17  ;;  %v4991_v38 = vand.u32 65535, %v11531_v31  ;;  %v5007_v48 = vand.u32 65535, %v11536_v18 }
 0xfeb   :  { %5219 = vmin.xlane.f32.xlu1 %v11777_v60  ;;  %v11786_v35 = vsel %vm5229_vm3, %v4987_v47, %v4988_v17  ;;  %v5023_v31 = vand.u32 65535, %v11558_v53  ;;  %v5087_v53 = vand.u32 65535, %v11613_v16  ;;  %v5119_v16 = vand.u32 65535, %v11659_v34 }
 0xfec   :  { %v11788_v37 = vcvt.s32.f32 %v5200_v25  ;;  %v5232_v23 = vshra.s32 %v11786_v35, 16  ;;  %v4993_v21 = vcvt.s32.f32 %v4991_v38  ;;  %v5009_v25 = vcvt.s32.f32 %v5007_v48 }
 0xfed   :  { %v5025_v18 = vcvt.s32.f32 %v5023_v31  ;;  %v5089_v31 = vcvt.s32.f32 %v5087_v53 }
 0xfee   :  { %5203 = vmin.xlane.f32.xlu0 %v11788_v37  ;;  %v11792_v12 = vcvt.s32.f32 %v5232_v23 }
 0xff2   :  { %5235 = vmin.xlane.f32.xlu0 %v11792_v12 }
0x102d   :  { %v11797_v58 = vpop.xlane.xlu1 %4995 }
0x102e   :  { %vm4997_vm6 = vcmp.eq.f32.partialorder %v11539_v29, %v11797_v58  ;;  %v5055_v29 = vand.u32 65535, %v11577_v40 }
0x102f   :  { %v11801_v47 = vpop.xlane.xlu0 %5011  ;;  %v4998_v17 = vsel %vm4997_vm6, %v4993_v21, inf  ;;  %vm5245_vm6 = vcmp.eq.s32.totalorder %v6476_v51, 13 }
0x1030   :  { %vm5013_vm11 = vcmp.eq.f32.partialorder %v11543_v27, %v11801_v47  ;;  %4999 = vmin.xlane.f32.xlu1 %v4998_v17  ;;  %v5057_v48 = vcvt.s32.f32 %v5055_v29  ;;  %v5039_v17 = vand.u32 65535, %v11604_v28  ;;  %v5071_v28 = vand.u32 65535, %v11641_v32 }
0x1031   :  { %v5014_v23 = vsel %vm5013_vm11, %v5009_v25, inf }
0x1032   :  { %5015 = vmin.xlane.f32.xlu0 %v5014_v23  ;;  %v5041_v23 = vcvt.s32.f32 %v5039_v17 }
0x1038   :  { %v11806_v19 = vpop.xlane.xlu1 %5027 }
0x1039   :  { %vm5029_vm13 = vcmp.eq.f32.partialorder %v11561_v59, %v11806_v19 }
0x103a   :  { %v5030_v38 = vsel %vm5029_vm13, %v5025_v18, inf }
0x103b   :  { %5031 = vmin.xlane.f32.xlu1 %v5030_v38  ;;  %v5073_v38 = vcvt.s32.f32 %v5071_v28 }
0x1044   :  { %v11811_v21 = vpop.xlane.xlu1 %5059 }
0x1045   :  { %vm5061_vm7 = vcmp.eq.f32.partialorder %v11589_v45, %v11811_v21 }
0x1046   :  { %v5062_v27 = vsel %vm5061_vm7, %v5057_v48, inf }
0x1047   :  { %5063 = vmin.xlane.f32.xlu1 %v5062_v27  ;;  %v5121_v27 = vcvt.s32.f32 %v5119_v16 }
0x1049   :  { %v11817_v25 = vpop.xlane.xlu0 %5043 }
0x104a   :  { %vm5045_vm14 = vcmp.eq.f32.partialorder %v11611_v57, %v11817_v25  ;;  %v5103_v57 = vand.u32 65535, %v11672_v20 }
0x104b   :  { %v5046_v59 = vsel %vm5045_vm14, %v5041_v23, inf }
0x104c   :  { %5047 = vmin.xlane.f32.xlu0 %v5046_v59  ;;  %v5105_v17 = vcvt.s32.f32 %v5103_v57  ;;  %v5199_v57 = vand.u32 65535, %v11779_v15 }
0x104e   :  { %v11821_v40 = vpop.xlane.xlu1 %5091 }
0x104f   :  { %vm5093_vm15 = vcmp.eq.f32.partialorder %v11618_v0, %v11821_v40  ;;  %v5151_v0 = vand.u32 65535, %v11679_v11 }
0x1050   :  { %v5094_v45 = vsel %vm5093_vm15, %v5089_v31, inf  ;;  %v5183_v31 = vand.u32 65535, %v11740_v44 }
0x1051   :  { %5095 = vmin.xlane.f32.xlu1 %v5094_v45  ;;  %v5153_v53 = vcvt.s32.f32 %v5151_v0  ;;  %v5167_v45 = vand.u32 65535, %v11759_v61  ;;  %v5231_v0 = vand.u32 65535, %v11786_v35 }
0x1052   :  { %v5185_v16 = vcvt.s32.f32 %v5183_v31 }
0x1053   :  { %v5169_v44 = vcvt.s32.f32 %v5167_v45 }
0x1056   :  { %v11827_v18 = vpop.xlane.xlu0 %5075 }
0x1057   :  { %vm5077_vm10 = vcmp.eq.f32.partialorder %v11657_v54, %v11827_v18 }
0x1058   :  { %v5078_v29 = vsel %vm5077_vm10, %v5073_v38, inf }
0x1059   :  { %5079 = vmin.xlane.f32.xlu0 %v5078_v29  ;;  %v11832_v48 = vpop.xlane.xlu1 %5123 }
0x105a   :  { %vm5125_vm1 = vcmp.eq.f32.partialorder %v11676_v63, %v11832_v48  ;;  %v5135_v63 = vand.u32 65535, %v11706_v36 }
0x105b   :  { %v11837_v32 = vpop.xlane.xlu0 %5107  ;;  %v5126_v34 = vsel %vm5125_vm1, %v5121_v27, inf  ;;  %v5201_v27 = vcvt.s32.f32 %v5199_v57 }
0x105c   :  { %vm5109_vm2 = vcmp.eq.f32.partialorder %v11683_v8, %v11837_v32  ;;  %5127 = vmin.xlane.f32.xlu1 %v5126_v34  ;;  %v5137_v59 = vcvt.s32.f32 %v5135_v63  ;;  %v5233_v34 = vcvt.s32.f32 %v5231_v0 }
0x105d   :  { %v5110_v54 = vsel %vm5109_vm2, %v5105_v17, inf  ;;  %v11841_v20 = vpop.xlane.xlu1 %5155  ;;  %v5002_v17 = vcvt.f32.s32 %v11797_v58 }
0x105e   :  { %5111 = vmin.xlane.f32.xlu0 %v5110_v54  ;;  %vm5157_vm12 = vcmp.eq.f32.partialorder %v11687_v30, %v11841_v20  ;;  %v5215_v30 = vand.u32 65535, %v11763_v24  ;;  %v5018_v54 = vcvt.f32.s32 %v11801_v47 }
0x105f   :  { %v5158_v11 = vsel %vm5157_vm12, %v5153_v53, inf }
0x1060   :  { %5159 = vmin.xlane.f32.xlu1 %v5158_v11  ;;  %v5217_v61 = vcvt.s32.f32 %v5215_v30  ;;  %v5003_v11 = vshll.u32 %v5002_v17, 16  ;;  %v5019_v63 = vshll.u32 %v5018_v54, 16  ;;  %v11894_v30 = vld [vmem:[#allocation2 + $0xb8] sm:$0xff]  ;;  %v5066_v54 = vcvt.f32.s32 %v11811_v21  ;;  %v11937_v21 = vld [vmem:[#allocation2 + $0xc0] sm:$0xff] }
0x106c   :  { %v11846_v23 = vpop.xlane.xlu0 %5139 }
0x106d   :  { %vm5141_vm5 = vcmp.eq.f32.partialorder %v11738_v49, %v11846_v23 }
0x106e   :  { %v5142_v8 = vsel %vm5141_vm5, %v5137_v59, inf }
0x106f   :  { %5143 = vmin.xlane.f32.xlu0 %v5142_v8 }
0x1070   :  { %v11852_v28 = vpop.xlane.xlu1 %5187 }
0x1071   :  { %vm5189_vm4 = vcmp.eq.f32.partialorder %v11757_v52, %v11852_v28 }
0x1072   :  { %v5190_v36 = vsel %vm5189_vm4, %v5185_v16, inf }
0x1073   :  { %v11857_v38 = vpop.xlane.xlu0 %5171  ;;  %5191 = vmin.xlane.f32.xlu1 %v5190_v36 }
0x1074   :  { %vm5173_vm0 = vcmp.eq.f32.partialorder %v11775_v1, %v11857_v38  ;;  %v11862_v49 = vpop.xlane.xlu1 %5219 }
0x1075   :  { %v5174_v29 = vsel %vm5173_vm0, %v5169_v44, inf  ;;  %vm5221_vm8 = vcmp.eq.f32.partialorder %v11777_v60, %v11862_v49 }
0x1076   :  { %5175 = vmin.xlane.f32.xlu0 %v5174_v29  ;;  %v5222_v24 = vsel %vm5221_vm8, %v5217_v61, inf }
0x1077   :  { %v11866_v52 = vpop.xlane.xlu0 %5203  ;;  %5223 = vmin.xlane.f32.xlu1 %v5222_v24 }
0x1078   :  { %vm5205_vm9 = vcmp.eq.f32.partialorder %v11788_v37, %v11866_v52 }
0x1079   :  { %v5206_v15 = vsel %vm5205_vm9, %v5201_v27, inf }
0x107a   :  { %5207 = vmin.xlane.f32.xlu0 %v5206_v15 }
0x107b   :  { %v11871_v1 = vpop.xlane.xlu0 %5235 }
0x107c   :  { %vm5237_vm3 = vcmp.eq.f32.partialorder %v11792_v12, %v11871_v1  ;;  %v11883_v12 = vld [vmem:[#allocation2 + $0x78] sm:$0xff] }
0x107d   :  { %v5238_v60 = vsel %vm5237_vm3, %v5233_v34, inf }
0x107e   :  { %5239 = vmin.xlane.f32.xlu0 %v5238_v60 }
0x10b9   :  { %v5000_v53 = vpop.xlane.xlu1 %4999 }
0x10ba   :  { %v5001_v35 = vcvt.f32.s32 %v5000_v53 }
0x10bb   :  { %v5016_v37 = vpop.xlane.xlu0 %5015 }
0x10bc   :  { %v5004_v59 = vadd.s32 %v5003_v11, %v5001_v35  ;;  %v5017_v31 = vcvt.f32.s32 %v5016_v37 }
0x10be   :  { %v11881_v8 = vsel %vm5245_vm6, %v5004_v59, %v11514_v33  ;;  %vm5262_vm11 = vcmp.gt.s32.totalorder %v11883_v12, %v5004_v59  ;;  %vm5263_vm13 = vcmp.gt.s32.totalorder %v11517_v62, %v5004_v59  ;;  %v5020_v58 = vadd.s32 %v5019_v63, %v5017_v31 }
0x10bf   :  { %v5294_v47 = vsel %vm5262_vm11, %v11883_v12, 2147483647  ;;  %v5295_v45 = vsel %vm5263_vm13, %v11517_v62, 2147483647  ;;  %v5050_v59 = vcvt.f32.s32 %v11817_v25 }
0x10c0   :  { %v11892_v16 = vsel %vm5245_vm6, %v5020_v58, %v11525_v7  ;;  %vm5264_vm7 = vcmp.gt.s32.totalorder %v11894_v30, %v5020_v58  ;;  %vm5265_vm14 = vcmp.gt.s32.totalorder %v11528_v13, %v5020_v58  ;;  %vm5326_vm15 = vcmp.lt.s32.totalorder %v5294_v47, %v5295_v45 }
0x10c1   :  { %v11898_v33 = vsel %vm5326_vm15, %v5294_v47, %v5295_v45  ;;  %v5296_v36 = vsel %vm5264_vm7, %v11894_v30, 2147483647  ;;  %v5297_v44 = vsel %vm5265_vm14, %v11528_v13, 2147483647  ;;  %v5034_v7 = vcvt.f32.s32 %v11806_v19  ;;  %v11918_v19 = vld [vmem:[#allocation2 + $0x88] sm:$0xff] }
0x10c2   :  { %v5329_v62 = vshra.s32 %v11898_v33, 16  ;;  %vm5342_vm10 = vcmp.lt.s32.totalorder %v5296_v36, %v5297_v44  ;;  %v5098_v58 = vcvt.f32.s32 %v11821_v40 }
0x10c3   :  { %v11903_v57 = vsel %vm5342_vm10, %v5296_v36, %v5297_v44  ;;  %v5035_v0 = vshll.u32 %v5034_v7, 16  ;;  %v5051_v36 = vshll.u32 %v5050_v59, 16 }
0x10c4   :  { %v11906_v61 = vcvt.s32.f32 %v5329_v62  ;;  %v5345_v29 = vshra.s32 %v11903_v57, 16  ;;  %v5032_v27 = vpop.xlane.xlu1 %5031 }
0x10c5   :  { %v5033_v15 = vcvt.f32.s32 %v5032_v27  ;;  %v5099_v27 = vshll.u32 %v5098_v58, 16 }
0x10c6   :  { %5332 = vmin.xlane.f32.xlu1 %v11906_v61  ;;  %v11910_v24 = vcvt.s32.f32 %v5345_v29 }
0x10c7   :  { %v5036_v13 = vadd.s32 %v5035_v0, %v5033_v15  ;;  %v11952_v15 = vld [vmem:[#allocation2 + $0x90] sm:$0xff] }
0x10c8   :  { %5348 = vmin.xlane.f32.xlu0 %v11910_v24 }
0x10c9   :  { %v11916_v34 = vsel %vm5245_vm6, %v5036_v13, %v11549_v39  ;;  %vm5266_vm1 = vcmp.gt.s32.totalorder %v11918_v19, %v5036_v13  ;;  %vm5267_vm2 = vcmp.gt.s32.totalorder %v11552_v2, %v5036_v13  ;;  %v5067_v39 = vshll.u32 %v5066_v54, 16 }
0x10ca   :  { %v5298_v60 = vsel %vm5266_vm1, %v11918_v19, 2147483647  ;;  %v5299_v17 = vsel %vm5267_vm2, %v11552_v2, 2147483647  ;;  %v5082_v54 = vcvt.f32.s32 %v11827_v18 }
0x10cb   :  { %vm5358_vm12 = vcmp.lt.s32.totalorder %v5298_v60, %v5299_v17 }
0x10cc   :  { %v11925_v53 = vsel %vm5358_vm12, %v5298_v60, %v5299_v17  ;;  %v5083_v58 = vshll.u32 %v5082_v54, 16 }
0x10cd   :  { %v5361_v11 = vshra.s32 %v11925_v53, 16 }
0x10cf   :  { %v11928_v63 = vcvt.s32.f32 %v5361_v11  ;;  %v11967_v11 = vld [vmem:[#allocation2 + $0xe8] sm:$0xff] }
0x10d0   :  { %v5064_v35 = vpop.xlane.xlu1 %5063 }
0x10d1   :  { %v5065_v37 = vcvt.f32.s32 %v5064_v35  ;;  %5364 = vmin.xlane.f32.xlu1 %v11928_v63 }
0x10d3   :  { %v5068_v31 = vadd.s32 %v5067_v39, %v5065_v37  ;;  %v5130_v37 = vcvt.f32.s32 %v11832_v48 }
0x10d5   :  { %v11935_v2 = vsel %vm5245_vm6, %v5068_v31, %v11568_v56  ;;  %vm5270_vm5 = vcmp.gt.s32.totalorder %v11937_v21, %v5068_v31  ;;  %vm5271_vm4 = vcmp.gt.s32.totalorder %v11571_v22, %v5068_v31  ;;  %v5048_v47 = vpop.xlane.xlu0 %5047  ;;  %v5131_v48 = vshll.u32 %v5130_v37, 16 }
0x10d6   :  { %v5302_v45 = vsel %vm5270_vm5, %v11937_v21, 2147483647  ;;  %v5303_v25 = vsel %vm5271_vm4, %v11571_v22, 2147483647  ;;  %v5049_v44 = vcvt.f32.s32 %v5048_v47  ;;  %v5114_v47 = vcvt.f32.s32 %v11837_v32  ;;  %v11992_v32 = vld [vmem:[#allocation2 + $0x20] sm:$0xff] }
0x10d7   :  { %vm5390_vm0 = vcmp.lt.s32.totalorder %v5302_v45, %v5303_v25 }
0x10d8   :  { %v11944_v62 = vsel %vm5390_vm0, %v5302_v45, %v5303_v25  ;;  %v5052_v56 = vadd.s32 %v5051_v36, %v5049_v44  ;;  %v5162_v36 = vcvt.f32.s32 %v11841_v20 }
0x10d9   :  { %v5393_v29 = vshra.s32 %v11944_v62, 16 }
0x10da   :  { %v5096_v7 = vpop.xlane.xlu1 %5095  ;;  %v11950_v40 = vsel %vm5245_vm6, %v5052_v56, %v11583_v6  ;;  %vm5268_vm8 = vcmp.gt.s32.totalorder %v11952_v15, %v5052_v56  ;;  %vm5269_vm9 = vcmp.gt.s32.totalorder %v11586_v3, %v5052_v56  ;;  %v5163_v54 = vshll.u32 %v5162_v36, 16 }
0x10db   :  { %v5097_v0 = vcvt.f32.s32 %v5096_v7  ;;  %v11956_v22 = vcvt.s32.f32 %v5393_v29  ;;  %v5300_v60 = vsel %vm5268_vm8, %v11952_v15, 2147483647  ;;  %v5301_v17 = vsel %vm5269_vm9, %v11586_v3, 2147483647 }
0x10dc   :  { %vm5374_vm3 = vcmp.lt.s32.totalorder %v5300_v60, %v5301_v17  ;;  %v5115_v29 = vshll.u32 %v5114_v47, 16 }
0x10dd   :  { %v5100_v13 = vadd.s32 %v5099_v27, %v5097_v0  ;;  %5396 = vmin.xlane.f32.xlu1 %v11956_v22  ;;  %v11971_v35 = vsel %vm5374_vm3, %v5300_v60, %v5301_v17 }
0x10de   :  { %v5377_v3 = vshra.s32 %v11971_v35, 16 }
0x10df   :  { %v11965_v6 = vsel %vm5245_vm6, %v5100_v13, %v11598_v5  ;;  %vm5274_vm11 = vcmp.gt.s32.totalorder %v11967_v11, %v5100_v13  ;;  %vm5275_vm13 = vcmp.gt.s32.totalorder %v11601_v41, %v5100_v13 }
0x10e0   :  { %v5306_v18 = vsel %vm5274_vm11, %v11967_v11, 2147483647  ;;  %v5307_v39 = vsel %vm5275_vm13, %v11601_v41, 2147483647  ;;  %v11977_v5 = vcvt.s32.f32 %v5377_v3 }
0x10e1   :  { %vm5422_vm7 = vcmp.lt.s32.totalorder %v5306_v18, %v5307_v39 }
0x10e2   :  { %v5080_v59 = vpop.xlane.xlu0 %5079  ;;  %v11979_v31 = vsel %vm5422_vm7, %v5306_v18, %v5307_v39  ;;  %5380 = vmin.xlane.f32.xlu0 %v11977_v5  ;;  %v12004_v18 = vld [vmem:[#allocation2 + $0x50] sm:$0xff] }
0x10e3   :  { %v5081_v45 = vcvt.f32.s32 %v5080_v59  ;;  %v5425_v25 = vshra.s32 %v11979_v31, 16 }
0x10e5   :  { %v5084_v44 = vadd.s32 %v5083_v58, %v5081_v45  ;;  %v5128_v41 = vpop.xlane.xlu1 %5127  ;;  %v11985_v56 = vcvt.s32.f32 %v5425_v25 }
0x10e6   :  { %v5129_v7 = vcvt.f32.s32 %v5128_v41 }
0x10e7   :  { %v11990_v27 = vsel %vm5245_vm6, %v5084_v44, %v11623_v26  ;;  %vm5272_vm14 = vcmp.gt.s32.totalorder %v11992_v32, %v5084_v44  ;;  %vm5273_vm15 = vcmp.gt.s32.totalorder %v11626_v9, %v5084_v44  ;;  %v5112_v0 = vpop.xlane.xlu0 %5111  ;;  %5428 = vmin.xlane.f32.xlu1 %v11985_v56 }
0x10e8   :  { %v5132_v20 = vadd.s32 %v5131_v48, %v5129_v7  ;;  %v5113_v13 = vcvt.f32.s32 %v5112_v0  ;;  %v5304_v60 = vsel %vm5272_vm14, %v11992_v32, 2147483647  ;;  %v5305_v17 = vsel %vm5273_vm15, %v11626_v9, 2147483647  ;;  %v12033_v48 = vld [vmem:[#allocation2 + $0x28] sm:$0xff] }
0x10e9   :  { %v5160_v3 = vpop.xlane.xlu1 %5159  ;;  %vm5406_vm10 = vcmp.lt.s32.totalorder %v5304_v60, %v5305_v17  ;;  %12997 = vst [vmem:[#allocation14_spill] sm:$0xff] %v12033_v48  ;;  %v12998_v7 = vld [vmem:[#allocation16_spill] sm:$0xff] }
0x10ea   :  { %v12002_v26 = vsel %vm5245_vm6, %v5132_v20, %v11635_v50  ;;  %vm5278_vm1 = vcmp.gt.s32.totalorder %v12004_v18, %v5132_v20  ;;  %vm5279_vm2 = vcmp.gt.s32.totalorder %v11638_v43, %v5132_v20  ;;  %v5116_v39 = vadd.s32 %v5115_v29, %v5113_v13  ;;  %v12017_v50 = vld [vmem:[#allocation2 + $0x80] sm:$0xff] }
0x10eb   :  { %v5161_v37 = vcvt.f32.s32 %v5160_v3  ;;  %v12008_v59 = vsel %vm5406_vm10, %v5304_v60, %v5305_v17  ;;  %v5310_v9 = vsel %vm5278_vm1, %v12004_v18, 2147483647  ;;  %v5311_v58 = vsel %vm5279_vm2, %v11638_v43, 2147483647 }
0x10ec   :  { %v12015_v47 = vsel %vm5245_vm6, %v5116_v39, %v11648_v4  ;;  %vm5276_vm12 = vcmp.gt.s32.totalorder %v12017_v50, %v5116_v39  ;;  %vm5277_vm5 = vcmp.gt.s32.totalorder %v11651_v14, %v5116_v39  ;;  %v5409_v45 = vshra.s32 %v12008_v59, 16 }
0x10ed   :  { %v5164_v25 = vadd.s32 %v5163_v54, %v5161_v37  ;;  %vm5454_vm4 = vcmp.lt.s32.totalorder %v5310_v9, %v5311_v58  ;;  %v5308_v36 = vsel %vm5276_vm12, %v12017_v50, 2147483647  ;;  %v5309_v44 = vsel %vm5277_vm5, %v11651_v14, 2147483647 }
0x10ee   :  { %v12024_v43 = vcvt.s32.f32 %v5409_v45  ;;  %v12026_v41 = vsel %vm5454_vm4, %v5310_v9, %v5311_v58  ;;  %vm5438_vm0 = vcmp.lt.s32.totalorder %v5308_v36, %v5309_v44  ;;  %v5146_v3 = vcvt.f32.s32 %v11846_v23 }
0x10ef   :  { %v12031_v4 = vsel %vm5245_vm6, %v5164_v25, %v11664_v55  ;;  %vm5282_vm8 = vcmp.gt.s32.totalorder %v12033_v48, %v5164_v25  ;;  %vm5283_vm9 = vcmp.gt.s32.totalorder %v12998_v7, %v5164_v25  ;;  %v5457_v29 = vshra.s32 %v12026_v41, 16 }
0x10f0   :  { %5412 = vmin.xlane.f32.xlu0 %v12024_v43  ;;  %v12039_v14 = vsel %vm5438_vm0, %v5308_v36, %v5309_v44  ;;  %v5314_v0 = vsel %vm5282_vm8, %v12033_v48, 2147483647  ;;  %v5315_v20 = vsel %vm5283_vm9, %v12998_v7, 2147483647  ;;  %v5194_v37 = vcvt.f32.s32 %v11852_v28  ;;  %v13001_v48 = vld [vmem:[#allocation17_spill] sm:$0xff] }
0x10f1   :  { %v12043_v13 = vcvt.s32.f32 %v5457_v29  ;;  %v5441_v55 = vshra.s32 %v12039_v14, 16  ;;  %vm5486_vm3 = vcmp.lt.s32.totalorder %v5314_v0, %v5315_v20  ;;  %v5147_v58 = vshll.u32 %v5146_v3, 16 }
0x10f2   :  { %v12046_v60 = vsel %vm5486_vm3, %v5314_v0, %v5315_v20  ;;  %v5195_v36 = vshll.u32 %v5194_v37, 16  ;;  %v5178_v44 = vcvt.f32.s32 %v11857_v38  ;;  %v5226_v7 = vcvt.f32.s32 %v11862_v49  ;;  %v12999_v0 = vld [vmem:[#allocation12_spill] sm:$0xff]  ;;  %v12065_v20 = vld [vmem:[#allocation2 + $0xa0] sm:$0xff] }
0x10f3   :  { %5460 = vmin.xlane.f32.xlu1 %v12043_v13  ;;  %v12049_v17 = vcvt.s32.f32 %v5441_v55  ;;  %v5489_v54 = vshra.s32 %v12046_v60, 16  ;;  %v5210_v38 = vcvt.f32.s32 %v11866_v52  ;;  %v5242_v49 = vcvt.f32.s32 %v11871_v1 }
0x10f5   :  { %5444 = vmin.xlane.f32.xlu0 %v12049_v17  ;;  %v12054_v39 = vcvt.s32.f32 %v5489_v54 }
0x10f7   :  { %5492 = vmin.xlane.f32.xlu1 %v12054_v39 }
0x10f8   :  { %v5144_v9 = vpop.xlane.xlu0 %5143 }
0x10f9   :  { %v5145_v45 = vcvt.f32.s32 %v5144_v9  ;;  %v5179_v9 = vshll.u32 %v5178_v44, 16 }
0x10fb   :  { %v5148_v25 = vadd.s32 %v5147_v58, %v5145_v45  ;;  %v5227_v58 = vshll.u32 %v5226_v7, 16  ;;  %v5211_v7 = vshll.u32 %v5210_v38, 16  ;;  %v12101_v38 = vld [vmem:[#allocation2 + $0x48] sm:$0xff] }
0x10fc   :  { %v5192_v29 = vpop.xlane.xlu1 %5191  ;;  %13009 = vst [vmem:[#allocation17_spill] sm:$0xff] %v12101_v38 }
0x10fd   :  { %v12063_v23 = vsel %vm5245_vm6, %v5148_v25, %v12999_v0  ;;  %vm5280_vm11 = vcmp.gt.s32.totalorder %v12065_v20, %v5148_v25  ;;  %vm5281_vm13 = vcmp.gt.s32.totalorder %v11699_v42, %v5148_v25  ;;  %v5193_v28 = vcvt.f32.s32 %v5192_v29  ;;  %v12080_v29 = vld [vmem:[#allocation2 + $0x40] sm:$0xff] }
0x10fe   :  { %13000 = vst [vmem:[#allocation9_spill] sm:$0xff] %v12063_v23  ;;  %v5312_v55 = vsel %vm5280_vm11, %v12065_v20, 2147483647  ;;  %v5313_v54 = vsel %vm5281_vm13, %v11699_v42, 2147483647 }
0x10ff   :  { %v5196_v3 = vadd.s32 %v5195_v36, %v5193_v28  ;;  %v5176_v37 = vpop.xlane.xlu0 %5175  ;;  %vm5470_vm7 = vcmp.lt.s32.totalorder %v5312_v55, %v5313_v54  ;;  %v5243_v28 = vshll.u32 %v5242_v49, 16  ;;  %v13010_v49 = vld [vmem:[#allocation18_spill] sm:$0xff] }
0x1100   :  { %v5177_v45 = vcvt.f32.s32 %v5176_v37  ;;  %v5224_v0 = vpop.xlane.xlu1 %5223  ;;  %v12073_v23 = vsel %vm5470_vm7, %v5312_v55, %v5313_v54 }
0x1101   :  { %v12078_v25 = vsel %vm5245_vm6, %v5196_v3, %v13001_v48  ;;  %vm5286_vm14 = vcmp.gt.s32.totalorder %v12080_v29, %v5196_v3  ;;  %vm5287_vm15 = vcmp.gt.s32.totalorder %v11714_v46, %v5196_v3  ;;  %v5225_v42 = vcvt.f32.s32 %v5224_v0  ;;  %v13003_v48 = vld [vmem:[#allocation13_spill] sm:$0xff]  ;;  %v13006_v3 = vld [vmem:[#allocation20_spill] sm:$0xff] }
0x1102   :  { %13002 = vst [vmem:[#allocation15_spill] sm:$0xff] %v12078_v25  ;;  %v5180_v52 = vadd.s32 %v5179_v9, %v5177_v45  ;;  %v5473_v1 = vshra.s32 %v12073_v23, 16  ;;  %v5318_v36 = vsel %vm5286_vm14, %v12080_v29, 2147483647  ;;  %v5319_v44 = vsel %vm5287_vm15, %v11714_v46, 2147483647 }
0x1103   :  { %v5228_v55 = vadd.s32 %v5227_v58, %v5225_v42  ;;  %v5208_v54 = vpop.xlane.xlu0 %5207  ;;  %vm5518_vm10 = vcmp.lt.s32.totalorder %v5318_v36, %v5319_v44  ;;  %v12092_v25 = vld [vmem:[#allocation2 + $0x58] sm:$0xff]  ;;  %v13007_v45 = vld [vmem:[#allocation21_spill] sm:$0xff] }
0x1104   :  { %v12090_v37 = vsel %vm5245_vm6, %v5180_v52, %v13003_v48  ;;  %13005 = vst [vmem:[#allocation16_spill] sm:$0xff] %v12092_v25  ;;  %vm5284_vm1 = vcmp.gt.s32.totalorder %v12092_v25, %v5180_v52  ;;  %vm5285_vm2 = vcmp.gt.s32.totalorder %v13006_v3, %v5180_v52  ;;  %v5209_v9 = vcvt.f32.s32 %v5208_v54 }
0x1105   :  { %13004 = vst [vmem:[#allocation11_spill] sm:$0xff] %v12090_v37  ;;  %v12099_v46 = vsel %vm5245_vm6, %v5228_v55, %v13007_v45  ;;  %vm5290_vm12 = vcmp.gt.s32.totalorder %v12101_v38, %v5228_v55  ;;  %vm5291_vm5 = vcmp.gt.s32.totalorder %v13010_v49, %v5228_v55  ;;  %v12105_v58 = vcvt.s32.f32 %v5473_v1  ;;  %v13011_v55 = vld [vmem:[#allocation10_spill] sm:$0xff] }
0x1106   :  { %13008 = vst [vmem:[#allocation12_spill] sm:$0xff] %v12099_v46  ;;  %v5212_v0 = vadd.s32 %v5211_v7, %v5209_v9  ;;  %v12107_v42 = vsel %vm5518_vm10, %v5318_v36, %v5319_v44  ;;  %v5316_v48 = vsel %vm5284_vm1, %v12092_v25, 2147483647  ;;  %v5317_v52 = vsel %vm5285_vm2, %v13006_v3, 2147483647  ;;  %v12120_v36 = vld [vmem:[#allocation2 + $0xf0] sm:$0xff] }
0x1107   :  { %v5240_v54 = vpop.xlane.xlu0 %5239  ;;  %5476 = vmin.xlane.f32.xlu0 %v12105_v58  ;;  %v5521_v45 = vshra.s32 %v12107_v42, 16  ;;  %vm5502_vm4 = vcmp.lt.s32.totalorder %v5316_v48, %v5317_v52  ;;  %v5322_v46 = vsel %vm5290_vm12, %v12101_v38, 2147483647  ;;  %v5323_v37 = vsel %vm5291_vm5, %v13010_v49, 2147483647 }
0x1108   :  { %v12118_v1 = vsel %vm5245_vm6, %v5212_v0, %v13011_v55  ;;  %vm5288_vm0 = vcmp.gt.s32.totalorder %v12120_v36, %v5212_v0  ;;  %vm5289_vm8 = vcmp.gt.s32.totalorder %v11754_v10, %v5212_v0  ;;  %v5241_v44 = vcvt.f32.s32 %v5240_v54  ;;  %v13013_v0 = vld [vmem:[#allocation19_spill] sm:$0xff] }
0x1109   :  { %13012 = vst [vmem:[#allocation13_spill] sm:$0xff] %v12118_v1  ;;  %v12124_v7 = vcvt.s32.f32 %v5521_v45  ;;  %v12126_v3 = vsel %vm5502_vm4, %v5316_v48, %v5317_v52  ;;  %vm5550_vm9 = vcmp.lt.s32.totalorder %v5322_v46, %v5323_v37  ;;  %v5320_v9 = vsel %vm5288_vm0, %v12120_v36, 2147483647  ;;  %v12140_v52 = vld [vmem:[#allocation2 + $0x30] sm:$0xff] }
0x110a   :  { %v5244_v49 = vadd.s32 %v5243_v28, %v5241_v44  ;;  %v5505_v38 = vshra.s32 %v12126_v3, 16  ;;  %v12130_v25 = vsel %vm5550_vm9, %v5322_v46, %v5323_v37  ;;  %v5321_v55 = vsel %vm5289_vm8, %v11754_v10, 2147483647  ;;  %13015 = vst [vmem:[#allocation21_spill] sm:$0xff] %v12140_v52  ;;  %v12143_v28 = vld [vmem:[#allocation2 + $0xf8] sm:$0xff] }
0x110b   :  { %5524 = vmin.xlane.f32.xlu1 %v12124_v7  ;;  %v5553_v1 = vshra.s32 %v12130_v25, 16  ;;  %vm5534_vm3 = vcmp.lt.s32.totalorder %v5320_v9, %v5321_v55  ;;  %13016 = vst [vmem:[#allocation18_spill] sm:$0xff] %v12143_v28 }
0x110c   :  { %v12138_v48 = vsel %vm5245_vm6, %v5244_v49, %v13013_v0  ;;  %vm5292_vm11 = vcmp.gt.s32.totalorder %v12140_v52, %v5244_v49  ;;  %vm5293_vm13 = vcmp.gt.s32.totalorder %v12143_v28, %v5244_v49  ;;  %v12146_v37 = vcvt.s32.f32 %v5505_v38 }
0x110d   :  { %13014 = vst [vmem:[#allocation20_spill] sm:$0xff] %v12138_v48  ;;  %v12148_v10 = vcvt.s32.f32 %v5553_v1  ;;  %v12150_v46 = vsel %vm5534_vm3, %v5320_v9, %v5321_v55  ;;  %v5324_v54 = vsel %vm5292_vm11, %v12140_v52, 2147483647  ;;  %v5325_v45 = vsel %vm5293_vm13, %v12143_v28, 2147483647 }
0x110e   :  { %5508 = vmin.xlane.f32.xlu0 %v12146_v37  ;;  %v5537_v44 = vshra.s32 %v12150_v46, 16  ;;  %vm5566_vm6 = vcmp.lt.s32.totalorder %v5324_v54, %v5325_v45  ;;  %v5328_v9 = vand.u32 65535, %v11898_v33  ;;  %v5344_v55 = vand.u32 65535, %v11903_v57 }
0x110f   :  { %5556 = vmin.xlane.f32.xlu1 %v12148_v10  ;;  %v12157_v0 = vsel %vm5566_vm6, %v5324_v54, %v5325_v45  ;;  %v5360_v33 = vand.u32 65535, %v11925_v53  ;;  %v5424_v53 = vand.u32 65535, %v11979_v31  ;;  %v5456_v31 = vand.u32 65535, %v12026_v41 }
0x1110   :  { %v12159_v49 = vcvt.s32.f32 %v5537_v44  ;;  %v5569_v38 = vshra.s32 %v12157_v0, 16  ;;  %v5330_v52 = vcvt.s32.f32 %v5328_v9  ;;  %v5346_v44 = vcvt.s32.f32 %v5344_v55 }
0x1111   :  { %v5362_v57 = vcvt.s32.f32 %v5360_v33  ;;  %v5426_v33 = vcvt.s32.f32 %v5424_v53 }
0x1112   :  { %5540 = vmin.xlane.f32.xlu0 %v12159_v49  ;;  %v12163_v1 = vcvt.s32.f32 %v5569_v38 }
0x1116   :  { %5572 = vmin.xlane.f32.xlu0 %v12163_v1 }
0x114f   :  { %v12168_v28 = vpop.xlane.xlu1 %5332 }
0x1150   :  { %vm5334_vm7 = vcmp.eq.f32.partialorder %v11906_v61, %v12168_v28  ;;  %v5392_v61 = vand.u32 65535, %v11944_v62 }
0x1151   :  { %v12172_v54 = vpop.xlane.xlu0 %5348  ;;  %v5335_v45 = vsel %vm5334_vm7, %v5330_v52, inf  ;;  %vm5582_vm7 = vcmp.eq.s32.totalorder %v6476_v51, 14 }
0x1152   :  { %vm5350_vm14 = vcmp.eq.f32.partialorder %v11910_v24, %v12172_v54  ;;  %5336 = vmin.xlane.f32.xlu1 %v5335_v45  ;;  %v5394_v55 = vcvt.s32.f32 %v5392_v61  ;;  %v5376_v45 = vand.u32 65535, %v11971_v35  ;;  %v5408_v35 = vand.u32 65535, %v12008_v59 }
0x1153   :  { %v5351_v38 = vsel %vm5350_vm14, %v5346_v44, inf }
0x1154   :  { %5352 = vmin.xlane.f32.xlu0 %v5351_v38  ;;  %v5378_v38 = vcvt.s32.f32 %v5376_v45 }
0x115a   :  { %v12177_v48 = vpop.xlane.xlu1 %5364 }
0x115b   :  { %vm5366_vm15 = vcmp.eq.f32.partialorder %v11928_v63, %v12177_v48 }
0x115c   :  { %v5367_v9 = vsel %vm5366_vm15, %v5362_v57, inf }
0x115d   :  { %5368 = vmin.xlane.f32.xlu1 %v5367_v9  ;;  %v5410_v9 = vcvt.s32.f32 %v5408_v35 }
0x1166   :  { %v12182_v52 = vpop.xlane.xlu1 %5396 }
0x1167   :  { %vm5398_vm10 = vcmp.eq.f32.partialorder %v11956_v22, %v12182_v52 }
0x1168   :  { %v5399_v24 = vsel %vm5398_vm10, %v5394_v55, inf }
0x1169   :  { %5400 = vmin.xlane.f32.xlu1 %v5399_v24  ;;  %v5458_v24 = vcvt.s32.f32 %v5456_v31 }
0x116b   :  { %v12188_v44 = vpop.xlane.xlu0 %5380 }
0x116c   :  { %vm5382_vm1 = vcmp.eq.f32.partialorder %v11977_v5, %v12188_v44  ;;  %v5440_v5 = vand.u32 65535, %v12039_v14 }
0x116d   :  { %v5383_v63 = vsel %vm5382_vm1, %v5378_v38, inf }
0x116e   :  { %5384 = vmin.xlane.f32.xlu0 %v5383_v63  ;;  %v5442_v45 = vcvt.s32.f32 %v5440_v5  ;;  %v5536_v5 = vand.u32 65535, %v12150_v46 }
0x1170   :  { %v12192_v62 = vpop.xlane.xlu1 %5428 }
0x1171   :  { %vm5430_vm2 = vcmp.eq.f32.partialorder %v11985_v56, %v12192_v62  ;;  %v5488_v56 = vand.u32 65535, %v12046_v60 }
0x1172   :  { %v5431_v22 = vsel %vm5430_vm2, %v5426_v33, inf  ;;  %v5520_v33 = vand.u32 65535, %v12107_v42 }
0x1173   :  { %5432 = vmin.xlane.f32.xlu1 %v5431_v22  ;;  %v5490_v53 = vcvt.s32.f32 %v5488_v56  ;;  %v5504_v22 = vand.u32 65535, %v12126_v3  ;;  %v5568_v56 = vand.u32 65535, %v12157_v0 }
0x1174   :  { %v5522_v31 = vcvt.s32.f32 %v5520_v33 }
0x1175   :  { %v5506_v42 = vcvt.s32.f32 %v5504_v22 }
0x1179   :  { %v12198_v57 = vpop.xlane.xlu0 %5412 }
0x117a   :  { %vm5414_vm12 = vcmp.eq.f32.partialorder %v12024_v43, %v12198_v57 }
0x117b   :  { %v5415_v61 = vsel %vm5414_vm12, %v5410_v9, inf }
0x117c   :  { %5416 = vmin.xlane.f32.xlu0 %v5415_v61  ;;  %v12203_v55 = vpop.xlane.xlu1 %5460 }
0x117d   :  { %vm5462_vm5 = vcmp.eq.f32.partialorder %v12043_v13, %v12203_v55  ;;  %v5472_v13 = vand.u32 65535, %v12073_v23 }
0x117e   :  { %v12208_v59 = vpop.xlane.xlu0 %5444  ;;  %v5463_v41 = vsel %vm5462_vm5, %v5458_v24, inf  ;;  %v5538_v24 = vcvt.s32.f32 %v5536_v5 }
0x117f   :  { %vm5446_vm4 = vcmp.eq.f32.partialorder %v12049_v17, %v12208_v59  ;;  %5464 = vmin.xlane.f32.xlu1 %v5463_v41  ;;  %v5474_v63 = vcvt.s32.f32 %v5472_v13  ;;  %v5570_v41 = vcvt.s32.f32 %v5568_v56 }
0x1180   :  { %v5447_v43 = vsel %vm5446_vm4, %v5442_v45, inf  ;;  %v12212_v14 = vpop.xlane.xlu1 %5492  ;;  %v5339_v45 = vcvt.f32.s32 %v12168_v28 }
0x1181   :  { %5448 = vmin.xlane.f32.xlu0 %v5447_v43  ;;  %vm5494_vm0 = vcmp.eq.f32.partialorder %v12054_v39, %v12212_v14  ;;  %v5552_v39 = vand.u32 65535, %v12130_v25  ;;  %v5355_v43 = vcvt.f32.s32 %v12172_v54 }
0x1182   :  { %v5495_v60 = vsel %vm5494_vm0, %v5490_v53, inf }
0x1183   :  { %5496 = vmin.xlane.f32.xlu1 %v5495_v60  ;;  %v5554_v3 = vcvt.s32.f32 %v5552_v39  ;;  %v5340_v60 = vshll.u32 %v5339_v45, 16  ;;  %v5356_v13 = vshll.u32 %v5355_v43, 16  ;;  %v6311_v39 = vld [vmem:[#allocation2 + $0x8] sm:$0xff]  ;;  %v5403_v43 = vcvt.f32.s32 %v12182_v52 }
0x1184   :  { %v6313_v52 = vld [vmem:[#allocation2 + $0xa8] sm:$0xff] }
0x1190   :  { %v12217_v38 = vpop.xlane.xlu0 %5476 }
0x1191   :  { %vm5478_vm8 = vcmp.eq.f32.partialorder %v12105_v58, %v12217_v38 }
0x1192   :  { %v5479_v17 = vsel %vm5478_vm8, %v5474_v63, inf }
0x1193   :  { %5480 = vmin.xlane.f32.xlu0 %v5479_v17 }
0x1194   :  { %v12223_v35 = vpop.xlane.xlu1 %5524 }
0x1195   :  { %vm5526_vm9 = vcmp.eq.f32.partialorder %v12124_v7, %v12223_v35 }
0x1196   :  { %v5527_v23 = vsel %vm5526_vm9, %v5522_v31, inf }
0x1197   :  { %v12228_v9 = vpop.xlane.xlu0 %5508  ;;  %5528 = vmin.xlane.f32.xlu1 %v5527_v23 }
0x1198   :  { %vm5510_vm3 = vcmp.eq.f32.partialorder %v12146_v37, %v12228_v9  ;;  %v12233_v58 = vpop.xlane.xlu1 %5556 }
0x1199   :  { %v5511_v61 = vsel %vm5510_vm3, %v5506_v42, inf  ;;  %vm5558_vm11 = vcmp.eq.f32.partialorder %v12148_v10, %v12233_v58 }
0x119a   :  { %5512 = vmin.xlane.f32.xlu0 %v5511_v61  ;;  %v5559_v25 = vsel %vm5558_vm11, %v5554_v3, inf  ;;  %v5371_v3 = vcvt.f32.s32 %v12177_v48  ;;  %v6312_v48 = vld [vmem:[#allocation2 + $0xb0] sm:$0xff] }
0x119b   :  { %v12237_v7 = vpop.xlane.xlu0 %5540  ;;  %5560 = vmin.xlane.f32.xlu1 %v5559_v25 }
0x119c   :  { %vm5542_vm13 = vcmp.eq.f32.partialorder %v12159_v49, %v12237_v7  ;;  %v5372_v56 = vshll.u32 %v5371_v3, 16 }
0x119d   :  { %v5543_v46 = vsel %vm5542_vm13, %v5538_v24, inf }
0x119e   :  { %5544 = vmin.xlane.f32.xlu0 %v5543_v46 }
0x119f   :  { %v12242_v37 = vpop.xlane.xlu0 %5572 }
0x11a0   :  { %vm5574_vm6 = vcmp.eq.f32.partialorder %v12163_v1, %v12242_v37  ;;  %v6310_v1 = vld [vmem:[#allocation2 + $0x60] sm:$0xff] }
0x11a1   :  { %v5575_v10 = vsel %vm5574_vm6, %v5570_v41, inf }
0x11a2   :  { %5576 = vmin.xlane.f32.xlu0 %v5575_v10 }
0x11db   :  { %v5337_v53 = vpop.xlane.xlu1 %5336 }
0x11dc   :  { %v5338_v0 = vcvt.f32.s32 %v5337_v53 }
0x11dd   :  { %v5353_v49 = vpop.xlane.xlu0 %5352 }
0x11de   :  { %v5341_v63 = vadd.s32 %v5340_v60, %v5338_v0  ;;  %v5354_v33 = vcvt.f32.s32 %v5353_v49  ;;  %v5404_v49 = vshll.u32 %v5403_v43, 16 }
0x11e0   :  { %v12252_v17 = vsel %vm5582_vm7, %v5341_v63, %v11881_v8  ;;  %vm5599_vm14 = vcmp.gt.s32.totalorder %v11883_v12, %v5341_v63  ;;  %vm5600_vm15 = vcmp.gt.s32.totalorder %v6310_v1, %v5341_v63  ;;  %v5357_v28 = vadd.s32 %v5356_v13, %v5354_v33 }
0x11e1   :  { %v5631_v54 = vsel %vm5599_vm14, %v11883_v12, 2147483647  ;;  %v5632_v22 = vsel %vm5600_vm15, %v6310_v1, 2147483647  ;;  %v5435_v1 = vcvt.f32.s32 %v12192_v62 }
0x11e2   :  { %v12259_v31 = vsel %vm5582_vm7, %v5357_v28, %v11892_v16  ;;  %vm5601_vm10 = vcmp.gt.s32.totalorder %v11894_v30, %v5357_v28  ;;  %vm5602_vm1 = vcmp.gt.s32.totalorder %v6311_v39, %v5357_v28  ;;  %vm5663_vm2 = vcmp.lt.s32.totalorder %v5631_v54, %v5632_v22 }
0x11e3   :  { %v12262_v8 = vsel %vm5663_vm2, %v5631_v54, %v5632_v22  ;;  %v5633_v23 = vsel %vm5601_vm10, %v11894_v30, 2147483647  ;;  %v5634_v42 = vsel %vm5602_vm1, %v6311_v39, 2147483647  ;;  %v5436_v3 = vshll.u32 %v5435_v1, 16 }
0x11e4   :  { %v5666_v5 = vshra.s32 %v12262_v8, 16  ;;  %vm5679_vm12 = vcmp.lt.s32.totalorder %v5633_v23, %v5634_v42 }
0x11e5   :  { %v12266_v12 = vsel %vm5679_vm12, %v5633_v23, %v5634_v42 }
0x11e6   :  { %v12269_v61 = vcvt.s32.f32 %v5666_v5  ;;  %v5682_v16 = vshra.s32 %v12266_v12, 16  ;;  %v5369_v24 = vpop.xlane.xlu1 %5368 }
0x11e7   :  { %v5370_v46 = vcvt.f32.s32 %v5369_v24 }
0x11e8   :  { %5669 = vmin.xlane.f32.xlu1 %v12269_v61  ;;  %v12273_v25 = vcvt.s32.f32 %v5682_v16 }
0x11e9   :  { %v5373_v30 = vadd.s32 %v5372_v56, %v5370_v46 }
0x11ea   :  { %5685 = vmin.xlane.f32.xlu0 %v12273_v25 }
0x11eb   :  { %v12279_v41 = vsel %vm5582_vm7, %v5373_v30, %v11916_v34  ;;  %vm5603_vm5 = vcmp.gt.s32.totalorder %v11918_v19, %v5373_v30  ;;  %vm5604_vm4 = vcmp.gt.s32.totalorder %v6312_v48, %v5373_v30  ;;  %v5387_v34 = vcvt.f32.s32 %v12188_v44 }
0x11ec   :  { %v5635_v10 = vsel %vm5603_vm5, %v11918_v19, 2147483647  ;;  %v5636_v45 = vsel %vm5604_vm4, %v6312_v48, 2147483647 }
0x11ed   :  { %vm5695_vm0 = vcmp.lt.s32.totalorder %v5635_v10, %v5636_v45  ;;  %v5388_v39 = vshll.u32 %v5387_v34, 16 }
0x11ee   :  { %v12284_v53 = vsel %vm5695_vm0, %v5635_v10, %v5636_v45  ;;  %v5419_v45 = vcvt.f32.s32 %v12198_v57 }
0x11ef   :  { %v5698_v60 = vshra.s32 %v12284_v53, 16 }
0x11f1   :  { %v12287_v63 = vcvt.s32.f32 %v5698_v60 }
0x11f2   :  { %v5401_v0 = vpop.xlane.xlu1 %5400 }
0x11f3   :  { %v5402_v13 = vcvt.f32.s32 %v5401_v0  ;;  %5701 = vmin.xlane.f32.xlu1 %v12287_v63 }
0x11f5   :  { %v5405_v33 = vadd.s32 %v5404_v49, %v5402_v13 }
0x11f7   :  { %v12294_v19 = vsel %vm5582_vm7, %v5405_v33, %v11935_v2  ;;  %vm5607_vm8 = vcmp.gt.s32.totalorder %v11937_v21, %v5405_v33  ;;  %vm5608_vm9 = vcmp.gt.s32.totalorder %v6313_v52, %v5405_v33  ;;  %v5385_v28 = vpop.xlane.xlu0 %5384  ;;  %v5420_v33 = vshll.u32 %v5419_v45, 16 }
0x11f8   :  { %v5639_v54 = vsel %vm5607_vm8, %v11937_v21, 2147483647  ;;  %v5640_v22 = vsel %vm5608_vm9, %v6313_v52, 2147483647  ;;  %v5386_v44 = vcvt.f32.s32 %v5385_v28  ;;  %v6314_v21 = vld [vmem:[#allocation2 + $0x38] sm:$0xff]  ;;  %v5451_v52 = vcvt.f32.s32 %v12208_v59 }
0x11f9   :  { %vm5727_vm3 = vcmp.lt.s32.totalorder %v5639_v54, %v5640_v22  ;;  %v6316_v59 = vld [vmem:[#allocation2 + $0xd8] sm:$0xff] }
0x11fa   :  { %v12299_v23 = vsel %vm5727_vm3, %v5639_v54, %v5640_v22  ;;  %v5389_v42 = vadd.s32 %v5388_v39, %v5386_v44 }
0x11fb   :  { %v5730_v2 = vshra.s32 %v12299_v23, 16 }
0x11fc   :  { %v5433_v5 = vpop.xlane.xlu1 %5432  ;;  %v12305_v24 = vsel %vm5582_vm7, %v5389_v42, %v11950_v40  ;;  %vm5605_vm11 = vcmp.gt.s32.totalorder %v11952_v15, %v5389_v42  ;;  %vm5606_vm13 = vcmp.gt.s32.totalorder %v6314_v21, %v5389_v42  ;;  %v6315_v40 = vld [vmem:[#allocation2 + $0x68] sm:$0xff] }
0x11fd   :  { %v5434_v16 = vcvt.f32.s32 %v5433_v5  ;;  %v12308_v62 = vcvt.s32.f32 %v5730_v2  ;;  %v5637_v46 = vsel %vm5605_vm11, %v11952_v15, 2147483647  ;;  %v5638_v30 = vsel %vm5606_vm13, %v6314_v21, 2147483647 }
0x11fe   :  { %vm5711_vm6 = vcmp.lt.s32.totalorder %v5637_v46, %v5638_v30 }
0x11ff   :  { %v5437_v56 = vadd.s32 %v5436_v3, %v5434_v16  ;;  %5733 = vmin.xlane.f32.xlu1 %v12308_v62  ;;  %v12318_v10 = vsel %vm5711_vm6, %v5637_v46, %v5638_v30 }
0x1200   :  { %v5714_v43 = vshra.s32 %v12318_v10, 16 }
0x1201   :  { %v12315_v48 = vsel %vm5582_vm7, %v5437_v56, %v11965_v6  ;;  %vm5611_vm14 = vcmp.gt.s32.totalorder %v11967_v11, %v5437_v56  ;;  %vm5612_vm15 = vcmp.gt.s32.totalorder %v6315_v40, %v5437_v56  ;;  %v5467_v6 = vcvt.f32.s32 %v12203_v55 }
0x1202   :  { %v5643_v15 = vsel %vm5611_vm14, %v11967_v11, 2147483647  ;;  %v5644_v60 = vsel %vm5612_vm15, %v6315_v40, 2147483647  ;;  %v12323_v0 = vcvt.s32.f32 %v5714_v43  ;;  %v5499_v11 = vcvt.f32.s32 %v12212_v14 }
0x1203   :  { %vm5759_vm10 = vcmp.lt.s32.totalorder %v5643_v15, %v5644_v60  ;;  %v5468_v22 = vshll.u32 %v5467_v6, 16  ;;  %v5452_v55 = vshll.u32 %v5451_v52, 16  ;;  %v6319_v52 = vld [vmem:[#allocation2 + $0xd0] sm:$0xff] }
0x1204   :  { %v12325_v49 = vsel %vm5759_vm10, %v5643_v15, %v5644_v60  ;;  %5717 = vmin.xlane.f32.xlu0 %v12323_v0  ;;  %v5500_v16 = vshll.u32 %v5499_v11, 16 }
0x1205   :  { %v5417_v13 = vpop.xlane.xlu0 %5416  ;;  %v5762_v34 = vshra.s32 %v12325_v49, 16 }
0x1206   :  { %v5418_v1 = vcvt.f32.s32 %v5417_v13 }
0x1207   :  { %v12331_v57 = vcvt.s32.f32 %v5762_v34 }
0x1208   :  { %v5421_v28 = vadd.s32 %v5420_v33, %v5418_v1  ;;  %v5465_v54 = vpop.xlane.xlu1 %5464  ;;  %v13017_v33 = vld [vmem:[#allocation14_spill] sm:$0xff] }
0x1209   :  { %v5466_v39 = vcvt.f32.s32 %v5465_v54  ;;  %5765 = vmin.xlane.f32.xlu1 %v12331_v57 }
0x120a   :  { %v12338_v44 = vsel %vm5582_vm7, %v5421_v28, %v11990_v27  ;;  %vm5609_vm1 = vcmp.gt.s32.totalorder %v11992_v32, %v5421_v28  ;;  %vm5610_vm2 = vcmp.gt.s32.totalorder %v6316_v59, %v5421_v28  ;;  %v5449_v42 = vpop.xlane.xlu0 %5448  ;;  %v6317_v27 = vld [vmem:[#allocation2] sm:$0xff] }
0x120b   :  { %v5469_v5 = vadd.s32 %v5468_v22, %v5466_v39  ;;  %v5450_v2 = vcvt.f32.s32 %v5449_v42  ;;  %v5641_v14 = vsel %vm5609_vm1, %v11992_v32, 2147483647  ;;  %v5642_v3 = vsel %vm5610_vm2, %v6316_v59, 2147483647 }
0x120c   :  { %v5497_v21 = vpop.xlane.xlu1 %5496  ;;  %vm5743_vm12 = vcmp.lt.s32.totalorder %v5641_v14, %v5642_v3  ;;  %v5483_v59 = vcvt.f32.s32 %v12217_v38 }
0x120d   :  { %v12345_v56 = vsel %vm5582_vm7, %v5469_v5, %v12002_v26  ;;  %vm5615_vm5 = vcmp.gt.s32.totalorder %v12004_v18, %v5469_v5  ;;  %vm5616_vm4 = vcmp.gt.s32.totalorder %v6317_v27, %v5469_v5  ;;  %v5453_v46 = vadd.s32 %v5452_v55, %v5450_v2  ;;  %v6318_v26 = vld [vmem:[#allocation2 + $0x98] sm:$0xff] }
0x120e   :  { %v5498_v30 = vcvt.f32.s32 %v5497_v21  ;;  %v12348_v40 = vsel %vm5743_vm12, %v5641_v14, %v5642_v3  ;;  %v5647_v45 = vsel %vm5615_vm5, %v12004_v18, 2147483647  ;;  %v5648_v32 = vsel %vm5616_vm4, %v6317_v27, 2147483647 }
0x120f   :  { %v12354_v43 = vsel %vm5582_vm7, %v5453_v46, %v12015_v47  ;;  %vm5613_vm0 = vcmp.gt.s32.totalorder %v12017_v50, %v5453_v46  ;;  %vm5614_vm8 = vcmp.gt.s32.totalorder %v6318_v26, %v5453_v46  ;;  %v5746_v15 = vshra.s32 %v12348_v40, 16 }
0x1210   :  { %v5501_v60 = vadd.s32 %v5500_v16, %v5498_v30  ;;  %vm5791_vm9 = vcmp.lt.s32.totalorder %v5647_v45, %v5648_v32  ;;  %v5645_v6 = vsel %vm5613_vm0, %v12017_v50, 2147483647  ;;  %v5646_v13 = vsel %vm5614_vm8, %v6318_v26, 2147483647 }
0x1211   :  { %v12359_v34 = vcvt.s32.f32 %v5746_v15  ;;  %v12361_v18 = vsel %vm5791_vm9, %v5647_v45, %v5648_v32  ;;  %vm5775_vm3 = vcmp.lt.s32.totalorder %v5645_v6, %v5646_v13  ;;  %v5531_v5 = vcvt.f32.s32 %v12223_v35  ;;  %v13018_v45 = vld [vmem:[#allocation9_spill] sm:$0xff] }
0x1212   :  { %v12366_v47 = vsel %vm5582_vm7, %v5501_v60, %v12031_v4  ;;  %vm5619_vm11 = vcmp.gt.s32.totalorder %v13017_v33, %v5501_v60  ;;  %vm5620_vm13 = vcmp.gt.s32.totalorder %v6319_v52, %v5501_v60  ;;  %v5794_v1 = vshra.s32 %v12361_v18, 16  ;;  %v6320_v32 = vld [vmem:[#allocation2 + $0x10] sm:$0xff] }
0x1213   :  { %5749 = vmin.xlane.f32.xlu0 %v12359_v34  ;;  %v12371_v50 = vsel %vm5775_vm3, %v5645_v6, %v5646_v13  ;;  %v5651_v11 = vsel %vm5619_vm11, %v13017_v33, 2147483647  ;;  %v5652_v28 = vsel %vm5620_vm13, %v6319_v52, 2147483647  ;;  %v5484_v14 = vshll.u32 %v5483_v59, 16 }
0x1214   :  { %v12374_v54 = vcvt.s32.f32 %v5794_v1  ;;  %v5778_v22 = vshra.s32 %v12371_v50, 16  ;;  %vm5823_vm6 = vcmp.lt.s32.totalorder %v5651_v11, %v5652_v28  ;;  %v5532_v21 = vshll.u32 %v5531_v5, 16 }
0x1215   :  { %v12377_v4 = vsel %vm5823_vm6, %v5651_v11, %v5652_v28  ;;  %v5515_v27 = vcvt.f32.s32 %v12228_v9  ;;  %v5563_v46 = vcvt.f32.s32 %v12233_v58  ;;  %v5547_v60 = vcvt.f32.s32 %v12237_v7  ;;  %v13019_v28 = vld [vmem:[#allocation15_spill] sm:$0xff] }
0x1216   :  { %5797 = vmin.xlane.f32.xlu1 %v12374_v54  ;;  %v12380_v39 = vcvt.s32.f32 %v5778_v22  ;;  %v5826_v55 = vshra.s32 %v12377_v4, 16  ;;  %v5579_v9 = vcvt.f32.s32 %v12242_v37 }
0x1217   :  { %v5516_v13 = vshll.u32 %v5515_v27, 16  ;;  %v5564_v33 = vshll.u32 %v5563_v46, 16  ;;  %v13021_v46 = vld [vmem:[#allocation16_spill] sm:$0xff] }
0x1218   :  { %5781 = vmin.xlane.f32.xlu0 %v12380_v39  ;;  %v12385_v42 = vcvt.s32.f32 %v5826_v55 }
0x121a   :  { %5829 = vmin.xlane.f32.xlu1 %v12385_v42 }
0x121c   :  { %v5481_v2 = vpop.xlane.xlu0 %5480 }
0x121d   :  { %v5482_v3 = vcvt.f32.s32 %v5481_v2  ;;  %v5548_v2 = vshll.u32 %v5547_v60, 16 }
0x121f   :  { %v5485_v16 = vadd.s32 %v5484_v14, %v5482_v3  ;;  %v5580_v14 = vshll.u32 %v5579_v9, 16 }
0x1220   :  { %v5529_v30 = vpop.xlane.xlu1 %5528 }
0x1221   :  { %v12394_v38 = vsel %vm5582_vm7, %v5485_v16, %v13018_v45  ;;  %vm5617_vm14 = vcmp.gt.s32.totalorder %v12065_v20, %v5485_v16  ;;  %vm5618_vm15 = vcmp.gt.s32.totalorder %v6320_v32, %v5485_v16  ;;  %v5530_v35 = vcvt.f32.s32 %v5529_v30  ;;  %v6322_v30 = vld [vmem:[#allocation2 + $0x70] sm:$0xff] }
0x1222   :  { %v5649_v26 = vsel %vm5617_vm14, %v12065_v20, 2147483647  ;;  %v5650_v15 = vsel %vm5618_vm15, %v6320_v32, 2147483647  ;;  %v6321_v20 = vld [vmem:[#allocation2 + $0xc8] sm:$0xff] }
0x1223   :  { %v5533_v6 = vadd.s32 %v5532_v21, %v5530_v35  ;;  %v5513_v58 = vpop.xlane.xlu0 %5512  ;;  %vm5807_vm10 = vcmp.lt.s32.totalorder %v5649_v26, %v5650_v15  ;;  %v13020_v21 = vld [vmem:[#allocation11_spill] sm:$0xff]  ;;  %v13022_v32 = vld [vmem:[#allocation12_spill] sm:$0xff]  ;;  %v13023_v35 = vld [vmem:[#allocation17_spill] sm:$0xff] }
0x1224   :  { %v5514_v52 = vcvt.f32.s32 %v5513_v58  ;;  %v5561_v1 = vpop.xlane.xlu1 %5560  ;;  %v12400_v11 = vsel %vm5807_vm10, %v5649_v26, %v5650_v15  ;;  %v6323_v26 = vld [vmem:[#allocation2 + $0x18] sm:$0xff] }
0x1225   :  { %v12405_v22 = vsel %vm5582_vm7, %v5533_v6, %v13019_v28  ;;  %vm5623_vm1 = vcmp.gt.s32.totalorder %v12080_v29, %v5533_v6  ;;  %vm5624_vm2 = vcmp.gt.s32.totalorder %v6321_v20, %v5533_v6  ;;  %v5562_v7 = vcvt.f32.s32 %v5561_v1  ;;  %v13024_v28 = vld [vmem:[#allocation13_spill] sm:$0xff] }
0x1226   :  { %v5517_v37 = vadd.s32 %v5516_v13, %v5514_v52  ;;  %v5810_v55 = vshra.s32 %v12400_v11, 16  ;;  %v5655_v59 = vsel %vm5623_vm1, %v12080_v29, 2147483647  ;;  %v5656_v5 = vsel %vm5624_vm2, %v6321_v20, 2147483647 }
0x1227   :  { %v5565_v3 = vadd.s32 %v5564_v33, %v5562_v7  ;;  %v5545_v16 = vpop.xlane.xlu0 %5544  ;;  %vm5855_vm12 = vcmp.lt.s32.totalorder %v5655_v59, %v5656_v5  ;;  %v6324_v7 = vld [vmem:[#allocation2 + $0xe0] sm:$0xff] }
0x1228   :  { %v12413_v27 = vsel %vm5582_vm7, %v5517_v37, %v13020_v21  ;;  %vm5621_vm5 = vcmp.gt.s32.totalorder %v13021_v46, %v5517_v37  ;;  %vm5622_vm4 = vcmp.gt.s32.totalorder %v6322_v30, %v5517_v37  ;;  %v5546_v45 = vcvt.f32.s32 %v5545_v16 }
0x1229   :  { %v12419_v29 = vsel %vm5582_vm7, %v5565_v3, %v13022_v32  ;;  %vm5627_vm0 = vcmp.gt.s32.totalorder %v13023_v35, %v5565_v3  ;;  %vm5628_vm8 = vcmp.gt.s32.totalorder %v6323_v26, %v5565_v3  ;;  %v12422_v15 = vcvt.s32.f32 %v5810_v55  ;;  %v13026_v32 = vld [vmem:[#allocation21_spill] sm:$0xff] }
0x122a   :  { %v5549_v60 = vadd.s32 %v5548_v2, %v5546_v45  ;;  %v12424_v9 = vsel %vm5855_vm12, %v5655_v59, %v5656_v5  ;;  %v5653_v6 = vsel %vm5621_vm5, %v13021_v46, 2147483647  ;;  %v5654_v58 = vsel %vm5622_vm4, %v6322_v30, 2147483647  ;;  %v13025_v30 = vld [vmem:[#allocation20_spill] sm:$0xff] }
0x122b   :  { %v5577_v13 = vpop.xlane.xlu0 %5576  ;;  %5813 = vmin.xlane.f32.xlu0 %v12422_v15  ;;  %v5858_v33 = vshra.s32 %v12424_v9, 16  ;;  %vm5839_vm9 = vcmp.lt.s32.totalorder %v5653_v6, %v5654_v58  ;;  %v5659_v52 = vsel %vm5627_vm0, %v13023_v35, 2147483647  ;;  %v5660_v1 = vsel %vm5628_vm8, %v6323_v26, 2147483647  ;;  %v13027_v35 = vld [vmem:[#allocation18_spill] sm:$0xff] }
0x122c   :  { %v12433_v20 = vsel %vm5582_vm7, %v5549_v60, %v13024_v28  ;;  %vm5625_vm3 = vcmp.gt.s32.totalorder %v12120_v36, %v5549_v60  ;;  %vm5626_vm11 = vcmp.gt.s32.totalorder %v6324_v7, %v5549_v60  ;;  %v5578_v37 = vcvt.f32.s32 %v5577_v13 }
0x122d   :  { %v12436_v55 = vcvt.s32.f32 %v5858_v33  ;;  %v12438_v59 = vsel %vm5839_vm9, %v5653_v6, %v5654_v58  ;;  %vm5887_vm13 = vcmp.lt.s32.totalorder %v5659_v52, %v5660_v1  ;;  %v5657_v5 = vsel %vm5625_vm3, %v12120_v36, 2147483647 }
0x122e   :  { %v5581_v2 = vadd.s32 %v5580_v14, %v5578_v37  ;;  %v5842_v3 = vshra.s32 %v12438_v59, 16  ;;  %v12442_v16 = vsel %vm5887_vm13, %v5659_v52, %v5660_v1  ;;  %v5658_v21 = vsel %vm5626_vm11, %v6324_v7, 2147483647 }
0x122f   :  { %5861 = vmin.xlane.f32.xlu1 %v12436_v55  ;;  %v5890_v46 = vshra.s32 %v12442_v16, 16  ;;  %vm5871_vm6 = vcmp.lt.s32.totalorder %v5657_v5, %v5658_v21  ;;  %v5665_v28 = vand.u32 65535, %v12262_v8  ;;  %v5681_v7 = vand.u32 65535, %v12266_v12 }
0x1230   :  { %v12449_v45 = vsel %vm5582_vm7, %v5581_v2, %v13025_v30  ;;  %vm5629_vm14 = vcmp.gt.s32.totalorder %v13026_v32, %v5581_v2  ;;  %vm5630_vm15 = vcmp.gt.s32.totalorder %v13027_v35, %v5581_v2  ;;  %v12453_v36 = vcvt.s32.f32 %v5842_v3 }
0x1231   :  { %v12455_v14 = vcvt.s32.f32 %v5890_v46  ;;  %v12457_v26 = vsel %vm5871_vm6, %v5657_v5, %v5658_v21  ;;  %v5661_v60 = vsel %vm5629_vm14, %v13026_v32, 2147483647  ;;  %v5662_v6 = vsel %vm5630_vm15, %v13027_v35, 2147483647 }
0x1232   :  { %5845 = vmin.xlane.f32.xlu0 %v12453_v36  ;;  %v5874_v58 = vshra.s32 %v12457_v26, 16  ;;  %vm5903_vm7 = vcmp.lt.s32.totalorder %v5661_v60, %v5662_v6  ;;  %v5667_v5 = vcvt.s32.f32 %v5665_v28  ;;  %v5683_v21 = vcvt.s32.f32 %v5681_v7 }
0x1233   :  { %5893 = vmin.xlane.f32.xlu1 %v12455_v14  ;;  %v12464_v13 = vsel %vm5903_vm7, %v5661_v60, %v5662_v6  ;;  %v5697_v8 = vand.u32 65535, %v12284_v53  ;;  %v5713_v6 = vand.u32 65535, %v12318_v10  ;;  %v5761_v53 = vand.u32 65535, %v12325_v49 }
0x1234   :  { %v12466_v33 = vcvt.s32.f32 %v5874_v58  ;;  %v5906_v52 = vshra.s32 %v12464_v13, 16  ;;  %v5745_v10 = vand.u32 65535, %v12348_v40  ;;  %v5793_v49 = vand.u32 65535, %v12361_v18 }
0x1235   :  { %v5699_v12 = vcvt.s32.f32 %v5697_v8  ;;  %v5763_v28 = vcvt.s32.f32 %v5761_v53 }
0x1236   :  { %5877 = vmin.xlane.f32.xlu0 %v12466_v33  ;;  %v12470_v1 = vcvt.s32.f32 %v5906_v52  ;;  %v5715_v52 = vcvt.s32.f32 %v5713_v6 }
0x123a   :  { %5909 = vmin.xlane.f32.xlu0 %v12470_v1 }
0x1271   :  { %v12475_v37 = vpop.xlane.xlu1 %5669 }
0x1272   :  { %vm5671_vm10 = vcmp.eq.f32.partialorder %v12269_v61, %v12475_v37  ;;  %v5729_v61 = vand.u32 65535, %v12299_v23 }
0x1273   :  { %v12479_v2 = vpop.xlane.xlu0 %5685  ;;  %v5672_v3 = vsel %vm5671_vm10, %v5667_v5, inf  ;;  %v5747_v5 = vcvt.s32.f32 %v5745_v10  ;;  %v5905_v10 = vand.u32 65535, %v12464_v13  ;;  %vm5919_vm10 = vcmp.eq.s32.totalorder %v6476_v51, 15 }
0x1274   :  { %vm5687_vm1 = vcmp.eq.f32.partialorder %v12273_v25, %v12479_v2  ;;  %5673 = vmin.xlane.f32.xlu1 %v5672_v3  ;;  %v5731_v60 = vcvt.s32.f32 %v5729_v61 }
0x1275   :  { %v5688_v46 = vsel %vm5687_vm1, %v5683_v21, inf }
0x1276   :  { %5689 = vmin.xlane.f32.xlu0 %v5688_v46  ;;  %v5795_v46 = vcvt.s32.f32 %v5793_v49  ;;  %v5907_v49 = vcvt.s32.f32 %v5905_v10 }
0x127c   :  { %v12484_v30 = vpop.xlane.xlu1 %5701 }
0x127d   :  { %vm5703_vm2 = vcmp.eq.f32.partialorder %v12287_v63, %v12484_v30 }
0x127e   :  { %v5704_v32 = vsel %vm5703_vm2, %v5699_v12, inf }
0x127f   :  { %5705 = vmin.xlane.f32.xlu1 %v5704_v32 }
0x1288   :  { %v12489_v35 = vpop.xlane.xlu1 %5733 }
0x1289   :  { %vm5735_vm12 = vcmp.eq.f32.partialorder %v12308_v62, %v12489_v35 }
0x128a   :  { %v5736_v25 = vsel %vm5735_vm12, %v5731_v60, inf  ;;  %v5857_v60 = vand.u32 65535, %v12424_v9 }
0x128b   :  { %5737 = vmin.xlane.f32.xlu1 %v5736_v25  ;;  %v5841_v25 = vand.u32 65535, %v12438_v59 }
0x128c   :  { %v5859_v53 = vcvt.s32.f32 %v5857_v60 }
0x128d   :  { %v12495_v58 = vpop.xlane.xlu0 %5717  ;;  %v5843_v9 = vcvt.s32.f32 %v5841_v25 }
0x128e   :  { %vm5719_vm5 = vcmp.eq.f32.partialorder %v12323_v0, %v12495_v58  ;;  %v5777_v0 = vand.u32 65535, %v12371_v50 }
0x128f   :  { %v5720_v63 = vsel %vm5719_vm5, %v5715_v52, inf }
0x1290   :  { %5721 = vmin.xlane.f32.xlu0 %v5720_v63  ;;  %v5779_v8 = vcvt.s32.f32 %v5777_v0  ;;  %v5873_v63 = vand.u32 65535, %v12457_v26  ;;  %v5692_v0 = vcvt.f32.s32 %v12479_v2  ;;  %v5708_v2 = vcvt.f32.s32 %v12484_v30 }
0x1292   :  { %v12499_v23 = vpop.xlane.xlu1 %5765 }
0x1293   :  { %vm5767_vm4 = vcmp.eq.f32.partialorder %v12331_v57, %v12499_v23  ;;  %v5825_v57 = vand.u32 65535, %v12377_v4 }
0x1294   :  { %v5768_v62 = vsel %vm5767_vm4, %v5763_v28, inf }
0x1295   :  { %5769 = vmin.xlane.f32.xlu1 %v5768_v62  ;;  %v5827_v12 = vcvt.s32.f32 %v5825_v57  ;;  %v5875_v62 = vcvt.s32.f32 %v5873_v63  ;;  %v5693_v57 = vshll.u32 %v5692_v0, 16 }
0x129c   :  { %v12505_v7 = vpop.xlane.xlu0 %5749 }
0x129d   :  { %vm5751_vm0 = vcmp.eq.f32.partialorder %v12359_v34, %v12505_v7 }
0x129e   :  { %v5752_v3 = vsel %vm5751_vm0, %v5747_v5, inf  ;;  %v5676_v5 = vcvt.f32.s32 %v12475_v37 }
0x129f   :  { %5753 = vmin.xlane.f32.xlu0 %v5752_v3  ;;  %v12510_v21 = vpop.xlane.xlu1 %5797 }
0x12a0   :  { %vm5799_vm8 = vcmp.eq.f32.partialorder %v12374_v54, %v12510_v21  ;;  %v5809_v54 = vand.u32 65535, %v12400_v11  ;;  %v5804_v10 = vcvt.f32.s32 %v12510_v21 }
0x12a1   :  { %v12515_v40 = vpop.xlane.xlu0 %5781  ;;  %v5800_v18 = vsel %vm5799_vm8, %v5795_v46, inf  ;;  %v5677_v46 = vshll.u32 %v5676_v5, 16 }
0x12a2   :  { %vm5783_vm9 = vcmp.eq.f32.partialorder %v12380_v39, %v12515_v40  ;;  %5801 = vmin.xlane.f32.xlu1 %v5800_v18  ;;  %v5811_v61 = vcvt.s32.f32 %v5809_v54  ;;  %v5788_v5 = vcvt.f32.s32 %v12515_v40 }
0x12a3   :  { %v5784_v34 = vsel %vm5783_vm9, %v5779_v8, inf  ;;  %v12519_v50 = vpop.xlane.xlu1 %5829 }
0x12a4   :  { %5785 = vmin.xlane.f32.xlu0 %v5784_v34  ;;  %vm5831_vm3 = vcmp.eq.f32.partialorder %v12385_v42, %v12519_v50  ;;  %v5889_v42 = vand.u32 65535, %v12442_v16 }
0x12a5   :  { %v5832_v4 = vsel %vm5831_vm3, %v5827_v12, inf }
0x12a6   :  { %5833 = vmin.xlane.f32.xlu1 %v5832_v4  ;;  %v5891_v59 = vcvt.s32.f32 %v5889_v42  ;;  %v5709_v4 = vshll.u32 %v5708_v2, 16  ;;  %v5724_v42 = vcvt.f32.s32 %v12495_v58 }
0x12a8   :  { %v5725_v63 = vshll.u32 %v5724_v42, 16 }
0x12b4   :  { %v12524_v32 = vpop.xlane.xlu0 %5813 }
0x12b5   :  { %vm5815_vm11 = vcmp.eq.f32.partialorder %v12422_v15, %v12524_v32  ;;  %v5820_v2 = vcvt.f32.s32 %v12524_v32 }
0x12b6   :  { %v5816_v39 = vsel %vm5815_vm11, %v5811_v61, inf }
0x12b7   :  { %5817 = vmin.xlane.f32.xlu0 %v5816_v39 }
0x12b8   :  { %v12530_v6 = vpop.xlane.xlu1 %5861 }
0x12b9   :  { %vm5863_vm13 = vcmp.eq.f32.partialorder %v12436_v55, %v12530_v6 }
0x12ba   :  { %v5864_v11 = vsel %vm5863_vm13, %v5859_v53, inf }
0x12bb   :  { %v12535_v52 = vpop.xlane.xlu0 %5845  ;;  %5865 = vmin.xlane.f32.xlu1 %v5864_v11  ;;  %v5772_v11 = vcvt.f32.s32 %v12499_v23  ;;  %v5756_v23 = vcvt.f32.s32 %v12505_v7 }
0x12bc   :  { %vm5847_vm6 = vcmp.eq.f32.partialorder %v12453_v36, %v12535_v52  ;;  %v12540_v15 = vpop.xlane.xlu1 %5893 }
0x12bd   :  { %v5848_v28 = vsel %vm5847_vm6, %v5843_v9, inf  ;;  %vm5895_vm14 = vcmp.eq.f32.partialorder %v12455_v14, %v12540_v15 }
0x12be   :  { %5849 = vmin.xlane.f32.xlu0 %v5848_v28  ;;  %v5896_v16 = vsel %vm5895_vm14, %v5891_v59, inf }
0x12bf   :  { %v12544_v55 = vpop.xlane.xlu0 %5877  ;;  %5897 = vmin.xlane.f32.xlu1 %v5896_v16  ;;  %v5773_v16 = vshll.u32 %v5772_v11, 16 }
0x12c0   :  { %vm5879_vm15 = vcmp.eq.f32.partialorder %v12466_v33, %v12544_v55 }
0x12c1   :  { %v5880_v26 = vsel %vm5879_vm15, %v5875_v62, inf }
0x12c2   :  { %5881 = vmin.xlane.f32.xlu0 %v5880_v26 }
0x12c3   :  { %v12549_v36 = vpop.xlane.xlu0 %5909 }
0x12c4   :  { %vm5911_vm7 = vcmp.eq.f32.partialorder %v12470_v1, %v12549_v36 }
0x12c5   :  { %v5912_v14 = vsel %vm5911_vm7, %v5907_v49, inf  ;;  %v5757_v49 = vshll.u32 %v5756_v23, 16 }
0x12c6   :  { %5913 = vmin.xlane.f32.xlu0 %v5912_v14 }
0x12fd   :  { %v5674_v3 = vpop.xlane.xlu1 %5673 }
0x12fe   :  { %v5675_v13 = vcvt.f32.s32 %v5674_v3 }
0x12ff   :  { %v5690_v33 = vpop.xlane.xlu0 %5689 }
0x1300   :  { %v5678_v18 = vadd.s32 %v5677_v46, %v5675_v13  ;;  %v5691_v8 = vcvt.f32.s32 %v5690_v33  ;;  %v5805_v46 = vshll.u32 %v5804_v10, 16 }
0x1302   :  { %v5920_v34 = vsel %vm5919_vm10, %v5678_v18, %v12252_v17  ;;  %v5694_v1 = vadd.s32 %v5693_v57, %v5691_v8  ;;  %v5740_v17 = vcvt.f32.s32 %v12489_v35  ;;  %v5789_v57 = vshll.u32 %v5788_v5, 16 }
0x1303   :  { %5936 = vst [vmem:[#allocation2 + $0x60] sm:$0xff] %v5920_v34 }
0x1304   :  { %v5921_v37 = vsel %vm5919_vm10, %v5694_v1, %v12259_v31  ;;  %v5741_v25 = vshll.u32 %v5740_v17, 16 }
0x1305   :  { %5937 = vst [vmem:[#allocation2 + $0x8] sm:$0xff] %v5921_v37 }
0x1308   :  { %v5706_v12 = vpop.xlane.xlu1 %5705 }
0x1309   :  { %v5707_v54 = vcvt.f32.s32 %v5706_v12 }
0x130b   :  { %v5710_v61 = vadd.s32 %v5709_v4, %v5707_v54  ;;  %v5821_v4 = vshll.u32 %v5820_v2, 16 }
0x130d   :  { %v5922_v60 = vsel %vm5919_vm10, %v5710_v61, %v12279_v41 }
0x130e   :  { %5938 = vst [vmem:[#allocation2 + $0xb0] sm:$0xff] %v5922_v60  ;;  %v5852_v60 = vcvt.f32.s32 %v12535_v52 }
0x1310   :  { %v5853_v42 = vshll.u32 %v5852_v60, 16 }
0x1314   :  { %v5738_v39 = vpop.xlane.xlu1 %5737 }
0x1315   :  { %v5739_v53 = vcvt.f32.s32 %v5738_v39 }
0x1317   :  { %v5742_v31 = vadd.s32 %v5741_v25, %v5739_v53 }
0x1319   :  { %v5924_v30 = vsel %vm5919_vm10, %v5742_v31, %v12294_v19  ;;  %v5722_v9 = vpop.xlane.xlu0 %5721  ;;  %v5884_v31 = vcvt.f32.s32 %v12544_v55 }
0x131a   :  { %5940 = vst [vmem:[#allocation2 + $0xa8] sm:$0xff] %v5924_v30  ;;  %v5723_v59 = vcvt.f32.s32 %v5722_v9 }
0x131c   :  { %v5726_v41 = vadd.s32 %v5725_v63, %v5723_v59 }
0x131e   :  { %v5770_v28 = vpop.xlane.xlu1 %5769  ;;  %v5923_v62 = vsel %vm5919_vm10, %v5726_v41, %v12305_v24  ;;  %v5836_v24 = vcvt.f32.s32 %v12519_v50  ;;  %v5916_v41 = vcvt.f32.s32 %v12549_v36 }
0x131f   :  { %v5771_v35 = vcvt.f32.s32 %v5770_v28  ;;  %5939 = vst [vmem:[#allocation2 + $0x38] sm:$0xff] %v5923_v62 }
0x1320   :  { %v5837_v8 = vshll.u32 %v5836_v24, 16  ;;  %v5917_v62 = vshll.u32 %v5916_v41, 16 }
0x1321   :  { %v5774_v58 = vadd.s32 %v5773_v16, %v5771_v35 }
0x1323   :  { %v5926_v19 = vsel %vm5919_vm10, %v5774_v58, %v12315_v48 }
0x1324   :  { %5942 = vst [vmem:[#allocation2 + $0x68] sm:$0xff] %v5926_v19 }
0x1328   :  { %v5754_v26 = vpop.xlane.xlu0 %5753 }
0x1329   :  { %v5755_v14 = vcvt.f32.s32 %v5754_v26 }
0x132b   :  { %v5758_v0 = vadd.s32 %v5757_v49, %v5755_v14  ;;  %v5802_v3 = vpop.xlane.xlu1 %5801 }
0x132c   :  { %v5803_v13 = vcvt.f32.s32 %v5802_v3 }
0x132d   :  { %v5925_v48 = vsel %vm5919_vm10, %v5758_v0, %v12338_v44  ;;  %v5786_v33 = vpop.xlane.xlu0 %5785 }
0x132e   :  { %5941 = vst [vmem:[#allocation2 + $0xd8] sm:$0xff] %v5925_v48  ;;  %v5806_v7 = vadd.s32 %v5805_v46, %v5803_v13  ;;  %v5787_v21 = vcvt.f32.s32 %v5786_v33 }
0x132f   :  { %v5834_v18 = vpop.xlane.xlu1 %5833 }
0x1330   :  { %v5928_v40 = vsel %vm5919_vm10, %v5806_v7, %v12345_v56  ;;  %v5790_v34 = vadd.s32 %v5789_v57, %v5787_v21  ;;  %v5835_v1 = vcvt.f32.s32 %v5834_v18  ;;  %v5868_v56 = vcvt.f32.s32 %v12530_v6 }
0x1331   :  { %5944 = vst [vmem:[#allocation2] sm:$0xff] %v5928_v40 }
0x1332   :  { %v5927_v50 = vsel %vm5919_vm10, %v5790_v34, %v12354_v43  ;;  %v5838_v37 = vadd.s32 %v5837_v8, %v5835_v1  ;;  %v5869_v39 = vshll.u32 %v5868_v56, 16  ;;  %v5900_v43 = vcvt.f32.s32 %v12540_v15 }
0x1333   :  { %5943 = vst [vmem:[#allocation2 + $0x98] sm:$0xff] %v5927_v50 }
0x1334   :  { %v5930_v44 = vsel %vm5919_vm10, %v5838_v37, %v12366_v47  ;;  %v5901_v11 = vshll.u32 %v5900_v43, 16 }
0x1335   :  { %5946 = vst [vmem:[#allocation2 + $0xd0] sm:$0xff] %v5930_v44 }
0x1340   :  { %v5818_v12 = vpop.xlane.xlu0 %5817 }
0x1341   :  { %v5819_v54 = vcvt.f32.s32 %v5818_v12 }
0x1343   :  { %v5822_v61 = vadd.s32 %v5821_v4, %v5819_v54 }
0x1344   :  { %v5866_v17 = vpop.xlane.xlu1 %5865 }
0x1345   :  { %v5929_v25 = vsel %vm5919_vm10, %v5822_v61, %v12394_v38  ;;  %v5867_v47 = vcvt.f32.s32 %v5866_v17  ;;  %v5885_v38 = vshll.u32 %v5884_v31, 16 }
0x1346   :  { %5945 = vst [vmem:[#allocation2 + $0x10] sm:$0xff] %v5929_v25 }
0x1347   :  { %v5870_v53 = vadd.s32 %v5869_v39, %v5867_v47  ;;  %v5850_v32 = vpop.xlane.xlu0 %5849 }
0x1348   :  { %v5851_v6 = vcvt.f32.s32 %v5850_v32  ;;  %v5898_v30 = vpop.xlane.xlu1 %5897 }
0x1349   :  { %v5932_v52 = vsel %vm5919_vm10, %v5870_v53, %v12405_v22  ;;  %v5899_v9 = vcvt.f32.s32 %v5898_v30 }
0x134a   :  { %5948 = vst [vmem:[#allocation2 + $0xc8] sm:$0xff] %v5932_v52  ;;  %v5854_v15 = vadd.s32 %v5853_v42, %v5851_v6 }
0x134b   :  { %v5902_v63 = vadd.s32 %v5901_v11, %v5899_v9  ;;  %v5882_v59 = vpop.xlane.xlu0 %5881 }
0x134c   :  { %v5931_v28 = vsel %vm5919_vm10, %v5854_v15, %v12413_v27  ;;  %v5883_v55 = vcvt.f32.s32 %v5882_v59 }
0x134d   :  { %5947 = vst [vmem:[#allocation2 + $0x70] sm:$0xff] %v5931_v28  ;;  %v5934_v16 = vsel %vm5919_vm10, %v5902_v63, %v12419_v29 }
0x134e   :  { %5950 = vst [vmem:[#allocation2 + $0x18] sm:$0xff] %v5934_v16  ;;  %v5886_v22 = vadd.s32 %v5885_v38, %v5883_v55 }
0x134f   :  { %v5914_v35 = vpop.xlane.xlu0 %5913 }
0x1350   :  { %v5933_v58 = vsel %vm5919_vm10, %v5886_v22, %v12433_v20  ;;  %v5915_v19 = vcvt.f32.s32 %v5914_v35 }
0x1351   :  { %5949 = vst [vmem:[#allocation2 + $0xe0] sm:$0xff] %v5933_v58 }
0x1352   :  { %v5918_v36 = vadd.s32 %v5917_v62, %v5915_v19 }
0x1354   :  { %v5935_v27 = vsel %vm5919_vm10, %v5918_v36, %v12449_v45 }
0x1355   :  { %5951 = vst [vmem:[#allocation2 + $0xf8] sm:$0xff] %v5935_v27 }
0x1356 PF:  { %v5955_v23 = vld [vmem:[#allocation2 + $0x60] sm:$0xff]  ;;  %v5956_v10 = vld [vmem:[#allocation2 + $0x8] sm:$0xff]  ;;  %v5957_v49 = vld [vmem:[#allocation2 + $0xb0] sm:$0xff]  ;;  %s6351_s3 = smov [#allocation6]  }
0x1357   :  { %vm5971_vm1 = vcmp.eq.s32.totalorder %v5955_v23, 2147483647  ;;  %v5987_v29 = vand.u32 127, %v5955_v23  ;;  %v5988_v26 = vand.u32 127, %v5956_v10  ;;  %vm5972_vm2 = vcmp.eq.s32.totalorder %v5956_v10, 2147483647 }
0x1358   :  { %v5989_v20 = vand.u32 127, %v5957_v49  ;;  %vm5973_vm12 = vcmp.eq.s32.totalorder %v5957_v49, 2147483647  ;;  %v5958_v0 = vld [vmem:[#allocation2 + $0x38] sm:$0xff]  ;;  %v5959_v51 = vld [vmem:[#allocation2 + $0xa8] sm:$0xff]  ;;  %s6058_s27 = sshll.u32 %s6351_s3, 4  ;;  %s6059_s27 = int_to_ptr.vmem [resolvable:$true] %s6058_s27 }
0x1359   :  { %v6003_v14 = vsel %vm5971_vm1, 4294967295, %v5987_v29  ;;  %v6004_v5 = vsel %vm5972_vm2, 4294967295, %v5988_v26  ;;  %v5990_v46 = vand.u32 127, %v5958_v0  ;;  %vm5974_vm5 = vcmp.eq.s32.totalorder %v5958_v0, 2147483647  ;;  %v5960_v13 = vld [vmem:[#allocation2 + $0xd8] sm:$0xff]  ;;  %p6330_p2 = scmp.lt.s32.totalorder %s6059_s27, %s6059_s27 }
0x135a   :  { %6019 = vxpose.xlu0.b32.start [1/16] (narrow) %v6003_v14, 16  ;;  %v6005_v3 = vsel %vm5973_vm12, 4294967295, %v5989_v20  ;;  %v5991_v24 = vand.u32 127, %v5959_v51  ;;  %vm5975_vm4 = vcmp.eq.s32.totalorder %v5959_v51, 2147483647  ;;  %v5992_v33 = vand.u32 127, %v5960_v13 }
0x135b   :  { %v6006_v45 = vsel %vm5974_vm5, 4294967295, %v5990_v46  ;;  %vm5976_vm0 = vcmp.eq.s32.totalorder %v5960_v13, 2147483647  ;;  %v5961_v57 = vld [vmem:[#allocation2 + $0x68] sm:$0xff]  ;;  %v5962_v18 = vld [vmem:[#allocation2 + $0x98] sm:$0xff]  ;;  %v5963_v34 = vld [vmem:[#allocation2] sm:$0xff] }
0x135c   :  { %v6007_v48 = vsel %vm5975_vm4, 4294967295, %v5991_v24  ;;  %v6008_v7 = vsel %vm5976_vm0, 4294967295, %v5992_v33  ;;  %v5993_v21 = vand.u32 127, %v5961_v57  ;;  %vm5977_vm8 = vcmp.eq.s32.totalorder %v5961_v57, 2147483647  ;;  %v5964_v37 = vld [vmem:[#allocation2 + $0x10] sm:$0xff] }
0x135d   :  { %v5994_v40 = vand.u32 127, %v5962_v18  ;;  %vm5978_vm9 = vcmp.eq.s32.totalorder %v5962_v18, 2147483647  ;;  %v5995_v50 = vand.u32 127, %v5963_v34  ;;  %vm5979_vm3 = vcmp.eq.s32.totalorder %v5963_v34, 2147483647 }
0x135e   :  { %6020 = vxpose.xlu0.b32.cont [2/16] (narrow) %v6004_v5, 16  ;;  %v6009_v8 = vsel %vm5977_vm8, 4294967295, %v5993_v21  ;;  %v5996_v2 = vand.u32 127, %v5964_v37  ;;  %vm5980_vm11 = vcmp.eq.s32.totalorder %v5964_v37, 2147483647  ;;  %v5965_v12 = vld [vmem:[#allocation2 + $0xd0] sm:$0xff] }
0x135f   :  { %v6010_v1 = vsel %vm5978_vm9, 4294967295, %v5994_v40  ;;  %v6011_v44 = vsel %vm5979_vm3, 4294967295, %v5995_v50  ;;  %v5997_v56 = vand.u32 127, %v5965_v12  ;;  %vm5981_vm13 = vcmp.eq.s32.totalorder %v5965_v12, 2147483647  ;;  %v5966_v54 = vld [vmem:[#allocation2 + $0x70] sm:$0xff] }
0x1360   :  { %v6012_v4 = vsel %vm5980_vm11, 4294967295, %v5996_v2  ;;  %v5998_v60 = vand.u32 127, %v5966_v54  ;;  %vm5982_vm6 = vcmp.eq.s32.totalorder %v5966_v54, 2147483647  ;;  %v5967_v17 = vld [vmem:[#allocation2 + $0xc8] sm:$0xff]  ;;  %v5968_v25 = vld [vmem:[#allocation2 + $0xe0] sm:$0xff] }
0x1361   :  { %v6013_v61 = vsel %vm5981_vm13, 4294967295, %v5997_v56  ;;  %v5999_v43 = vand.u32 127, %v5967_v17  ;;  %vm5983_vm14 = vcmp.eq.s32.totalorder %v5967_v17, 2147483647  ;;  %v6000_v53 = vand.u32 127, %v5968_v25  ;;  %v5969_v32 = vld [vmem:[#allocation2 + $0x18] sm:$0xff] }
0x1362   :  { %6021 = vxpose.xlu0.b32.cont [3/16] (narrow) %v6005_v3, 16  ;;  %v6014_v39 = vsel %vm5982_vm6, 4294967295, %v5998_v60  ;;  %vm5984_vm15 = vcmp.eq.s32.totalorder %v5968_v25, 2147483647  ;;  %v6001_v31 = vand.u32 127, %v5969_v32  ;;  %v5970_v6 = vld [vmem:[#allocation2 + $0xf8] sm:$0xff] }
0x1363   :  { %v6015_v47 = vsel %vm5983_vm14, 4294967295, %v5999_v43  ;;  %v6016_v42 = vsel %vm5984_vm15, 4294967295, %v6000_v53  ;;  %vm5985_vm7 = vcmp.eq.s32.totalorder %v5969_v32, 2147483647  ;;  %v6002_v11 = vand.u32 127, %v5970_v6  ;;  %s6325_s28 = scalar_lea.vmem %s6059_s27, 256 }
0x1364   :  { %v6017_v30 = vsel %vm5985_vm7, 4294967295, %v6001_v31  ;;  %vm5986_vm10 = vcmp.eq.s32.totalorder %v5970_v6, 2147483647  ;;  %p6326_p1 = scmp.ne.s32.totalorder %s6059_s27, %s6325_s28  ;;  %p6331_p3 = scmp.lt.s32.totalorder %s6325_s28, %s6325_s28 }
0x1365   :  { %v6018_v52 = vsel %vm5986_vm10, 4294967295, %v6002_v11 }
0x1366   :  { %6022 = vxpose.xlu0.b32.cont [4/16] (narrow) %v6006_v45, 16  ;;  %p6332_p4 = por %p6331_p3, %p6330_p2 }
0x1368   :  { %p6333_p5 = pnand %p6332_p4, %p6326_p1 }
0x136a   :  { %6023 = vxpose.xlu0.b32.cont [5/16] (narrow) %v6007_v48, 16 }
0x136e   :  { %6024 = vxpose.xlu0.b32.cont [6/16] (narrow) %v6008_v7, 16 }
0x1372   :  { %6025 = vxpose.xlu0.b32.cont [7/16] (narrow) %v6009_v8, 16 }
0x1376   :  { %6026 = vxpose.xlu0.b32.cont [8/16] (narrow) %v6010_v1, 16 }
0x137a   :  { %6027 = vxpose.xlu0.b32.cont [9/16] (narrow) %v6011_v44, 16 }
0x137e   :  { %6028 = vxpose.xlu0.b32.cont [10/16] (narrow) %v6012_v4, 16 }
0x1382   :  { %6029 = vxpose.xlu0.b32.cont [11/16] (narrow) %v6013_v61, 16 }
0x1386   :  { %6030 = vxpose.xlu0.b32.cont [12/16] (narrow) %v6014_v39, 16 }
0x138a   :  { %6031 = vxpose.xlu0.b32.cont [13/16] (narrow) %v6015_v47, 16 }
0x138e   :  { %6032 = vxpose.xlu0.b32.cont [14/16] (narrow) %v6016_v42, 16 }
0x1392   :  { %6033 = vxpose.xlu0.b32.cont [15/16] (narrow) %v6017_v30, 16 }
0x1396   :  { %6034 = vxpose.xlu0.b32.end [16/16] (narrow) %v6018_v52, 16 }
0x13d6   :  { %v6035_v9 = vpop.trf.xlu0 }
0x13d7   :  { %6051 = vst [vmem:[#allocation6] sm:$0xff] %v6035_v9 }
0x13da   :  { %v6036_v15 = vpop.trf.xlu0 }
0x13db   :  { %6052 = vst [vmem:[#allocation6 + $0x8] sm:$0xff] %v6036_v15 }
0x13dc   :  { %6336 = shalt.err (!%p6333_p5)
}
0x13dd   :  { %s6352_s29 = smov 128   ;;  %s6353_s30 = smov 8  }
0x13de   :  { %6064 = dma.vmem_to_hbm [thread:$0]  %s6059_s27, 256, %s12625_s4, [#allocation7], %s6352_s29, %s6352_s29, %s6353_s30  }
0x13df   :  { %6345 = dma.done.wait [#allocation7], 256  }
0x13e0   :  { %6346 = vsyncadd [#allocation7], 4294967040 }
0x13e1   :  { %6068 = vsyncpa [#allocation7], 1 }

</bundles_post_ra>
